<compile_context>
chip_gen: v7x
topology: tpu7x:2x2x1
jax: 0.10.0
libtpu: 0.0.40
codegen_flags: <defaults>
</compile_context>

<pallas_src>
import functools

import jax
import jax.numpy as jnp
from jax.experimental import pallas as pl
from jax.experimental.pallas import tpu as pltpu

HEAD_PAD = 128          # lane-padded width of the fused value/advantage head output
_MEGACORE_SPLIT_MIN_B = 512   # only force-split the grid when compute > weight fetch


def dueling_mlp_kernel(x_ref,
                       w1_ref, b1_ref,
                       w2_ref, b2_ref,
                       w3_ref, b3_ref,
                       wh1_ref, bh1_ref,
                       wh2_ref, bh2_ref,
                       q_ref, *, n_actions):
    x = x_ref[...]  # (TB, F) bf16

    # fc1 + ReLU   (dropout1 = identity in eval mode)
    h = jnp.dot(x, w1_ref[...], preferred_element_type=jnp.float32) + b1_ref[...]
    h = jnp.maximum(h, 0.0).astype(jnp.bfloat16)

    # fc2 + ReLU   (dropout2 = identity)
    h = jnp.dot(h, w2_ref[...], preferred_element_type=jnp.float32) + b2_ref[...]
    h = jnp.maximum(h, 0.0).astype(jnp.bfloat16)

    # fc3 + ReLU   (dropout3 = identity)
    h = jnp.dot(h, w3_ref[...], preferred_element_type=jnp.float32) + b3_ref[...]
    h = jnp.maximum(h, 0.0).astype(jnp.bfloat16)

    # fused value/advantage first layers:  wh1 = [wv1 | wa1]  -> (TB, 512)
    h1 = jnp.dot(h, wh1_ref[...], preferred_element_type=jnp.float32) + bh1_ref[...]
    h1 = jnp.maximum(h1, 0.0).astype(jnp.bfloat16)

    # fused, block-diagonal, lane-padded second layers -> (TB, HEAD_PAD)
    #   column 0             : value head output
    #   columns 1..n_actions : advantage head output
    #   remaining columns    : zero padding
    h2 = jnp.dot(h1, wh2_ref[...], preferred_element_type=jnp.float32) + bh2_ref[...]

    # Epilogue is off the MXU critical path (XLU slot has slack), so the two
    # masked cross-lane reductions are left as-is.
    col = jax.lax.broadcasted_iota(jnp.int32, h2.shape, 1)
    adv = jnp.where((col >= 1) & (col <= n_actions), h2, 0.0)            # (TB, HEAD_PAD)
    val = jnp.sum(jnp.where(col == 0, h2, 0.0), axis=1, keepdims=True)   # (TB, 1)
    adv_mean = jnp.sum(adv, axis=1, keepdims=True) * (1.0 / n_actions)   # (TB, 1)

    # dueling combine, kept lane-dense; the wrapper slices columns 1..n_actions.
    q_ref[...] = (adv + (val - adv_mean)).astype(q_ref.dtype)


def make_params(key, input_dims, n_actions, embedding_dim=32):
    """Deterministic synthetic parameters (shapes match the PyTorch module)."""
    dims = [
        ("emb", (6, embedding_dim)),
        ("w1", (input_dims * embedding_dim, 2048)), ("b1", (1, 2048)),
        ("w2", (2048, 1024)), ("b2", (1, 1024)),
        ("w3", (1024, 512)), ("b3", (1, 512)),
        ("wv1", (512, 256)), ("bv1", (1, 256)),
        ("wv2", (256, 1)), ("bv2", (1, 1)),
        ("wa1", (512, 256)), ("ba1", (1, 256)),
        ("wa2", (256, n_actions)), ("ba2", (1, n_actions)),
    ]
    keys = jax.random.split(key, len(dims))
    params = {}
    for k, (name, shape) in zip(keys, dims):
        fan_in = shape[0]
        scale = 1.0 / jnp.sqrt(jnp.float32(fan_in))
        params[name] = jax.random.normal(k, shape, dtype=jnp.float32) * scale
    return params


def prepare_kernel_weights(params, n_actions):
    """Cast to bf16 and build the fused / lane-padded head weights."""
    assert n_actions + 1 <= HEAD_PAD
    bf16, f32 = jnp.bfloat16, jnp.float32
    hidden = params["wv2"].shape[0]  # 256

    # fused head layer 1: (512, 512) weight, (1, 512) bias
    wh1 = jnp.concatenate([params["wv1"], params["wa1"]], axis=1).astype(bf16)
    bh1 = jnp.concatenate([params["bv1"], params["ba1"]], axis=1).astype(f32)

    # fused, block-diagonal head layer 2 padded to HEAD_PAD lanes
    wh2 = jnp.zeros((2 * hidden, HEAD_PAD), dtype=f32)
    wh2 = wh2.at[:hidden, 0:1].set(params["wv2"])
    wh2 = wh2.at[hidden:, 1:1 + n_actions].set(params["wa2"])
    wh2 = wh2.astype(bf16)
    bh2 = jnp.zeros((1, HEAD_PAD), dtype=f32)
    bh2 = bh2.at[:, 0:1].set(params["bv2"])
    bh2 = bh2.at[:, 1:1 + n_actions].set(params["ba2"])

    return [
        params["w1"].astype(bf16), params["b1"].astype(f32),
        params["w2"].astype(bf16), params["b2"].astype(f32),
        params["w3"].astype(bf16), params["b3"].astype(f32),
        wh1, bh1,
        wh2, bh2,
    ]


def _round_up(x, m):
    return (x + m - 1) // m * m


def _cdiv(a, b):
    return -(-a // b)


def _default_batch_tile():
    """TB=512 on v6e/v7x (wide MXU), TB=256 on v5e (per perf review)."""
    try:
        kind = jax.devices()[0].device_kind.lower()
    except Exception:
        kind = ""
    return 256 if "v5" in kind else 512


def _choose_batch_tile(B, batch_tile):
    """Adaptive batch tile: near-equal, sublane-aligned tiles.

    Avoids padding e.g. B=300 up to 512, and force-splits large single-tile
    batches into 2 grid steps so both v7x TensorCores get work (only when B is
    large enough that matmul time exceeds the ~6.7 MiB weight fetch).
    """
    n_tiles = _cdiv(B, batch_tile)
    if n_tiles == 1 and B >= _MEGACORE_SPLIT_MIN_B:
        n_tiles = 2
    return _round_up(_cdiv(B, n_tiles), 8)


def dueling_q_forward(state, params, n_actions, batch_tile=None):
    """state: (B, input_dims) int32.  Returns q_values (B, n_actions) f32."""
    B = state.shape[0]
    if batch_tile is None:
        batch_tile = _default_batch_tile()

    # Embedding gather + flatten (glue in plain JAX), from a pre-cast bf16
    # table so the gather output / pad copy is already half-width.
    emb_bf16 = params["emb"].astype(jnp.bfloat16)
    x = emb_bf16[state].reshape(B, -1)               # (B, input_dims * emb_dim) bf16
    F_dim = x.shape[1]

    TB = _choose_batch_tile(B, batch_tile)
    B_pad = _round_up(B, TB)
    if B_pad != B:
        x = jnp.pad(x, ((0, B_pad - B), (0, 0)))

    weights = prepare_kernel_weights(params, n_actions)

    # x / q tiles move through the grid; weights are full resident blocks with
    # constant index_maps, single-buffered (they are never re-DMA'd).
    x_spec = pl.BlockSpec((TB, F_dim), lambda i: (i, 0))
    w_specs = [
        pl.BlockSpec(w.shape, lambda i: (0, 0), pipeline_mode=pl.Buffered(1))
        for w in weights
    ]
    out_spec = pl.BlockSpec((TB, HEAD_PAD), lambda i: (i, 0))

    q_padded = pl.pallas_call(
        functools.partial(dueling_mlp_kernel, n_actions=n_actions),
        out_shape=jax.ShapeDtypeStruct((B_pad, HEAD_PAD), jnp.float32),
        grid=(B_pad // TB,),
        in_specs=[x_spec] + w_specs,
        out_specs=out_spec,
        compiler_params=pltpu.CompilerParams(
            dimension_semantics=("parallel",),   # megacore sharding on v7x
            vmem_limit_bytes=32 << 20,           # single-buffered bf16 weights ~6.7 MiB
                                                 # + TB<=512 tiles + f32 intermediates
        ),
    )(x, *weights)

    # Only this slice is meaningful: cols 1..n_actions of the first B rows.
    return q_padded[:B, 1:1 + n_actions]


def reference_forward(state, params, n_actions):
    """Pure-JAX reference with identical bf16 weight / activation quantization."""
    B = state.shape[0]
    x = params["emb"][state].reshape(B, -1).astype(jnp.bfloat16)

    def lin(h, w, b):
        return jnp.dot(h, w.astype(jnp.bfloat16),
                       preferred_element_type=jnp.float32) + b

    h = jax.nn.relu(lin(x, params["w1"], params["b1"])).astype(jnp.bfloat16)
    h = jax.nn.relu(lin(h, params["w2"], params["b2"])).astype(jnp.bfloat16)
    h = jax.nn.relu(lin(h, params["w3"], params["b3"])).astype(jnp.bfloat16)
    v = jax.nn.relu(lin(h, params["wv1"], params["bv1"])).astype(jnp.bfloat16)
    val = lin(v, params["wv2"], params["bv2"])
    a = jax.nn.relu(lin(h, params["wa1"], params["ba1"])).astype(jnp.bfloat16)
    adv = lin(a, params["wa2"], params["ba2"])
    return val + (adv - jnp.mean(adv, axis=1, keepdims=True))


if __name__ == "__main__":
    input_dims = 8
    embedding_dim = 32
    n_actions = 4

    key = jax.random.PRNGKey(0)
    k_state, k_params, k_state2 = jax.random.split(key, 3)
    params = make_params(k_params, input_dims, n_actions, embedding_dim)

    # --- main check: tiny batch (B=2), single grid step -----------------------
    B = 2
    # state holds integer category indices in [0, 6) like nn.Embedding(6, ...)
    state = jax.random.randint(k_state, (B, input_dims), 0, 6, dtype=jnp.int32)

    q = dueling_q_forward(state, params, n_actions)
    q = jax.block_until_ready(q)
    q_ref = reference_forward(state, params, n_actions)
    assert q.shape == (B, n_actions)
    assert jnp.allclose(q, q_ref, atol=1e-3, rtol=1e-3)

    # --- secondary check: multi-step grid + batch padding (small shapes) ------
    B2 = 20
    state2 = jax.random.randint(k_state2, (B2, input_dims), 0, 6, dtype=jnp.int32)
    q2 = dueling_q_forward(state2, params, n_actions, batch_tile=8)  # grid=(3,)
    q2 = jax.block_until_ready(q2)
    q2_ref = reference_forward(state2, params, n_actions)
    assert q2.shape == (B2, n_actions)
    assert jnp.allclose(q2, q2_ref, atol=1e-3, rtol=1e-3)

    print("KERNEL_OK")
</pallas_src>

<mosaic_0001>
module attributes {stable_mosaic.version = 11 : i64} {
  func.func @dueling_mlp_kernel(%arg0: i32, %arg1: memref<8x256xbf16, #tpu.memory_space<vmem>>, %arg2: memref<256x2048xbf16, #tpu.memory_space<vmem>>, %arg3: memref<1x2048xf32, #tpu.memory_space<vmem>>, %arg4: memref<2048x1024xbf16, #tpu.memory_space<vmem>>, %arg5: memref<1x1024xf32, #tpu.memory_space<vmem>>, %arg6: memref<1024x512xbf16, #tpu.memory_space<vmem>>, %arg7: memref<1x512xf32, #tpu.memory_space<vmem>>, %arg8: memref<512x512xbf16, #tpu.memory_space<vmem>>, %arg9: memref<1x512xf32, #tpu.memory_space<vmem>>, %arg10: memref<512x128xbf16, #tpu.memory_space<vmem>>, %arg11: memref<1x128xf32, #tpu.memory_space<vmem>>, %arg12: memref<8x128xf32, #tpu.memory_space<vmem>>) attributes {dimension_semantics = [#tpu.dimension_semantics<parallel>], iteration_bounds = array<i64: 1>, scalar_prefetch = 0 : i64, scratch_operands = 0 : i64, tpu.core_type = #tpu.core_type<tc>, window_params = [{transform_indices = @transform_0, window_bounds = array<i64: 8, 256>}, {pipeline_mode = #tpu.pipeline_mode<synchronous>, transform_indices = @transform_1, window_bounds = array<i64: 256, 2048>}, {pipeline_mode = #tpu.pipeline_mode<synchronous>, transform_indices = @transform_2, window_bounds = array<i64: 1, 2048>}, {pipeline_mode = #tpu.pipeline_mode<synchronous>, transform_indices = @transform_3, window_bounds = array<i64: 2048, 1024>}, {pipeline_mode = #tpu.pipeline_mode<synchronous>, transform_indices = @transform_4, window_bounds = array<i64: 1, 1024>}, {pipeline_mode = #tpu.pipeline_mode<synchronous>, transform_indices = @transform_5, window_bounds = array<i64: 1024, 512>}, {pipeline_mode = #tpu.pipeline_mode<synchronous>, transform_indices = @transform_6, window_bounds = array<i64: 1, 512>}, {pipeline_mode = #tpu.pipeline_mode<synchronous>, transform_indices = @transform_7, window_bounds = array<i64: 512, 512>}, {pipeline_mode = #tpu.pipeline_mode<synchronous>, transform_indices = @transform_8, window_bounds = array<i64: 1, 512>}, {pipeline_mode = #tpu.pipeline_mode<synchronous>, transform_indices = @transform_9, window_bounds = array<i64: 512, 128>}, {pipeline_mode = #tpu.pipeline_mode<synchronous>, transform_indices = @transform_10, window_bounds = array<i64: 1, 128>}, {transform_indices = @transform_11, window_bounds = array<i64: 8, 128>}]} {
    %c0 = arith.constant 0 : index
    %c0_0 = arith.constant 0 : index
    %0 = vector.load %arg1[%c0, %c0_0] : memref<8x256xbf16, #tpu.memory_space<vmem>>, vector<8x256xbf16>
    %c0_1 = arith.constant 0 : index
    %c0_2 = arith.constant 0 : index
    %1 = vector.load %arg2[%c0_1, %c0_2] : memref<256x2048xbf16, #tpu.memory_space<vmem>>, vector<256x2048xbf16>
    %cst = arith.constant dense<0.000000e+00> : vector<8x2048xf32>
    %2 = tpu.matmul %0, %1, %cst {dimension_numbers = #tpu.dot_dimension_numbers<[1], [0], [0], [1], [0, 0, 1, 1], [], []>} : vector<8x256xbf16>, vector<256x2048xbf16>, vector<8x2048xf32> -> vector<8x2048xf32>
    %c0_3 = arith.constant 0 : index
    %c0_4 = arith.constant 0 : index
    %3 = vector.load %arg3[%c0_3, %c0_4] : memref<1x2048xf32, #tpu.memory_space<vmem>>, vector<1x2048xf32>
    %4 = vector.broadcast %3 : vector<1x2048xf32> to vector<8x2048xf32>
    %5 = arith.addf %2, %4 : vector<8x2048xf32>
    %cst_5 = arith.constant 0.000000e+00 : f32
    %6 = vector.broadcast %cst_5 : f32 to vector<8x2048xf32>
    %7 = arith.maximumf %5, %6 : vector<8x2048xf32>
    %8 = arith.truncf %7 : vector<8x2048xf32> to vector<8x2048xbf16>
    %c0_6 = arith.constant 0 : index
    %c0_7 = arith.constant 0 : index
    %9 = vector.load %arg4[%c0_6, %c0_7] : memref<2048x1024xbf16, #tpu.memory_space<vmem>>, vector<2048x1024xbf16>
    %cst_8 = arith.constant dense<0.000000e+00> : vector<8x1024xf32>
    %10 = tpu.matmul %8, %9, %cst_8 {dimension_numbers = #tpu.dot_dimension_numbers<[1], [0], [0], [1], [0, 0, 1, 1], [], []>} : vector<8x2048xbf16>, vector<2048x1024xbf16>, vector<8x1024xf32> -> vector<8x1024xf32>
    %c0_9 = arith.constant 0 : index
    %c0_10 = arith.constant 0 : index
    %11 = vector.load %arg5[%c0_9, %c0_10] : memref<1x1024xf32, #tpu.memory_space<vmem>>, vector<1x1024xf32>
    %12 = vector.broadcast %11 : vector<1x1024xf32> to vector<8x1024xf32>
    %13 = arith.addf %10, %12 : vector<8x1024xf32>
    %cst_11 = arith.constant 0.000000e+00 : f32
    %14 = vector.broadcast %cst_11 : f32 to vector<8x1024xf32>
    %15 = arith.maximumf %13, %14 : vector<8x1024xf32>
    %16 = arith.truncf %15 : vector<8x1024xf32> to vector<8x1024xbf16>
    %c0_12 = arith.constant 0 : index
    %c0_13 = arith.constant 0 : index
    %17 = vector.load %arg6[%c0_12, %c0_13] : memref<1024x512xbf16, #tpu.memory_space<vmem>>, vector<1024x512xbf16>
    %cst_14 = arith.constant dense<0.000000e+00> : vector<8x512xf32>
    %18 = tpu.matmul %16, %17, %cst_14 {dimension_numbers = #tpu.dot_dimension_numbers<[1], [0], [0], [1], [0, 0, 1, 1], [], []>} : vector<8x1024xbf16>, vector<1024x512xbf16>, vector<8x512xf32> -> vector<8x512xf32>
    %c0_15 = arith.constant 0 : index
    %c0_16 = arith.constant 0 : index
    %19 = vector.load %arg7[%c0_15, %c0_16] : memref<1x512xf32, #tpu.memory_space<vmem>>, vector<1x512xf32>
    %20 = vector.broadcast %19 : vector<1x512xf32> to vector<8x512xf32>
    %21 = arith.addf %18, %20 : vector<8x512xf32>
    %cst_17 = arith.constant 0.000000e+00 : f32
    %22 = vector.broadcast %cst_17 : f32 to vector<8x512xf32>
    %23 = arith.maximumf %21, %22 : vector<8x512xf32>
    %24 = arith.truncf %23 : vector<8x512xf32> to vector<8x512xbf16>
    %c0_18 = arith.constant 0 : index
    %c0_19 = arith.constant 0 : index
    %25 = vector.load %arg8[%c0_18, %c0_19] : memref<512x512xbf16, #tpu.memory_space<vmem>>, vector<512x512xbf16>
    %cst_20 = arith.constant dense<0.000000e+00> : vector<8x512xf32>
    %26 = tpu.matmul %24, %25, %cst_20 {dimension_numbers = #tpu.dot_dimension_numbers<[1], [0], [0], [1], [0, 0, 1, 1], [], []>} : vector<8x512xbf16>, vector<512x512xbf16>, vector<8x512xf32> -> vector<8x512xf32>
    %c0_21 = arith.constant 0 : index
    %c0_22 = arith.constant 0 : index
    %27 = vector.load %arg9[%c0_21, %c0_22] : memref<1x512xf32, #tpu.memory_space<vmem>>, vector<1x512xf32>
    %28 = vector.broadcast %27 : vector<1x512xf32> to vector<8x512xf32>
    %29 = arith.addf %26, %28 : vector<8x512xf32>
    %cst_23 = arith.constant 0.000000e+00 : f32
    %30 = vector.broadcast %cst_23 : f32 to vector<8x512xf32>
    %31 = arith.maximumf %29, %30 : vector<8x512xf32>
    %32 = arith.truncf %31 : vector<8x512xf32> to vector<8x512xbf16>
    %c0_24 = arith.constant 0 : index
    %c0_25 = arith.constant 0 : index
    %33 = vector.load %arg10[%c0_24, %c0_25] : memref<512x128xbf16, #tpu.memory_space<vmem>>, vector<512x128xbf16>
    %cst_26 = arith.constant dense<0.000000e+00> : vector<8x128xf32>
    %34 = tpu.matmul %32, %33, %cst_26 {dimension_numbers = #tpu.dot_dimension_numbers<[1], [0], [0], [1], [0, 0, 1, 1], [], []>} : vector<8x512xbf16>, vector<512x128xbf16>, vector<8x128xf32> -> vector<8x128xf32>
    %c0_27 = arith.constant 0 : index
    %c0_28 = arith.constant 0 : index
    %35 = vector.load %arg11[%c0_27, %c0_28] : memref<1x128xf32, #tpu.memory_space<vmem>>, vector<1x128xf32>
    %36 = vector.broadcast %35 : vector<1x128xf32> to vector<8x128xf32>
    %37 = arith.addf %34, %36 : vector<8x128xf32>
    %38 = tpu.iota {dimensions = array<i32: 1>} : vector<8x128xi32>
    %c1_i32 = arith.constant 1 : i32
    %39 = vector.broadcast %c1_i32 : i32 to vector<8x128xi32>
    %40 = arith.cmpi sge, %38, %39 : vector<8x128xi32>
    %c4_i32 = arith.constant 4 : i32
    %41 = vector.broadcast %c4_i32 : i32 to vector<8x128xi32>
    %42 = arith.cmpi sle, %38, %41 : vector<8x128xi32>
    %43 = arith.andi %40, %42 : vector<8x128xi1>
    %cst_29 = arith.constant 0.000000e+00 : f32
    %44 = vector.broadcast %cst_29 : f32 to vector<8x128xf32>
    %45 = arith.select %43, %37, %44 : vector<8x128xi1>, vector<8x128xf32>
    %c0_i32 = arith.constant 0 : i32
    %46 = vector.broadcast %c0_i32 : i32 to vector<8x128xi32>
    %47 = arith.cmpi eq, %38, %46 : vector<8x128xi32>
    %cst_30 = arith.constant 0.000000e+00 : f32
    %48 = vector.broadcast %cst_30 : f32 to vector<8x128xf32>
    %49 = arith.select %47, %37, %48 : vector<8x128xi1>, vector<8x128xf32>
    %cst_31 = arith.constant dense<0.000000e+00> : vector<8xf32>
    %50 = vector.multi_reduction <add>, %49, %cst_31 [1] : vector<8x128xf32> to vector<8xf32>
    %51 = vector.shape_cast %50 : vector<8xf32> to vector<8x1xf32>
    %cst_32 = arith.constant dense<0.000000e+00> : vector<8xf32>
    %52 = vector.multi_reduction <add>, %45, %cst_32 [1] : vector<8x128xf32> to vector<8xf32>
    %53 = vector.shape_cast %52 : vector<8xf32> to vector<8x1xf32>
    %cst_33 = arith.constant 2.500000e-01 : f32
    %54 = vector.broadcast %cst_33 : f32 to vector<8x1xf32>
    %55 = arith.mulf %53, %54 : vector<8x1xf32>
    %56 = arith.subf %51, %55 : vector<8x1xf32>
    %57 = vector.broadcast %56 : vector<8x1xf32> to vector<8x128xf32>
    %58 = arith.addf %45, %57 : vector<8x128xf32>
    %c0_34 = arith.constant 0 : index
    %c0_35 = arith.constant 0 : index
    %59 = vector.load %arg12[%c0_34, %c0_35] : memref<8x128xf32, #tpu.memory_space<vmem>>, vector<8x128xf32>
    tpu.vector_store %arg12[%c0_34, %c0_35], %58 {strides = array<i32>} : memref<8x128xf32, #tpu.memory_space<vmem>>, vector<8x128xf32>,
    return
  }
  func.func @transform_0(%arg0: i32) -> (i32, i32) {
    %c0_i32 = arith.constant 0 : i32
    %c0_i32_0 = arith.constant 0 : i32
    return %arg0, %c0_i32 : i32, i32
  }
  func.func @transform_1(%arg0: i32) -> (i32, i32) {
    %c0_i32 = arith.constant 0 : i32
    %c0_i32_0 = arith.constant 0 : i32
    %c0_i32_1 = arith.constant 0 : i32
    return %c0_i32, %c0_i32_0 : i32, i32
  }
  func.func @transform_2(%arg0: i32) -> (i32, i32) {
    %c0_i32 = arith.constant 0 : i32
    %c0_i32_0 = arith.constant 0 : i32
    %c0_i32_1 = arith.constant 0 : i32
    return %c0_i32, %c0_i32_0 : i32, i32
  }
  func.func @transform_3(%arg0: i32) -> (i32, i32) {
    %c0_i32 = arith.constant 0 : i32
    %c0_i32_0 = arith.constant 0 : i32
    %c0_i32_1 = arith.constant 0 : i32
    return %c0_i32, %c0_i32_0 : i32, i32
  }
  func.func @transform_4(%arg0: i32) -> (i32, i32) {
    %c0_i32 = arith.constant 0 : i32
    %c0_i32_0 = arith.constant 0 : i32
    %c0_i32_1 = arith.constant 0 : i32
    return %c0_i32, %c0_i32_0 : i32, i32
  }
  func.func @transform_5(%arg0: i32) -> (i32, i32) {
    %c0_i32 = arith.constant 0 : i32
    %c0_i32_0 = arith.constant 0 : i32
    %c0_i32_1 = arith.constant 0 : i32
    return %c0_i32, %c0_i32_0 : i32, i32
  }
  func.func @transform_6(%arg0: i32) -> (i32, i32) {
    %c0_i32 = arith.constant 0 : i32
    %c0_i32_0 = arith.constant 0 : i32
    %c0_i32_1 = arith.constant 0 : i32
    return %c0_i32, %c0_i32_0 : i32, i32
  }
  func.func @transform_7(%arg0: i32) -> (i32, i32) {
    %c0_i32 = arith.constant 0 : i32
    %c0_i32_0 = arith.constant 0 : i32
    %c0_i32_1 = arith.constant 0 : i32
    return %c0_i32, %c0_i32_0 : i32, i32
  }
  func.func @transform_8(%arg0: i32) -> (i32, i32) {
    %c0_i32 = arith.constant 0 : i32
    %c0_i32_0 = arith.constant 0 : i32
    %c0_i32_1 = arith.constant 0 : i32
    return %c0_i32, %c0_i32_0 : i32, i32
  }
  func.func @transform_9(%arg0: i32) -> (i32, i32) {
    %c0_i32 = arith.constant 0 : i32
    %c0_i32_0 = arith.constant 0 : i32
    %c0_i32_1 = arith.constant 0 : i32
    return %c0_i32, %c0_i32_0 : i32, i32
  }
  func.func @transform_10(%arg0: i32) -> (i32, i32) {
    %c0_i32 = arith.constant 0 : i32
    %c0_i32_0 = arith.constant 0 : i32
    %c0_i32_1 = arith.constant 0 : i32
    return %c0_i32, %c0_i32_0 : i32, i32
  }
  func.func @transform_11(%arg0: i32) -> (i32, i32) {
    %c0_i32 = arith.constant 0 : i32
    %c0_i32_0 = arith.constant 0 : i32
    return %arg0, %c0_i32 : i32, i32
  }
}

</mosaic_0001>

<bundles_post_ra>
// kernel: tpu_custom_call.1
= control target key start
LH: loop header
LB: loop body
LE: loop exit
PB: predicated region body
PF: predicated region fallthrough
CT: control target
= control target key end

     0   :  { %16 = vsyncpa [#allocation3], 0  ;;  %s16237_s0 = inlined_call_operand.hbm [shape: bf16[8,256], index: 0, kind: input, shape index: {}]   ;;  %s16238_s1 = inlined_call_operand.hbm [shape: bf16[256,2048], index: 1, kind: input, shape index: {}]   ;;  %s16239_s2 = inlined_call_operand.hbm [shape: f32[1,2048], index: 2, kind: input, shape index: {}]   ;;  %s16240_s3 = inlined_call_operand.hbm [shape: bf16[2048,1024], index: 3, kind: input, shape index: {}]   ;;  %s16241_s4 = inlined_call_operand.hbm [shape: f32[1,1024], index: 4, kind: input, shape index: {}]   ;;  %s16242_s5 = inlined_call_operand.hbm [shape: bf16[1024,512], index: 5, kind: input, shape index: {}]   ;;  %s16243_s6 = inlined_call_operand.hbm [shape: f32[1,512], index: 6, kind: input, shape index: {}]   ;;  %s16244_s7 = inlined_call_operand.hbm [shape: bf16[512,512], index: 7, kind: input, shape index: {}]   ;;  %s16245_s8 = inlined_call_operand.hbm [shape: f32[1,512], index: 8, kind: input, shape index: {}]   ;;  %s16246_s9 = inlined_call_operand.hbm [shape: bf16[512,128], index: 9, kind: input, shape index: {}]   ;;  %s16247_s10 = inlined_call_operand.hbm [shape: f32[1,128], index: 10, kind: input, shape index: {}]   ;;  %s16248_s11 = inlined_call_operand.hbm [shape: f32[8,128], index: 11, kind: output, shape index: {}]  }
   0x1   :  { %17 = vsyncpa [#allocation6], 0 }
   0x2   :  { %18 = vsyncpa [#allocation9], 0 }
   0x3   :  { %19 = vsyncpa [#allocation12], 0 }
   0x4   :  { %20 = vsyncpa [#allocation15], 0 }
   0x5   :  { %21 = vsyncpa [#allocation18], 0 }
   0x6   :  { %22 = vsyncpa [#allocation4], 0  ;;  %s15727_s17 = smov [#allocation5]   ;;  %s15449_s21 = scalar_lea.hbm %s16238_s1, 32768 }
   0x7   :  { %s38_s18 = sshll.u32 %s15727_s17, 4  ;;  %p15450_p0 = scmp.ne.s32.totalorder %s16238_s1, %s15449_s21  ;;  %s39_s18 = int_to_ptr.vmem [resolvable:$true] %s38_s18 }
   0x8   :  { %p15453_p1 = scmp.lt.u32.totalorder %s15449_s21, %s16238_s1 }
   0xa   :  { %p15455_p2 = pnand %p15453_p1, %p15450_p0 }
   0xc   :  { %15458 = shalt.err (!%p15455_p2)
}
   0xd   :  { %s15459_s26 = scalar_lea.vmem %s39_s18, 32768  ;;  %p15464_p4 = scmp.lt.s32.totalorder %s39_s18, %s39_s18 }
   0xe   :  { %p15460_p3 = scmp.ne.s32.totalorder %s39_s18, %s15459_s26  ;;  %p15465_p5 = scmp.lt.s32.totalorder %s15459_s26, %s15459_s26 }
  0x10   :  { %p15466_p6 = por %p15465_p5, %p15464_p4 }
  0x12   :  { %p15467_p7 = pnand %p15466_p6, %p15460_p3 }
  0x14   :  { %15470 = shalt.err (!%p15467_p7)
}
  0x15   :  { %s15728_s27 = smov 1024   ;;  %s15729_s28 = smov 64  }
  0x16   :  { %44 = dma.hbm_to_vmem [thread:$0]  %s16238_s1, 32768, %s39_s18, [#allocation6], %s15728_s27, %s15728_s27, %s15729_s28  }
  0x17   :  { %s15730_s12 = smov [#allocation8]   ;;  %s15471_s16 = scalar_lea.hbm %s16240_s3, 131072 }
  0x18   :  { %s60_s13 = sshll.u32 %s15730_s12, 4  ;;  %p15472_p8 = scmp.ne.s32.totalorder %s16240_s3, %s15471_s16  ;;  %s61_s13 = int_to_ptr.vmem [resolvable:$true] %s60_s13 }
  0x19   :  { %p15475_p9 = scmp.lt.u32.totalorder %s15471_s16, %s16240_s3 }
  0x1b   :  { %p15477_p10 = pnand %p15475_p9, %p15472_p8 }
  0x1d   :  { %15480 = shalt.err (!%p15477_p10)
}
  0x1e   :  { %s15481_s22 = scalar_lea.vmem %s61_s13, 131072  ;;  %p15486_p12 = scmp.lt.s32.totalorder %s61_s13, %s61_s13 }
  0x1f   :  { %p15482_p11 = scmp.ne.s32.totalorder %s61_s13, %s15481_s22  ;;  %p15487_p13 = scmp.lt.s32.totalorder %s15481_s22, %s15481_s22 }
  0x21   :  { %p15488_p0 = por %p15487_p13, %p15486_p12 }
  0x23   :  { %p15489_p1 = pnand %p15488_p0, %p15482_p11 }
  0x25   :  { %15492 = shalt.err (!%p15489_p1)
}
  0x26   :  { %s15731_s1 = smov 512   ;;  %s15732_s18 = smov 32  }
  0x27   :  { %66 = dma.hbm_to_vmem [thread:$0]  %s16240_s3, 131072, %s61_s13, [#allocation9], %s15731_s1, %s15731_s1, %s15732_s18  }
  0x28   :  { %s15733_s25 = smov [#allocation11]   ;;  %s15493_s30 = scalar_lea.hbm %s16242_s5, 32768 }
  0x29   :  { %s82_s26 = sshll.u32 %s15733_s25, 4  ;;  %p15494_p2 = scmp.ne.s32.totalorder %s16242_s5, %s15493_s30  ;;  %s83_s26 = int_to_ptr.vmem [resolvable:$true] %s82_s26 }
  0x2a   :  { %p15497_p3 = scmp.lt.u32.totalorder %s15493_s30, %s16242_s5 }
  0x2c   :  { %p15499_p4 = pnand %p15497_p3, %p15494_p2 }
  0x2e   :  { %15502 = shalt.err (!%p15499_p4)
}
  0x2f   :  { %s15503_s17 = scalar_lea.vmem %s83_s26, 32768  ;;  %p15508_p6 = scmp.lt.s32.totalorder %s83_s26, %s83_s26 }
  0x30   :  { %p15504_p5 = scmp.ne.s32.totalorder %s83_s26, %s15503_s17  ;;  %p15509_p7 = scmp.lt.s32.totalorder %s15503_s17, %s15503_s17 }
  0x32   :  { %p15510_p8 = por %p15509_p7, %p15508_p6 }
  0x34   :  { %p15511_p9 = pnand %p15510_p8, %p15504_p5 }
  0x36   :  { %15514 = shalt.err (!%p15511_p9)
}
  0x37   :  { %s15734_s3 = smov 256   ;;  %s15735_s13 = smov 16  }
  0x38   :  { %88 = dma.hbm_to_vmem [thread:$0]  %s16242_s5, 32768, %s83_s26, [#allocation12], %s15734_s3, %s15734_s3, %s15735_s13  }
  0x39   :  { %s15736_s21 = smov [#allocation14]   ;;  %s15737_s1 = smov [#allocation17]  }
  0x3a   :  { %s104_s22 = sshll.u32 %s15736_s21, 4  ;;  %s126_s18 = sshll.u32 %s15737_s1, 4  ;;  %s105_s22 = int_to_ptr.vmem [resolvable:$true] %s104_s22  ;;  %s127_s18 = int_to_ptr.vmem [resolvable:$true] %s126_s18 }
  0x3b   :  { %s15515_s25 = scalar_lea.hbm %s16244_s7, 16384 }
  0x3c   :  { %p15516_p10 = scmp.ne.s32.totalorder %s16244_s7, %s15515_s25  ;;  %p15519_p11 = scmp.lt.u32.totalorder %s15515_s25, %s16244_s7 }
  0x3e   :  { %p15521_p12 = pnand %p15519_p11, %p15516_p10 }
  0x40   :  { %15524 = shalt.err (!%p15521_p12)
}
  0x41   :  { %s15525_s5 = scalar_lea.vmem %s105_s22, 16384  ;;  %p15530_p0 = scmp.lt.s32.totalorder %s105_s22, %s105_s22 }
  0x42   :  { %p15526_p13 = scmp.ne.s32.totalorder %s105_s22, %s15525_s5  ;;  %p15531_p1 = scmp.lt.s32.totalorder %s15525_s5, %s15525_s5 }
  0x44   :  { %p15532_p2 = por %p15531_p1, %p15530_p0 }
  0x46   :  { %p15533_p3 = pnand %p15532_p2, %p15526_p13 }
  0x48   :  { %15536 = shalt.err (!%p15533_p3)
}
  0x49   :  { %110 = dma.hbm_to_vmem [thread:$0]  %s16244_s7, 16384, %s105_s22, [#allocation15], %s15734_s3, %s15734_s3, %s15735_s13  }
  0x4a   :  { %s15537_s17 = scalar_lea.hbm %s16246_s9, 4096 }
  0x4b   :  { %p15538_p4 = scmp.ne.s32.totalorder %s16246_s9, %s15537_s17  ;;  %p15541_p5 = scmp.lt.u32.totalorder %s15537_s17, %s16246_s9 }
  0x4d   :  { %p15543_p6 = pnand %p15541_p5, %p15538_p4 }
  0x4f   :  { %15546 = shalt.err (!%p15543_p6)
}
  0x50   :  { %s15547_s23 = scalar_lea.vmem %s127_s18, 4096  ;;  %p15552_p8 = scmp.lt.s32.totalorder %s127_s18, %s127_s18 }
  0x51   :  { %p15548_p7 = scmp.ne.s32.totalorder %s127_s18, %s15547_s23  ;;  %p15553_p9 = scmp.lt.s32.totalorder %s15547_s23, %s15547_s23 }
  0x53   :  { %p15554_p10 = por %p15553_p9, %p15552_p8 }
  0x55   :  { %p15555_p11 = pnand %p15554_p10, %p15548_p7 }
  0x57   :  { %15558 = shalt.err (!%p15555_p11)
}
  0x58   :  { %s15738_s7 = smov 4   ;;  %s15739_s22 = smov [#allocation2]  }
  0x59   :  { %132 = dma.hbm_to_vmem [thread:$0]  %s16246_s9, 4096, %s127_s18, [#allocation18], %s15729_s28, %s15729_s28, %s15738_s7  }
  0x5a   :  { %s29_s24 = sshll.u32 %s15739_s22, 4  ;;  %s15740_s25 = smov [#allocation7]   ;;  %s30_s24 = int_to_ptr.vmem [resolvable:$true] %s29_s24 }
  0x5b   :  { %s51_s27 = sshll.u32 %s15740_s25, 4  ;;  %s15559_s12 = scalar_lea.hbm %s16237_s0, 128  ;;  %s52_s27 = int_to_ptr.vmem [resolvable:$true] %s51_s27 }
  0x5c   :  { %p15560_p12 = scmp.ne.s32.totalorder %s16237_s0, %s15559_s12  ;;  %p15563_p13 = scmp.lt.u32.totalorder %s15559_s12, %s16237_s0 }
  0x5e   :  { %p15565_p0 = pnand %p15563_p13, %p15560_p12 }
  0x60   :  { %15568 = shalt.err (!%p15565_p0)
}
  0x61   :  { %s15569_s9 = scalar_lea.vmem %s30_s24, 128  ;;  %p15574_p2 = scmp.lt.s32.totalorder %s30_s24, %s30_s24 }
  0x62   :  { %p15570_p1 = scmp.ne.s32.totalorder %s30_s24, %s15569_s9  ;;  %p15575_p3 = scmp.lt.s32.totalorder %s15569_s9, %s15569_s9 }
  0x64   :  { %p15576_p4 = por %p15575_p3, %p15574_p2 }
  0x66   :  { %p15577_p5 = pnand %p15576_p4, %p15570_p1 }
  0x68   :  { %15580 = shalt.err (!%p15577_p5)
}
  0x69   :  { %32 = dma.hbm_to_vmem [thread:$0]  %s16237_s0, 128, %s30_s24, [#allocation3]  }
  0x6a   :  { %s15581_s19 = scalar_lea.hbm %s16239_s2, 256 }
  0x6b   :  { %p15582_p6 = scmp.ne.s32.totalorder %s16239_s2, %s15581_s19  ;;  %p15585_p7 = scmp.lt.u32.totalorder %s15581_s19, %s16239_s2 }
  0x6d   :  { %p15587_p8 = pnand %p15585_p7, %p15582_p6 }
  0x6f   :  { %15590 = shalt.err (!%p15587_p8)
}
  0x70   :  { %s15591_s7 = scalar_lea.vmem %s52_s27, 256  ;;  %p15596_p10 = scmp.lt.s32.totalorder %s52_s27, %s52_s27 }
  0x71   :  { %p15592_p9 = scmp.ne.s32.totalorder %s52_s27, %s15591_s7  ;;  %p15597_p11 = scmp.lt.s32.totalorder %s15591_s7, %s15591_s7 }
  0x73   :  { %p15598_p12 = por %p15597_p11, %p15596_p10 }
  0x75   :  { %p15599_p13 = pnand %p15598_p12, %p15592_p9 }
  0x77   :  { %15602 = shalt.err (!%p15599_p13)
}
  0x78   :  { %54 = dma.hbm_to_vmem [thread:$0]  %s16239_s2, 256, %s52_s27, [#allocation6]  }
  0x79   :  { %s15741_s13 = smov [#allocation10]   ;;  %s15742_s24 = smov [#allocation13]  }
  0x7a   :  { %s73_s22 = sshll.u32 %s15741_s13, 4  ;;  %s95_s25 = sshll.u32 %s15742_s24, 4  ;;  %s74_s22 = int_to_ptr.vmem [resolvable:$true] %s73_s22  ;;  %s96_s25 = int_to_ptr.vmem [resolvable:$true] %s95_s25 }
  0x7b   :  { %s15603_s12 = scalar_lea.hbm %s16241_s4, 128 }
  0x7c   :  { %p15604_p0 = scmp.ne.s32.totalorder %s16241_s4, %s15603_s12  ;;  %p15607_p1 = scmp.lt.u32.totalorder %s15603_s12, %s16241_s4 }
  0x7e   :  { %p15609_p2 = pnand %p15607_p1, %p15604_p0 }
  0x80   :  { %15612 = shalt.err (!%p15609_p2)
}
  0x81   :  { %s15613_s2 = scalar_lea.vmem %s74_s22, 128  ;;  %p15618_p4 = scmp.lt.s32.totalorder %s74_s22, %s74_s22 }
  0x82   :  { %p15614_p3 = scmp.ne.s32.totalorder %s74_s22, %s15613_s2  ;;  %p15619_p5 = scmp.lt.s32.totalorder %s15613_s2, %s15613_s2 }
  0x84   :  { %p15620_p6 = por %p15619_p5, %p15618_p4 }
  0x86   :  { %p15621_p7 = pnand %p15620_p6, %p15614_p3 }
  0x88   :  { %15624 = shalt.err (!%p15621_p7)
}
  0x89   :  { %76 = dma.hbm_to_vmem [thread:$0]  %s16241_s4, 128, %s74_s22, [#allocation9]  }
  0x8a   :  { %s15625_s16 = scalar_lea.hbm %s16243_s6, 64 }
  0x8b   :  { %p15626_p8 = scmp.ne.s32.totalorder %s16243_s6, %s15625_s16  ;;  %p15629_p9 = scmp.lt.u32.totalorder %s15625_s16, %s16243_s6 }
  0x8d   :  { %p15631_p10 = pnand %p15629_p9, %p15626_p8 }
  0x8f   :  { %15634 = shalt.err (!%p15631_p10)
}
  0x90   :  { %s15635_s1 = scalar_lea.vmem %s96_s25, 64  ;;  %p15640_p12 = scmp.lt.s32.totalorder %s96_s25, %s96_s25 }
  0x91   :  { %p15636_p11 = scmp.ne.s32.totalorder %s96_s25, %s15635_s1  ;;  %p15641_p13 = scmp.lt.s32.totalorder %s15635_s1, %s15635_s1 }
  0x93   :  { %p15642_p0 = por %p15641_p13, %p15640_p12 }
  0x95   :  { %p15643_p1 = pnand %p15642_p0, %p15636_p11 }
  0x97   :  { %15646 = shalt.err (!%p15643_p1)
}
  0x98   :  { %98 = dma.hbm_to_vmem [thread:$0]  %s16243_s6, 64, %s96_s25, [#allocation12]  }
  0x99   :  { %s15743_s7 = smov [#allocation16]   ;;  %s15744_s3 = smov [#allocation19]  }
  0x9a   :  { %s117_s0 = sshll.u32 %s15743_s7, 4  ;;  %s139_s13 = sshll.u32 %s15744_s3, 4  ;;  %s118_s0 = int_to_ptr.vmem [resolvable:$true] %s117_s0  ;;  %s140_s13 = int_to_ptr.vmem [resolvable:$true] %s139_s13 }
  0x9b   :  { %s15647_s29 = scalar_lea.hbm %s16245_s8, 64 }
  0x9c   :  { %p15648_p2 = scmp.ne.s32.totalorder %s16245_s8, %s15647_s29  ;;  %p15651_p3 = scmp.lt.u32.totalorder %s15647_s29, %s16245_s8 }
  0x9e   :  { %p15653_p4 = pnand %p15651_p3, %p15648_p2 }
  0xa0   :  { %15656 = shalt.err (!%p15653_p4)
}
  0xa1   :  { %s15657_s6 = scalar_lea.vmem %s118_s0, 64  ;;  %p15662_p6 = scmp.lt.s32.totalorder %s118_s0, %s118_s0 }
  0xa2   :  { %p15658_p5 = scmp.ne.s32.totalorder %s118_s0, %s15657_s6  ;;  %p15663_p7 = scmp.lt.s32.totalorder %s15657_s6, %s15657_s6 }
  0xa4   :  { %p15664_p8 = por %p15663_p7, %p15662_p6 }
  0xa6   :  { %p15665_p9 = pnand %p15664_p8, %p15658_p5 }
  0xa8   :  { %15668 = shalt.err (!%p15665_p9)
}
  0xa9   :  { %120 = dma.hbm_to_vmem [thread:$0]  %s16245_s8, 64, %s118_s0, [#allocation15]  }
  0xaa   :  { %s15669_s27 = scalar_lea.hbm %s16247_s10, 16 }
  0xab   :  { %p15670_p10 = scmp.ne.s32.totalorder %s16247_s10, %s15669_s27  ;;  %p15673_p11 = scmp.lt.u32.totalorder %s15669_s27, %s16247_s10 }
  0xad   :  { %p15675_p12 = pnand %p15673_p11, %p15670_p10 }
  0xaf   :  { %15678 = shalt.err (!%p15675_p12)
}
  0xb0   :  { %s15679_s17 = scalar_lea.vmem %s140_s13, 16  ;;  %s15683_s19 = scalar_lea.vmem %s140_s13, 32 }
  0xb1   :  { %p15680_p13 = scmp.ne.s32.totalorder %s140_s13, %s15679_s17  ;;  %p15684_p0 = scmp.lt.s32.totalorder %s140_s13, %s140_s13 }
  0xb2   :  { %p15685_p1 = scmp.lt.s32.totalorder %s15683_s19, %s15679_s17 }
  0xb4   :  { %p15686_p2 = por %p15685_p1, %p15684_p0 }
  0xb6   :  { %p15687_p3 = pnand %p15686_p2, %p15680_p13 }
  0xb8   :  { %15690 = shalt.err (!%p15687_p3)
}
  0xb9   :  { %142 = dma.hbm_to_vmem [thread:$0]  %s16247_s10, 16, %s140_s13, [#allocation18]  }
  0xba   :  { %15713 = dma.done.wait [#allocation3], 128  }
  0xbb   :  { %15714 = vsyncadd [#allocation3], 4294967168 }
  0xbc   :  { %15715 = dma.done.wait [#allocation6], 33024  }
  0xbd   :  { %15716 = vsyncadd [#allocation6], 4294934272 }
  0xbe   :  { %15717 = dma.done.wait [#allocation9], 131200  }
  0xbf   :  { %15718 = vsyncadd [#allocation9], 4294836096 }
  0xc0   :  { %15719 = dma.done.wait [#allocation12], 32832  }
  0xc1   :  { %15720 = vsyncadd [#allocation12], 4294934464 }
  0xc2   :  { %15721 = dma.done.wait [#allocation15], 16448  }
  0xc3   :  { %15722 = vsyncadd [#allocation15], 4294950848 }
  0xc4   :  { %15723 = dma.done.wait [#allocation18], 4112  }
  0xc5   :  { %15724 = vsyncadd [#allocation18], 4294963184  ;;  %v178_v0 = vld [vmem:[#allocation5] sm:$0xff]  ;;  %v179_v2 = vld [vmem:[#allocation5 + $0x8] sm:$0xff]  ;;  %s15745_s10 = smov [#allocation20]  }
  0xc6   :  { %v186_v1 = vld [vmem:[#allocation5 + $0x40] sm:$0xff]  ;;  %v187_v4 = vld [vmem:[#allocation5 + $0x48] sm:$0xff]  ;;  %v15941_v53 = vld [vmem:[#allocation2] sm:$0xff]  ;;  %s12900_s21 = sshll.u32 %s15745_s10, 4  ;;  %s12901_s21 = int_to_ptr.vmem [resolvable:$true] %s12900_s21 }
  0xc7   :  { %v12917_v3 = vcombine.high %v178_v0, %v186_v1  ;;  %v12916_v5 = vcombine.low %v178_v0, %v186_v1  ;;  %v194_v6 = vld [vmem:[#allocation5 + $0x80] sm:$0xff]  ;;  %v12919_v8 = vcombine.high %v179_v2, %v187_v4  ;;  %v12918_v9 = vcombine.low %v179_v2, %v187_v4  ;;  %v195_v11 = vld [vmem:[#allocation5 + $0x88] sm:$0xff]  ;;  %s15691_s1 = scalar_lea.vmem %s12901_s21, 128  ;;  %p15696_p5 = scmp.lt.s32.totalorder %s12901_s21, %s12901_s21 }
  0xc8   :  { %v202_v7 = vld [vmem:[#allocation5 + $0xc0] sm:$0xff]  ;;  %v203_v12 = vld [vmem:[#allocation5 + $0xc8] sm:$0xff]  ;;  %v15945_v57 = vcombine.high %v15941_v53, %v15941_v53  ;;  %p15692_p4 = scmp.ne.s32.totalorder %s12901_s21, %s15691_s1  ;;  %p15697_p6 = scmp.lt.s32.totalorder %s15691_s1, %s15691_s1 }
  0xc9   :  { %v12933_v10 = vcombine.high %v194_v6, %v202_v7  ;;  %v210_v13 = vld [vmem:[#allocation5 + $0x100] sm:$0xff]  ;;  %1805 = vmatprep.subr.bf16.mxu0 %v12917_v3  ;;  %v12935_v14 = vcombine.high %v195_v11, %v203_v12  ;;  %v211_v16 = vld [vmem:[#allocation5 + $0x108] sm:$0xff]  ;;  %1846 = vmatprep.subr.bf16.mxu1 %v12919_v8  ;;  %v12932_v18 = vcombine.low %v194_v6, %v202_v7 }
  0xca   :  { %v218_v15 = vld [vmem:[#allocation5 + $0x140] sm:$0xff]  ;;  %v219_v17 = vld [vmem:[#allocation5 + $0x148] sm:$0xff]  ;;  %1806 = vmatpush1.bf16.msra.mxu0 %v12916_v5  ;;  %1847 = vmatpush1.bf16.msra.mxu1 %v12918_v9  ;;  %v12934_v19 = vcombine.low %v195_v11, %v203_v12  ;;  %p15698_p7 = por %p15697_p6, %p15696_p5 }
  0xcb   :  { %1807 = vmatprep.subr.bf16.mxu0 %v12933_v10  ;;  %v12949_v20 = vcombine.high %v210_v13, %v218_v15  ;;  %1848 = vmatprep.subr.bf16.mxu1 %v12935_v14  ;;  %v12951_v21 = vcombine.high %v211_v16, %v219_v17  ;;  %v226_v22 = vld [vmem:[#allocation5 + $0x180] sm:$0xff]  ;;  %v227_v24 = vld [vmem:[#allocation5 + $0x188] sm:$0xff]  ;;  %v12948_v26 = vcombine.low %v210_v13, %v218_v15 }
  0xcc   :  { %v234_v23 = vld [vmem:[#allocation5 + $0x1c0] sm:$0xff]  ;;  %v235_v25 = vld [vmem:[#allocation5 + $0x1c8] sm:$0xff]  ;;  %v12950_v27 = vcombine.low %v211_v16, %v219_v17  ;;  %1837 = vmatprep.mubr.bf16.mxu0 %v15945_v57  ;;  %1878 = vmatprep.mubr.bf16.mxu1 %v15945_v57  ;;  %p15699_p8 = pnand %p15698_p7, %p15692_p4 }
  0xcd   :  { %v12965_v28 = vcombine.high %v226_v22, %v234_v23  ;;  %v12967_v29 = vcombine.high %v227_v24, %v235_v25  ;;  %v242_v30 = vld [vmem:[#allocation5 + $0x200] sm:$0xff]  ;;  %v243_v32 = vld [vmem:[#allocation5 + $0x208] sm:$0xff]  ;;  %v12964_v34 = vcombine.low %v226_v22, %v234_v23  ;;  %v12966_v35 = vcombine.low %v227_v24, %v235_v25 }
  0xce   :  { %1808 = vmatpush1.bf16.msra.mxu0 %v12932_v18  ;;  %1849 = vmatpush1.bf16.msra.mxu1 %v12934_v19  ;;  %v250_v31 = vld [vmem:[#allocation5 + $0x240] sm:$0xff]  ;;  %v251_v33 = vld [vmem:[#allocation5 + $0x248] sm:$0xff] }
  0xcf   :  { %1809 = vmatprep.subr.bf16.mxu0 %v12949_v20  ;;  %1850 = vmatprep.subr.bf16.mxu1 %v12951_v21  ;;  %v12981_v36 = vcombine.high %v242_v30, %v250_v31  ;;  %v12983_v37 = vcombine.high %v243_v32, %v251_v33  ;;  %v258_v38 = vld [vmem:[#allocation5 + $0x280] sm:$0xff]  ;;  %v259_v40 = vld [vmem:[#allocation5 + $0x288] sm:$0xff]  ;;  %v12980_v42 = vcombine.low %v242_v30, %v250_v31 }
  0xd0   :  { %v266_v39 = vld [vmem:[#allocation5 + $0x2c0] sm:$0xff]  ;;  %v267_v41 = vld [vmem:[#allocation5 + $0x2c8] sm:$0xff]  ;;  %v12982_v43 = vcombine.low %v243_v32, %v251_v33 }
  0xd1   :  { %v12997_v44 = vcombine.high %v258_v38, %v266_v39  ;;  %v12999_v45 = vcombine.high %v259_v40, %v267_v41  ;;  %v274_v46 = vld [vmem:[#allocation5 + $0x300] sm:$0xff]  ;;  %v275_v48 = vld [vmem:[#allocation5 + $0x308] sm:$0xff]  ;;  %v12996_v50 = vcombine.low %v258_v38, %v266_v39  ;;  %v12998_v51 = vcombine.low %v259_v40, %v267_v41 }
  0xd2   :  { %1810 = vmatpush1.bf16.msra.mxu0 %v12948_v26  ;;  %1851 = vmatpush1.bf16.msra.mxu1 %v12950_v27  ;;  %v282_v47 = vld [vmem:[#allocation5 + $0x340] sm:$0xff]  ;;  %v283_v49 = vld [vmem:[#allocation5 + $0x348] sm:$0xff] }
  0xd3   :  { %1811 = vmatprep.subr.bf16.mxu0 %v12965_v28  ;;  %1852 = vmatprep.subr.bf16.mxu1 %v12967_v29  ;;  %v13013_v52 = vcombine.high %v274_v46, %v282_v47  ;;  %v13015_v54 = vcombine.high %v275_v48, %v283_v49  ;;  %v290_v55 = vld [vmem:[#allocation5 + $0x380] sm:$0xff]  ;;  %v291_v58 = vld [vmem:[#allocation5 + $0x388] sm:$0xff]  ;;  %v13012_v60 = vcombine.low %v274_v46, %v282_v47 }
  0xd4   :  { %v298_v56 = vld [vmem:[#allocation5 + $0x3c0] sm:$0xff]  ;;  %v299_v59 = vld [vmem:[#allocation5 + $0x3c8] sm:$0xff]  ;;  %v13014_v61 = vcombine.low %v275_v48, %v283_v49 }
  0xd5   :  { %v13029_v62 = vcombine.high %v290_v55, %v298_v56  ;;  %v13031_v63 = vcombine.high %v291_v58, %v299_v59  ;;  %v306_v0 = vld [vmem:[#allocation5 + $0x400] sm:$0xff]  ;;  %v307_v2 = vld [vmem:[#allocation5 + $0x408] sm:$0xff]  ;;  %v13028_v4 = vcombine.low %v290_v55, %v298_v56  ;;  %v13030_v5 = vcombine.low %v291_v58, %v299_v59 }
  0xd6   :  { %1812 = vmatpush1.bf16.msra.mxu0 %v12964_v34  ;;  %1853 = vmatpush1.bf16.msra.mxu1 %v12966_v35  ;;  %v314_v1 = vld [vmem:[#allocation5 + $0x440] sm:$0xff]  ;;  %v315_v3 = vld [vmem:[#allocation5 + $0x448] sm:$0xff] }
  0xd7   :  { %1813 = vmatprep.subr.bf16.mxu0 %v12981_v36  ;;  %1854 = vmatprep.subr.bf16.mxu1 %v12983_v37  ;;  %v13045_v6 = vcombine.high %v306_v0, %v314_v1  ;;  %v13047_v7 = vcombine.high %v307_v2, %v315_v3  ;;  %v322_v8 = vld [vmem:[#allocation5 + $0x480] sm:$0xff]  ;;  %v323_v10 = vld [vmem:[#allocation5 + $0x488] sm:$0xff]  ;;  %v13044_v12 = vcombine.low %v306_v0, %v314_v1 }
  0xd8   :  { %v330_v9 = vld [vmem:[#allocation5 + $0x4c0] sm:$0xff]  ;;  %v331_v11 = vld [vmem:[#allocation5 + $0x4c8] sm:$0xff]  ;;  %v13046_v13 = vcombine.low %v307_v2, %v315_v3  ;;  %v180_v2 = vld [vmem:[#allocation5 + $0x10] sm:$0xff] }
  0xd9   :  { %v13061_v14 = vcombine.high %v322_v8, %v330_v9  ;;  %v13063_v15 = vcombine.high %v323_v10, %v331_v11  ;;  %v338_v16 = vld [vmem:[#allocation5 + $0x500] sm:$0xff]  ;;  %v339_v18 = vld [vmem:[#allocation5 + $0x508] sm:$0xff]  ;;  %v13060_v20 = vcombine.low %v322_v8, %v330_v9  ;;  %v13062_v21 = vcombine.low %v323_v10, %v331_v11  ;;  %v188_v3 = vld [vmem:[#allocation5 + $0x50] sm:$0xff] }
  0xda   :  { %1814 = vmatpush1.bf16.msra.mxu0 %v12980_v42  ;;  %1855 = vmatpush1.bf16.msra.mxu1 %v12982_v43  ;;  %v346_v17 = vld [vmem:[#allocation5 + $0x540] sm:$0xff]  ;;  %v347_v19 = vld [vmem:[#allocation5 + $0x548] sm:$0xff]  ;;  %v12921_v8 = vcombine.high %v180_v2, %v188_v3  ;;  %v196_v10 = vld [vmem:[#allocation5 + $0x90] sm:$0xff] }
  0xdb   :  { %1815 = vmatprep.subr.bf16.mxu0 %v12997_v44  ;;  %1856 = vmatprep.subr.bf16.mxu1 %v12999_v45  ;;  %v13077_v22 = vcombine.high %v338_v16, %v346_v17  ;;  %v13079_v23 = vcombine.high %v339_v18, %v347_v19  ;;  %v354_v24 = vld [vmem:[#allocation5 + $0x580] sm:$0xff]  ;;  %v355_v26 = vld [vmem:[#allocation5 + $0x588] sm:$0xff]  ;;  %v13076_v28 = vcombine.low %v338_v16, %v346_v17  ;;  %v204_v11 = vld [vmem:[#allocation5 + $0xd0] sm:$0xff] }
  0xdc   :  { %v362_v25 = vld [vmem:[#allocation5 + $0x5c0] sm:$0xff]  ;;  %v363_v27 = vld [vmem:[#allocation5 + $0x5c8] sm:$0xff]  ;;  %v13078_v29 = vcombine.low %v339_v18, %v347_v19  ;;  %v12937_v17 = vcombine.high %v196_v10, %v204_v11  ;;  %v212_v18 = vld [vmem:[#allocation5 + $0x110] sm:$0xff] }
  0xdd   :  { %v13093_v30 = vcombine.high %v354_v24, %v362_v25  ;;  %v13095_v31 = vcombine.high %v355_v26, %v363_v27  ;;  %v370_v32 = vld [vmem:[#allocation5 + $0x600] sm:$0xff]  ;;  %v371_v34 = vld [vmem:[#allocation5 + $0x608] sm:$0xff]  ;;  %v13092_v36 = vcombine.low %v354_v24, %v362_v25  ;;  %v13094_v37 = vcombine.low %v355_v26, %v363_v27  ;;  %v220_v19 = vld [vmem:[#allocation5 + $0x150] sm:$0xff] }
  0xde   :  { %1816 = vmatpush1.bf16.msra.mxu0 %v12996_v50  ;;  %1857 = vmatpush1.bf16.msra.mxu1 %v12998_v51  ;;  %v378_v33 = vld [vmem:[#allocation5 + $0x640] sm:$0xff]  ;;  %v379_v35 = vld [vmem:[#allocation5 + $0x648] sm:$0xff]  ;;  %v12953_v24 = vcombine.high %v212_v18, %v220_v19  ;;  %v228_v25 = vld [vmem:[#allocation5 + $0x190] sm:$0xff] }
  0xdf   :  { %1817 = vmatprep.subr.bf16.mxu0 %v13013_v52  ;;  %1858 = vmatprep.subr.bf16.mxu1 %v13015_v54  ;;  %v13109_v38 = vcombine.high %v370_v32, %v378_v33  ;;  %v13111_v39 = vcombine.high %v371_v34, %v379_v35  ;;  %v386_v40 = vld [vmem:[#allocation5 + $0x680] sm:$0xff]  ;;  %v387_v42 = vld [vmem:[#allocation5 + $0x688] sm:$0xff]  ;;  %v13108_v44 = vcombine.low %v370_v32, %v378_v33  ;;  %v236_v26 = vld [vmem:[#allocation5 + $0x1d0] sm:$0xff] }
  0xe0   :  { %v394_v41 = vld [vmem:[#allocation5 + $0x6c0] sm:$0xff]  ;;  %v395_v43 = vld [vmem:[#allocation5 + $0x6c8] sm:$0xff]  ;;  %v13110_v45 = vcombine.low %v371_v34, %v379_v35  ;;  %v229_v27 = vld [vmem:[#allocation5 + $0x198] sm:$0xff]  ;;  %v12969_v32 = vcombine.high %v228_v25, %v236_v26 }
  0xe1   :  { %v13125_v46 = vcombine.high %v386_v40, %v394_v41  ;;  %v13127_v47 = vcombine.high %v387_v42, %v395_v43  ;;  %v402_v48 = vld [vmem:[#allocation5 + $0x700] sm:$0xff]  ;;  %v403_v50 = vld [vmem:[#allocation5 + $0x708] sm:$0xff]  ;;  %v13124_v52 = vcombine.low %v386_v40, %v394_v41  ;;  %v13126_v54 = vcombine.low %v387_v42, %v395_v43  ;;  %v244_v33 = vld [vmem:[#allocation5 + $0x210] sm:$0xff] }
  0xe2   :  { %1818 = vmatpush1.bf16.msra.mxu0 %v13012_v60  ;;  %1859 = vmatpush1.bf16.msra.mxu1 %v13014_v61  ;;  %v410_v49 = vld [vmem:[#allocation5 + $0x740] sm:$0xff]  ;;  %v411_v51 = vld [vmem:[#allocation5 + $0x748] sm:$0xff]  ;;  %v252_v34 = vld [vmem:[#allocation5 + $0x250] sm:$0xff] }
  0xe3   :  { %1819 = vmatprep.subr.bf16.mxu0 %v13029_v62  ;;  %1860 = vmatprep.subr.bf16.mxu1 %v13031_v63  ;;  %v13141_v55 = vcombine.high %v402_v48, %v410_v49  ;;  %v13143_v56 = vcombine.high %v403_v50, %v411_v51  ;;  %v418_v58 = vld [vmem:[#allocation5 + $0x780] sm:$0xff]  ;;  %v419_v60 = vld [vmem:[#allocation5 + $0x788] sm:$0xff]  ;;  %v13140_v62 = vcombine.low %v402_v48, %v410_v49  ;;  %v245_v35 = vld [vmem:[#allocation5 + $0x218] sm:$0xff] }
  0xe4   :  { %v426_v59 = vld [vmem:[#allocation5 + $0x7c0] sm:$0xff]  ;;  %v427_v61 = vld [vmem:[#allocation5 + $0x7c8] sm:$0xff]  ;;  %v13142_v63 = vcombine.low %v403_v50, %v411_v51  ;;  %v12985_v40 = vcombine.high %v244_v33, %v252_v34  ;;  %v260_v41 = vld [vmem:[#allocation5 + $0x290] sm:$0xff] }
  0xe5   :  { %v13157_v0 = vcombine.high %v418_v58, %v426_v59  ;;  %v13159_v1 = vcombine.high %v419_v60, %v427_v61  ;;  %v268_v42 = vld [vmem:[#allocation5 + $0x2d0] sm:$0xff]  ;;  %v261_v43 = vld [vmem:[#allocation5 + $0x298] sm:$0xff] }
  0xe6   :  { %1820 = vmatpush1.bf16.msra.mxu0 %v13028_v4  ;;  %1861 = vmatpush1.bf16.msra.mxu1 %v13030_v5  ;;  %v181_v4 = vld [vmem:[#allocation5 + $0x18] sm:$0xff]  ;;  %v13001_v48 = vcombine.high %v260_v41, %v268_v42  ;;  %v276_v49 = vld [vmem:[#allocation5 + $0x310] sm:$0xff] }
  0xe7   :  { %1821 = vmatprep.subr.bf16.mxu0 %v13045_v6  ;;  %1862 = vmatprep.subr.bf16.mxu1 %v13047_v7  ;;  %v189_v5 = vld [vmem:[#allocation5 + $0x58] sm:$0xff]  ;;  %v13156_v6 = vcombine.low %v418_v58, %v426_v59  ;;  %v13158_v7 = vcombine.low %v419_v60, %v427_v61  ;;  %v284_v50 = vld [vmem:[#allocation5 + $0x350] sm:$0xff] }
  0xe8   :  { %v12923_v9 = vcombine.high %v181_v4, %v189_v5  ;;  %v12922_v16 = vcombine.low %v181_v4, %v189_v5  ;;  %v277_v51 = vld [vmem:[#allocation5 + $0x318] sm:$0xff]  ;;  %v13017_v58 = vcombine.high %v276_v49, %v284_v50  ;;  %v292_v59 = vld [vmem:[#allocation5 + $0x390] sm:$0xff] }
  0xe9   :  { %v300_v60 = vld [vmem:[#allocation5 + $0x3d0] sm:$0xff]  ;;  %v293_v61 = vld [vmem:[#allocation5 + $0x398] sm:$0xff] }
  0xea   :  { %1822 = vmatpush1.bf16.msra.mxu0 %v13044_v12  ;;  %1863 = vmatpush1.bf16.msra.mxu1 %v13046_v13  ;;  %v15951_v12 = vcombine.low %v15941_v53, %v15941_v53  ;;  %v197_v13 = vld [vmem:[#allocation5 + $0x98] sm:$0xff]  ;;  %v12936_v53 = vcombine.low %v196_v10, %v204_v11  ;;  %v316_v4 = vld [vmem:[#allocation5 + $0x450] sm:$0xff] }
  0xeb   :  { %1823 = vmatprep.subr.bf16.mxu0 %v13061_v14  ;;  %1864 = vmatprep.subr.bf16.mxu1 %v13063_v15  ;;  %v205_v14 = vld [vmem:[#allocation5 + $0xd8] sm:$0xff]  ;;  %v12920_v15 = vcombine.low %v180_v2, %v188_v3  ;;  %v13033_v2 = vcombine.high %v292_v59, %v300_v60  ;;  %v308_v3 = vld [vmem:[#allocation5 + $0x410] sm:$0xff] }
  0xec   :  { %v309_v5 = vld [vmem:[#allocation5 + $0x418] sm:$0xff]  ;;  %v13049_v10 = vcombine.high %v308_v3, %v316_v4  ;;  %v324_v11 = vld [vmem:[#allocation5 + $0x490] sm:$0xff] }
  0xee   :  { %1824 = vmatpush1.bf16.msra.mxu0 %v13060_v20  ;;  %1865 = vmatpush1.bf16.msra.mxu1 %v13062_v21  ;;  %v213_v20 = vld [vmem:[#allocation5 + $0x118] sm:$0xff]  ;;  %v12939_v21 = vcombine.high %v197_v13, %v205_v14 }
  0xef   :  { %1825 = vmatprep.subr.bf16.mxu0 %v13077_v22  ;;  %1866 = vmatprep.subr.bf16.mxu1 %v13079_v23  ;;  %v221_v22 = vld [vmem:[#allocation5 + $0x158] sm:$0xff]  ;;  %v12938_v23 = vcombine.low %v197_v13, %v205_v14  ;;  %v332_v13 = vld [vmem:[#allocation5 + $0x4d0] sm:$0xff] }
  0xf0   :  { %v325_v14 = vld [vmem:[#allocation5 + $0x498] sm:$0xff] }
  0xf2   :  { %1826 = vmatpush1.bf16.msra.mxu0 %v13076_v28  ;;  %1867 = vmatpush1.bf16.msra.mxu1 %v13078_v29  ;;  %v12955_v28 = vcombine.high %v213_v20, %v221_v22  ;;  %v237_v29 = vld [vmem:[#allocation5 + $0x1d8] sm:$0xff] }
  0xf3   :  { %1827 = vmatprep.subr.bf16.mxu0 %v13093_v30  ;;  %1868 = vmatprep.subr.bf16.mxu1 %v13095_v31  ;;  %v12952_v30 = vcombine.low %v212_v18, %v220_v19  ;;  %v12954_v31 = vcombine.low %v213_v20, %v221_v22  ;;  %v13065_v19 = vcombine.high %v324_v11, %v332_v13  ;;  %v340_v20 = vld [vmem:[#allocation5 + $0x510] sm:$0xff]  ;;  %v341_v22 = vld [vmem:[#allocation5 + $0x518] sm:$0xff] }
  0xf6   :  { %1828 = vmatpush1.bf16.msra.mxu0 %v13092_v36  ;;  %1869 = vmatpush1.bf16.msra.mxu1 %v13094_v37  ;;  %v12971_v36 = vcombine.high %v229_v27, %v237_v29  ;;  %v253_v37 = vld [vmem:[#allocation5 + $0x258] sm:$0xff] }
  0xf7   :  { %1829 = vmatprep.subr.bf16.mxu0 %v13109_v38  ;;  %1870 = vmatprep.subr.bf16.mxu1 %v13111_v39  ;;  %v12968_v38 = vcombine.low %v228_v25, %v236_v26  ;;  %v12970_v39 = vcombine.low %v229_v27, %v237_v29  ;;  %v356_v27 = vld [vmem:[#allocation5 + $0x590] sm:$0xff]  ;;  %v357_v29 = vld [vmem:[#allocation5 + $0x598] sm:$0xff] }
  0xfa   :  { %1830 = vmatpush1.bf16.msra.mxu0 %v13108_v44  ;;  %1871 = vmatpush1.bf16.msra.mxu1 %v13110_v45  ;;  %v12987_v44 = vcombine.high %v245_v35, %v253_v37  ;;  %v269_v45 = vld [vmem:[#allocation5 + $0x2d8] sm:$0xff] }
  0xfb   :  { %1831 = vmatprep.subr.bf16.mxu0 %v13125_v46  ;;  %1872 = vmatprep.subr.bf16.mxu1 %v13127_v47  ;;  %v12984_v46 = vcombine.low %v244_v33, %v252_v34  ;;  %v12986_v47 = vcombine.low %v245_v35, %v253_v37  ;;  %v372_v35 = vld [vmem:[#allocation5 + $0x610] sm:$0xff]  ;;  %v373_v37 = vld [vmem:[#allocation5 + $0x618] sm:$0xff] }
  0xfe   :  { %1832 = vmatpush1.bf16.msra.mxu0 %v13124_v52  ;;  %1873 = vmatpush1.bf16.msra.mxu1 %v13126_v54  ;;  %v13003_v52 = vcombine.high %v261_v43, %v269_v45  ;;  %v285_v54 = vld [vmem:[#allocation5 + $0x358] sm:$0xff] }
  0xff   :  { %1833 = vmatprep.subr.bf16.mxu0 %v13141_v55  ;;  %1874 = vmatprep.subr.bf16.mxu1 %v13143_v56  ;;  %v13000_v55 = vcombine.low %v260_v41, %v268_v42  ;;  %v13002_v56 = vcombine.low %v261_v43, %v269_v45  ;;  %v388_v43 = vld [vmem:[#allocation5 + $0x690] sm:$0xff]  ;;  %v389_v45 = vld [vmem:[#allocation5 + $0x698] sm:$0xff] }
 0x102   :  { %1834 = vmatpush1.bf16.msra.mxu0 %v13140_v62  ;;  %1875 = vmatpush1.bf16.msra.mxu1 %v13142_v63  ;;  %v13019_v62 = vcombine.high %v277_v51, %v285_v54  ;;  %v301_v63 = vld [vmem:[#allocation5 + $0x3d8] sm:$0xff] }
 0x103   :  { %1835 = vmatprep.subr.bf16.mxu0 %v13157_v0  ;;  %1876 = vmatprep.subr.bf16.mxu1 %v13159_v1  ;;  %v13016_v0 = vcombine.low %v276_v49, %v284_v50  ;;  %v13018_v1 = vcombine.low %v277_v51, %v285_v54  ;;  %v404_v51 = vld [vmem:[#allocation5 + $0x710] sm:$0xff]  ;;  %v405_v54 = vld [vmem:[#allocation5 + $0x718] sm:$0xff] }
 0x106   :  { %1836 = vmatpush1.bf16.msra.mxu0 %v13156_v6  ;;  %1877 = vmatpush1.bf16.msra.mxu1 %v13158_v7  ;;  %v13035_v6 = vcombine.high %v293_v61, %v301_v63  ;;  %v317_v7 = vld [vmem:[#allocation5 + $0x458] sm:$0xff] }
 0x107   :  { %1887 = vmatprep.subr.bf16.mxu0 %v12921_v8  ;;  %1928 = vmatprep.subr.bf16.mxu1 %v12923_v9  ;;  %v13032_v8 = vcombine.low %v292_v59, %v300_v60  ;;  %v13034_v9 = vcombine.low %v293_v61, %v301_v63  ;;  %v13050_v18 = vcombine.low %v309_v5, %v317_v7  ;;  %v420_v61 = vld [vmem:[#allocation5 + $0x790] sm:$0xff]  ;;  %v421_v63 = vld [vmem:[#allocation5 + $0x798] sm:$0xff] }
 0x109   :  { %1838 = vmatmul.mubr.bf16.vlgmr.msra.gmra.mrb[0].mxu0 %v15951_v12  ;;  %1879 = vmatmul.mubr.bf16.vlgmr.msra.gmra.mrb[0].mxu1 %v15951_v12 }
 0x10a   :  { %1888 = vmatpush1.bf16.msra.mxu0 %v12920_v15  ;;  %1929 = vmatpush1.bf16.msra.mxu1 %v12922_v16  ;;  %v13051_v15 = vcombine.high %v309_v5, %v317_v7  ;;  %v333_v16 = vld [vmem:[#allocation5 + $0x4d8] sm:$0xff]  ;;  %v182_v5 = vld [vmem:[#allocation5 + $0x20] sm:$0xff]  ;;  %v183_v7 = vld [vmem:[#allocation5 + $0x28] sm:$0xff] }
 0x10b   :  { %1889 = vmatprep.subr.bf16.mxu0 %v12937_v17  ;;  %1930 = vmatprep.subr.bf16.mxu1 %v12939_v21  ;;  %v13048_v17 = vcombine.low %v308_v3, %v316_v4  ;;  %v348_v21 = vld [vmem:[#allocation5 + $0x550] sm:$0xff]  ;;  %v13066_v25 = vcombine.low %v325_v14, %v333_v16 }
 0x10c   :  { %1919 = vmatprep.mubr.bf16.mxu0 %v15945_v57  ;;  %1960 = vmatprep.mubr.bf16.mxu1 %v15945_v57  ;;  %v13081_v26 = vcombine.high %v340_v20, %v348_v21 }
 0x10e   :  { %1890 = vmatpush1.bf16.msra.mxu0 %v12936_v53  ;;  %1931 = vmatpush1.bf16.msra.mxu1 %v12938_v23  ;;  %v13067_v53 = vcombine.high %v325_v14, %v333_v16  ;;  %v349_v23 = vld [vmem:[#allocation5 + $0x558] sm:$0xff]  ;;  %v198_v14 = vld [vmem:[#allocation5 + $0xa0] sm:$0xff]  ;;  %v199_v16 = vld [vmem:[#allocation5 + $0xa8] sm:$0xff] }
 0x10f   :  { %1891 = vmatprep.subr.bf16.mxu0 %v12953_v24  ;;  %1932 = vmatprep.subr.bf16.mxu1 %v12955_v28  ;;  %v13064_v24 = vcombine.low %v324_v11, %v332_v13  ;;  %v364_v28 = vld [vmem:[#allocation5 + $0x5d0] sm:$0xff]  ;;  %v13082_v33 = vcombine.low %v341_v22, %v349_v23 }
 0x110   :  { %v13097_v34 = vcombine.high %v356_v27, %v364_v28 }
 0x112   :  { %1892 = vmatpush1.bf16.msra.mxu0 %v12952_v30  ;;  %1933 = vmatpush1.bf16.msra.mxu1 %v12954_v31  ;;  %v13083_v30 = vcombine.high %v341_v22, %v349_v23  ;;  %v365_v31 = vld [vmem:[#allocation5 + $0x5d8] sm:$0xff]  ;;  %v214_v22 = vld [vmem:[#allocation5 + $0x120] sm:$0xff]  ;;  %v215_v23 = vld [vmem:[#allocation5 + $0x128] sm:$0xff] }
 0x113   :  { %1893 = vmatprep.subr.bf16.mxu0 %v12969_v32  ;;  %1934 = vmatprep.subr.bf16.mxu1 %v12971_v36  ;;  %v13080_v32 = vcombine.low %v340_v20, %v348_v21  ;;  %v380_v36 = vld [vmem:[#allocation5 + $0x650] sm:$0xff]  ;;  %v13098_v41 = vcombine.low %v357_v29, %v365_v31 }
 0x114   :  { %v13113_v42 = vcombine.high %v372_v35, %v380_v36 }
 0x116   :  { %1894 = vmatpush1.bf16.msra.mxu0 %v12968_v38  ;;  %1935 = vmatpush1.bf16.msra.mxu1 %v12970_v39  ;;  %v13099_v38 = vcombine.high %v357_v29, %v365_v31  ;;  %v381_v39 = vld [vmem:[#allocation5 + $0x658] sm:$0xff]  ;;  %v230_v29 = vld [vmem:[#allocation5 + $0x1a0] sm:$0xff]  ;;  %v231_v31 = vld [vmem:[#allocation5 + $0x1a8] sm:$0xff] }
 0x117   :  { %1895 = vmatprep.subr.bf16.mxu0 %v12985_v40  ;;  %1936 = vmatprep.subr.bf16.mxu1 %v12987_v44  ;;  %v13096_v40 = vcombine.low %v356_v27, %v364_v28  ;;  %v396_v44 = vld [vmem:[#allocation5 + $0x6d0] sm:$0xff]  ;;  %v13114_v49 = vcombine.low %v373_v37, %v381_v39 }
 0x118   :  { %v13129_v50 = vcombine.high %v388_v43, %v396_v44 }
 0x11a   :  { %1896 = vmatpush1.bf16.msra.mxu0 %v12984_v46  ;;  %1937 = vmatpush1.bf16.msra.mxu1 %v12986_v47  ;;  %v13115_v46 = vcombine.high %v373_v37, %v381_v39  ;;  %v397_v47 = vld [vmem:[#allocation5 + $0x6d8] sm:$0xff]  ;;  %v246_v37 = vld [vmem:[#allocation5 + $0x220] sm:$0xff]  ;;  %v247_v39 = vld [vmem:[#allocation5 + $0x228] sm:$0xff] }
 0x11b   :  { %1897 = vmatprep.subr.bf16.mxu0 %v13001_v48  ;;  %1938 = vmatprep.subr.bf16.mxu1 %v13003_v52  ;;  %v13112_v48 = vcombine.low %v372_v35, %v380_v36  ;;  %v412_v52 = vld [vmem:[#allocation5 + $0x750] sm:$0xff]  ;;  %v13130_v59 = vcombine.low %v389_v45, %v397_v47 }
 0x11c   :  { %v13145_v60 = vcombine.high %v404_v51, %v412_v52 }
 0x11e   :  { %1898 = vmatpush1.bf16.msra.mxu0 %v13000_v55  ;;  %1939 = vmatpush1.bf16.msra.mxu1 %v13002_v56  ;;  %v13131_v55 = vcombine.high %v389_v45, %v397_v47  ;;  %v413_v56 = vld [vmem:[#allocation5 + $0x758] sm:$0xff]  ;;  %v262_v45 = vld [vmem:[#allocation5 + $0x2a0] sm:$0xff]  ;;  %v263_v47 = vld [vmem:[#allocation5 + $0x2a8] sm:$0xff] }
 0x11f   :  { %1899 = vmatprep.subr.bf16.mxu0 %v13017_v58  ;;  %1940 = vmatprep.subr.bf16.mxu1 %v13019_v62  ;;  %v13128_v58 = vcombine.low %v388_v43, %v396_v44  ;;  %v428_v62 = vld [vmem:[#allocation5 + $0x7d0] sm:$0xff]  ;;  %v13146_v3 = vcombine.low %v405_v54, %v413_v56 }
 0x120   :  { %v13161_v4 = vcombine.high %v420_v61, %v428_v62 }
 0x122   :  { %1900 = vmatpush1.bf16.msra.mxu0 %v13016_v0  ;;  %1941 = vmatpush1.bf16.msra.mxu1 %v13018_v1  ;;  %v13147_v0 = vcombine.high %v405_v54, %v413_v56  ;;  %v429_v1 = vld [vmem:[#allocation5 + $0x7d8] sm:$0xff]  ;;  %v278_v54 = vld [vmem:[#allocation5 + $0x320] sm:$0xff]  ;;  %v279_v56 = vld [vmem:[#allocation5 + $0x328] sm:$0xff] }
 0x123   :  { %1901 = vmatprep.subr.bf16.mxu0 %v13033_v2  ;;  %1942 = vmatprep.subr.bf16.mxu1 %v13035_v6  ;;  %v13144_v2 = vcombine.low %v404_v51, %v412_v52  ;;  %v190_v6 = vld [vmem:[#allocation5 + $0x60] sm:$0xff]  ;;  %v13162_v11 = vcombine.low %v421_v63, %v429_v1 }
 0x124   :  { %v12925_v13 = vcombine.high %v182_v5, %v190_v6 }
 0x126   :  { %1902 = vmatpush1.bf16.msra.mxu0 %v13032_v8  ;;  %1943 = vmatpush1.bf16.msra.mxu1 %v13034_v9  ;;  %v13163_v8 = vcombine.high %v421_v63, %v429_v1  ;;  %v191_v9 = vld [vmem:[#allocation5 + $0x68] sm:$0xff]  ;;  %v294_v63 = vld [vmem:[#allocation5 + $0x3a0] sm:$0xff] }
 0x127   :  { %1903 = vmatprep.subr.bf16.mxu0 %v13049_v10  ;;  %1944 = vmatprep.subr.bf16.mxu1 %v13051_v15  ;;  %v13160_v10 = vcombine.low %v420_v61, %v428_v62  ;;  %v206_v15 = vld [vmem:[#allocation5 + $0xe0] sm:$0xff]  ;;  %v12926_v20 = vcombine.low %v183_v7, %v191_v9 }
 0x128   :  { %v12941_v21 = vcombine.high %v198_v14, %v206_v15 }
 0x12a   :  { %1904 = vmatpush1.bf16.msra.mxu0 %v13048_v17  ;;  %1945 = vmatpush1.bf16.msra.mxu1 %v13050_v18  ;;  %v12927_v17 = vcombine.high %v183_v7, %v191_v9  ;;  %v207_v18 = vld [vmem:[#allocation5 + $0xe8] sm:$0xff]  ;;  %v310_v7 = vld [vmem:[#allocation5 + $0x420] sm:$0xff] }
 0x12b   :  { %1905 = vmatprep.subr.bf16.mxu0 %v13065_v19  ;;  %1946 = vmatprep.subr.bf16.mxu1 %v13067_v53  ;;  %v12924_v19 = vcombine.low %v182_v5, %v190_v6  ;;  %v222_v53 = vld [vmem:[#allocation5 + $0x160] sm:$0xff]  ;;  %v12942_v27 = vcombine.low %v199_v16, %v207_v18  ;;  %v311_v9 = vld [vmem:[#allocation5 + $0x428] sm:$0xff] }
 0x12c   :  { %v12957_v28 = vcombine.high %v214_v22, %v222_v53 }
 0x12e   :  { %1906 = vmatpush1.bf16.msra.mxu0 %v13064_v24  ;;  %1947 = vmatpush1.bf16.msra.mxu1 %v13066_v25  ;;  %v12943_v24 = vcombine.high %v199_v16, %v207_v18  ;;  %v223_v25 = vld [vmem:[#allocation5 + $0x168] sm:$0xff]  ;;  %v326_v16 = vld [vmem:[#allocation5 + $0x4a0] sm:$0xff] }
 0x12f   :  { %1907 = vmatprep.subr.bf16.mxu0 %v13081_v26  ;;  %1948 = vmatprep.subr.bf16.mxu1 %v13083_v30  ;;  %v12940_v26 = vcombine.low %v198_v14, %v206_v15  ;;  %v238_v30 = vld [vmem:[#allocation5 + $0x1e0] sm:$0xff]  ;;  %v12958_v35 = vcombine.low %v215_v23, %v223_v25  ;;  %v327_v18 = vld [vmem:[#allocation5 + $0x4a8] sm:$0xff] }
 0x130   :  { %v12973_v36 = vcombine.high %v230_v29, %v238_v30 }
 0x132   :  { %1908 = vmatpush1.bf16.msra.mxu0 %v13080_v32  ;;  %1949 = vmatpush1.bf16.msra.mxu1 %v13082_v33  ;;  %v12959_v32 = vcombine.high %v215_v23, %v223_v25  ;;  %v239_v33 = vld [vmem:[#allocation5 + $0x1e8] sm:$0xff]  ;;  %v342_v23 = vld [vmem:[#allocation5 + $0x520] sm:$0xff] }
 0x133   :  { %1909 = vmatprep.subr.bf16.mxu0 %v13097_v34  ;;  %1950 = vmatprep.subr.bf16.mxu1 %v13099_v38  ;;  %v12956_v34 = vcombine.low %v214_v22, %v222_v53  ;;  %v254_v38 = vld [vmem:[#allocation5 + $0x260] sm:$0xff]  ;;  %v12974_v43 = vcombine.low %v231_v31, %v239_v33  ;;  %v343_v25 = vld [vmem:[#allocation5 + $0x528] sm:$0xff] }
 0x134   :  { %v12989_v44 = vcombine.high %v246_v37, %v254_v38 }
 0x136   :  { %1910 = vmatpush1.bf16.msra.mxu0 %v13096_v40  ;;  %1951 = vmatpush1.bf16.msra.mxu1 %v13098_v41  ;;  %v12975_v40 = vcombine.high %v231_v31, %v239_v33  ;;  %v255_v41 = vld [vmem:[#allocation5 + $0x268] sm:$0xff]  ;;  %v358_v31 = vld [vmem:[#allocation5 + $0x5a0] sm:$0xff] }
 0x137   :  { %1911 = vmatprep.subr.bf16.mxu0 %v13113_v42  ;;  %1952 = vmatprep.subr.bf16.mxu1 %v13115_v46  ;;  %v12972_v42 = vcombine.low %v230_v29, %v238_v30  ;;  %v270_v46 = vld [vmem:[#allocation5 + $0x2e0] sm:$0xff]  ;;  %v12990_v51 = vcombine.low %v247_v39, %v255_v41  ;;  %v359_v33 = vld [vmem:[#allocation5 + $0x5a8] sm:$0xff] }
 0x138   :  { %v13005_v52 = vcombine.high %v262_v45, %v270_v46 }
 0x13a   :  { %1912 = vmatpush1.bf16.msra.mxu0 %v13112_v48  ;;  %1953 = vmatpush1.bf16.msra.mxu1 %v13114_v49  ;;  %v12991_v48 = vcombine.high %v247_v39, %v255_v41  ;;  %v271_v49 = vld [vmem:[#allocation5 + $0x2e8] sm:$0xff]  ;;  %v374_v39 = vld [vmem:[#allocation5 + $0x620] sm:$0xff] }
 0x13b   :  { %1913 = vmatprep.subr.bf16.mxu0 %v13129_v50  ;;  %1954 = vmatprep.subr.bf16.mxu1 %v13131_v55  ;;  %v12988_v50 = vcombine.low %v246_v37, %v254_v38  ;;  %v286_v55 = vld [vmem:[#allocation5 + $0x360] sm:$0xff]  ;;  %v13006_v61 = vcombine.low %v263_v47, %v271_v49  ;;  %v375_v41 = vld [vmem:[#allocation5 + $0x628] sm:$0xff] }
 0x13c   :  { %v13021_v62 = vcombine.high %v278_v54, %v286_v55 }
 0x13e   :  { %1914 = vmatpush1.bf16.msra.mxu0 %v13128_v58  ;;  %1955 = vmatpush1.bf16.msra.mxu1 %v13130_v59  ;;  %v13007_v58 = vcombine.high %v263_v47, %v271_v49  ;;  %v287_v59 = vld [vmem:[#allocation5 + $0x368] sm:$0xff]  ;;  %v390_v47 = vld [vmem:[#allocation5 + $0x6a0] sm:$0xff] }
 0x13f   :  { %1915 = vmatprep.subr.bf16.mxu0 %v13145_v60  ;;  %1956 = vmatprep.subr.bf16.mxu1 %v13147_v0  ;;  %v13004_v60 = vcombine.low %v262_v45, %v270_v46  ;;  %v302_v0 = vld [vmem:[#allocation5 + $0x3e0] sm:$0xff]  ;;  %v13023_v1 = vcombine.high %v279_v56, %v287_v59  ;;  %v13022_v5 = vcombine.low %v279_v56, %v287_v59  ;;  %v391_v49 = vld [vmem:[#allocation5 + $0x6a8] sm:$0xff] }
 0x140   :  { %v13037_v6 = vcombine.high %v294_v63, %v302_v0  ;;  %v406_v56 = vld [vmem:[#allocation5 + $0x720] sm:$0xff]  ;;  %v407_v59 = vld [vmem:[#allocation5 + $0x728] sm:$0xff] }
 0x142   :  { %1916 = vmatpush1.bf16.msra.mxu0 %v13144_v2  ;;  %1957 = vmatpush1.bf16.msra.mxu1 %v13146_v3  ;;  %v295_v2 = vld [vmem:[#allocation5 + $0x3a8] sm:$0xff] }
 0x143   :  { %1917 = vmatprep.subr.bf16.mxu0 %v13161_v4  ;;  %1958 = vmatprep.subr.bf16.mxu1 %v13163_v8  ;;  %v303_v3 = vld [vmem:[#allocation5 + $0x3e8] sm:$0xff]  ;;  %v13020_v4 = vcombine.low %v278_v54, %v286_v55  ;;  %v318_v8 = vld [vmem:[#allocation5 + $0x460] sm:$0xff] }
 0x144   :  { %v13038_v14 = vcombine.low %v295_v2, %v303_v3  ;;  %v13053_v15 = vcombine.high %v310_v7, %v318_v8 }
 0x146   :  { %1918 = vmatpush1.bf16.msra.mxu0 %v13160_v10  ;;  %1959 = vmatpush1.bf16.msra.mxu1 %v13162_v11  ;;  %v13039_v10 = vcombine.high %v295_v2, %v303_v3  ;;  %v319_v11 = vld [vmem:[#allocation5 + $0x468] sm:$0xff]  ;;  %v430_v2 = vld [vmem:[#allocation5 + $0x7e0] sm:$0xff] }
 0x147   :  { %1969 = vmatprep.subr.bf16.mxu0 %v12925_v13  ;;  %2010 = vmatprep.subr.bf16.mxu1 %v12927_v17  ;;  %v13036_v13 = vcombine.low %v294_v63, %v302_v0  ;;  %v334_v17 = vld [vmem:[#allocation5 + $0x4e0] sm:$0xff]  ;;  %v13054_v22 = vcombine.low %v311_v9, %v319_v11  ;;  %v423_v3 = vld [vmem:[#allocation5 + $0x7a8] sm:$0xff] }
 0x148   :  { %v13069_v53 = vcombine.high %v326_v16, %v334_v17 }
 0x149   :  { %1920 = vmatmul.mubr.bf16.vlgmr.msra.gmra.mrb[4].mxu0 %v15951_v12  ;;  %1961 = vmatmul.mubr.bf16.vlgmr.msra.gmra.mrb[4].mxu1 %v15951_v12 }
 0x14a   :  { %1970 = vmatpush1.bf16.msra.mxu0 %v12924_v19  ;;  %2011 = vmatpush1.bf16.msra.mxu1 %v12926_v20  ;;  %v13055_v19 = vcombine.high %v311_v9, %v319_v11  ;;  %v335_v20 = vld [vmem:[#allocation5 + $0x4e8] sm:$0xff]  ;;  %v184_v9 = vld [vmem:[#allocation5 + $0x30] sm:$0xff]  ;;  %v185_v11 = vld [vmem:[#allocation5 + $0x38] sm:$0xff] }
 0x14b   :  { %1971 = vmatprep.subr.bf16.mxu0 %v12941_v21  ;;  %2012 = vmatprep.subr.bf16.mxu1 %v12943_v24  ;;  %v13052_v21 = vcombine.low %v310_v7, %v318_v8  ;;  %v350_v24 = vld [vmem:[#allocation5 + $0x560] sm:$0xff]  ;;  %v13070_v29 = vcombine.low %v327_v18, %v335_v20 }
 0x14c   :  { %2001 = vmatprep.mubr.bf16.mxu0 %v15945_v57  ;;  %2042 = vmatprep.mubr.bf16.mxu1 %v15945_v57  ;;  %v13085_v30 = vcombine.high %v342_v23, %v350_v24 }
 0x14e   :  { %1972 = vmatpush1.bf16.msra.mxu0 %v12940_v26  ;;  %2013 = vmatpush1.bf16.msra.mxu1 %v12942_v27  ;;  %v13071_v26 = vcombine.high %v327_v18, %v335_v20  ;;  %v351_v27 = vld [vmem:[#allocation5 + $0x568] sm:$0xff]  ;;  %v200_v18 = vld [vmem:[#allocation5 + $0xb0] sm:$0xff]  ;;  %v201_v20 = vld [vmem:[#allocation5 + $0xb8] sm:$0xff] }
 0x14f   :  { %1973 = vmatprep.subr.bf16.mxu0 %v12957_v28  ;;  %2014 = vmatprep.subr.bf16.mxu1 %v12959_v32  ;;  %v13068_v28 = vcombine.low %v326_v16, %v334_v17  ;;  %v366_v32 = vld [vmem:[#allocation5 + $0x5e0] sm:$0xff]  ;;  %v13086_v37 = vcombine.low %v343_v25, %v351_v27 }
 0x150   :  { %v13101_v38 = vcombine.high %v358_v31, %v366_v32 }
 0x152   :  { %1974 = vmatpush1.bf16.msra.mxu0 %v12956_v34  ;;  %2015 = vmatpush1.bf16.msra.mxu1 %v12958_v35  ;;  %v13087_v34 = vcombine.high %v343_v25, %v351_v27  ;;  %v367_v35 = vld [vmem:[#allocation5 + $0x5e8] sm:$0xff]  ;;  %v216_v25 = vld [vmem:[#allocation5 + $0x130] sm:$0xff]  ;;  %v217_v27 = vld [vmem:[#allocation5 + $0x138] sm:$0xff] }
 0x153   :  { %1975 = vmatprep.subr.bf16.mxu0 %v12973_v36  ;;  %2016 = vmatprep.subr.bf16.mxu1 %v12975_v40  ;;  %v13084_v36 = vcombine.low %v342_v23, %v350_v24  ;;  %v382_v40 = vld [vmem:[#allocation5 + $0x660] sm:$0xff]  ;;  %v13102_v45 = vcombine.low %v359_v33, %v367_v35 }
 0x154   :  { %v13117_v46 = vcombine.high %v374_v39, %v382_v40 }
 0x156   :  { %1976 = vmatpush1.bf16.msra.mxu0 %v12972_v42  ;;  %2017 = vmatpush1.bf16.msra.mxu1 %v12974_v43  ;;  %v13103_v42 = vcombine.high %v359_v33, %v367_v35  ;;  %v383_v43 = vld [vmem:[#allocation5 + $0x668] sm:$0xff]  ;;  %v232_v33 = vld [vmem:[#allocation5 + $0x1b0] sm:$0xff]  ;;  %v233_v35 = vld [vmem:[#allocation5 + $0x1b8] sm:$0xff] }
 0x157   :  { %1977 = vmatprep.subr.bf16.mxu0 %v12989_v44  ;;  %2018 = vmatprep.subr.bf16.mxu1 %v12991_v48  ;;  %v13100_v44 = vcombine.low %v358_v31, %v366_v32  ;;  %v398_v48 = vld [vmem:[#allocation5 + $0x6e0] sm:$0xff]  ;;  %v13118_v54 = vcombine.low %v375_v41, %v383_v43 }
 0x158   :  { %v13133_v55 = vcombine.high %v390_v47, %v398_v48 }
 0x15a   :  { %1978 = vmatpush1.bf16.msra.mxu0 %v12988_v50  ;;  %2019 = vmatpush1.bf16.msra.mxu1 %v12990_v51  ;;  %v13119_v50 = vcombine.high %v375_v41, %v383_v43  ;;  %v399_v51 = vld [vmem:[#allocation5 + $0x6e8] sm:$0xff]  ;;  %v248_v41 = vld [vmem:[#allocation5 + $0x230] sm:$0xff]  ;;  %v249_v43 = vld [vmem:[#allocation5 + $0x238] sm:$0xff] }
 0x15b   :  { %1979 = vmatprep.subr.bf16.mxu0 %v13005_v52  ;;  %2020 = vmatprep.subr.bf16.mxu1 %v13007_v58  ;;  %v13116_v52 = vcombine.low %v374_v39, %v382_v40  ;;  %v414_v58 = vld [vmem:[#allocation5 + $0x760] sm:$0xff]  ;;  %v13134_v63 = vcombine.low %v391_v49, %v399_v51 }
 0x15c   :  { %v13149_v0 = vcombine.high %v406_v56, %v414_v58 }
 0x15e   :  { %1980 = vmatpush1.bf16.msra.mxu0 %v13004_v60  ;;  %2021 = vmatpush1.bf16.msra.mxu1 %v13006_v61  ;;  %v13135_v60 = vcombine.high %v391_v49, %v399_v51  ;;  %v415_v61 = vld [vmem:[#allocation5 + $0x768] sm:$0xff]  ;;  %v264_v49 = vld [vmem:[#allocation5 + $0x2b0] sm:$0xff] }
 0x15f   :  { %1981 = vmatprep.subr.bf16.mxu0 %v13021_v62  ;;  %2022 = vmatprep.subr.bf16.mxu1 %v13023_v1  ;;  %v13132_v62 = vcombine.low %v390_v47, %v398_v48  ;;  %v422_v1 = vld [vmem:[#allocation5 + $0x7a0] sm:$0xff]  ;;  %v13150_v7 = vcombine.low %v407_v59, %v415_v61 }
 0x160   :  { %v13165_v8 = vcombine.high %v422_v1, %v430_v2 }
 0x162   :  { %1982 = vmatpush1.bf16.msra.mxu0 %v13020_v4  ;;  %2023 = vmatpush1.bf16.msra.mxu1 %v13022_v5  ;;  %v13151_v4 = vcombine.high %v407_v59, %v415_v61  ;;  %v431_v5 = vld [vmem:[#allocation5 + $0x7e8] sm:$0xff]  ;;  %v288_v59 = vld [vmem:[#allocation5 + $0x370] sm:$0xff] }
 0x163   :  { %1983 = vmatprep.subr.bf16.mxu0 %v13037_v6  ;;  %2024 = vmatprep.subr.bf16.mxu1 %v13039_v10  ;;  %v13148_v6 = vcombine.low %v406_v56, %v414_v58  ;;  %v192_v10 = vld [vmem:[#allocation5 + $0x70] sm:$0xff]  ;;  %v13166_v16 = vcombine.low %v423_v3, %v431_v5 }
 0x164   :  { %v12929_v17 = vcombine.high %v184_v9, %v192_v10  ;;  %v280_v58 = vld [vmem:[#allocation5 + $0x330] sm:$0xff] }
 0x166   :  { %1984 = vmatpush1.bf16.msra.mxu0 %v13036_v13  ;;  %2025 = vmatpush1.bf16.msra.mxu1 %v13038_v14  ;;  %v13167_v13 = vcombine.high %v423_v3, %v431_v5  ;;  %v193_v14 = vld [vmem:[#allocation5 + $0x78] sm:$0xff]  ;;  %v304_v3 = vld [vmem:[#allocation5 + $0x3f0] sm:$0xff] }
 0x167   :  { %1985 = vmatprep.subr.bf16.mxu0 %v13053_v15  ;;  %2026 = vmatprep.subr.bf16.mxu1 %v13055_v19  ;;  %v13164_v15 = vcombine.low %v422_v1, %v430_v2  ;;  %v208_v19 = vld [vmem:[#allocation5 + $0xf0] sm:$0xff]  ;;  %v12930_v23 = vcombine.low %v185_v11, %v193_v14  ;;  %v13025_v1 = vcombine.high %v280_v58, %v288_v59 }
 0x168   :  { %v12945_v24 = vcombine.high %v200_v18, %v208_v19  ;;  %v296_v2 = vld [vmem:[#allocation5 + $0x3b0] sm:$0xff] }
 0x16a   :  { %1986 = vmatpush1.bf16.msra.mxu0 %v13052_v21  ;;  %2027 = vmatpush1.bf16.msra.mxu1 %v13054_v22  ;;  %v12931_v21 = vcombine.high %v185_v11, %v193_v14  ;;  %v209_v22 = vld [vmem:[#allocation5 + $0xf8] sm:$0xff]  ;;  %v320_v11 = vld [vmem:[#allocation5 + $0x470] sm:$0xff] }
 0x16b   :  { %1987 = vmatprep.subr.bf16.mxu0 %v13069_v53  ;;  %2028 = vmatprep.subr.bf16.mxu1 %v13071_v26  ;;  %v12928_v53 = vcombine.low %v184_v9, %v192_v10  ;;  %v224_v26 = vld [vmem:[#allocation5 + $0x170] sm:$0xff]  ;;  %v12946_v31 = vcombine.low %v201_v20, %v209_v22  ;;  %v13041_v9 = vcombine.high %v296_v2, %v304_v3 }
 0x16c   :  { %v12961_v32 = vcombine.high %v216_v25, %v224_v26  ;;  %v312_v10 = vld [vmem:[#allocation5 + $0x430] sm:$0xff] }
 0x16e   :  { %1988 = vmatpush1.bf16.msra.mxu0 %v13068_v28  ;;  %2029 = vmatpush1.bf16.msra.mxu1 %v13070_v29  ;;  %v12947_v28 = vcombine.high %v201_v20, %v209_v22  ;;  %v225_v29 = vld [vmem:[#allocation5 + $0x178] sm:$0xff]  ;;  %v336_v20 = vld [vmem:[#allocation5 + $0x4f0] sm:$0xff] }
 0x16f   :  { %1989 = vmatprep.subr.bf16.mxu0 %v13085_v30  ;;  %2030 = vmatprep.subr.bf16.mxu1 %v13087_v34  ;;  %v12944_v30 = vcombine.low %v200_v18, %v208_v19  ;;  %v240_v34 = vld [vmem:[#allocation5 + $0x1f0] sm:$0xff]  ;;  %v12962_v39 = vcombine.low %v217_v27, %v225_v29  ;;  %v13057_v18 = vcombine.high %v312_v10, %v320_v11 }
 0x170   :  { %v12977_v40 = vcombine.high %v232_v33, %v240_v34  ;;  %v328_v19 = vld [vmem:[#allocation5 + $0x4b0] sm:$0xff] }
 0x172   :  { %1990 = vmatpush1.bf16.msra.mxu0 %v13084_v36  ;;  %2031 = vmatpush1.bf16.msra.mxu1 %v13086_v37  ;;  %v12963_v36 = vcombine.high %v217_v27, %v225_v29  ;;  %v241_v37 = vld [vmem:[#allocation5 + $0x1f8] sm:$0xff]  ;;  %v352_v27 = vld [vmem:[#allocation5 + $0x570] sm:$0xff] }
 0x173   :  { %1991 = vmatprep.subr.bf16.mxu0 %v13101_v38  ;;  %2032 = vmatprep.subr.bf16.mxu1 %v13103_v42  ;;  %v12960_v38 = vcombine.low %v216_v25, %v224_v26  ;;  %v256_v42 = vld [vmem:[#allocation5 + $0x270] sm:$0xff]  ;;  %v12978_v47 = vcombine.low %v233_v35, %v241_v37  ;;  %v13073_v25 = vcombine.high %v328_v19, %v336_v20 }
 0x174   :  { %v12993_v48 = vcombine.high %v248_v41, %v256_v42  ;;  %v344_v26 = vld [vmem:[#allocation5 + $0x530] sm:$0xff] }
 0x176   :  { %1992 = vmatpush1.bf16.msra.mxu0 %v13100_v44  ;;  %2033 = vmatpush1.bf16.msra.mxu1 %v13102_v45  ;;  %v12979_v44 = vcombine.high %v233_v35, %v241_v37  ;;  %v257_v45 = vld [vmem:[#allocation5 + $0x278] sm:$0xff]  ;;  %v368_v35 = vld [vmem:[#allocation5 + $0x5f0] sm:$0xff] }
 0x177   :  { %1993 = vmatprep.subr.bf16.mxu0 %v13117_v46  ;;  %2034 = vmatprep.subr.bf16.mxu1 %v13119_v50  ;;  %v12976_v46 = vcombine.low %v232_v33, %v240_v34  ;;  %v265_v50 = vld [vmem:[#allocation5 + $0x2b8] sm:$0xff]  ;;  %v12995_v51 = vcombine.high %v249_v43, %v257_v45  ;;  %v13089_v33 = vcombine.high %v344_v26, %v352_v27  ;;  %v360_v34 = vld [vmem:[#allocation5 + $0x5b0] sm:$0xff] }
 0x17a   :  { %1994 = vmatpush1.bf16.msra.mxu0 %v13116_v52  ;;  %2035 = vmatpush1.bf16.msra.mxu1 %v13118_v54  ;;  %v273_v52 = vld [vmem:[#allocation5 + $0x2f8] sm:$0xff]  ;;  %v12992_v54 = vcombine.low %v248_v41, %v256_v42  ;;  %v13105_v41 = vcombine.high %v360_v34, %v368_v35  ;;  %v376_v42 = vld [vmem:[#allocation5 + $0x630] sm:$0xff] }
 0x17b   :  { %1995 = vmatprep.subr.bf16.mxu0 %v13133_v55  ;;  %2036 = vmatprep.subr.bf16.mxu1 %v13135_v60  ;;  %v12994_v55 = vcombine.low %v249_v43, %v257_v45  ;;  %v281_v60 = vld [vmem:[#allocation5 + $0x338] sm:$0xff]  ;;  %v13011_v61 = vcombine.high %v265_v50, %v273_v52  ;;  %v384_v43 = vld [vmem:[#allocation5 + $0x670] sm:$0xff] }
 0x17e   :  { %1996 = vmatpush1.bf16.msra.mxu0 %v13132_v62  ;;  %2037 = vmatpush1.bf16.msra.mxu1 %v13134_v63  ;;  %v289_v62 = vld [vmem:[#allocation5 + $0x378] sm:$0xff] }
 0x17f   :  { %1997 = vmatprep.subr.bf16.mxu0 %v13149_v0  ;;  %2038 = vmatprep.subr.bf16.mxu1 %v13151_v4  ;;  %v13010_v0 = vcombine.low %v265_v50, %v273_v52  ;;  %v297_v4 = vld [vmem:[#allocation5 + $0x3b8] sm:$0xff]  ;;  %v13027_v5 = vcombine.high %v281_v60, %v289_v62  ;;  %v400_v50 = vld [vmem:[#allocation5 + $0x6f0] sm:$0xff] }
 0x182   :  { %1998 = vmatpush1.bf16.msra.mxu0 %v13148_v6  ;;  %2039 = vmatpush1.bf16.msra.mxu1 %v13150_v7  ;;  %v305_v6 = vld [vmem:[#allocation5 + $0x3f8] sm:$0xff]  ;;  %v13024_v7 = vcombine.low %v280_v58, %v288_v59  ;;  %v408_v59 = vld [vmem:[#allocation5 + $0x730] sm:$0xff] }
 0x183   :  { %1999 = vmatprep.subr.bf16.mxu0 %v13165_v8  ;;  %2040 = vmatprep.subr.bf16.mxu1 %v13167_v13  ;;  %v13026_v8 = vcombine.low %v281_v60, %v289_v62  ;;  %v313_v13 = vld [vmem:[#allocation5 + $0x438] sm:$0xff]  ;;  %v13043_v14 = vcombine.high %v297_v4, %v305_v6  ;;  %v416_v60 = vld [vmem:[#allocation5 + $0x770] sm:$0xff] }
 0x186   :  { %2000 = vmatpush1.bf16.msra.mxu0 %v13164_v15  ;;  %2041 = vmatpush1.bf16.msra.mxu1 %v13166_v16  ;;  %v321_v15 = vld [vmem:[#allocation5 + $0x478] sm:$0xff]  ;;  %v13040_v16 = vcombine.low %v296_v2, %v304_v3  ;;  %v13153_v2 = vcombine.high %v408_v59, %v416_v60  ;;  %v424_v3 = vld [vmem:[#allocation5 + $0x7b0] sm:$0xff] }
 0x187   :  { %2051 = vmatprep.subr.bf16.mxu0 %v12929_v17  ;;  %2092 = vmatprep.subr.bf16.mxu1 %v12931_v21  ;;  %v13042_v17 = vcombine.low %v297_v4, %v305_v6  ;;  %v329_v21 = vld [vmem:[#allocation5 + $0x4b8] sm:$0xff]  ;;  %v13059_v22 = vcombine.high %v313_v13, %v321_v15  ;;  %v432_v4 = vld [vmem:[#allocation5 + $0x7f0] sm:$0xff] }
 0x189   :  { %2002 = vmatmul.mubr.bf16.vlgmr.msra.gmra.mrb[8].mxu0 %v15951_v12  ;;  %2043 = vmatmul.mubr.bf16.vlgmr.msra.gmra.mrb[8].mxu1 %v15951_v12 }
 0x18a   :  { %2052 = vmatpush1.bf16.msra.mxu0 %v12928_v53  ;;  %2093 = vmatpush1.bf16.msra.mxu1 %v12930_v23  ;;  %v337_v53 = vld [vmem:[#allocation5 + $0x4f8] sm:$0xff]  ;;  %v13056_v23 = vcombine.low %v312_v10, %v320_v11  ;;  %v13169_v10 = vcombine.high %v424_v3, %v432_v4  ;;  %v2165_v11 = vld [vmem:[#allocation8] sm:$0xff] }
 0x18b   :  { %2053 = vmatprep.subr.bf16.mxu0 %v12945_v24  ;;  %2094 = vmatprep.subr.bf16.mxu1 %v12947_v28  ;;  %v13058_v24 = vcombine.low %v313_v13, %v321_v15  ;;  %v345_v28 = vld [vmem:[#allocation5 + $0x538] sm:$0xff]  ;;  %v13075_v29 = vcombine.high %v329_v21, %v337_v53  ;;  %v2169_v13 = vld [vmem:[#allocation8 + $0x20] sm:$0xff] }
 0x18c   :  { %2083 = vmatprep.mubr.bf16.mxu0 %v15945_v57  ;;  %2124 = vmatprep.mubr.bf16.mxu1 %v15945_v57  ;;  %v272_v57 = vld [vmem:[#allocation5 + $0x2f0] sm:$0xff] }
 0x18d   :  { %v13009_v56 = vcombine.high %v264_v49, %v272_v57  ;;  %v13008_v63 = vcombine.low %v264_v49, %v272_v57  ;;  %v13121_v49 = vcombine.high %v376_v42, %v384_v43  ;;  %v392_v57 = vld [vmem:[#allocation5 + $0x6b0] sm:$0xff] }
 0x18e   :  { %2054 = vmatpush1.bf16.msra.mxu0 %v12944_v30  ;;  %2095 = vmatpush1.bf16.msra.mxu1 %v12946_v31  ;;  %v353_v30 = vld [vmem:[#allocation5 + $0x578] sm:$0xff]  ;;  %v13072_v31 = vcombine.low %v328_v19, %v336_v20  ;;  %v13137_v58 = vcombine.high %v392_v57, %v400_v50  ;;  %v13173_v19 = vcombine.high %v2165_v11, %v2169_v13  ;;  %v2173_v20 = vld [vmem:[#allocation8 + $0x40] sm:$0xff] }
 0x18f   :  { %2055 = vmatprep.subr.bf16.mxu0 %v12961_v32  ;;  %2096 = vmatprep.subr.bf16.mxu1 %v12963_v36  ;;  %v13074_v32 = vcombine.low %v329_v21, %v337_v53  ;;  %v361_v36 = vld [vmem:[#allocation5 + $0x5b8] sm:$0xff]  ;;  %v13091_v37 = vcombine.high %v345_v28, %v353_v30  ;;  %v2177_v21 = vld [vmem:[#allocation8 + $0x60] sm:$0xff] }
 0x192   :  { %2056 = vmatpush1.bf16.msra.mxu0 %v12960_v38  ;;  %2097 = vmatpush1.bf16.msra.mxu1 %v12962_v39  ;;  %v369_v38 = vld [vmem:[#allocation5 + $0x5f8] sm:$0xff]  ;;  %v13088_v39 = vcombine.low %v344_v26, %v352_v27  ;;  %v13181_v26 = vcombine.high %v2173_v20, %v2177_v21  ;;  %v2181_v27 = vld [vmem:[#allocation8 + $0x80] sm:$0xff] }
 0x193   :  { %2057 = vmatprep.subr.bf16.mxu0 %v12977_v40  ;;  %2098 = vmatprep.subr.bf16.mxu1 %v12979_v44  ;;  %v13090_v40 = vcombine.low %v345_v28, %v353_v30  ;;  %v377_v44 = vld [vmem:[#allocation5 + $0x638] sm:$0xff]  ;;  %v13107_v45 = vcombine.high %v361_v36, %v369_v38  ;;  %v2185_v28 = vld [vmem:[#allocation8 + $0xa0] sm:$0xff] }
 0x196   :  { %2058 = vmatpush1.bf16.msra.mxu0 %v12976_v46  ;;  %2099 = vmatpush1.bf16.msra.mxu1 %v12978_v47  ;;  %v385_v46 = vld [vmem:[#allocation5 + $0x678] sm:$0xff]  ;;  %v13104_v47 = vcombine.low %v360_v34, %v368_v35  ;;  %v13189_v34 = vcombine.high %v2181_v27, %v2185_v28 }
 0x197   :  { %2059 = vmatprep.subr.bf16.mxu0 %v12993_v48  ;;  %2100 = vmatprep.subr.bf16.mxu1 %v12995_v51  ;;  %v13106_v48 = vcombine.low %v361_v36, %v369_v38  ;;  %v393_v51 = vld [vmem:[#allocation5 + $0x6b8] sm:$0xff]  ;;  %v13123_v52 = vcombine.high %v377_v44, %v385_v46  ;;  %v2189_v36 = vld [vmem:[#allocation8 + $0xc0] sm:$0xff] }
 0x198   :  { %v2190_v38 = vld [vmem:[#allocation8 + $0xc8] sm:$0xff] }
 0x19a   :  { %2060 = vmatpush1.bf16.msra.mxu0 %v12992_v54  ;;  %2101 = vmatpush1.bf16.msra.mxu1 %v12994_v55  ;;  %v401_v54 = vld [vmem:[#allocation5 + $0x6f8] sm:$0xff]  ;;  %v13120_v55 = vcombine.low %v376_v42, %v384_v43 }
 0x19b   :  { %2061 = vmatprep.subr.bf16.mxu0 %v13009_v56  ;;  %2102 = vmatprep.subr.bf16.mxu1 %v13011_v61  ;;  %v13122_v56 = vcombine.low %v377_v44, %v385_v46  ;;  %v409_v61 = vld [vmem:[#allocation5 + $0x738] sm:$0xff]  ;;  %v13139_v62 = vcombine.high %v393_v51, %v401_v54  ;;  %v2201_v44 = vld [vmem:[#allocation8 + $0x120] sm:$0xff] }
 0x19e   :  { %2062 = vmatpush1.bf16.msra.mxu0 %v13008_v63  ;;  %2103 = vmatpush1.bf16.msra.mxu1 %v13010_v0  ;;  %v417_v63 = vld [vmem:[#allocation5 + $0x778] sm:$0xff]  ;;  %v13136_v0 = vcombine.low %v392_v57, %v400_v50 }
 0x19f   :  { %2063 = vmatprep.subr.bf16.mxu0 %v13025_v1  ;;  %2104 = vmatprep.subr.bf16.mxu1 %v13027_v5  ;;  %v13138_v1 = vcombine.low %v393_v51, %v401_v54  ;;  %v425_v5 = vld [vmem:[#allocation5 + $0x7b8] sm:$0xff]  ;;  %v13155_v6 = vcombine.high %v409_v61, %v417_v63  ;;  %v2205_v51 = vld [vmem:[#allocation8 + $0x140] sm:$0xff] }
 0x1a0   :  { %v2206_v54 = vld [vmem:[#allocation8 + $0x148] sm:$0xff] }
 0x1a2   :  { %2064 = vmatpush1.bf16.msra.mxu0 %v13024_v7  ;;  %2105 = vmatpush1.bf16.msra.mxu1 %v13026_v8  ;;  %v433_v7 = vld [vmem:[#allocation5 + $0x7f8] sm:$0xff]  ;;  %v13152_v8 = vcombine.low %v408_v59, %v416_v60  ;;  %v15973_v59 = vld [vmem:[#allocation7] sm:$0xff] }
 0x1a3   :  { %2065 = vmatprep.subr.bf16.mxu0 %v13041_v9  ;;  %2106 = vmatprep.subr.bf16.mxu1 %v13043_v14  ;;  %v13154_v9 = vcombine.low %v409_v61, %v417_v63  ;;  %v2166_v14 = vld [vmem:[#allocation8 + $0x8] sm:$0xff]  ;;  %v13171_v15 = vcombine.high %v425_v5, %v433_v7  ;;  %v2213_v63 = vld [vmem:[#allocation8 + $0x180] sm:$0xff] }
 0x1a6   :  { %2066 = vmatpush1.bf16.msra.mxu0 %v13040_v16  ;;  %2107 = vmatpush1.bf16.msra.mxu1 %v13042_v17  ;;  %v2170_v16 = vld [vmem:[#allocation8 + $0x28] sm:$0xff]  ;;  %v13168_v17 = vcombine.low %v424_v3, %v432_v4 }
 0x1a7   :  { %2067 = vmatprep.subr.bf16.mxu0 %v13057_v18  ;;  %2108 = vmatprep.subr.bf16.mxu1 %v13059_v22  ;;  %v13170_v18 = vcombine.low %v425_v5, %v433_v7  ;;  %v2174_v22 = vld [vmem:[#allocation8 + $0x48] sm:$0xff]  ;;  %v13175_v53 = vcombine.high %v2166_v14, %v2170_v16 }
 0x1a8   :  { %v2218_v3 = vld [vmem:[#allocation8 + $0x1a8] sm:$0xff] }
 0x1aa   :  { %2068 = vmatpush1.bf16.msra.mxu0 %v13056_v23  ;;  %2109 = vmatpush1.bf16.msra.mxu1 %v13058_v24  ;;  %v2178_v23 = vld [vmem:[#allocation8 + $0x68] sm:$0xff]  ;;  %v13172_v24 = vcombine.low %v2165_v11, %v2169_v13  ;;  %v2225_v11 = vld [vmem:[#allocation8 + $0x1e0] sm:$0xff] }
 0x1ab   :  { %2069 = vmatprep.subr.bf16.mxu0 %v13073_v25  ;;  %2110 = vmatprep.subr.bf16.mxu1 %v13075_v29  ;;  %v13174_v25 = vcombine.low %v2166_v14, %v2170_v16  ;;  %v2182_v29 = vld [vmem:[#allocation8 + $0x88] sm:$0xff]  ;;  %v13183_v30 = vcombine.high %v2174_v22, %v2178_v23 }
 0x1ac   :  { %v2222_v14 = vld [vmem:[#allocation8 + $0x1c8] sm:$0xff] }
 0x1ae   :  { %2070 = vmatpush1.bf16.msra.mxu0 %v13072_v31  ;;  %2111 = vmatpush1.bf16.msra.mxu1 %v13074_v32  ;;  %v2186_v31 = vld [vmem:[#allocation8 + $0xa8] sm:$0xff]  ;;  %v13180_v32 = vcombine.low %v2173_v20, %v2177_v21 }
 0x1af   :  { %2071 = vmatprep.subr.bf16.mxu0 %v13089_v33  ;;  %2112 = vmatprep.subr.bf16.mxu1 %v13091_v37  ;;  %v13182_v33 = vcombine.low %v2174_v22, %v2178_v23  ;;  %v13191_v35 = vcombine.high %v2182_v29, %v2186_v31  ;;  %v2193_v37 = vld [vmem:[#allocation8 + $0xe0] sm:$0xff]  ;;  %v13190_v42 = vcombine.low %v2182_v29, %v2186_v31 }
 0x1b0   :  { %v13197_v43 = vcombine.high %v2189_v36, %v2193_v37 }
 0x1b2   :  { %2072 = vmatpush1.bf16.msra.mxu0 %v13088_v39  ;;  %2113 = vmatpush1.bf16.msra.mxu1 %v13090_v40  ;;  %v438_v39 = vlaneseq  ;;  %v2194_v40 = vld [vmem:[#allocation8 + $0xe8] sm:$0xff] }
 0x1b3   :  { %2073 = vmatprep.subr.bf16.mxu0 %v13105_v41  ;;  %2114 = vmatprep.subr.bf16.mxu1 %v13107_v45  ;;  %v13188_v41 = vcombine.low %v2181_v27, %v2185_v28  ;;  %v2198_v45 = vld [vmem:[#allocation8 + $0x108] sm:$0xff]  ;;  %v13199_v46 = vcombine.high %v2190_v38, %v2194_v40  ;;  %v13198_v57 = vcombine.low %v2190_v38, %v2194_v40 }
 0x1b4   :  { %v2230_v27 = vld [vmem:[#allocation8 + $0x208] sm:$0xff] }
 0x1b5   :  { %v2242_v40 = vld [vmem:[#allocation8 + $0x268] sm:$0xff] }
 0x1b6   :  { %2074 = vmatpush1.bf16.msra.mxu0 %v13104_v47  ;;  %2115 = vmatpush1.bf16.msra.mxu1 %v13106_v48  ;;  %v2202_v47 = vld [vmem:[#allocation8 + $0x128] sm:$0xff]  ;;  %v15968_v48 = vshrl.u32 %v438_v39, 7 }
 0x1b7   :  { %2075 = vmatprep.subr.bf16.mxu0 %v13121_v49  ;;  %2116 = vmatprep.subr.bf16.mxu1 %v13123_v52  ;;  %v13196_v49 = vcombine.low %v2189_v36, %v2193_v37  ;;  %v2209_v52 = vld [vmem:[#allocation8 + $0x160] sm:$0xff]  ;;  %v13206_v61 = vcombine.low %v2198_v45, %v2202_v47  ;;  %v2238_v37 = vld [vmem:[#allocation8 + $0x248] sm:$0xff] }
 0x1b8   :  { %v13212_v5 = vcombine.low %v2205_v51, %v2209_v52  ;;  %v2241_v36 = vld [vmem:[#allocation8 + $0x260] sm:$0xff] }
 0x1ba   :  { %2076 = vmatpush1.bf16.msra.mxu0 %v13120_v55  ;;  %2117 = vmatpush1.bf16.msra.mxu1 %v13122_v56  ;;  %v13207_v55 = vcombine.high %v2198_v45, %v2202_v47  ;;  %v15971_v56 = vsub.s32 1, %v15968_v48  ;;  %v13247_v45 = vcombine.high %v2238_v37, %v2242_v40  ;;  %v2250_v47 = vld [vmem:[#allocation8 + $0x2a8] sm:$0xff] }
 0x1bb   :  { %2077 = vmatprep.subr.bf16.mxu0 %v13137_v58  ;;  %2118 = vmatprep.subr.bf16.mxu1 %v13139_v62  ;;  %v2210_v58 = vld [vmem:[#allocation8 + $0x168] sm:$0xff]  ;;  %v13213_v62 = vcombine.high %v2205_v51, %v2209_v52  ;;  %v2253_v52 = vld [vmem:[#allocation8 + $0x2c0] sm:$0xff] }
 0x1bc   :  { %v445_v4 = vrot.slane %v15973_v59, %v15971_v56 }
 0x1be   :  { %2078 = vmatpush1.bf16.msra.mxu0 %v13136_v0  ;;  %2119 = vmatpush1.bf16.msra.mxu1 %v13138_v1  ;;  %v2217_v0 = vld [vmem:[#allocation8 + $0x1a0] sm:$0xff]  ;;  %v2214_v1 = vld [vmem:[#allocation8 + $0x188] sm:$0xff] }
 0x1bf   :  { %2079 = vmatprep.subr.bf16.mxu0 %v13153_v2  ;;  %2120 = vmatprep.subr.bf16.mxu1 %v13155_v6  ;;  %v13215_v2 = vcombine.high %v2206_v54, %v2210_v58  ;;  %v13214_v6 = vcombine.low %v2206_v54, %v2210_v58  ;;  %v13221_v7 = vcombine.high %v2213_v63, %v2217_v0  ;;  %v2257_v54 = vld [vmem:[#allocation8 + $0x2e0] sm:$0xff]  ;;  %v2258_v58 = vld [vmem:[#allocation8 + $0x2e8] sm:$0xff] }
 0x1c0   :  { %v13222_v22 = vcombine.low %v2214_v1, %v2218_v3 }
 0x1c2   :  { %2080 = vmatpush1.bf16.msra.mxu0 %v13152_v8  ;;  %2121 = vmatpush1.bf16.msra.mxu1 %v13154_v9  ;;  %v13223_v9 = vcombine.high %v2214_v1, %v2218_v3  ;;  %v2265_v1 = vld [vmem:[#allocation8 + $0x320] sm:$0xff]  ;;  %v2266_v3 = vld [vmem:[#allocation8 + $0x328] sm:$0xff] }
 0x1c3   :  { %2081 = vmatprep.subr.bf16.mxu0 %v13169_v10  ;;  %2122 = vmatprep.subr.bf16.mxu1 %v13171_v15  ;;  %v2221_v10 = vld [vmem:[#allocation8 + $0x1c0] sm:$0xff]  ;;  %v2226_v15 = vld [vmem:[#allocation8 + $0x1e8] sm:$0xff] }
 0x1c4   :  { %v13231_v29 = vcombine.high %v2222_v14, %v2226_v15 }
 0x1c6   :  { %2082 = vmatpush1.bf16.msra.mxu0 %v13168_v17  ;;  %2123 = vmatpush1.bf16.msra.mxu1 %v13170_v18 }
 0x1c7   :  { %8351 = vmatprep.subr.bf16.mxu0 %v13173_v19  ;;  %8679 = vmatprep.subr.bf16.mxu1 %v13175_v53  ;;  %v13220_v19 = vcombine.low %v2213_v63, %v2217_v0  ;;  %v13229_v53 = vcombine.high %v2221_v10, %v2225_v11  ;;  %v2261_v0 = vld [vmem:[#allocation8 + $0x300] sm:$0xff] }
 0x1c9   :  { %2084 = vmatmul.mubr.bf16.vlgmr.msra.gmra.mrb[12].mxu0 %v15951_v12  ;;  %2125 = vmatmul.mubr.bf16.vlgmr.msra.gmra.mrb[12].mxu1 %v15951_v12  ;;  %v2197_v12 = vld [vmem:[#allocation8 + $0x100] sm:$0xff] }
 0x1ca   :  { %8352 = vmatpush1.bf16.msra.mxu0 %v13172_v24  ;;  %8680 = vmatpush1.bf16.msra.mxu1 %v13174_v25  ;;  %v13205_v50 = vcombine.high %v2197_v12, %v2201_v44  ;;  %v13204_v60 = vcombine.low %v2197_v12, %v2201_v44  ;;  %v2229_v25 = vld [vmem:[#allocation8 + $0x200] sm:$0xff] }
 0x1cb   :  { %8353 = vmatprep.subr.bf16.mxu0 %v13181_v26  ;;  %8681 = vmatprep.subr.bf16.mxu1 %v13183_v30  ;;  %v2233_v26 = vld [vmem:[#allocation8 + $0x220] sm:$0xff]  ;;  %v2234_v30 = vld [vmem:[#allocation8 + $0x228] sm:$0xff] }
 0x1cc   :  { %v13239_v38 = vcombine.high %v2230_v27, %v2234_v30  ;;  %v2245_v12 = vld [vmem:[#allocation8 + $0x280] sm:$0xff] }
 0x1cd   :  { %v2249_v44 = vld [vmem:[#allocation8 + $0x2a0] sm:$0xff] }
 0x1ce   :  { %8354 = vmatpush1.bf16.msra.mxu0 %v13180_v32  ;;  %8682 = vmatpush1.bf16.msra.mxu1 %v13182_v33  ;;  %v13228_v32 = vcombine.low %v2221_v10, %v2225_v11  ;;  %v13230_v33 = vcombine.low %v2222_v14, %v2226_v15  ;;  %v2273_v10 = vld [vmem:[#allocation8 + $0x360] sm:$0xff]  ;;  %v2270_v11 = vld [vmem:[#allocation8 + $0x348] sm:$0xff]  ;;  %v13268_v14 = vcombine.low %v2261_v0, %v2265_v1  ;;  %v15988_v15 = vsub.s32 0, %v15968_v48 }
 0x1cf   :  { %8355 = vmatprep.subr.bf16.mxu0 %v13189_v34  ;;  %8683 = vmatprep.subr.bf16.mxu1 %v13191_v35  ;;  %v13237_v34 = vcombine.high %v2229_v25, %v2233_v26  ;;  %v2237_v35 = vld [vmem:[#allocation8 + $0x240] sm:$0xff] }
 0x1d2   :  { %8356 = vmatpush1.bf16.msra.mxu0 %v13188_v41  ;;  %8684 = vmatpush1.bf16.msra.mxu1 %v13190_v42  ;;  %v13236_v41 = vcombine.low %v2229_v25, %v2233_v26  ;;  %v13238_v42 = vcombine.low %v2230_v27, %v2234_v30  ;;  %v441_v26 = vrot.slane %v15973_v59, %v15988_v15  ;;  %v2285_v30 = vld [vmem:[#allocation8 + $0x3c0] sm:$0xff] }
 0x1d3   :  { %8357 = vmatprep.subr.bf16.mxu0 %v13197_v43  ;;  %8685 = vmatprep.subr.bf16.mxu1 %v13199_v46  ;;  %v13245_v43 = vcombine.high %v2237_v35, %v2241_v36  ;;  %v2246_v46 = vld [vmem:[#allocation8 + $0x288] sm:$0xff] }
 0x1d4   :  { %v13255_v51 = vcombine.high %v2246_v46, %v2250_v47 }
 0x1d6   :  { %8358 = vmatpush1.bf16.msra.mxu0 %v13196_v49  ;;  %8686 = vmatpush1.bf16.msra.mxu1 %v13198_v57  ;;  %v13244_v49 = vcombine.low %v2237_v35, %v2241_v36  ;;  %v13246_v57 = vcombine.low %v2238_v37, %v2242_v40  ;;  %v2290_v35 = vld [vmem:[#allocation8 + $0x3e8] sm:$0xff] }
 0x1d7   :  { %8359 = vmatprep.subr.bf16.mxu0 %v13205_v50  ;;  %8687 = vmatprep.subr.bf16.mxu1 %v13207_v55  ;;  %v13253_v50 = vcombine.high %v2245_v12, %v2249_v44  ;;  %v2254_v55 = vld [vmem:[#allocation8 + $0x2c8] sm:$0xff] }
 0x1d8   :  { %v13263_v63 = vcombine.high %v2254_v55, %v2258_v58 }
 0x1da   :  { %8360 = vmatpush1.bf16.msra.mxu0 %v13204_v60  ;;  %8688 = vmatpush1.bf16.msra.mxu1 %v13206_v61  ;;  %v13252_v60 = vcombine.low %v2245_v12, %v2249_v44  ;;  %v13254_v61 = vcombine.low %v2246_v46, %v2250_v47  ;;  %v2294_v44 = vld [vmem:[#allocation8 + $0x408] sm:$0xff] }
 0x1db   :  { %8361 = vmatprep.subr.bf16.mxu0 %v13213_v62  ;;  %8689 = vmatprep.subr.bf16.mxu1 %v13215_v2  ;;  %v13261_v62 = vcombine.high %v2253_v52, %v2257_v54  ;;  %v2262_v2 = vld [vmem:[#allocation8 + $0x308] sm:$0xff] }
 0x1dc   :  { %v15977_v8 = vpop.f32.mrb[0].mxu0  ;;  %v15979_v16 = vpop.f32.mrb[0].mxu1 }
 0x1dd   :  { %v1841_v13 = vpop.f32.mrb[1].mxu0  ;;  %v15981_v20 = vpop.f32.mrb[1].mxu1  ;;  %v1840_v37 = vadd.f32 %v15977_v8, %v441_v26 }
 0x1de   :  { %v1842_v17 = vadd.f32 %v1841_v13, %v445_v4  ;;  %v1843_v18 = vpop.f32.mrb[2].mxu0  ;;  %8362 = vmatpush1.bf16.msra.mxu0 %v13212_v5  ;;  %8690 = vmatpush1.bf16.msra.mxu1 %v13214_v6  ;;  %v1884_v23 = vpop.f32.mrb[2].mxu1  ;;  %v13260_v4 = vcombine.low %v2253_v52, %v2257_v54  ;;  %v13262_v5 = vcombine.low %v2254_v55, %v2258_v58  ;;  %v2274_v13 = vld [vmem:[#allocation8 + $0x368] sm:$0xff] }
 0x1df   :  { %v1844_v21 = vpop.f32.mrb[3].mxu0  ;;  %8363 = vmatprep.subr.bf16.mxu0 %v13221_v7  ;;  %8691 = vmatprep.subr.bf16.mxu1 %v13223_v9  ;;  %v1885_v28 = vpop.f32.mrb[3].mxu1  ;;  %v13269_v6 = vcombine.high %v2261_v0, %v2265_v1  ;;  %v13271_v7 = vcombine.high %v2262_v2, %v2266_v3  ;;  %v2269_v9 = vld [vmem:[#allocation8 + $0x340] sm:$0xff]  ;;  %v2278_v23 = vld [vmem:[#allocation8 + $0x388] sm:$0xff]  ;;  %v13278_v27 = vcombine.low %v2270_v11, %v2274_v13  ;;  %v2133_v47 = vmax.f32 %v1840_v37, 0.0 }
 0x1e0   :  { %v2134_v24 = vmax.f32 %v1842_v17, 0.0  ;;  %v13270_v17 = vcombine.low %v2262_v2, %v2266_v3  ;;  %v13277_v18 = vcombine.high %v2269_v9, %v2273_v10  ;;  %v2277_v21 = vld [vmem:[#allocation8 + $0x380] sm:$0xff]  ;;  %v13276_v25 = vcombine.low %v2269_v9, %v2273_v10  ;;  %v2302_v54 = vld [vmem:[#allocation8 + $0x448] sm:$0xff] }
 0x1e1   :  { %v2306_v55 = vld [vmem:[#allocation8 + $0x468] sm:$0xff]  ;;  %v2313_v0 = vld [vmem:[#allocation8 + $0x4a0] sm:$0xff] }
 0x1e2   :  { %v15983_v31 = vpack.c.bf16 %v2134_v24, %v2134_v24  ;;  %8364 = vmatpush1.bf16.msra.mxu0 %v13220_v19  ;;  %8692 = vmatpush1.bf16.msra.mxu1 %v13222_v22  ;;  %v13279_v19 = vcombine.high %v2270_v11, %v2274_v13  ;;  %v2281_v22 = vld [vmem:[#allocation8 + $0x3a0] sm:$0xff]  ;;  %v2282_v24 = vld [vmem:[#allocation8 + $0x3a8] sm:$0xff] }
 0x1e3   :  { %8365 = vmatprep.subr.bf16.mxu0 %v13229_v53  ;;  %8693 = vmatprep.subr.bf16.mxu1 %v13231_v29  ;;  %v15991_v53 = vsub.s32 3, %v15968_v48  ;;  %v13285_v28 = vcombine.high %v2277_v21, %v2281_v22  ;;  %v13287_v29 = vcombine.high %v2278_v23, %v2282_v24  ;;  %v13284_v36 = vcombine.low %v2277_v21, %v2281_v22  ;;  %v2310_v2 = vld [vmem:[#allocation8 + $0x488] sm:$0xff]  ;;  %v2317_v9 = vld [vmem:[#allocation8 + $0x4c0] sm:$0xff] }
 0x1e4   :  { %8383 = vmatprep.mubr.bf16.mxu0 %v15983_v31  ;;  %8711 = vmatprep.mubr.bf16.mxu1 %v15983_v31  ;;  %v2314_v3 = vld [vmem:[#allocation8 + $0x4a8] sm:$0xff]  ;;  %v2321_v10 = vld [vmem:[#allocation8 + $0x4e0] sm:$0xff] }
 0x1e5   :  { %v2318_v11 = vld [vmem:[#allocation8 + $0x4c8] sm:$0xff]  ;;  %v2325_v21 = vld [vmem:[#allocation8 + $0x500] sm:$0xff] }
 0x1e6   :  { %8366 = vmatpush1.bf16.msra.mxu0 %v13228_v32  ;;  %8694 = vmatpush1.bf16.msra.mxu1 %v13230_v33  ;;  %v2289_v32 = vld [vmem:[#allocation8 + $0x3e0] sm:$0xff]  ;;  %v453_v33 = vrot.slane %v15973_v59, %v15991_v53  ;;  %v2322_v13 = vld [vmem:[#allocation8 + $0x4e8] sm:$0xff] }
 0x1e7   :  { %8367 = vmatprep.subr.bf16.mxu0 %v13237_v34  ;;  %8695 = vmatprep.subr.bf16.mxu1 %v13239_v38  ;;  %v2286_v34 = vld [vmem:[#allocation8 + $0x3c8] sm:$0xff]  ;;  %v13286_v38 = vcombine.low %v2278_v23, %v2282_v24  ;;  %v13293_v40 = vcombine.high %v2285_v30, %v2289_v32  ;;  %v13292_v46 = vcombine.low %v2285_v30, %v2289_v32  ;;  %v2329_v22 = vld [vmem:[#allocation8 + $0x520] sm:$0xff] }
 0x1e8   :  { %v1883_v12 = vadd.f32 %v15981_v20, %v453_v33  ;;  %v2326_v23 = vld [vmem:[#allocation8 + $0x508] sm:$0xff]  ;;  %v13326_v26 = vcombine.low %v2318_v11, %v2322_v13  ;;  %v2337_v30 = vld [vmem:[#allocation8 + $0x560] sm:$0xff] }
 0x1e9   :  { %v2330_v24 = vld [vmem:[#allocation8 + $0x528] sm:$0xff] }
 0x1ea   :  { %8368 = vmatpush1.bf16.msra.mxu0 %v13236_v41  ;;  %8696 = vmatpush1.bf16.msra.mxu1 %v13238_v42  ;;  %v13295_v41 = vcombine.high %v2286_v34, %v2290_v35  ;;  %v2293_v42 = vld [vmem:[#allocation8 + $0x400] sm:$0xff]  ;;  %v2136_v52 = vmax.f32 %v1883_v12, 0.0  ;;  %v2334_v32 = vld [vmem:[#allocation8 + $0x548] sm:$0xff] }
 0x1eb   :  { %8369 = vmatprep.subr.bf16.mxu0 %v13245_v43  ;;  %8697 = vmatprep.subr.bf16.mxu1 %v13247_v45  ;;  %v2297_v43 = vld [vmem:[#allocation8 + $0x420] sm:$0xff]  ;;  %v2298_v45 = vld [vmem:[#allocation8 + $0x428] sm:$0xff] }
 0x1ec   :  { %v13303_v8 = vcombine.high %v2294_v44, %v2298_v45  ;;  %v13300_v58 = vcombine.low %v2293_v42, %v2297_v43  ;;  %v13302_v20 = vcombine.low %v2294_v44, %v2298_v45  ;;  %v16001_v1 = vpack.c.bf16 %v2136_v52, %v2136_v52  ;;  %v2338_v33 = vld [vmem:[#allocation8 + $0x568] sm:$0xff] }
 0x1ed   :  { %v13343_v37 = vcombine.high %v2334_v32, %v2338_v33  ;;  %v13342_v12 = vcombine.low %v2334_v32, %v2338_v33  ;;  %v2381_v32 = vld [vmem:[#allocation8 + $0x6c0] sm:$0xff] }
 0x1ee   :  { %8370 = vmatpush1.bf16.msra.mxu0 %v13244_v49  ;;  %8698 = vmatpush1.bf16.msra.mxu1 %v13246_v57  ;;  %v13294_v49 = vcombine.low %v2286_v34, %v2290_v35  ;;  %v13301_v57 = vcombine.high %v2293_v42, %v2297_v43  ;;  %v13332_v34 = vcombine.low %v2325_v21, %v2329_v22  ;;  %v2346_v42 = vld [vmem:[#allocation8 + $0x5a8] sm:$0xff]  ;;  %v2385_v33 = vld [vmem:[#allocation8 + $0x6e0] sm:$0xff] }
 0x1ef   :  { %8371 = vmatprep.subr.bf16.mxu0 %v13253_v50  ;;  %8699 = vmatprep.subr.bf16.mxu1 %v13255_v51  ;;  %v2301_v50 = vld [vmem:[#allocation8 + $0x440] sm:$0xff]  ;;  %v13334_v35 = vcombine.low %v2326_v23, %v2330_v24 }
 0x1f0   :  { %v2305_v51 = vld [vmem:[#allocation8 + $0x460] sm:$0xff] }
 0x1f2   :  { %8372 = vmatpush1.bf16.msra.mxu0 %v13252_v60  ;;  %8700 = vmatpush1.bf16.msra.mxu1 %v13254_v61  ;;  %v15999_v60 = vpack.c.bf16 %v2133_v47, %v2133_v47  ;;  %v13309_v61 = vcombine.high %v2301_v50, %v2305_v51  ;;  %v2349_v47 = vld [vmem:[#allocation8 + $0x5c0] sm:$0xff] }
 0x1f3   :  { %8373 = vmatprep.subr.bf16.mxu0 %v13261_v62  ;;  %8701 = vmatprep.subr.bf16.mxu1 %v13263_v63  ;;  %v13311_v62 = vcombine.high %v2302_v54, %v2306_v55  ;;  %v2309_v63 = vld [vmem:[#allocation8 + $0x480] sm:$0xff] }
 0x1f6   :  { %8374 = vmatpush1.bf16.msra.mxu0 %v13260_v4  ;;  %8702 = vmatpush1.bf16.msra.mxu1 %v13262_v5  ;;  %v13308_v4 = vcombine.low %v2301_v50, %v2305_v51  ;;  %v13310_v5 = vcombine.low %v2302_v54, %v2306_v55  ;;  %v2354_v50 = vld [vmem:[#allocation8 + $0x5e8] sm:$0xff] }
 0x1f7   :  { %8375 = vmatprep.subr.bf16.mxu0 %v13269_v6  ;;  %8703 = vmatprep.subr.bf16.mxu1 %v13271_v7  ;;  %v13317_v6 = vcombine.high %v2309_v63, %v2313_v0  ;;  %v13319_v7 = vcombine.high %v2310_v2, %v2314_v3 }
 0x1fa   :  { %8376 = vmatpush1.bf16.msra.mxu0 %v13268_v14  ;;  %8704 = vmatpush1.bf16.msra.mxu1 %v13270_v17  ;;  %v13316_v14 = vcombine.low %v2309_v63, %v2313_v0  ;;  %v13318_v17 = vcombine.low %v2310_v2, %v2314_v3  ;;  %v2357_v0 = vld [vmem:[#allocation8 + $0x600] sm:$0xff] }
 0x1fb   :  { %8377 = vmatprep.subr.bf16.mxu0 %v13277_v18  ;;  %8705 = vmatprep.subr.bf16.mxu1 %v13279_v19  ;;  %v13325_v18 = vcombine.high %v2317_v9, %v2321_v10  ;;  %v13327_v19 = vcombine.high %v2318_v11, %v2322_v13  ;;  %v2361_v2 = vld [vmem:[#allocation8 + $0x620] sm:$0xff] }
 0x1fc   :  { %v2365_v11 = vld [vmem:[#allocation8 + $0x640] sm:$0xff] }
 0x1fd   :  { %v2369_v13 = vld [vmem:[#allocation8 + $0x660] sm:$0xff] }
 0x1fe   :  { %8378 = vmatpush1.bf16.msra.mxu0 %v13276_v25  ;;  %8706 = vmatpush1.bf16.msra.mxu1 %v13278_v27  ;;  %v13324_v25 = vcombine.low %v2317_v9, %v2321_v10  ;;  %v13333_v27 = vcombine.high %v2325_v21, %v2329_v22  ;;  %v13365_v9 = vcombine.high %v2357_v0, %v2361_v2 }
 0x1ff   :  { %8379 = vmatprep.subr.bf16.mxu0 %v13285_v28  ;;  %8707 = vmatprep.subr.bf16.mxu1 %v13287_v29  ;;  %v13335_v28 = vcombine.high %v2326_v23, %v2330_v24  ;;  %v2333_v29 = vld [vmem:[#allocation8 + $0x540] sm:$0xff]  ;;  %v13373_v21 = vcombine.high %v2365_v11, %v2369_v13 }
 0x200   :  { %v13340_v43 = vcombine.low %v2333_v29, %v2337_v30  ;;  %v2373_v23 = vld [vmem:[#allocation8 + $0x680] sm:$0xff] }
 0x201   :  { %v2377_v24 = vld [vmem:[#allocation8 + $0x6a0] sm:$0xff] }
 0x202   :  { %8380 = vmatpush1.bf16.msra.mxu0 %v13284_v36  ;;  %8708 = vmatpush1.bf16.msra.mxu1 %v13286_v38  ;;  %v13341_v36 = vcombine.high %v2333_v29, %v2337_v30  ;;  %v2341_v38 = vld [vmem:[#allocation8 + $0x580] sm:$0xff]  ;;  %v13381_v29 = vcombine.high %v2373_v23, %v2377_v24 }
 0x203   :  { %8381 = vmatprep.subr.bf16.mxu0 %v13293_v40  ;;  %8709 = vmatprep.subr.bf16.mxu1 %v13295_v41  ;;  %v2345_v40 = vld [vmem:[#allocation8 + $0x5a0] sm:$0xff]  ;;  %v2342_v41 = vld [vmem:[#allocation8 + $0x588] sm:$0xff] }
 0x204   :  { %v13349_v44 = vcombine.high %v2341_v38, %v2345_v40  ;;  %v13348_v54 = vcombine.low %v2341_v38, %v2345_v40  ;;  %v13389_v38 = vcombine.high %v2381_v32, %v2385_v33 }
 0x206   :  { %8382 = vmatpush1.bf16.msra.mxu0 %v13292_v46  ;;  %8710 = vmatpush1.bf16.msra.mxu1 %v13294_v49  ;;  %v13351_v46 = vcombine.high %v2342_v41, %v2346_v42  ;;  %v2353_v49 = vld [vmem:[#allocation8 + $0x5e0] sm:$0xff] }
 0x207   :  { %8392 = vmatprep.subr.bf16.mxu0 %v13301_v57  ;;  %8720 = vmatprep.subr.bf16.mxu1 %v13303_v8  ;;  %v2350_v8 = vld [vmem:[#allocation8 + $0x5c8] sm:$0xff] }
 0x208   :  { %v13359_v63 = vcombine.high %v2350_v8, %v2354_v50 }
 0x209   :  { %8384 = vmatmul.mubr.bf16.vlgmr.msra.gmra.mrb[16].mxu0 %v15999_v60  ;;  %8712 = vmatmul.mubr.bf16.vlgmr.msra.gmra.mrb[16].mxu1 %v15999_v60 }
 0x20a   :  { %8393 = vmatpush1.bf16.msra.mxu0 %v13300_v58  ;;  %8721 = vmatpush1.bf16.msra.mxu1 %v13302_v20  ;;  %v13350_v20 = vcombine.low %v2342_v41, %v2346_v42  ;;  %v2389_v41 = vld [vmem:[#allocation8 + $0x700] sm:$0xff] }
 0x20b   :  { %8394 = vmatprep.subr.bf16.mxu0 %v13309_v61  ;;  %8722 = vmatprep.subr.bf16.mxu1 %v13311_v62  ;;  %v13357_v61 = vcombine.high %v2349_v47, %v2353_v49  ;;  %v2393_v42 = vld [vmem:[#allocation8 + $0x720] sm:$0xff] }
 0x20c   :  { %8424 = vmatprep.mubr.bf16.mxu0 %v16001_v1  ;;  %8752 = vmatprep.mubr.bf16.mxu1 %v16001_v1 }
 0x20e   :  { %8395 = vmatpush1.bf16.msra.mxu0 %v13308_v4  ;;  %8723 = vmatpush1.bf16.msra.mxu1 %v13310_v5  ;;  %v2358_v4 = vld [vmem:[#allocation8 + $0x608] sm:$0xff] }
 0x20f   :  { %8396 = vmatprep.subr.bf16.mxu0 %v13317_v6  ;;  %8724 = vmatprep.subr.bf16.mxu1 %v13319_v7  ;;  %v2362_v5 = vld [vmem:[#allocation8 + $0x628] sm:$0xff]  ;;  %v13356_v6 = vcombine.low %v2349_v47, %v2353_v49  ;;  %v13358_v7 = vcombine.low %v2350_v8, %v2354_v50  ;;  %v13397_v47 = vcombine.high %v2389_v41, %v2393_v42  ;;  %v2397_v8 = vld [vmem:[#allocation8 + $0x740] sm:$0xff] }
 0x210   :  { %v13367_v10 = vcombine.high %v2358_v4, %v2362_v5  ;;  %v2401_v50 = vld [vmem:[#allocation8 + $0x760] sm:$0xff] }
 0x212   :  { %8397 = vmatpush1.bf16.msra.mxu0 %v13316_v14  ;;  %8725 = vmatpush1.bf16.msra.mxu1 %v13318_v17  ;;  %v2366_v14 = vld [vmem:[#allocation8 + $0x648] sm:$0xff] }
 0x213   :  { %8398 = vmatprep.subr.bf16.mxu0 %v13325_v18  ;;  %8726 = vmatprep.subr.bf16.mxu1 %v13327_v19  ;;  %v2370_v17 = vld [vmem:[#allocation8 + $0x668] sm:$0xff]  ;;  %v13364_v18 = vcombine.low %v2357_v0, %v2361_v2  ;;  %v13366_v19 = vcombine.low %v2358_v4, %v2362_v5  ;;  %v2405_v0 = vld [vmem:[#allocation8 + $0x780] sm:$0xff] }
 0x214   :  { %v13375_v22 = vcombine.high %v2366_v14, %v2370_v17  ;;  %v2409_v2 = vld [vmem:[#allocation8 + $0x7a0] sm:$0xff]  ;;  %v2406_v4 = vld [vmem:[#allocation8 + $0x788] sm:$0xff] }
 0x215   :  { %v2410_v5 = vld [vmem:[#allocation8 + $0x7a8] sm:$0xff] }
 0x216   :  { %8399 = vmatpush1.bf16.msra.mxu0 %v13324_v25  ;;  %8727 = vmatpush1.bf16.msra.mxu1 %v13326_v26  ;;  %v2374_v25 = vld [vmem:[#allocation8 + $0x688] sm:$0xff] }
 0x217   :  { %8400 = vmatprep.subr.bf16.mxu0 %v13333_v27  ;;  %8728 = vmatprep.subr.bf16.mxu1 %v13335_v28  ;;  %v2378_v26 = vld [vmem:[#allocation8 + $0x6a8] sm:$0xff]  ;;  %v13372_v27 = vcombine.low %v2365_v11, %v2369_v13  ;;  %v13374_v28 = vcombine.low %v2366_v14, %v2370_v17  ;;  %v13415_v11 = vcombine.high %v2406_v4, %v2410_v5  ;;  %v2413_v13 = vld [vmem:[#allocation8 + $0x7c0] sm:$0xff] }
 0x218   :  { %v13383_v30 = vcombine.high %v2374_v25, %v2378_v26  ;;  %v2417_v14 = vld [vmem:[#allocation8 + $0x7e0] sm:$0xff] }
 0x21a   :  { %8401 = vmatpush1.bf16.msra.mxu0 %v13332_v34  ;;  %8729 = vmatpush1.bf16.msra.mxu1 %v13334_v35  ;;  %v2382_v34 = vld [vmem:[#allocation8 + $0x6c8] sm:$0xff] }
 0x21b   :  { %8402 = vmatprep.subr.bf16.mxu0 %v13341_v36  ;;  %8730 = vmatprep.subr.bf16.mxu1 %v13343_v37  ;;  %v2386_v35 = vld [vmem:[#allocation8 + $0x6e8] sm:$0xff]  ;;  %v13380_v36 = vcombine.low %v2373_v23, %v2377_v24  ;;  %v13382_v37 = vcombine.low %v2374_v25, %v2378_v26  ;;  %v13414_v23 = vcombine.low %v2406_v4, %v2410_v5  ;;  %v2421_v26 = vld [vmem:[#allocation8 + $0x800] sm:$0xff] }
 0x21c   :  { %v16007_v45 = vpop.f32.mrb[4].mxu0  ;;  %v16011_v51 = vpop.f32.mrb[4].mxu1  ;;  %v13391_v40 = vcombine.high %v2382_v34, %v2386_v35  ;;  %v13421_v24 = vcombine.high %v2413_v13, %v2417_v14 }
 0x21d   :  { %v16009_v57 = vpop.f32.mrb[5].mxu0  ;;  %v16013_v55 = vpop.f32.mrb[5].mxu1 }
 0x21e   :  { %v1925_v52 = vpop.f32.mrb[6].mxu0  ;;  %8403 = vmatpush1.bf16.msra.mxu0 %v13340_v43  ;;  %8731 = vmatpush1.bf16.msra.mxu1 %v13342_v12  ;;  %v1966_v62 = vpop.f32.mrb[6].mxu1  ;;  %v2390_v43 = vld [vmem:[#allocation8 + $0x708] sm:$0xff] }
 0x21f   :  { %v1926_v58 = vpop.f32.mrb[7].mxu0  ;;  %8404 = vmatprep.subr.bf16.mxu0 %v13349_v44  ;;  %8732 = vmatprep.subr.bf16.mxu1 %v13351_v46  ;;  %v1967_v3 = vpop.f32.mrb[7].mxu1  ;;  %v2394_v12 = vld [vmem:[#allocation8 + $0x728] sm:$0xff]  ;;  %v13388_v44 = vcombine.low %v2381_v32, %v2385_v33  ;;  %v13390_v46 = vcombine.low %v2382_v34, %v2386_v35  ;;  %v13405_v62 = vcombine.high %v2397_v8, %v2401_v50 }
 0x220   :  { %v13399_v49 = vcombine.high %v2390_v43, %v2394_v12  ;;  %v2398_v52 = vld [vmem:[#allocation8 + $0x748] sm:$0xff]  ;;  %v13396_v58 = vcombine.low %v2389_v41, %v2393_v42  ;;  %v16019_v3 = vsub.s32 5, %v15968_v48 }
 0x221   :  { %v2434_v41 = vld [vmem:[#allocation8 + $0x868] sm:$0xff] }
 0x222   :  { %8405 = vmatpush1.bf16.msra.mxu0 %v13348_v54  ;;  %8733 = vmatpush1.bf16.msra.mxu1 %v13350_v20  ;;  %v2402_v54 = vld [vmem:[#allocation8 + $0x768] sm:$0xff]  ;;  %v16016_v20 = vsub.s32 2, %v15968_v48  ;;  %v461_v17 = vrot.slane %v15973_v59, %v16019_v3 }
 0x223   :  { %8406 = vmatprep.subr.bf16.mxu0 %v13357_v61  ;;  %8734 = vmatprep.subr.bf16.mxu1 %v13359_v63  ;;  %v13398_v61 = vcombine.low %v2390_v43, %v2394_v12  ;;  %v13407_v63 = vcombine.high %v2398_v52, %v2402_v54  ;;  %v2437_v12 = vld [vmem:[#allocation8 + $0x880] sm:$0xff] }
 0x226   :  { %8407 = vmatpush1.bf16.msra.mxu0 %v13356_v6  ;;  %8735 = vmatpush1.bf16.msra.mxu1 %v13358_v7  ;;  %v13404_v6 = vcombine.low %v2397_v8, %v2401_v50  ;;  %v449_v7 = vrot.slane %v15973_v59, %v16016_v20  ;;  %v13420_v59 = vcombine.low %v2413_v13, %v2417_v14  ;;  %v2442_v8 = vld [vmem:[#allocation8 + $0x8a8] sm:$0xff] }
 0x227   :  { %8408 = vmatprep.subr.bf16.mxu0 %v13365_v9  ;;  %8736 = vmatprep.subr.bf16.mxu1 %v13367_v10  ;;  %v13406_v9 = vcombine.low %v2398_v52, %v2402_v54  ;;  %v13413_v10 = vcombine.high %v2405_v0, %v2409_v2 }
 0x22a   :  { %8409 = vmatpush1.bf16.msra.mxu0 %v13364_v18  ;;  %8737 = vmatpush1.bf16.msra.mxu1 %v13366_v19  ;;  %v2414_v18 = vld [vmem:[#allocation8 + $0x7c8] sm:$0xff] }
 0x22b   :  { %8410 = vmatprep.subr.bf16.mxu0 %v13373_v21  ;;  %8738 = vmatprep.subr.bf16.mxu1 %v13375_v22  ;;  %v2418_v19 = vld [vmem:[#allocation8 + $0x7e8] sm:$0xff]  ;;  %v13412_v21 = vcombine.low %v2405_v0, %v2409_v2  ;;  %v1881_v22 = vadd.f32 %v15979_v16, %v449_v7  ;;  %v2453_v7 = vld [vmem:[#allocation8 + $0x900] sm:$0xff] }
 0x22c   :  { %v13423_v25 = vcombine.high %v2414_v18, %v2418_v19  ;;  %v13422_v33 = vcombine.low %v2414_v18, %v2418_v19  ;;  %v2450_v0 = vld [vmem:[#allocation8 + $0x8e8] sm:$0xff]  ;;  %v2461_v19 = vld [vmem:[#allocation8 + $0x940] sm:$0xff] }
 0x22d   :  { %v2135_v32 = vmax.f32 %v1881_v22, 0.0  ;;  %v2462_v22 = vld [vmem:[#allocation8 + $0x948] sm:$0xff] }
 0x22e   :  { %8411 = vmatpush1.bf16.msra.mxu0 %v13372_v27  ;;  %8739 = vmatpush1.bf16.msra.mxu1 %v13374_v28  ;;  %v2425_v27 = vld [vmem:[#allocation8 + $0x820] sm:$0xff]  ;;  %v1924_v28 = vadd.f32 %v16009_v57, %v461_v17 }
 0x22f   :  { %8412 = vmatprep.subr.bf16.mxu0 %v13381_v29  ;;  %8740 = vmatprep.subr.bf16.mxu1 %v13383_v30  ;;  %v2422_v29 = vld [vmem:[#allocation8 + $0x808] sm:$0xff]  ;;  %v13429_v34 = vcombine.high %v2421_v26, %v2425_v27  ;;  %v16027_v42 = vpack.c.bf16 %v2135_v32, %v2135_v32 }
 0x230   :  { %v2426_v30 = vld [vmem:[#allocation8 + $0x828] sm:$0xff]  ;;  %v2138_v35 = vmax.f32 %v1924_v28, 0.0  ;;  %v2469_v28 = vld [vmem:[#allocation8 + $0x980] sm:$0xff] }
 0x231   :  { %v13431_v16 = vcombine.high %v2422_v29, %v2426_v30  ;;  %v13430_v57 = vcombine.low %v2422_v29, %v2426_v30  ;;  %v2473_v29 = vld [vmem:[#allocation8 + $0x9a0] sm:$0xff]  ;;  %v2470_v30 = vld [vmem:[#allocation8 + $0x988] sm:$0xff] }
 0x232   :  { %8413 = vmatpush1.bf16.msra.mxu0 %v13380_v36  ;;  %8741 = vmatpush1.bf16.msra.mxu1 %v13382_v37  ;;  %v2429_v36 = vld [vmem:[#allocation8 + $0x840] sm:$0xff] }
 0x233   :  { %8414 = vmatprep.subr.bf16.mxu0 %v13389_v38  ;;  %8742 = vmatprep.subr.bf16.mxu1 %v13391_v40  ;;  %v2433_v37 = vld [vmem:[#allocation8 + $0x860] sm:$0xff]  ;;  %v13428_v38 = vcombine.low %v2421_v26, %v2425_v27  ;;  %v2430_v40 = vld [vmem:[#allocation8 + $0x848] sm:$0xff] }
 0x234   :  { %v13437_v43 = vcombine.high %v2429_v36, %v2433_v37  ;;  %v13436_v50 = vcombine.low %v2429_v36, %v2433_v37  ;;  %v13438_v52 = vcombine.low %v2430_v40, %v2434_v41  ;;  %v2477_v36 = vld [vmem:[#allocation8 + $0x9c0] sm:$0xff] }
 0x235   :  { %v2481_v37 = vld [vmem:[#allocation8 + $0x9e0] sm:$0xff] }
 0x236   :  { %8415 = vmatpush1.bf16.msra.mxu0 %v13388_v44  ;;  %8743 = vmatpush1.bf16.msra.mxu1 %v13390_v46  ;;  %v2441_v44 = vld [vmem:[#allocation8 + $0x8a0] sm:$0xff]  ;;  %v16029_v46 = vpack.c.bf16 %v2138_v35, %v2138_v35 }
 0x237   :  { %8416 = vmatprep.subr.bf16.mxu0 %v13397_v47  ;;  %8744 = vmatprep.subr.bf16.mxu1 %v13399_v49  ;;  %v13439_v47 = vcombine.high %v2430_v40, %v2434_v41  ;;  %v2438_v49 = vld [vmem:[#allocation8 + $0x888] sm:$0xff]  ;;  %v13445_v54 = vcombine.high %v2437_v12, %v2441_v44  ;;  %v13444_v2 = vcombine.low %v2437_v12, %v2441_v44 }
 0x238   :  { %v13446_v4 = vcombine.low %v2438_v49, %v2442_v8  ;;  %v2478_v40 = vld [vmem:[#allocation8 + $0x9c8] sm:$0xff]  ;;  %v13476_v12 = vcombine.low %v2469_v28, %v2473_v29 }
 0x239   :  { %v2482_v41 = vld [vmem:[#allocation8 + $0x9e8] sm:$0xff] }
 0x23a   :  { %8417 = vmatpush1.bf16.msra.mxu0 %v13396_v58  ;;  %8745 = vmatpush1.bf16.msra.mxu1 %v13398_v61  ;;  %v13447_v58 = vcombine.high %v2438_v49, %v2442_v8  ;;  %v2445_v61 = vld [vmem:[#allocation8 + $0x8c0] sm:$0xff]  ;;  %v13485_v8 = vcombine.high %v2477_v36, %v2481_v37 }
 0x23b   :  { %8418 = vmatprep.subr.bf16.mxu0 %v13405_v62  ;;  %8746 = vmatprep.subr.bf16.mxu1 %v13407_v63  ;;  %v2449_v62 = vld [vmem:[#allocation8 + $0x8e0] sm:$0xff]  ;;  %v2446_v63 = vld [vmem:[#allocation8 + $0x8c8] sm:$0xff] }
 0x23c   :  { %v13453_v5 = vcombine.high %v2445_v61, %v2449_v62  ;;  %v13452_v13 = vcombine.low %v2445_v61, %v2449_v62  ;;  %v13454_v14 = vcombine.low %v2446_v63, %v2450_v0  ;;  %v2486_v62 = vld [vmem:[#allocation8 + $0xa08] sm:$0xff] }
 0x23e   :  { %8419 = vmatpush1.bf16.msra.mxu0 %v13404_v6  ;;  %8747 = vmatpush1.bf16.msra.mxu1 %v13406_v9  ;;  %v13455_v6 = vcombine.high %v2446_v63, %v2450_v0  ;;  %v2457_v9 = vld [vmem:[#allocation8 + $0x920] sm:$0xff]  ;;  %v2490_v63 = vld [vmem:[#allocation8 + $0xa28] sm:$0xff]  ;;  %v13484_v0 = vcombine.low %v2477_v36, %v2481_v37 }
 0x23f   :  { %8420 = vmatprep.subr.bf16.mxu0 %v13413_v10  ;;  %8748 = vmatprep.subr.bf16.mxu1 %v13415_v11  ;;  %v2454_v10 = vld [vmem:[#allocation8 + $0x908] sm:$0xff]  ;;  %v13461_v17 = vcombine.high %v2453_v7, %v2457_v9  ;;  %v2521_v36 = vld [vmem:[#allocation8 + $0xb20] sm:$0xff] }
 0x240   :  { %v2458_v11 = vld [vmem:[#allocation8 + $0x928] sm:$0xff] }
 0x241   :  { %v13463_v18 = vcombine.high %v2454_v10, %v2458_v11  ;;  %v2518_v37 = vld [vmem:[#allocation8 + $0xb08] sm:$0xff] }
 0x242   :  { %8421 = vmatpush1.bf16.msra.mxu0 %v13412_v21  ;;  %8749 = vmatpush1.bf16.msra.mxu1 %v13414_v23  ;;  %v2465_v21 = vld [vmem:[#allocation8 + $0x960] sm:$0xff]  ;;  %v2466_v23 = vld [vmem:[#allocation8 + $0x968] sm:$0xff] }
 0x243   :  { %8422 = vmatprep.subr.bf16.mxu0 %v13421_v24  ;;  %8750 = vmatprep.subr.bf16.mxu1 %v13423_v25  ;;  %v13460_v24 = vcombine.low %v2453_v7, %v2457_v9  ;;  %v13462_v25 = vcombine.low %v2454_v10, %v2458_v11  ;;  %v13469_v26 = vcombine.high %v2461_v19, %v2465_v21  ;;  %v2497_v7 = vld [vmem:[#allocation8 + $0xa60] sm:$0xff]  ;;  %v2494_v9 = vld [vmem:[#allocation8 + $0xa48] sm:$0xff] }
 0x244   :  { %v13471_v27 = vcombine.high %v2462_v22, %v2466_v23  ;;  %v13468_v32 = vcombine.low %v2461_v19, %v2465_v21  ;;  %v2498_v10 = vld [vmem:[#allocation8 + $0xa68] sm:$0xff]  ;;  %v2505_v19 = vld [vmem:[#allocation8 + $0xaa0] sm:$0xff] }
 0x245   :  { %v2502_v21 = vld [vmem:[#allocation8 + $0xa88] sm:$0xff] }
 0x246   :  { %8423 = vmatpush1.bf16.msra.mxu0 %v13420_v59  ;;  %8751 = vmatpush1.bf16.msra.mxu1 %v13422_v33  ;;  %v2474_v59 = vld [vmem:[#allocation8 + $0x9a8] sm:$0xff]  ;;  %v13470_v33 = vcombine.low %v2462_v22, %v2466_v23 }
 0x247   :  { %8433 = vmatprep.subr.bf16.mxu0 %v13429_v34  ;;  %8761 = vmatprep.subr.bf16.mxu1 %v13431_v16  ;;  %v13477_v34 = vcombine.high %v2469_v28, %v2473_v29  ;;  %v13479_v35 = vcombine.high %v2470_v30, %v2474_v59  ;;  %v13478_v49 = vcombine.low %v2470_v30, %v2474_v59  ;;  %v2506_v22 = vld [vmem:[#allocation8 + $0xaa8] sm:$0xff]  ;;  %v2513_v28 = vld [vmem:[#allocation8 + $0xae0] sm:$0xff] }
 0x248   :  { %v2510_v29 = vld [vmem:[#allocation8 + $0xac8] sm:$0xff] }
 0x249   :  { %8425 = vmatmul.mubr.bf16.vlgmr.msra.gmra.mrb[16].mxu0 %v16027_v42  ;;  %8753 = vmatmul.mubr.bf16.vlgmr.msra.gmra.mrb[16].mxu1 %v16027_v42  ;;  %v2514_v30 = vld [vmem:[#allocation8 + $0xae8] sm:$0xff] }
 0x24a   :  { %8434 = vmatpush1.bf16.msra.mxu0 %v13428_v38  ;;  %8465 = vmatprep.mubr.bf16.mxu0 %v16029_v46 }
 0x24b   :  { %8762 = vmatpush1.bf16.msra.mxu1 %v13430_v57  ;;  %8793 = vmatprep.mubr.bf16.mxu1 %v16029_v46 }
 0x24c   :  { %8435 = vmatprep.subr.bf16.mxu0 %v13437_v43  ;;  %8763 = vmatprep.subr.bf16.mxu1 %v13439_v47 }
 0x24e   :  { %8436 = vmatpush1.bf16.msra.mxu0 %v13436_v50 }
 0x24f   :  { %8764 = vmatpush1.bf16.msra.mxu1 %v13438_v52  ;;  %8437 = vmatprep.subr.bf16.mxu0 %v13445_v54  ;;  %v13487_v52 = vcombine.high %v2478_v40, %v2482_v41  ;;  %v2485_v54 = vld [vmem:[#allocation8 + $0xa00] sm:$0xff] }
 0x250   :  { %8765 = vmatprep.subr.bf16.mxu1 %v13447_v58  ;;  %v2489_v58 = vld [vmem:[#allocation8 + $0xa20] sm:$0xff] }
 0x251   :  { %v13492_v11 = vcombine.low %v2485_v54, %v2489_v58 }
 0x252   :  { %8438 = vmatpush1.bf16.msra.mxu0 %v13444_v2  ;;  %v13486_v2 = vcombine.low %v2478_v40, %v2482_v41  ;;  %v2522_v40 = vld [vmem:[#allocation8 + $0xb28] sm:$0xff] }
 0x253   :  { %8766 = vmatpush1.bf16.msra.mxu1 %v13446_v4  ;;  %8439 = vmatprep.subr.bf16.mxu0 %v13453_v5  ;;  %v13493_v4 = vcombine.high %v2485_v54, %v2489_v58  ;;  %v13495_v5 = vcombine.high %v2486_v62, %v2490_v63  ;;  %v16044_v58 = vsub.s32 4, %v15968_v48 }
 0x254   :  { %8767 = vmatprep.subr.bf16.mxu1 %v13455_v6  ;;  %v2493_v6 = vld [vmem:[#allocation8 + $0xa40] sm:$0xff] }
 0x255   :  { %v13500_v23 = vcombine.low %v2493_v6, %v2497_v7 }
 0x256   :  { %8440 = vmatpush1.bf16.msra.mxu0 %v13452_v13  ;;  %v13494_v13 = vcombine.low %v2486_v62, %v2490_v63 }
 0x257   :  { %8768 = vmatpush1.bf16.msra.mxu1 %v13454_v14  ;;  %8441 = vmatprep.subr.bf16.mxu0 %v13461_v17  ;;  %v13501_v14 = vcombine.high %v2493_v6, %v2497_v7  ;;  %v13503_v17 = vcombine.high %v2494_v9, %v2498_v10  ;;  %v2538_v6 = vld [vmem:[#allocation8 + $0xba8] sm:$0xff] }
 0x258   :  { %8769 = vmatprep.subr.bf16.mxu1 %v13463_v18  ;;  %v2501_v18 = vld [vmem:[#allocation8 + $0xa80] sm:$0xff] }
 0x259   :  { %v13508_v59 = vcombine.low %v2501_v18, %v2505_v19 }
 0x25a   :  { %8442 = vmatpush1.bf16.msra.mxu0 %v13460_v24  ;;  %v13502_v24 = vcombine.low %v2494_v9, %v2498_v10  ;;  %v16049_v9 = vld [vmem:[#allocation7] sm:$0xff] }
 0x25b   :  { %8770 = vmatpush1.bf16.msra.mxu1 %v13462_v25  ;;  %8443 = vmatprep.subr.bf16.mxu0 %v13469_v26  ;;  %v13509_v25 = vcombine.high %v2501_v18, %v2505_v19  ;;  %v13511_v26 = vcombine.high %v2502_v21, %v2506_v22  ;;  %v457_v10 = vrot.slane %v16049_v9, %v16044_v58  ;;  %v2545_v18 = vld [vmem:[#allocation8 + $0xbe0] sm:$0xff] }
 0x25c   :  { %v16035_v16 = vpop.f32.mrb[8].mxu0  ;;  %8771 = vmatprep.subr.bf16.mxu1 %v13471_v27  ;;  %v16039_v57 = vpop.f32.mrb[8].mxu1  ;;  %v2509_v27 = vld [vmem:[#allocation8 + $0xac0] sm:$0xff] }
 0x25d   :  { %v16037_v38 = vpop.f32.mrb[9].mxu0  ;;  %v16041_v44 = vpop.f32.mrb[9].mxu1  ;;  %v13516_v41 = vcombine.low %v2509_v27, %v2513_v28 }
 0x25e   :  { %v2007_v43 = vpop.f32.mrb[10].mxu0  ;;  %8444 = vmatpush1.bf16.msra.mxu0 %v13468_v32  ;;  %v2048_v50 = vpop.f32.mrb[10].mxu1  ;;  %v13510_v32 = vcombine.low %v2502_v21, %v2506_v22  ;;  %v2542_v21 = vld [vmem:[#allocation8 + $0xbc8] sm:$0xff] }
 0x25f   :  { %8772 = vmatpush1.bf16.msra.mxu1 %v13470_v33  ;;  %v2008_v47 = vpop.f32.mrb[11].mxu0  ;;  %8445 = vmatprep.subr.bf16.mxu0 %v13477_v34  ;;  %v2049_v61 = vpop.f32.mrb[11].mxu1  ;;  %v13517_v33 = vcombine.high %v2509_v27, %v2513_v28  ;;  %v13519_v34 = vcombine.high %v2510_v29, %v2514_v30  ;;  %v13518_v43 = vcombine.low %v2510_v29, %v2514_v30  ;;  %v2526_v50 = vld [vmem:[#allocation8 + $0xb48] sm:$0xff]  ;;  %v2549_v28 = vld [vmem:[#allocation8 + $0xc00] sm:$0xff] }
 0x260   :  { %8773 = vmatprep.subr.bf16.mxu1 %v13479_v35  ;;  %v2517_v35 = vld [vmem:[#allocation8 + $0xb00] sm:$0xff]  ;;  %v13527_v47 = vcombine.high %v2518_v37, %v2522_v40  ;;  %v13526_v61 = vcombine.low %v2518_v37, %v2522_v40  ;;  %v2546_v22 = vld [vmem:[#allocation8 + $0xbe8] sm:$0xff] }
 0x261   :  { %v13524_v54 = vcombine.low %v2517_v35, %v2521_v36  ;;  %v13551_v27 = vcombine.high %v2542_v21, %v2546_v22  ;;  %v2553_v29 = vld [vmem:[#allocation8 + $0xc20] sm:$0xff] }
 0x262   :  { %8446 = vmatpush1.bf16.msra.mxu0 %v13476_v12  ;;  %v13525_v12 = vcombine.high %v2517_v35, %v2521_v36  ;;  %v13550_v35 = vcombine.low %v2542_v21, %v2546_v22  ;;  %v13557_v36 = vcombine.high %v2549_v28, %v2553_v29  ;;  %v2557_v40 = vld [vmem:[#allocation8 + $0xc40] sm:$0xff] }
 0x263   :  { %8774 = vmatpush1.bf16.msra.mxu1 %v13478_v49  ;;  %8447 = vmatprep.subr.bf16.mxu0 %v13485_v8  ;;  %v2525_v49 = vld [vmem:[#allocation8 + $0xb40] sm:$0xff] }
 0x264   :  { %8775 = vmatprep.subr.bf16.mxu1 %v13487_v52  ;;  %v2529_v8 = vld [vmem:[#allocation8 + $0xb60] sm:$0xff]  ;;  %v2530_v52 = vld [vmem:[#allocation8 + $0xb68] sm:$0xff] }
 0x265   :  { %v13533_v62 = vcombine.high %v2525_v49, %v2529_v8  ;;  %v13535_v63 = vcombine.high %v2526_v50, %v2530_v52  ;;  %v13532_v7 = vcombine.low %v2525_v49, %v2529_v8  ;;  %v2581_v21 = vld [vmem:[#allocation8 + $0xd00] sm:$0xff] }
 0x266   :  { %8448 = vmatpush1.bf16.msra.mxu0 %v13484_v0  ;;  %v2533_v0 = vld [vmem:[#allocation8 + $0xb80] sm:$0xff] }
 0x267   :  { %8776 = vmatpush1.bf16.msra.mxu1 %v13486_v2  ;;  %8449 = vmatprep.subr.bf16.mxu0 %v13493_v4  ;;  %v2537_v2 = vld [vmem:[#allocation8 + $0xba0] sm:$0xff]  ;;  %v16047_v4 = vsub.s32 7, %v15968_v48 }
 0x268   :  { %8777 = vmatprep.subr.bf16.mxu1 %v13495_v5  ;;  %v2534_v5 = vld [vmem:[#allocation8 + $0xb88] sm:$0xff]  ;;  %v2585_v22 = vld [vmem:[#allocation8 + $0xd20] sm:$0xff] }
 0x269   :  { %v469_v19 = vrot.slane %v16049_v9, %v16047_v4 }
 0x26a   :  { %8450 = vmatpush1.bf16.msra.mxu0 %v13492_v11  ;;  %v13534_v11 = vcombine.low %v2526_v50, %v2530_v52  ;;  %v2565_v50 = vld [vmem:[#allocation8 + $0xc80] sm:$0xff] }
 0x26b   :  { %8778 = vmatpush1.bf16.msra.mxu1 %v13494_v13  ;;  %8451 = vmatprep.subr.bf16.mxu0 %v13501_v14  ;;  %v13541_v13 = vcombine.high %v2533_v0, %v2537_v2  ;;  %v13543_v14 = vcombine.high %v2534_v5, %v2538_v6  ;;  %v1965_v30 = vadd.f32 %v16013_v55, %v469_v19  ;;  %v2569_v52 = vld [vmem:[#allocation8 + $0xca0] sm:$0xff] }
 0x26c   :  { %8779 = vmatprep.subr.bf16.mxu1 %v13503_v17  ;;  %v2541_v17 = vld [vmem:[#allocation8 + $0xbc0] sm:$0xff] }
 0x26d   :  { %v2140_v37 = vmax.f32 %v1965_v30, 0.0  ;;  %v2593_v30 = vld [vmem:[#allocation8 + $0xd60] sm:$0xff] }
 0x26e   :  { %8452 = vmatpush1.bf16.msra.mxu0 %v13500_v23  ;;  %v13540_v23 = vcombine.low %v2533_v0, %v2537_v2 }
 0x26f   :  { %8780 = vmatpush1.bf16.msra.mxu1 %v13502_v24  ;;  %8453 = vmatprep.subr.bf16.mxu0 %v13509_v25  ;;  %v1922_v24 = vadd.f32 %v16007_v45, %v457_v10  ;;  %v13542_v25 = vcombine.low %v2534_v5, %v2538_v6  ;;  %v13573_v5 = vcombine.high %v2565_v50, %v2569_v52  ;;  %v2577_v10 = vld [vmem:[#allocation8 + $0xce0] sm:$0xff] }
 0x270   :  { %8781 = vmatprep.subr.bf16.mxu1 %v13511_v26  ;;  %v13549_v26 = vcombine.high %v2541_v17, %v2545_v18 }
 0x272   :  { %8454 = vmatpush1.bf16.msra.mxu0 %v13508_v59  ;;  %v2550_v59 = vld [vmem:[#allocation8 + $0xc08] sm:$0xff] }
 0x273   :  { %8782 = vmatpush1.bf16.msra.mxu1 %v13510_v32  ;;  %8455 = vmatprep.subr.bf16.mxu0 %v13517_v33  ;;  %v2554_v32 = vld [vmem:[#allocation8 + $0xc28] sm:$0xff]  ;;  %v13548_v33 = vcombine.low %v2541_v17, %v2545_v18 }
 0x274   :  { %8783 = vmatprep.subr.bf16.mxu1 %v13519_v34  ;;  %v2137_v34 = vmax.f32 %v1922_v24, 0.0  ;;  %v13559_v45 = vcombine.high %v2550_v59, %v2554_v32  ;;  %v13558_v55 = vcombine.low %v2550_v59, %v2554_v32  ;;  %v2586_v24 = vld [vmem:[#allocation8 + $0xd28] sm:$0xff] }
 0x275   :  { %v2590_v59 = vld [vmem:[#allocation8 + $0xd48] sm:$0xff] }
 0x276   :  { %8456 = vmatpush1.bf16.msra.mxu0 %v13516_v41  ;;  %v2561_v41 = vld [vmem:[#allocation8 + $0xc60] sm:$0xff]  ;;  %v16057_v49 = vpack.c.bf16 %v2137_v34, %v2137_v34  ;;  %v2594_v32 = vld [vmem:[#allocation8 + $0xd68] sm:$0xff] }
 0x277   :  { %8784 = vmatpush1.bf16.msra.mxu1 %v13518_v43  ;;  %8457 = vmatprep.subr.bf16.mxu0 %v13525_v12  ;;  %v13556_v43 = vcombine.low %v2549_v28, %v2553_v29  ;;  %v2558_v12 = vld [vmem:[#allocation8 + $0xc48] sm:$0xff]  ;;  %v13565_v8 = vcombine.high %v2557_v40, %v2561_v41  ;;  %v13564_v0 = vcombine.low %v2557_v40, %v2561_v41  ;;  %v2589_v29 = vld [vmem:[#allocation8 + $0xd40] sm:$0xff] }
 0x278   :  { %8785 = vmatprep.subr.bf16.mxu1 %v13527_v47  ;;  %v2562_v47 = vld [vmem:[#allocation8 + $0xc68] sm:$0xff] }
 0x279   :  { %v13566_v2 = vcombine.low %v2558_v12, %v2562_v47  ;;  %v2598_v40 = vld [vmem:[#allocation8 + $0xd88] sm:$0xff] }
 0x27a   :  { %8458 = vmatpush1.bf16.msra.mxu0 %v13524_v54  ;;  %v16059_v54 = vpack.c.bf16 %v2140_v37, %v2140_v37  ;;  %v2601_v37 = vld [vmem:[#allocation8 + $0xda0] sm:$0xff]  ;;  %v2602_v41 = vld [vmem:[#allocation8 + $0xda8] sm:$0xff] }
 0x27b   :  { %8786 = vmatpush1.bf16.msra.mxu1 %v13526_v61  ;;  %8459 = vmatprep.subr.bf16.mxu0 %v13533_v62  ;;  %v13567_v61 = vcombine.high %v2558_v12, %v2562_v47  ;;  %v2566_v62 = vld [vmem:[#allocation8 + $0xc88] sm:$0xff]  ;;  %v13598_v12 = vcombine.low %v2590_v59, %v2594_v32 }
 0x27c   :  { %8787 = vmatprep.subr.bf16.mxu1 %v13535_v63  ;;  %v2570_v63 = vld [vmem:[#allocation8 + $0xca8] sm:$0xff] }
 0x27d   :  { %v13575_v6 = vcombine.high %v2566_v62, %v2570_v63  ;;  %v13574_v17 = vcombine.low %v2566_v62, %v2570_v63  ;;  %v2606_v62 = vld [vmem:[#allocation8 + $0xdc8] sm:$0xff] }
 0x27e   :  { %8460 = vmatpush1.bf16.msra.mxu0 %v13532_v7  ;;  %v2573_v7 = vld [vmem:[#allocation8 + $0xcc0] sm:$0xff]  ;;  %v2610_v63 = vld [vmem:[#allocation8 + $0xde8] sm:$0xff] }
 0x27f   :  { %8788 = vmatpush1.bf16.msra.mxu1 %v13534_v11  ;;  %8461 = vmatprep.subr.bf16.mxu0 %v13541_v13  ;;  %v2574_v11 = vld [vmem:[#allocation8 + $0xcc8] sm:$0xff]  ;;  %v13581_v18 = vcombine.high %v2573_v7, %v2577_v10 }
 0x280   :  { %8789 = vmatprep.subr.bf16.mxu1 %v13543_v14  ;;  %v2578_v13 = vld [vmem:[#allocation8 + $0xce8] sm:$0xff]  ;;  %v13572_v14 = vcombine.low %v2565_v50, %v2569_v52  ;;  %v2605_v50 = vld [vmem:[#allocation8 + $0xdc0] sm:$0xff] }
 0x281   :  { %v13583_v19 = vcombine.high %v2574_v11, %v2578_v13  ;;  %v2609_v52 = vld [vmem:[#allocation8 + $0xde0] sm:$0xff] }
 0x282   :  { %8462 = vmatpush1.bf16.msra.mxu0 %v13540_v23  ;;  %v2582_v23 = vld [vmem:[#allocation8 + $0xd08] sm:$0xff] }
 0x283   :  { %8790 = vmatpush1.bf16.msra.mxu1 %v13542_v25  ;;  %8463 = vmatprep.subr.bf16.mxu0 %v13549_v26  ;;  %v13580_v25 = vcombine.low %v2573_v7, %v2577_v10  ;;  %v13582_v26 = vcombine.low %v2574_v11, %v2578_v13  ;;  %v13591_v28 = vcombine.high %v2582_v23, %v2586_v24 }
 0x284   :  { %8791 = vmatprep.subr.bf16.mxu1 %v13551_v27  ;;  %v13589_v27 = vcombine.high %v2581_v21, %v2585_v22  ;;  %v13590_v34 = vcombine.low %v2582_v23, %v2586_v24  ;;  %v13606_v10 = vcombine.low %v2598_v40, %v2602_v41  ;;  %v13613_v11 = vcombine.high %v2605_v50, %v2609_v52 }
 0x285   :  { %v13612_v23 = vcombine.low %v2605_v50, %v2609_v52  ;;  %v13614_v24 = vcombine.low %v2606_v62, %v2610_v63  ;;  %v2638_v50 = vld [vmem:[#allocation8 + $0xec8] sm:$0xff] }
 0x286   :  { %8464 = vmatpush1.bf16.msra.mxu0 %v13548_v33  ;;  %v13588_v33 = vcombine.low %v2581_v21, %v2585_v22  ;;  %v2614_v21 = vld [vmem:[#allocation8 + $0xe08] sm:$0xff] }
 0x287   :  { %8792 = vmatpush1.bf16.msra.mxu1 %v13550_v35  ;;  %8474 = vmatprep.subr.bf16.mxu0 %v13557_v36  ;;  %v13597_v35 = vcombine.high %v2589_v29, %v2593_v30  ;;  %v13599_v36 = vcombine.high %v2590_v59, %v2594_v32  ;;  %v2618_v22 = vld [vmem:[#allocation8 + $0xe28] sm:$0xff] }
 0x288   :  { %8802 = vmatprep.subr.bf16.mxu1 %v13559_v45  ;;  %v2597_v45 = vld [vmem:[#allocation8 + $0xd80] sm:$0xff]  ;;  %v13622_v32 = vcombine.low %v2614_v21, %v2618_v22  ;;  %v2642_v52 = vld [vmem:[#allocation8 + $0xee8] sm:$0xff] }
 0x289   :  { %8466 = vmatmul.mubr.bf16.vlgmr.msra.gmra.mrb[16].mxu0 %v16057_v49  ;;  %v13605_v47 = vcombine.high %v2597_v45, %v2601_v37 }
 0x28a   :  { %8794 = vmatmul.mubr.bf16.vlgmr.msra.gmra.mrb[16].mxu1 %v16057_v49  ;;  %8475 = vmatpush1.bf16.msra.mxu0 %v13556_v43  ;;  %v13596_v43 = vcombine.low %v2589_v29, %v2593_v30  ;;  %v2622_v29 = vld [vmem:[#allocation8 + $0xe48] sm:$0xff] }
 0x28b   :  { %8506 = vmatprep.mubr.bf16.mxu0 %v16059_v54  ;;  %8803 = vmatpush1.bf16.msra.mxu1 %v13558_v55  ;;  %v2626_v30 = vld [vmem:[#allocation8 + $0xe68] sm:$0xff] }
 0x28c   :  { %8834 = vmatprep.mubr.bf16.mxu1 %v16059_v54  ;;  %8476 = vmatprep.subr.bf16.mxu0 %v13565_v8  ;;  %v13607_v8 = vcombine.high %v2598_v40, %v2602_v41  ;;  %v13630_v41 = vcombine.low %v2622_v29, %v2626_v30 }
 0x28d   :  { %8804 = vmatprep.subr.bf16.mxu1 %v13567_v61 }
 0x28e   :  { %8477 = vmatpush1.bf16.msra.mxu0 %v13564_v0 }
 0x28f   :  { %8805 = vmatpush1.bf16.msra.mxu1 %v13566_v2  ;;  %8478 = vmatprep.subr.bf16.mxu0 %v13573_v5  ;;  %v13604_v5 = vcombine.low %v2597_v45, %v2601_v37  ;;  %v2630_v45 = vld [vmem:[#allocation8 + $0xe88] sm:$0xff] }
 0x290   :  { %8806 = vmatprep.subr.bf16.mxu1 %v13575_v6  ;;  %v2634_v37 = vld [vmem:[#allocation8 + $0xea8] sm:$0xff] }
 0x292   :  { %8479 = vmatpush1.bf16.msra.mxu0 %v13572_v14  ;;  %v13615_v14 = vcombine.high %v2606_v62, %v2610_v63  ;;  %v13638_v63 = vcombine.low %v2630_v45, %v2634_v37 }
 0x293   :  { %8807 = vmatpush1.bf16.msra.mxu1 %v13574_v17  ;;  %8480 = vmatprep.subr.bf16.mxu0 %v13581_v18  ;;  %v2613_v17 = vld [vmem:[#allocation8 + $0xe00] sm:$0xff] }
 0x294   :  { %8808 = vmatprep.subr.bf16.mxu1 %v13583_v19  ;;  %v2617_v18 = vld [vmem:[#allocation8 + $0xe20] sm:$0xff] }
 0x295   :  { %v13620_v59 = vcombine.low %v2613_v17, %v2617_v18 }
 0x296   :  { %8481 = vmatpush1.bf16.msra.mxu0 %v13580_v25  ;;  %v13621_v25 = vcombine.high %v2613_v17, %v2617_v18  ;;  %v13646_v17 = vcombine.low %v2638_v50, %v2642_v52 }
 0x297   :  { %8809 = vmatpush1.bf16.msra.mxu1 %v13582_v26  ;;  %8482 = vmatprep.subr.bf16.mxu0 %v13589_v27  ;;  %v13623_v26 = vcombine.high %v2614_v21, %v2618_v22  ;;  %v2621_v27 = vld [vmem:[#allocation8 + $0xe40] sm:$0xff] }
 0x298   :  { %8810 = vmatprep.subr.bf16.mxu1 %v13591_v28  ;;  %v2625_v28 = vld [vmem:[#allocation8 + $0xe60] sm:$0xff] }
 0x299   :  { %v13628_v40 = vcombine.low %v2621_v27, %v2625_v28  ;;  %v2653_v21 = vld [vmem:[#allocation8 + $0xf40] sm:$0xff] }
 0x29a   :  { %8483 = vmatpush1.bf16.msra.mxu0 %v13588_v33  ;;  %v13629_v33 = vcombine.high %v2621_v27, %v2625_v28  ;;  %v2657_v22 = vld [vmem:[#allocation8 + $0xf60] sm:$0xff] }
 0x29b   :  { %8811 = vmatpush1.bf16.msra.mxu1 %v13590_v34  ;;  %8484 = vmatprep.subr.bf16.mxu0 %v13597_v35  ;;  %v13631_v34 = vcombine.high %v2622_v29, %v2626_v30  ;;  %v2629_v35 = vld [vmem:[#allocation8 + $0xe80] sm:$0xff]  ;;  %v13661_v28 = vcombine.high %v2653_v21, %v2657_v22 }
 0x29c   :  { %v16065_v55 = vpop.f32.mrb[12].mxu0  ;;  %8812 = vmatprep.subr.bf16.mxu1 %v13599_v36  ;;  %v16069_v0 = vpop.f32.mrb[12].mxu1  ;;  %v2633_v36 = vld [vmem:[#allocation8 + $0xea0] sm:$0xff] }
 0x29d   :  { %v16067_v61 = vpop.f32.mrb[13].mxu0  ;;  %v16071_v6 = vpop.f32.mrb[13].mxu1  ;;  %v13636_v62 = vcombine.low %v2629_v35, %v2633_v36  ;;  %v2661_v30 = vld [vmem:[#allocation8 + $0xf80] sm:$0xff] }
 0x29e   :  { %v2089_v2 = vpop.f32.mrb[14].mxu0  ;;  %8485 = vmatpush1.bf16.msra.mxu0 %v13596_v43  ;;  %v2130_v13 = vpop.f32.mrb[14].mxu1  ;;  %v13637_v43 = vcombine.high %v2629_v35, %v2633_v36  ;;  %v13660_v35 = vcombine.low %v2653_v21, %v2657_v22  ;;  %v2689_v21 = vld [vmem:[#allocation8 + $0x1060] sm:$0xff] }
 0x29f   :  { %8813 = vmatpush1.bf16.msra.mxu1 %v13598_v12  ;;  %v2090_v7 = vpop.f32.mrb[15].mxu0  ;;  %8486 = vmatprep.subr.bf16.mxu0 %v13605_v47  ;;  %v2131_v19 = vpop.f32.mrb[15].mxu1  ;;  %v13639_v12 = vcombine.high %v2630_v45, %v2634_v37  ;;  %v2637_v47 = vld [vmem:[#allocation8 + $0xec0] sm:$0xff]  ;;  %v2650_v13 = vld [vmem:[#allocation8 + $0xf28] sm:$0xff] }
 0x2a0   :  { %8814 = vmatprep.subr.bf16.mxu1 %v13607_v8  ;;  %v2641_v8 = vld [vmem:[#allocation8 + $0xee0] sm:$0xff] }
 0x2a1   :  { %v13645_v2 = vcombine.high %v2637_v47, %v2641_v8  ;;  %v2645_v7 = vld [vmem:[#allocation8 + $0xf00] sm:$0xff] }
 0x2a2   :  { %8487 = vmatpush1.bf16.msra.mxu0 %v13604_v5  ;;  %v13647_v5 = vcombine.high %v2638_v50, %v2642_v52 }
 0x2a3   :  { %8815 = vmatpush1.bf16.msra.mxu1 %v13606_v10  ;;  %8488 = vmatprep.subr.bf16.mxu0 %v13613_v11  ;;  %v2649_v10 = vld [vmem:[#allocation8 + $0xf20] sm:$0xff]  ;;  %v2646_v11 = vld [vmem:[#allocation8 + $0xf08] sm:$0xff] }
 0x2a4   :  { %8816 = vmatprep.subr.bf16.mxu1 %v13615_v14  ;;  %v13644_v14 = vcombine.low %v2637_v47, %v2641_v8  ;;  %v13653_v18 = vcombine.high %v2645_v7, %v2649_v10  ;;  %v13655_v19 = vcombine.high %v2646_v11, %v2650_v13  ;;  %v13654_v27 = vcombine.low %v2646_v11, %v2650_v13  ;;  %v2674_v47 = vld [vmem:[#allocation8 + $0xfe8] sm:$0xff] }
 0x2a6   :  { %8489 = vmatpush1.bf16.msra.mxu0 %v13612_v23  ;;  %v2654_v23 = vld [vmem:[#allocation8 + $0xf48] sm:$0xff] }
 0x2a7   :  { %8817 = vmatpush1.bf16.msra.mxu1 %v13614_v24  ;;  %8490 = vmatprep.subr.bf16.mxu0 %v13621_v25  ;;  %v2658_v24 = vld [vmem:[#allocation8 + $0xf68] sm:$0xff]  ;;  %v13652_v25 = vcombine.low %v2645_v7, %v2649_v10 }
 0x2a8   :  { %8818 = vmatprep.subr.bf16.mxu1 %v13623_v26  ;;  %v16074_v26 = vsub.s32 6, %v15968_v48  ;;  %v13663_v29 = vcombine.high %v2654_v23, %v2658_v24  ;;  %v13662_v48 = vcombine.low %v2654_v23, %v2658_v24  ;;  %v2678_v7 = vld [vmem:[#allocation8 + $0x1008] sm:$0xff] }
 0x2a9   :  { %v2682_v10 = vld [vmem:[#allocation8 + $0x1028] sm:$0xff] }
 0x2aa   :  { %8491 = vmatpush1.bf16.msra.mxu0 %v13620_v59  ;;  %v2665_v59 = vld [vmem:[#allocation8 + $0xfa0] sm:$0xff]  ;;  %v465_v36 = vrot.slane %v16049_v9, %v16074_v26  ;;  %v2686_v23 = vld [vmem:[#allocation8 + $0x1048] sm:$0xff] }
 0x2ab   :  { %8819 = vmatpush1.bf16.msra.mxu1 %v13622_v32  ;;  %8492 = vmatprep.subr.bf16.mxu0 %v13629_v33  ;;  %v2662_v32 = vld [vmem:[#allocation8 + $0xf88] sm:$0xff]  ;;  %v13669_v45 = vcombine.high %v2661_v30, %v2665_v59  ;;  %v13668_v8 = vcombine.low %v2661_v30, %v2665_v59 }
 0x2ac   :  { %8820 = vmatprep.subr.bf16.mxu1 %v13631_v34  ;;  %v2666_v33 = vld [vmem:[#allocation8 + $0xfa8] sm:$0xff]  ;;  %v16076_v34 = vld [vmem:[#allocation7 + $0x8] sm:$0xff]  ;;  %v1963_v50 = vadd.f32 %v16011_v51, %v465_v36  ;;  %v13687_v51 = vcombine.high %v2678_v7, %v2682_v10 }
 0x2ad   :  { %v13671_v37 = vcombine.high %v2662_v32, %v2666_v33  ;;  %v13670_v9 = vcombine.low %v2662_v32, %v2666_v33  ;;  %v2690_v24 = vld [vmem:[#allocation8 + $0x1068] sm:$0xff] }
 0x2ae   :  { %8493 = vmatpush1.bf16.msra.mxu0 %v13628_v40  ;;  %v2669_v40 = vld [vmem:[#allocation8 + $0xfc0] sm:$0xff]  ;;  %v2139_v13 = vmax.f32 %v1963_v50, 0.0  ;;  %v13695_v59 = vcombine.high %v2686_v23, %v2690_v24  ;;  %v2694_v32 = vld [vmem:[#allocation8 + $0x1088] sm:$0xff]  ;;  %v13694_v36 = vcombine.low %v2686_v23, %v2690_v24 }
 0x2af   :  { %8821 = vmatpush1.bf16.msra.mxu1 %v13630_v41  ;;  %8494 = vmatprep.subr.bf16.mxu0 %v13637_v43  ;;  %v2673_v41 = vld [vmem:[#allocation8 + $0xfe0] sm:$0xff]  ;;  %v477_v43 = vrot.slane %v16076_v34, %v15971_v56  ;;  %v2698_v33 = vld [vmem:[#allocation8 + $0x10a8] sm:$0xff] }
 0x2b0   :  { %8822 = vmatprep.subr.bf16.mxu1 %v13639_v12  ;;  %v2670_v12 = vld [vmem:[#allocation8 + $0xfc8] sm:$0xff]  ;;  %v13677_v52 = vcombine.high %v2669_v40, %v2673_v41  ;;  %v13676_v11 = vcombine.low %v2669_v40, %v2673_v41  ;;  %v2705_v40 = vld [vmem:[#allocation8 + $0x10e0] sm:$0xff] }
 0x2b1   :  { %v2702_v41 = vld [vmem:[#allocation8 + $0x10c8] sm:$0xff]  ;;  %v2729_v23 = vld [vmem:[#allocation8 + $0x11a0] sm:$0xff] }
 0x2b2   :  { %8495 = vmatpush1.bf16.msra.mxu0 %v13636_v62  ;;  %v13679_v62 = vcombine.high %v2670_v12, %v2674_v47  ;;  %v2726_v24 = vld [vmem:[#allocation8 + $0x1188] sm:$0xff] }
 0x2b3   :  { %8823 = vmatpush1.bf16.msra.mxu1 %v13638_v63  ;;  %8496 = vmatprep.subr.bf16.mxu0 %v13645_v2  ;;  %v2677_v63 = vld [vmem:[#allocation8 + $0x1000] sm:$0xff] }
 0x2b4   :  { %8824 = vmatprep.subr.bf16.mxu1 %v13647_v5  ;;  %v2681_v2 = vld [vmem:[#allocation8 + $0x1020] sm:$0xff]  ;;  %v2006_v5 = vadd.f32 %v16037_v38, %v477_v43  ;;  %v13686_v38 = vcombine.low %v2678_v7, %v2682_v10  ;;  %v2706_v43 = vld [vmem:[#allocation8 + $0x10e8] sm:$0xff] }
 0x2b5   :  { %v13684_v22 = vcombine.low %v2677_v63, %v2681_v2  ;;  %v13711_v50 = vcombine.high %v2702_v41, %v2706_v43 }
 0x2b6   :  { %8497 = vmatpush1.bf16.msra.mxu0 %v13644_v14  ;;  %v13678_v14 = vcombine.low %v2670_v12, %v2674_v47  ;;  %v13702_v47 = vcombine.low %v2694_v32, %v2698_v33 }
 0x2b7   :  { %8825 = vmatpush1.bf16.msra.mxu1 %v13646_v17  ;;  %8498 = vmatprep.subr.bf16.mxu0 %v13653_v18  ;;  %v13685_v17 = vcombine.high %v2677_v63, %v2681_v2  ;;  %v2142_v18 = vmax.f32 %v2006_v5, 0.0  ;;  %v2714_v63 = vld [vmem:[#allocation8 + $0x1128] sm:$0xff]  ;;  %v13710_v5 = vcombine.low %v2702_v41, %v2706_v43  ;;  %v2741_v41 = vld [vmem:[#allocation8 + $0x1200] sm:$0xff] }
 0x2b8   :  { %8826 = vmatprep.subr.bf16.mxu1 %v13655_v19  ;;  %v2685_v19 = vld [vmem:[#allocation8 + $0x1040] sm:$0xff] }
 0x2b9   :  { %v16086_v30 = vpack.c.bf16 %v2142_v18, %v2142_v18  ;;  %v2745_v43 = vld [vmem:[#allocation8 + $0x1220] sm:$0xff] }
 0x2ba   :  { %8499 = vmatpush1.bf16.msra.mxu0 %v13652_v25  ;;  %v16084_v25 = vpack.c.bf16 %v2139_v13, %v2139_v13  ;;  %v2721_v13 = vld [vmem:[#allocation8 + $0x1160] sm:$0xff] }
 0x2bb   :  { %8827 = vmatpush1.bf16.msra.mxu1 %v13654_v27  ;;  %8500 = vmatprep.subr.bf16.mxu0 %v13661_v28  ;;  %v13693_v27 = vcombine.high %v2685_v19, %v2689_v21  ;;  %v2693_v28 = vld [vmem:[#allocation8 + $0x1080] sm:$0xff] }
 0x2bc   :  { %8828 = vmatprep.subr.bf16.mxu1 %v13663_v29  ;;  %v2697_v29 = vld [vmem:[#allocation8 + $0x10a0] sm:$0xff] }
 0x2bd   :  { %v13700_v12 = vcombine.low %v2693_v28, %v2697_v29 }
 0x2be   :  { %8501 = vmatpush1.bf16.msra.mxu0 %v13660_v35  ;;  %v13692_v35 = vcombine.low %v2685_v19, %v2689_v21 }
 0x2bf   :  { %8829 = vmatpush1.bf16.msra.mxu1 %v13662_v48  ;;  %8502 = vmatprep.subr.bf16.mxu0 %v13669_v45  ;;  %v13701_v48 = vcombine.high %v2693_v28, %v2697_v29  ;;  %v13703_v45 = vcombine.high %v2694_v32, %v2698_v33  ;;  %v2733_v32 = vld [vmem:[#allocation8 + $0x11c0] sm:$0xff] }
 0x2c0   :  { %8830 = vmatprep.subr.bf16.mxu1 %v13671_v37  ;;  %v2701_v37 = vld [vmem:[#allocation8 + $0x10c0] sm:$0xff] }
 0x2c1   :  { %v13708_v2 = vcombine.low %v2701_v37, %v2705_v40  ;;  %v2737_v33 = vld [vmem:[#allocation8 + $0x11e0] sm:$0xff] }
 0x2c2   :  { %8503 = vmatpush1.bf16.msra.mxu0 %v13668_v8  ;;  %v13709_v8 = vcombine.high %v2701_v37, %v2705_v40  ;;  %v13741_v37 = vcombine.high %v2733_v32, %v2737_v33 }
 0x2c3   :  { %8831 = vmatpush1.bf16.msra.mxu1 %v13670_v9  ;;  %8504 = vmatprep.subr.bf16.mxu0 %v13677_v52  ;;  %v2709_v9 = vld [vmem:[#allocation8 + $0x1100] sm:$0xff] }
 0x2c4   :  { %8832 = vmatprep.subr.bf16.mxu1 %v13679_v62  ;;  %v2713_v52 = vld [vmem:[#allocation8 + $0x1120] sm:$0xff]  ;;  %v2710_v62 = vld [vmem:[#allocation8 + $0x1108] sm:$0xff] }
 0x2c5   :  { %v13717_v7 = vcombine.high %v2709_v9, %v2713_v52  ;;  %v13719_v10 = vcombine.high %v2710_v62, %v2714_v63  ;;  %v13718_v18 = vcombine.low %v2710_v62, %v2714_v63  ;;  %v2749_v62 = vld [vmem:[#allocation8 + $0x1240] sm:$0xff] }
 0x2c6   :  { %8505 = vmatpush1.bf16.msra.mxu0 %v13676_v11  ;;  %v2717_v11 = vld [vmem:[#allocation8 + $0x1140] sm:$0xff] }
 0x2c7   :  { %8833 = vmatpush1.bf16.msra.mxu1 %v13678_v14  ;;  %8515 = vmatprep.subr.bf16.mxu0 %v13685_v17  ;;  %v2718_v14 = vld [vmem:[#allocation8 + $0x1148] sm:$0xff]  ;;  %v13725_v19 = vcombine.high %v2717_v11, %v2721_v13  ;;  %v2753_v63 = vld [vmem:[#allocation8 + $0x1260] sm:$0xff] }
 0x2c8   :  { %8843 = vmatprep.subr.bf16.mxu1 %v13687_v51  ;;  %v2722_v17 = vld [vmem:[#allocation8 + $0x1168] sm:$0xff]  ;;  %v13716_v51 = vcombine.low %v2709_v9, %v2713_v52  ;;  %v13749_v9 = vcombine.high %v2741_v41, %v2745_v43 }
 0x2c9   :  { %8507 = vmatmul.mubr.bf16.vlgmr.msra.gmra.mrb[16].mxu0 %v16084_v25  ;;  %v13727_v21 = vcombine.high %v2718_v14, %v2722_v17  ;;  %v13726_v28 = vcombine.low %v2718_v14, %v2722_v17  ;;  %v2757_v14 = vld [vmem:[#allocation8 + $0x1280] sm:$0xff] }
 0x2ca   :  { %8835 = vmatmul.mubr.bf16.vlgmr.msra.gmra.mrb[16].mxu1 %v16084_v25  ;;  %8516 = vmatpush1.bf16.msra.mxu0 %v13684_v22  ;;  %v2725_v22 = vld [vmem:[#allocation8 + $0x1180] sm:$0xff] }
 0x2cb   :  { %8547 = vmatprep.mubr.bf16.mxu0 %v16086_v30  ;;  %8844 = vmatpush1.bf16.msra.mxu1 %v13686_v38  ;;  %v2730_v38 = vld [vmem:[#allocation8 + $0x11a8] sm:$0xff]  ;;  %v13733_v29 = vcombine.high %v2725_v22, %v2729_v23  ;;  %v2761_v17 = vld [vmem:[#allocation8 + $0x12a0] sm:$0xff] }
 0x2cc   :  { %8875 = vmatprep.mubr.bf16.mxu1 %v16086_v30  ;;  %8517 = vmatprep.subr.bf16.mxu0 %v13693_v27  ;;  %v13724_v27 = vcombine.low %v2717_v11, %v2721_v13  ;;  %v13757_v11 = vcombine.high %v2749_v62, %v2753_v63 }
 0x2cd   :  { %8845 = vmatprep.subr.bf16.mxu1 %v13695_v59  ;;  %v13735_v59 = vcombine.high %v2726_v24, %v2730_v38 }
 0x2ce   :  { %8518 = vmatpush1.bf16.msra.mxu0 %v13692_v35  ;;  %v2734_v35 = vld [vmem:[#allocation8 + $0x11c8] sm:$0xff] }
 0x2cf   :  { %8846 = vmatpush1.bf16.msra.mxu1 %v13694_v36  ;;  %8519 = vmatprep.subr.bf16.mxu0 %v13701_v48  ;;  %v2738_v36 = vld [vmem:[#allocation8 + $0x11e8] sm:$0xff]  ;;  %v13732_v48 = vcombine.low %v2725_v22, %v2729_v23  ;;  %v13765_v22 = vcombine.high %v2757_v14, %v2761_v17 }
 0x2d0   :  { %8847 = vmatprep.subr.bf16.mxu1 %v13703_v45  ;;  %v13734_v45 = vcombine.low %v2726_v24, %v2730_v38  ;;  %v13743_v40 = vcombine.high %v2734_v35, %v2738_v36  ;;  %v2765_v24 = vld [vmem:[#allocation8 + $0x12c0] sm:$0xff] }
 0x2d1   :  { %v2769_v38 = vld [vmem:[#allocation8 + $0x12e0] sm:$0xff] }
 0x2d2   :  { %8520 = vmatpush1.bf16.msra.mxu0 %v13700_v12  ;;  %v2742_v12 = vld [vmem:[#allocation8 + $0x1208] sm:$0xff] }
 0x2d3   :  { %8848 = vmatpush1.bf16.msra.mxu1 %v13702_v47  ;;  %8521 = vmatprep.subr.bf16.mxu0 %v13709_v8  ;;  %v2746_v47 = vld [vmem:[#allocation8 + $0x1228] sm:$0xff]  ;;  %v13740_v8 = vcombine.low %v2733_v32, %v2737_v33  ;;  %v13773_v32 = vcombine.high %v2765_v24, %v2769_v38 }
 0x2d4   :  { %8849 = vmatprep.subr.bf16.mxu1 %v13711_v50  ;;  %v13742_v50 = vcombine.low %v2734_v35, %v2738_v36  ;;  %v13751_v52 = vcombine.high %v2742_v12, %v2746_v47  ;;  %v2773_v35 = vld [vmem:[#allocation8 + $0x1300] sm:$0xff] }
 0x2d5   :  { %v2777_v36 = vld [vmem:[#allocation8 + $0x1320] sm:$0xff] }
 0x2d6   :  { %8522 = vmatpush1.bf16.msra.mxu0 %v13708_v2  ;;  %v2750_v2 = vld [vmem:[#allocation8 + $0x1248] sm:$0xff] }
 0x2d7   :  { %8850 = vmatpush1.bf16.msra.mxu1 %v13710_v5  ;;  %8523 = vmatprep.subr.bf16.mxu0 %v13717_v7  ;;  %v2754_v5 = vld [vmem:[#allocation8 + $0x1268] sm:$0xff]  ;;  %v13748_v7 = vcombine.low %v2741_v41, %v2745_v43  ;;  %v13781_v41 = vcombine.high %v2773_v35, %v2777_v36 }
 0x2d8   :  { %8851 = vmatprep.subr.bf16.mxu1 %v13719_v10  ;;  %v13750_v10 = vcombine.low %v2742_v12, %v2746_v47  ;;  %v13759_v13 = vcombine.high %v2750_v2, %v2754_v5  ;;  %v2781_v12 = vld [vmem:[#allocation8 + $0x1340] sm:$0xff] }
 0x2d9   :  { %v2785_v47 = vld [vmem:[#allocation8 + $0x1360] sm:$0xff] }
 0x2da   :  { %8524 = vmatpush1.bf16.msra.mxu0 %v13716_v51  ;;  %v2758_v51 = vld [vmem:[#allocation8 + $0x1288] sm:$0xff] }
 0x2db   :  { %8852 = vmatpush1.bf16.msra.mxu1 %v13718_v18  ;;  %8525 = vmatprep.subr.bf16.mxu0 %v13725_v19  ;;  %v2762_v18 = vld [vmem:[#allocation8 + $0x12a8] sm:$0xff]  ;;  %v13756_v19 = vcombine.low %v2749_v62, %v2753_v63  ;;  %v13789_v62 = vcombine.high %v2781_v12, %v2785_v47 }
 0x2dc   :  { %8853 = vmatprep.subr.bf16.mxu1 %v13727_v21  ;;  %v13758_v21 = vcombine.low %v2750_v2, %v2754_v5  ;;  %v13767_v23 = vcombine.high %v2758_v51, %v2762_v18  ;;  %v2789_v2 = vld [vmem:[#allocation8 + $0x1380] sm:$0xff] }
 0x2dd   :  { %v2793_v5 = vld [vmem:[#allocation8 + $0x13a0] sm:$0xff] }
 0x2de   :  { %8526 = vmatpush1.bf16.msra.mxu0 %v13724_v27  ;;  %v2766_v27 = vld [vmem:[#allocation8 + $0x12c8] sm:$0xff] }
 0x2df   :  { %8854 = vmatpush1.bf16.msra.mxu1 %v13726_v28  ;;  %8527 = vmatprep.subr.bf16.mxu0 %v13733_v29  ;;  %v2770_v28 = vld [vmem:[#allocation8 + $0x12e8] sm:$0xff]  ;;  %v13764_v29 = vcombine.low %v2757_v14, %v2761_v17  ;;  %v13797_v17 = vcombine.high %v2789_v2, %v2793_v5 }
 0x2e0   :  { %8855 = vmatprep.subr.bf16.mxu1 %v13735_v59  ;;  %v13766_v59 = vcombine.low %v2758_v51, %v2762_v18  ;;  %v13775_v33 = vcombine.high %v2766_v27, %v2770_v28  ;;  %v2797_v18 = vld [vmem:[#allocation8 + $0x13c0] sm:$0xff] }
 0x2e2   :  { %8528 = vmatpush1.bf16.msra.mxu0 %v13732_v48  ;;  %v2774_v48 = vld [vmem:[#allocation8 + $0x1308] sm:$0xff] }
 0x2e3   :  { %8856 = vmatpush1.bf16.msra.mxu1 %v13734_v45  ;;  %8529 = vmatprep.subr.bf16.mxu0 %v13741_v37  ;;  %v2778_v45 = vld [vmem:[#allocation8 + $0x1328] sm:$0xff]  ;;  %v13772_v37 = vcombine.low %v2765_v24, %v2769_v38  ;;  %v13796_v24 = vcombine.low %v2789_v2, %v2793_v5 }
 0x2e4   :  { %8857 = vmatprep.subr.bf16.mxu1 %v13743_v40  ;;  %v13774_v40 = vcombine.low %v2766_v27, %v2770_v28  ;;  %v13783_v43 = vcombine.high %v2774_v48, %v2778_v45 }
 0x2e6   :  { %8530 = vmatpush1.bf16.msra.mxu0 %v13740_v8  ;;  %v2782_v8 = vld [vmem:[#allocation8 + $0x1348] sm:$0xff] }
 0x2e7   :  { %8858 = vmatpush1.bf16.msra.mxu1 %v13742_v50  ;;  %8531 = vmatprep.subr.bf16.mxu0 %v13749_v9  ;;  %v2786_v50 = vld [vmem:[#allocation8 + $0x1368] sm:$0xff]  ;;  %v13780_v9 = vcombine.low %v2773_v35, %v2777_v36 }
 0x2e8   :  { %8859 = vmatprep.subr.bf16.mxu1 %v13751_v52  ;;  %v13782_v52 = vcombine.low %v2774_v48, %v2778_v45  ;;  %v13791_v63 = vcombine.high %v2782_v8, %v2786_v50  ;;  %v13790_v14 = vcombine.low %v2782_v8, %v2786_v50  ;;  %v2806_v35 = vld [vmem:[#allocation8 + $0x1408] sm:$0xff] }
 0x2e9   :  { %v2810_v36 = vld [vmem:[#allocation8 + $0x1428] sm:$0xff] }
 0x2ea   :  { %8532 = vmatpush1.bf16.msra.mxu0 %v13748_v7  ;;  %v2790_v7 = vld [vmem:[#allocation8 + $0x1388] sm:$0xff] }
 0x2eb   :  { %8860 = vmatpush1.bf16.msra.mxu1 %v13750_v10  ;;  %8533 = vmatprep.subr.bf16.mxu0 %v13757_v11  ;;  %v2794_v10 = vld [vmem:[#allocation8 + $0x13a8] sm:$0xff]  ;;  %v13788_v11 = vcombine.low %v2781_v12, %v2785_v47  ;;  %v2817_v12 = vld [vmem:[#allocation8 + $0x1460] sm:$0xff] }
 0x2ec   :  { %8861 = vmatprep.subr.bf16.mxu1 %v13759_v13  ;;  %v473_v13 = vrot.slane %v16076_v34, %v15988_v15  ;;  %v13799_v51 = vcombine.high %v2790_v7, %v2794_v10  ;;  %v13798_v27 = vcombine.low %v2790_v7, %v2794_v10  ;;  %v2814_v8 = vld [vmem:[#allocation8 + $0x1448] sm:$0xff] }
 0x2ed   :  { %v2818_v50 = vld [vmem:[#allocation8 + $0x1468] sm:$0xff] }
 0x2ee   :  { %8534 = vmatpush1.bf16.msra.mxu0 %v13756_v19  ;;  %v2801_v19 = vld [vmem:[#allocation8 + $0x13e0] sm:$0xff]  ;;  %v2004_v38 = vadd.f32 %v16035_v16, %v473_v13  ;;  %v13815_v16 = vcombine.high %v2806_v35, %v2810_v36  ;;  %v13823_v5 = vcombine.high %v2814_v8, %v2818_v50  ;;  %v2822_v7 = vld [vmem:[#allocation8 + $0x1488] sm:$0xff]  ;;  %v13822_v13 = vcombine.low %v2814_v8, %v2818_v50 }
 0x2ef   :  { %8862 = vmatpush1.bf16.msra.mxu1 %v13758_v21  ;;  %8535 = vmatprep.subr.bf16.mxu0 %v13765_v22  ;;  %v485_v21 = vrot.slane %v16076_v34, %v15991_v53  ;;  %v2798_v22 = vld [vmem:[#allocation8 + $0x13c8] sm:$0xff]  ;;  %v13805_v28 = vcombine.high %v2797_v18, %v2801_v19  ;;  %v13804_v48 = vcombine.low %v2797_v18, %v2801_v19  ;;  %v2833_v18 = vld [vmem:[#allocation8 + $0x14e0] sm:$0xff] }
 0x2f0   :  { %8863 = vmatprep.subr.bf16.mxu1 %v13767_v23  ;;  %v2802_v23 = vld [vmem:[#allocation8 + $0x13e8] sm:$0xff]  ;;  %v2141_v45 = vmax.f32 %v2004_v38, 0.0  ;;  %v2857_v8 = vld [vmem:[#allocation8 + $0x15a0] sm:$0xff] }
 0x2f1   :  { %v2826_v10 = vld [vmem:[#allocation8 + $0x14a8] sm:$0xff] }
 0x2f2   :  { %8536 = vmatpush1.bf16.msra.mxu0 %v13764_v29  ;;  %v13807_v29 = vcombine.high %v2798_v22, %v2802_v23  ;;  %v2830_v19 = vld [vmem:[#allocation8 + $0x14c8] sm:$0xff] }
 0x2f3   :  { %8864 = vmatpush1.bf16.msra.mxu1 %v13766_v59  ;;  %8537 = vmatprep.subr.bf16.mxu0 %v13773_v32  ;;  %v2805_v59 = vld [vmem:[#allocation8 + $0x1400] sm:$0xff]  ;;  %v2854_v50 = vld [vmem:[#allocation8 + $0x1588] sm:$0xff] }
 0x2f4   :  { %8865 = vmatprep.subr.bf16.mxu1 %v13775_v33  ;;  %v2809_v32 = vld [vmem:[#allocation8 + $0x1420] sm:$0xff]  ;;  %v2047_v33 = vadd.f32 %v16041_v44, %v485_v21  ;;  %v13814_v44 = vcombine.low %v2806_v35, %v2810_v36  ;;  %v2834_v21 = vld [vmem:[#allocation8 + $0x14e8] sm:$0xff] }
 0x2f5   :  { %v13812_v47 = vcombine.low %v2805_v59, %v2809_v32  ;;  %v13839_v38 = vcombine.high %v2830_v19, %v2834_v21 }
 0x2f6   :  { %8538 = vmatpush1.bf16.msra.mxu0 %v13772_v37  ;;  %v13806_v37 = vcombine.low %v2798_v22, %v2802_v23  ;;  %v13830_v23 = vcombine.low %v2822_v7, %v2826_v10 }
 0x2f7   :  { %8866 = vmatpush1.bf16.msra.mxu1 %v13774_v40  ;;  %8539 = vmatprep.subr.bf16.mxu0 %v13781_v41  ;;  %v13813_v40 = vcombine.high %v2805_v59, %v2809_v32  ;;  %v2144_v41 = vmax.f32 %v2047_v33, 0.0  ;;  %v2842_v59 = vld [vmem:[#allocation8 + $0x1528] sm:$0xff]  ;;  %v13838_v33 = vcombine.low %v2830_v19, %v2834_v21  ;;  %v2869_v19 = vld [vmem:[#allocation8 + $0x1600] sm:$0xff] }
 0x2f8   :  { %8867 = vmatprep.subr.bf16.mxu1 %v13783_v43  ;;  %v2813_v43 = vld [vmem:[#allocation8 + $0x1440] sm:$0xff] }
 0x2f9   :  { %v16100_v2 = vpack.c.bf16 %v2144_v41, %v2144_v41  ;;  %v2873_v21 = vld [vmem:[#allocation8 + $0x1620] sm:$0xff] }
 0x2fa   :  { %8540 = vmatpush1.bf16.msra.mxu0 %v13780_v9  ;;  %v16098_v9 = vpack.c.bf16 %v2141_v45, %v2141_v45  ;;  %v2849_v45 = vld [vmem:[#allocation8 + $0x1560] sm:$0xff] }
 0x2fb   :  { %8868 = vmatpush1.bf16.msra.mxu1 %v13782_v52  ;;  %8541 = vmatprep.subr.bf16.mxu0 %v13789_v62  ;;  %v13821_v52 = vcombine.high %v2813_v43, %v2817_v12  ;;  %v2821_v62 = vld [vmem:[#allocation8 + $0x1480] sm:$0xff] }
 0x2fc   :  { %8869 = vmatprep.subr.bf16.mxu1 %v13791_v63  ;;  %v2825_v63 = vld [vmem:[#allocation8 + $0x14a0] sm:$0xff] }
 0x2fd   :  { %v13828_v22 = vcombine.low %v2821_v62, %v2825_v63 }
 0x2fe   :  { %8542 = vmatpush1.bf16.msra.mxu0 %v13788_v11  ;;  %v13820_v11 = vcombine.low %v2813_v43, %v2817_v12 }
 0x2ff   :  { %8870 = vmatpush1.bf16.msra.mxu1 %v13790_v14  ;;  %8543 = vmatprep.subr.bf16.mxu0 %v13797_v17  ;;  %v13829_v14 = vcombine.high %v2821_v62, %v2825_v63  ;;  %v13831_v17 = vcombine.high %v2822_v7, %v2826_v10  ;;  %v2861_v7 = vld [vmem:[#allocation8 + $0x15c0] sm:$0xff] }
 0x300   :  { %8871 = vmatprep.subr.bf16.mxu1 %v13799_v51  ;;  %v2829_v51 = vld [vmem:[#allocation8 + $0x14c0] sm:$0xff] }
 0x301   :  { %v13836_v32 = vcombine.low %v2829_v51, %v2833_v18  ;;  %v2865_v10 = vld [vmem:[#allocation8 + $0x15e0] sm:$0xff] }
 0x302   :  { %8544 = vmatpush1.bf16.msra.mxu0 %v13796_v24  ;;  %v13837_v24 = vcombine.high %v2829_v51, %v2833_v18  ;;  %v13869_v51 = vcombine.high %v2861_v7, %v2865_v10 }
 0x303   :  { %8872 = vmatpush1.bf16.msra.mxu1 %v13798_v27  ;;  %8545 = vmatprep.subr.bf16.mxu0 %v13805_v28  ;;  %v2837_v27 = vld [vmem:[#allocation8 + $0x1500] sm:$0xff] }
 0x304   :  { %8873 = vmatprep.subr.bf16.mxu1 %v13807_v29  ;;  %v2841_v28 = vld [vmem:[#allocation8 + $0x1520] sm:$0xff]  ;;  %v2838_v29 = vld [vmem:[#allocation8 + $0x1508] sm:$0xff] }
 0x305   :  { %v13845_v35 = vcombine.high %v2837_v27, %v2841_v28  ;;  %v13847_v36 = vcombine.high %v2838_v29, %v2842_v59  ;;  %v13846_v41 = vcombine.low %v2838_v29, %v2842_v59  ;;  %v2877_v29 = vld [vmem:[#allocation8 + $0x1640] sm:$0xff] }
 0x306   :  { %8546 = vmatpush1.bf16.msra.mxu0 %v13804_v48  ;;  %v2845_v48 = vld [vmem:[#allocation8 + $0x1540] sm:$0xff] }
 0x307   :  { %8874 = vmatpush1.bf16.msra.mxu1 %v13806_v37  ;;  %8556 = vmatprep.subr.bf16.mxu0 %v13813_v40  ;;  %v2846_v37 = vld [vmem:[#allocation8 + $0x1548] sm:$0xff]  ;;  %v13853_v43 = vcombine.high %v2845_v48, %v2849_v45  ;;  %v2881_v59 = vld [vmem:[#allocation8 + $0x1660] sm:$0xff] }
 0x308   :  { %8884 = vmatprep.subr.bf16.mxu1 %v13815_v16  ;;  %v2850_v40 = vld [vmem:[#allocation8 + $0x1568] sm:$0xff]  ;;  %v13844_v16 = vcombine.low %v2837_v27, %v2841_v28  ;;  %v13877_v27 = vcombine.high %v2869_v19, %v2873_v21 }
 0x309   :  { %8548 = vmatmul.mubr.bf16.vlgmr.msra.gmra.mrb[16].mxu0 %v16098_v9  ;;  %v13855_v12 = vcombine.high %v2846_v37, %v2850_v40  ;;  %v13854_v62 = vcombine.low %v2846_v37, %v2850_v40  ;;  %v2885_v37 = vld [vmem:[#allocation8 + $0x1680] sm:$0xff] }
 0x30a   :  { %8876 = vmatmul.mubr.bf16.vlgmr.msra.gmra.mrb[16].mxu1 %v16098_v9  ;;  %8557 = vmatpush1.bf16.msra.mxu0 %v13812_v47  ;;  %v2853_v47 = vld [vmem:[#allocation8 + $0x1580] sm:$0xff] }
 0x30b   :  { %8588 = vmatprep.mubr.bf16.mxu0 %v16100_v2  ;;  %8885 = vmatpush1.bf16.msra.mxu1 %v13814_v44  ;;  %v2858_v44 = vld [vmem:[#allocation8 + $0x15a8] sm:$0xff]  ;;  %v13861_v63 = vcombine.high %v2853_v47, %v2857_v8  ;;  %v2889_v40 = vld [vmem:[#allocation8 + $0x16a0] sm:$0xff] }
 0x30c   :  { %8916 = vmatprep.mubr.bf16.mxu1 %v16100_v2  ;;  %8558 = vmatprep.subr.bf16.mxu0 %v13821_v52  ;;  %v13852_v52 = vcombine.low %v2845_v48, %v2849_v45  ;;  %v13885_v48 = vcombine.high %v2877_v29, %v2881_v59 }
 0x30d   :  { %8886 = vmatprep.subr.bf16.mxu1 %v13823_v5  ;;  %v13863_v5 = vcombine.high %v2854_v50, %v2858_v44 }
 0x30e   :  { %8559 = vmatpush1.bf16.msra.mxu0 %v13820_v11  ;;  %v2862_v11 = vld [vmem:[#allocation8 + $0x15c8] sm:$0xff] }
 0x30f   :  { %8887 = vmatpush1.bf16.msra.mxu1 %v13822_v13  ;;  %8560 = vmatprep.subr.bf16.mxu0 %v13829_v14  ;;  %v2866_v13 = vld [vmem:[#allocation8 + $0x15e8] sm:$0xff]  ;;  %v13860_v14 = vcombine.low %v2853_v47, %v2857_v8  ;;  %v13893_v47 = vcombine.high %v2885_v37, %v2889_v40 }
 0x310   :  { %8888 = vmatprep.subr.bf16.mxu1 %v13831_v17  ;;  %v13862_v17 = vcombine.low %v2854_v50, %v2858_v44  ;;  %v13871_v18 = vcombine.high %v2862_v11, %v2866_v13  ;;  %v2893_v50 = vld [vmem:[#allocation8 + $0x16c0] sm:$0xff] }
 0x311   :  { %v2897_v44 = vld [vmem:[#allocation8 + $0x16e0] sm:$0xff] }
 0x312   :  { %8561 = vmatpush1.bf16.msra.mxu0 %v13828_v22  ;;  %v2870_v22 = vld [vmem:[#allocation8 + $0x1608] sm:$0xff] }
 0x313   :  { %8889 = vmatpush1.bf16.msra.mxu1 %v13830_v23  ;;  %8562 = vmatprep.subr.bf16.mxu0 %v13837_v24  ;;  %v2874_v23 = vld [vmem:[#allocation8 + $0x1628] sm:$0xff]  ;;  %v13868_v24 = vcombine.low %v2861_v7, %v2865_v10  ;;  %v13901_v7 = vcombine.high %v2893_v50, %v2897_v44 }
 0x314   :  { %8890 = vmatprep.subr.bf16.mxu1 %v13839_v38  ;;  %v13870_v38 = vcombine.low %v2862_v11, %v2866_v13  ;;  %v13879_v28 = vcombine.high %v2870_v22, %v2874_v23  ;;  %v2901_v11 = vld [vmem:[#allocation8 + $0x1700] sm:$0xff] }
 0x315   :  { %v2905_v13 = vld [vmem:[#allocation8 + $0x1720] sm:$0xff] }
 0x316   :  { %8563 = vmatpush1.bf16.msra.mxu0 %v13836_v32  ;;  %v2878_v32 = vld [vmem:[#allocation8 + $0x1648] sm:$0xff] }
 0x317   :  { %8891 = vmatpush1.bf16.msra.mxu1 %v13838_v33  ;;  %8564 = vmatprep.subr.bf16.mxu0 %v13845_v35  ;;  %v2882_v33 = vld [vmem:[#allocation8 + $0x1668] sm:$0xff]  ;;  %v13876_v35 = vcombine.low %v2869_v19, %v2873_v21  ;;  %v13909_v19 = vcombine.high %v2901_v11, %v2905_v13 }
 0x318   :  { %8892 = vmatprep.subr.bf16.mxu1 %v13847_v36  ;;  %v13878_v36 = vcombine.low %v2870_v22, %v2874_v23  ;;  %v13887_v45 = vcombine.high %v2878_v32, %v2882_v33  ;;  %v2909_v22 = vld [vmem:[#allocation8 + $0x1740] sm:$0xff] }
 0x319   :  { %v2913_v23 = vld [vmem:[#allocation8 + $0x1760] sm:$0xff] }
 0x31a   :  { %8565 = vmatpush1.bf16.msra.mxu0 %v13844_v16  ;;  %v2886_v16 = vld [vmem:[#allocation8 + $0x1688] sm:$0xff] }
 0x31b   :  { %8893 = vmatpush1.bf16.msra.mxu1 %v13846_v41  ;;  %8566 = vmatprep.subr.bf16.mxu0 %v13853_v43  ;;  %v2890_v41 = vld [vmem:[#allocation8 + $0x16a8] sm:$0xff]  ;;  %v13884_v43 = vcombine.low %v2877_v29, %v2881_v59  ;;  %v13917_v29 = vcombine.high %v2909_v22, %v2913_v23 }
 0x31c   :  { %8894 = vmatprep.subr.bf16.mxu1 %v13855_v12  ;;  %v13886_v12 = vcombine.low %v2878_v32, %v2882_v33  ;;  %v13895_v8 = vcombine.high %v2886_v16, %v2890_v41  ;;  %v2917_v32 = vld [vmem:[#allocation8 + $0x1780] sm:$0xff] }
 0x31d   :  { %v2921_v33 = vld [vmem:[#allocation8 + $0x17a0] sm:$0xff] }
 0x31e   :  { %8567 = vmatpush1.bf16.msra.mxu0 %v13852_v52  ;;  %v2894_v52 = vld [vmem:[#allocation8 + $0x16c8] sm:$0xff] }
 0x31f   :  { %8895 = vmatpush1.bf16.msra.mxu1 %v13854_v62  ;;  %8568 = vmatprep.subr.bf16.mxu0 %v13861_v63  ;;  %v2898_v62 = vld [vmem:[#allocation8 + $0x16e8] sm:$0xff]  ;;  %v13892_v63 = vcombine.low %v2885_v37, %v2889_v40  ;;  %v13925_v40 = vcombine.high %v2917_v32, %v2921_v33 }
 0x320   :  { %8896 = vmatprep.subr.bf16.mxu1 %v13863_v5  ;;  %v13894_v5 = vcombine.low %v2886_v16, %v2890_v41  ;;  %v13903_v10 = vcombine.high %v2894_v52, %v2898_v62  ;;  %v2925_v41 = vld [vmem:[#allocation8 + $0x17c0] sm:$0xff] }
 0x322   :  { %8569 = vmatpush1.bf16.msra.mxu0 %v13860_v14  ;;  %v2902_v14 = vld [vmem:[#allocation8 + $0x1708] sm:$0xff] }
 0x323   :  { %8897 = vmatpush1.bf16.msra.mxu1 %v13862_v17  ;;  %8570 = vmatprep.subr.bf16.mxu0 %v13869_v51  ;;  %v2906_v17 = vld [vmem:[#allocation8 + $0x1728] sm:$0xff]  ;;  %v13900_v51 = vcombine.low %v2893_v50, %v2897_v44  ;;  %v13924_v50 = vcombine.low %v2917_v32, %v2921_v33 }
 0x324   :  { %8898 = vmatprep.subr.bf16.mxu1 %v13871_v18  ;;  %v13902_v18 = vcombine.low %v2894_v52, %v2898_v62  ;;  %v13911_v21 = vcombine.high %v2902_v14, %v2906_v17  ;;  %v2950_v33 = vld [vmem:[#allocation8 + $0x1888] sm:$0xff] }
 0x326   :  { %8571 = vmatpush1.bf16.msra.mxu0 %v13868_v24  ;;  %v2910_v24 = vld [vmem:[#allocation8 + $0x1748] sm:$0xff] }
 0x327   :  { %8899 = vmatpush1.bf16.msra.mxu1 %v13870_v38  ;;  %8572 = vmatprep.subr.bf16.mxu0 %v13877_v27  ;;  %v2914_v38 = vld [vmem:[#allocation8 + $0x1768] sm:$0xff]  ;;  %v13908_v27 = vcombine.low %v2901_v11, %v2905_v13 }
 0x328   :  { %8900 = vmatprep.subr.bf16.mxu1 %v13879_v28  ;;  %v13910_v28 = vcombine.low %v2902_v14, %v2906_v17  ;;  %v13919_v59 = vcombine.high %v2910_v24, %v2914_v38  ;;  %v13918_v37 = vcombine.low %v2910_v24, %v2914_v38  ;;  %v2934_v11 = vld [vmem:[#allocation8 + $0x1808] sm:$0xff] }
 0x329   :  { %v2938_v13 = vld [vmem:[#allocation8 + $0x1828] sm:$0xff] }
 0x32a   :  { %8573 = vmatpush1.bf16.msra.mxu0 %v13876_v35  ;;  %v2918_v35 = vld [vmem:[#allocation8 + $0x1788] sm:$0xff] }
 0x32b   :  { %8901 = vmatpush1.bf16.msra.mxu1 %v13878_v36  ;;  %8574 = vmatprep.subr.bf16.mxu0 %v13885_v48  ;;  %v2922_v36 = vld [vmem:[#allocation8 + $0x17a8] sm:$0xff]  ;;  %v13916_v48 = vcombine.low %v2909_v22, %v2913_v23 }
 0x32c   :  { %8902 = vmatprep.subr.bf16.mxu1 %v13887_v45  ;;  %v481_v45 = vrot.slane %v16076_v34, %v16016_v20  ;;  %v13927_v16 = vcombine.high %v2918_v35, %v2922_v36  ;;  %v13926_v52 = vcombine.low %v2918_v35, %v2922_v36  ;;  %v2942_v23 = vld [vmem:[#allocation8 + $0x1848] sm:$0xff] }
 0x32d   :  { %v2946_v24 = vld [vmem:[#allocation8 + $0x1868] sm:$0xff] }
 0x32e   :  { %8575 = vmatpush1.bf16.msra.mxu0 %v13884_v43  ;;  %v2929_v43 = vld [vmem:[#allocation8 + $0x17e0] sm:$0xff]  ;;  %v2045_v44 = vadd.f32 %v16039_v57, %v481_v45  ;;  %v13943_v57 = vcombine.high %v2934_v11, %v2938_v13  ;;  %v13951_v32 = vcombine.high %v2942_v23, %v2946_v24  ;;  %v2954_v35 = vld [vmem:[#allocation8 + $0x18a8] sm:$0xff] }
 0x32f   :  { %8903 = vmatpush1.bf16.msra.mxu1 %v13886_v12  ;;  %8576 = vmatprep.subr.bf16.mxu0 %v13893_v47  ;;  %v493_v12 = vrot.slane %v16076_v34, %v16019_v3  ;;  %v2926_v47 = vld [vmem:[#allocation8 + $0x17c8] sm:$0xff]  ;;  %v13933_v62 = vcombine.high %v2925_v41, %v2929_v43  ;;  %v13932_v34 = vcombine.low %v2925_v41, %v2929_v43 }
 0x330   :  { %8904 = vmatprep.subr.bf16.mxu1 %v13895_v8  ;;  %v2930_v8 = vld [vmem:[#allocation8 + $0x17e8] sm:$0xff]  ;;  %v2143_v14 = vmax.f32 %v2045_v44, 0.0  ;;  %v2965_v44 = vld [vmem:[#allocation8 + $0x1900] sm:$0xff] }
 0x331   :  { %v13934_v17 = vcombine.low %v2926_v47, %v2930_v8  ;;  %v2958_v41 = vld [vmem:[#allocation8 + $0x18c8] sm:$0xff] }
 0x332   :  { %8577 = vmatpush1.bf16.msra.mxu0 %v13892_v63  ;;  %v13935_v63 = vcombine.high %v2926_v47, %v2930_v8  ;;  %v16112_v38 = vpack.c.bf16 %v2143_v14, %v2143_v14  ;;  %v2962_v43 = vld [vmem:[#allocation8 + $0x18e8] sm:$0xff]  ;;  %v13958_v47 = vcombine.low %v2950_v33, %v2954_v35 }
 0x333   :  { %8905 = vmatpush1.bf16.msra.mxu1 %v13894_v5  ;;  %8578 = vmatprep.subr.bf16.mxu0 %v13901_v7  ;;  %v2933_v5 = vld [vmem:[#allocation8 + $0x1800] sm:$0xff]  ;;  %v2974_v14 = vld [vmem:[#allocation8 + $0x1948] sm:$0xff] }
 0x334   :  { %8906 = vmatprep.subr.bf16.mxu1 %v13903_v10  ;;  %v2937_v7 = vld [vmem:[#allocation8 + $0x1820] sm:$0xff]  ;;  %v2088_v10 = vadd.f32 %v16067_v61, %v493_v12  ;;  %v13942_v61 = vcombine.low %v2934_v11, %v2938_v13 }
 0x335   :  { %v13940_v22 = vcombine.low %v2933_v5, %v2937_v7  ;;  %v2973_v13 = vld [vmem:[#allocation8 + $0x1940] sm:$0xff] }
 0x336   :  { %8579 = vmatpush1.bf16.msra.mxu0 %v13900_v51  ;;  %v13941_v51 = vcombine.high %v2933_v5, %v2937_v7  ;;  %v13966_v7 = vcombine.low %v2958_v41, %v2962_v43 }
 0x337   :  { %8907 = vmatpush1.bf16.msra.mxu1 %v13902_v18  ;;  %8580 = vmatprep.subr.bf16.mxu0 %v13909_v19  ;;  %v2146_v18 = vmax.f32 %v2088_v10, 0.0  ;;  %v2941_v19 = vld [vmem:[#allocation8 + $0x1840] sm:$0xff] }
 0x338   :  { %8908 = vmatprep.subr.bf16.mxu1 %v13911_v21  ;;  %v2945_v21 = vld [vmem:[#allocation8 + $0x1860] sm:$0xff] }
 0x339   :  { %v13948_v36 = vcombine.low %v2941_v19, %v2945_v21 }
 0x33a   :  { %8581 = vmatpush1.bf16.msra.mxu0 %v13908_v27  ;;  %v13949_v27 = vcombine.high %v2941_v19, %v2945_v21  ;;  %v2981_v21 = vld [vmem:[#allocation8 + $0x1980] sm:$0xff] }
 0x33b   :  { %8909 = vmatpush1.bf16.msra.mxu1 %v13910_v28  ;;  %8582 = vmatprep.subr.bf16.mxu0 %v13917_v29  ;;  %v2949_v28 = vld [vmem:[#allocation8 + $0x1880] sm:$0xff] }
 0x33c   :  { %8910 = vmatprep.subr.bf16.mxu1 %v13919_v59  ;;  %v2953_v29 = vld [vmem:[#allocation8 + $0x18a0] sm:$0xff]  ;;  %v16114_v59 = vpack.c.bf16 %v2146_v18, %v2146_v18 }
 0x33d   :  { %v13957_v45 = vcombine.high %v2949_v28, %v2953_v29  ;;  %v13956_v12 = vcombine.low %v2949_v28, %v2953_v29 }
 0x33e   :  { %8583 = vmatpush1.bf16.msra.mxu0 %v13916_v48  ;;  %v13950_v48 = vcombine.low %v2942_v23, %v2946_v24  ;;  %v2982_v23 = vld [vmem:[#allocation8 + $0x1988] sm:$0xff] }
 0x33f   :  { %8911 = vmatpush1.bf16.msra.mxu1 %v13918_v37  ;;  %8584 = vmatprep.subr.bf16.mxu0 %v13925_v40  ;;  %v13959_v37 = vcombine.high %v2950_v33, %v2954_v35  ;;  %v2957_v40 = vld [vmem:[#allocation8 + $0x18c0] sm:$0xff]  ;;  %v2986_v24 = vld [vmem:[#allocation8 + $0x19a8] sm:$0xff] }
 0x340   :  { %8912 = vmatprep.subr.bf16.mxu1 %v13927_v16  ;;  %v2961_v16 = vld [vmem:[#allocation8 + $0x18e0] sm:$0xff]  ;;  %v13991_v29 = vcombine.high %v2982_v23, %v2986_v24  ;;  %v2990_v35 = vld [vmem:[#allocation8 + $0x19c8] sm:$0xff] }
 0x341   :  { %v13965_v8 = vcombine.high %v2957_v40, %v2961_v16  ;;  %v13964_v5 = vcombine.low %v2957_v40, %v2961_v16  ;;  %v2993_v33 = vld [vmem:[#allocation8 + $0x19e0] sm:$0xff] }
 0x342   :  { %8585 = vmatpush1.bf16.msra.mxu0 %v13924_v50  ;;  %v13967_v50 = vcombine.high %v2958_v41, %v2962_v43  ;;  %v2997_v16 = vld [vmem:[#allocation8 + $0x1a00] sm:$0xff]  ;;  %v2998_v43 = vld [vmem:[#allocation8 + $0x1a08] sm:$0xff] }
 0x343   :  { %8913 = vmatpush1.bf16.msra.mxu1 %v13926_v52  ;;  %8586 = vmatprep.subr.bf16.mxu0 %v13933_v62  ;;  %v2969_v52 = vld [vmem:[#allocation8 + $0x1920] sm:$0xff]  ;;  %v2966_v62 = vld [vmem:[#allocation8 + $0x1908] sm:$0xff] }
 0x344   :  { %8914 = vmatprep.subr.bf16.mxu1 %v13935_v63  ;;  %v2970_v63 = vld [vmem:[#allocation8 + $0x1928] sm:$0xff]  ;;  %v13973_v10 = vcombine.high %v2965_v44, %v2969_v52  ;;  %v3001_v41 = vld [vmem:[#allocation8 + $0x1a20] sm:$0xff] }
 0x345   :  { %v13975_v11 = vcombine.high %v2966_v62, %v2970_v63 }
 0x346   :  { %8587 = vmatpush1.bf16.msra.mxu0 %v13932_v34  ;;  %v2977_v34 = vld [vmem:[#allocation8 + $0x1960] sm:$0xff] }
 0x347   :  { %8915 = vmatpush1.bf16.msra.mxu1 %v13934_v17  ;;  %8597 = vmatprep.subr.bf16.mxu0 %v13941_v51  ;;  %v2978_v17 = vld [vmem:[#allocation8 + $0x1968] sm:$0xff]  ;;  %v13972_v51 = vcombine.low %v2965_v44, %v2969_v52  ;;  %v13981_v18 = vcombine.high %v2973_v13, %v2977_v34  ;;  %v3005_v52 = vld [vmem:[#allocation8 + $0x1a40] sm:$0xff] }
 0x348   :  { %8925 = vmatprep.subr.bf16.mxu1 %v13943_v57  ;;  %v13974_v57 = vcombine.low %v2966_v62, %v2970_v63  ;;  %v13983_v19 = vcombine.high %v2974_v14, %v2978_v17  ;;  %v3009_v62 = vld [vmem:[#allocation8 + $0x1a60] sm:$0xff]  ;;  %v3006_v63 = vld [vmem:[#allocation8 + $0x1a48] sm:$0xff] }
 0x349   :  { %8589 = vmatmul.mubr.bf16.vlgmr.msra.gmra.mrb[16].mxu0 %v16112_v38 }
 0x34a   :  { %8917 = vmatmul.mubr.bf16.vlgmr.msra.gmra.mrb[16].mxu1 %v16112_v38  ;;  %8598 = vmatpush1.bf16.msra.mxu0 %v13940_v22  ;;  %v2985_v22 = vld [vmem:[#allocation8 + $0x19a0] sm:$0xff] }
 0x34b   :  { %8629 = vmatprep.mubr.bf16.mxu0 %v16114_v59  ;;  %8926 = vmatpush1.bf16.msra.mxu1 %v13942_v61  ;;  %v13980_v61 = vcombine.low %v2973_v13, %v2977_v34  ;;  %v13989_v28 = vcombine.high %v2981_v21, %v2985_v22  ;;  %v3013_v34 = vld [vmem:[#allocation8 + $0x1a80] sm:$0xff] }
 0x34c   :  { %8957 = vmatprep.mubr.bf16.mxu1 %v16114_v59  ;;  %8599 = vmatprep.subr.bf16.mxu0 %v13949_v27  ;;  %v13982_v27 = vcombine.low %v2974_v14, %v2978_v17  ;;  %v3017_v14 = vld [vmem:[#allocation8 + $0x1aa0] sm:$0xff]  ;;  %v3014_v17 = vld [vmem:[#allocation8 + $0x1a88] sm:$0xff] }
 0x34d   :  { %8927 = vmatprep.subr.bf16.mxu1 %v13951_v32  ;;  %v2989_v32 = vld [vmem:[#allocation8 + $0x19c0] sm:$0xff] }
 0x34e   :  { %8600 = vmatpush1.bf16.msra.mxu0 %v13948_v36  ;;  %v2994_v36 = vld [vmem:[#allocation8 + $0x19e8] sm:$0xff] }
 0x34f   :  { %8928 = vmatpush1.bf16.msra.mxu1 %v13950_v48  ;;  %8601 = vmatprep.subr.bf16.mxu0 %v13957_v45  ;;  %v13988_v48 = vcombine.low %v2981_v21, %v2985_v22  ;;  %v13990_v45 = vcombine.low %v2982_v23, %v2986_v24  ;;  %v13999_v40 = vcombine.high %v2990_v35, %v2994_v36  ;;  %v3021_v22 = vld [vmem:[#allocation8 + $0x1ac0] sm:$0xff]  ;;  %v3022_v24 = vld [vmem:[#allocation8 + $0x1ac8] sm:$0xff] }
 0x350   :  { %8929 = vmatprep.subr.bf16.mxu1 %v13959_v37  ;;  %v13997_v37 = vcombine.high %v2989_v32, %v2993_v33  ;;  %v3025_v23 = vld [vmem:[#allocation8 + $0x1ae0] sm:$0xff] }
 0x352   :  { %8602 = vmatpush1.bf16.msra.mxu0 %v13956_v12  ;;  %v3002_v12 = vld [vmem:[#allocation8 + $0x1a28] sm:$0xff] }
 0x353   :  { %8930 = vmatpush1.bf16.msra.mxu1 %v13958_v47  ;;  %8603 = vmatprep.subr.bf16.mxu0 %v13965_v8  ;;  %v13996_v47 = vcombine.low %v2989_v32, %v2993_v33  ;;  %v13998_v8 = vcombine.low %v2990_v35, %v2994_v36  ;;  %v14007_v44 = vcombine.high %v2998_v43, %v3002_v12  ;;  %v3029_v33 = vld [vmem:[#allocation8 + $0x1b00] sm:$0xff]  ;;  %v3030_v36 = vld [vmem:[#allocation8 + $0x1b08] sm:$0xff] }
 0x354   :  { %8931 = vmatprep.subr.bf16.mxu1 %v13967_v50  ;;  %v14005_v50 = vcombine.high %v2997_v16, %v3001_v41  ;;  %v3033_v35 = vld [vmem:[#allocation8 + $0x1b20] sm:$0xff] }
 0x356   :  { %8604 = vmatpush1.bf16.msra.mxu0 %v13964_v5  ;;  %v3010_v5 = vld [vmem:[#allocation8 + $0x1a68] sm:$0xff] }
 0x357   :  { %8932 = vmatpush1.bf16.msra.mxu1 %v13966_v7  ;;  %8605 = vmatprep.subr.bf16.mxu0 %v13973_v10  ;;  %v14004_v7 = vcombine.low %v2997_v16, %v3001_v41  ;;  %v14006_v10 = vcombine.low %v2998_v43, %v3002_v12  ;;  %v14015_v13 = vcombine.high %v3006_v63, %v3010_v5  ;;  %v3037_v41 = vld [vmem:[#allocation8 + $0x1b40] sm:$0xff]  ;;  %v3038_v12 = vld [vmem:[#allocation8 + $0x1b48] sm:$0xff] }
 0x358   :  { %8933 = vmatprep.subr.bf16.mxu1 %v13975_v11  ;;  %v14013_v11 = vcombine.high %v3005_v52, %v3009_v62  ;;  %v3041_v43 = vld [vmem:[#allocation8 + $0x1b60] sm:$0xff] }
 0x35a   :  { %8606 = vmatpush1.bf16.msra.mxu0 %v13972_v51  ;;  %v3018_v51 = vld [vmem:[#allocation8 + $0x1aa8] sm:$0xff] }
 0x35b   :  { %8934 = vmatpush1.bf16.msra.mxu1 %v13974_v57  ;;  %8607 = vmatprep.subr.bf16.mxu0 %v13981_v18  ;;  %v14012_v57 = vcombine.low %v3005_v52, %v3009_v62  ;;  %v14014_v18 = vcombine.low %v3006_v63, %v3010_v5  ;;  %v14023_v21 = vcombine.high %v3014_v17, %v3018_v51  ;;  %v3045_v62 = vld [vmem:[#allocation8 + $0x1b80] sm:$0xff]  ;;  %v3046_v5 = vld [vmem:[#allocation8 + $0x1b88] sm:$0xff] }
 0x35c   :  { %8935 = vmatprep.subr.bf16.mxu1 %v13983_v19  ;;  %v14021_v19 = vcombine.high %v3013_v34, %v3017_v14  ;;  %v3049_v63 = vld [vmem:[#allocation8 + $0x1ba0] sm:$0xff] }
 0x35e   :  { %8608 = vmatpush1.bf16.msra.mxu0 %v13980_v61  ;;  %v3026_v61 = vld [vmem:[#allocation8 + $0x1ae8] sm:$0xff] }
 0x35f   :  { %8936 = vmatpush1.bf16.msra.mxu1 %v13982_v27  ;;  %8609 = vmatprep.subr.bf16.mxu0 %v13989_v28  ;;  %v14020_v27 = vcombine.low %v3013_v34, %v3017_v14  ;;  %v14022_v28 = vcombine.low %v3014_v17, %v3018_v51  ;;  %v14031_v32 = vcombine.high %v3022_v24, %v3026_v61  ;;  %v3053_v51 = vld [vmem:[#allocation8 + $0x1bc0] sm:$0xff] }
 0x360   :  { %8937 = vmatprep.subr.bf16.mxu1 %v13991_v29  ;;  %v14029_v29 = vcombine.high %v3021_v22, %v3025_v23  ;;  %v14053_v14 = vcombine.high %v3045_v62, %v3049_v63 }
 0x362   :  { %8610 = vmatpush1.bf16.msra.mxu0 %v13988_v48  ;;  %v3034_v48 = vld [vmem:[#allocation8 + $0x1b28] sm:$0xff] }
 0x363   :  { %8938 = vmatpush1.bf16.msra.mxu1 %v13990_v45  ;;  %8611 = vmatprep.subr.bf16.mxu0 %v13997_v37  ;;  %v14028_v45 = vcombine.low %v3021_v22, %v3025_v23  ;;  %v14030_v37 = vcombine.low %v3022_v24, %v3026_v61  ;;  %v14039_v16 = vcombine.high %v3030_v36, %v3034_v48 }
 0x364   :  { %8939 = vmatprep.subr.bf16.mxu1 %v13999_v40  ;;  %v14037_v40 = vcombine.high %v3029_v33, %v3033_v35  ;;  %v14052_v22 = vcombine.low %v3045_v62, %v3049_v63 }
 0x366   :  { %8612 = vmatpush1.bf16.msra.mxu0 %v13996_v47  ;;  %v3042_v47 = vld [vmem:[#allocation8 + $0x1b68] sm:$0xff] }
 0x367   :  { %8940 = vmatpush1.bf16.msra.mxu1 %v13998_v8  ;;  %8613 = vmatprep.subr.bf16.mxu0 %v14005_v50  ;;  %v14036_v8 = vcombine.low %v3029_v33, %v3033_v35  ;;  %v14038_v50 = vcombine.low %v3030_v36, %v3034_v48  ;;  %v14047_v52 = vcombine.high %v3038_v12, %v3042_v47  ;;  %v3062_v33 = vld [vmem:[#allocation8 + $0x1c08] sm:$0xff] }
 0x368   :  { %8941 = vmatprep.subr.bf16.mxu1 %v14007_v44  ;;  %v14045_v44 = vcombine.high %v3037_v41, %v3041_v43  ;;  %v14046_v34 = vcombine.low %v3038_v12, %v3042_v47  ;;  %v3066_v35 = vld [vmem:[#allocation8 + $0x1c28] sm:$0xff] }
 0x369   :  { %v3070_v12 = vld [vmem:[#allocation8 + $0x1c48] sm:$0xff] }
 0x36a   :  { %8614 = vmatpush1.bf16.msra.mxu0 %v14004_v7  ;;  %v3050_v7 = vld [vmem:[#allocation8 + $0x1ba8] sm:$0xff] }
 0x36b   :  { %8942 = vmatpush1.bf16.msra.mxu1 %v14006_v10  ;;  %8615 = vmatprep.subr.bf16.mxu0 %v14013_v11  ;;  %v14044_v10 = vcombine.low %v3037_v41, %v3041_v43  ;;  %v16120_v11 = vld [vmem:[#allocation7 + $0x8] sm:$0xff]  ;;  %v14055_v17 = vcombine.high %v3046_v5, %v3050_v7  ;;  %v14054_v24 = vcombine.low %v3046_v5, %v3050_v7  ;;  %v3073_v41 = vld [vmem:[#allocation8 + $0x1c60] sm:$0xff]  ;;  %v3074_v47 = vld [vmem:[#allocation8 + $0x1c68] sm:$0xff] }
 0x36c   :  { %8943 = vmatprep.subr.bf16.mxu1 %v14015_v13  ;;  %v489_v13 = vrot.slane %v16120_v11, %v16044_v58  ;;  %v14079_v63 = vcombine.high %v3070_v12, %v3074_v47  ;;  %v3078_v5 = vld [vmem:[#allocation8 + $0x1c88] sm:$0xff] }
 0x36d   :  { %v3082_v7 = vld [vmem:[#allocation8 + $0x1ca8] sm:$0xff] }
 0x36e   :  { %8616 = vmatpush1.bf16.msra.mxu0 %v14012_v57  ;;  %v3057_v57 = vld [vmem:[#allocation8 + $0x1be0] sm:$0xff]  ;;  %v2086_v23 = vadd.f32 %v16065_v55, %v489_v13  ;;  %v14071_v55 = vcombine.high %v3062_v33, %v3066_v35  ;;  %v14078_v13 = vcombine.low %v3070_v12, %v3074_v47  ;;  %v3110_v47 = vld [vmem:[#allocation8 + $0x1d88] sm:$0xff] }
 0x36f   :  { %8944 = vmatpush1.bf16.msra.mxu1 %v14014_v18  ;;  %8617 = vmatprep.subr.bf16.mxu0 %v14021_v19  ;;  %v501_v18 = vrot.slane %v16120_v11, %v16047_v4  ;;  %v3054_v19 = vld [vmem:[#allocation8 + $0x1bc8] sm:$0xff]  ;;  %v14061_v61 = vcombine.high %v3053_v51, %v3057_v57  ;;  %v14060_v36 = vcombine.low %v3053_v51, %v3057_v57  ;;  %v3089_v51 = vld [vmem:[#allocation8 + $0x1ce0] sm:$0xff] }
 0x370   :  { %8945 = vmatprep.subr.bf16.mxu1 %v14023_v21  ;;  %v3058_v21 = vld [vmem:[#allocation8 + $0x1be8] sm:$0xff]  ;;  %v2145_v48 = vmax.f32 %v2086_v23, 0.0  ;;  %v3113_v12 = vld [vmem:[#allocation8 + $0x1da0] sm:$0xff] }
 0x371   :  { %v3086_v57 = vld [vmem:[#allocation8 + $0x1cc8] sm:$0xff] }
 0x372   :  { %8618 = vmatpush1.bf16.msra.mxu0 %v14020_v27  ;;  %v14063_v27 = vcombine.high %v3054_v19, %v3058_v21 }
 0x373   :  { %8946 = vmatpush1.bf16.msra.mxu1 %v14022_v28  ;;  %8619 = vmatprep.subr.bf16.mxu0 %v14029_v29  ;;  %v3061_v28 = vld [vmem:[#allocation8 + $0x1c00] sm:$0xff] }
 0x374   :  { %8947 = vmatprep.subr.bf16.mxu1 %v14031_v32  ;;  %v3065_v29 = vld [vmem:[#allocation8 + $0x1c20] sm:$0xff]  ;;  %v2129_v32 = vadd.f32 %v16071_v6, %v501_v18  ;;  %v14070_v6 = vcombine.low %v3062_v33, %v3066_v35  ;;  %v3090_v18 = vld [vmem:[#allocation8 + $0x1ce8] sm:$0xff] }
 0x375   :  { %v14068_v43 = vcombine.low %v3061_v28, %v3065_v29  ;;  %v14095_v23 = vcombine.high %v3086_v57, %v3090_v18 }
 0x376   :  { %8620 = vmatpush1.bf16.msra.mxu0 %v14028_v45  ;;  %v14062_v45 = vcombine.low %v3054_v19, %v3058_v21  ;;  %v14086_v21 = vcombine.low %v3078_v5, %v3082_v7 }
 0x377   :  { %8948 = vmatpush1.bf16.msra.mxu1 %v14030_v37  ;;  %8621 = vmatprep.subr.bf16.mxu0 %v14037_v40  ;;  %v14069_v37 = vcombine.high %v3061_v28, %v3065_v29  ;;  %v2148_v40 = vmax.f32 %v2129_v32, 0.0  ;;  %v3098_v28 = vld [vmem:[#allocation8 + $0x1d28] sm:$0xff]  ;;  %v14094_v32 = vcombine.low %v3086_v57, %v3090_v18  ;;  %v3125_v57 = vld [vmem:[#allocation8 + $0x1e00] sm:$0xff] }
 0x378   :  { %8949 = vmatprep.subr.bf16.mxu1 %v14039_v16  ;;  %v3069_v16 = vld [vmem:[#allocation8 + $0x1c40] sm:$0xff] }
 0x379   :  { %v16130_v62 = vpack.c.bf16 %v2148_v40, %v2148_v40  ;;  %v3129_v18 = vld [vmem:[#allocation8 + $0x1e20] sm:$0xff] }
 0x37a   :  { %8622 = vmatpush1.bf16.msra.mxu0 %v14036_v8  ;;  %v16128_v8 = vpack.c.bf16 %v2145_v48, %v2145_v48  ;;  %v3105_v48 = vld [vmem:[#allocation8 + $0x1d60] sm:$0xff] }
 0x37b   :  { %8950 = vmatpush1.bf16.msra.mxu1 %v14038_v50  ;;  %8623 = vmatprep.subr.bf16.mxu0 %v14045_v44  ;;  %v14077_v50 = vcombine.high %v3069_v16, %v3073_v41  ;;  %v3077_v44 = vld [vmem:[#allocation8 + $0x1c80] sm:$0xff] }
 0x37c   :  { %8951 = vmatprep.subr.bf16.mxu1 %v14047_v52  ;;  %v3081_v52 = vld [vmem:[#allocation8 + $0x1ca0] sm:$0xff] }
 0x37d   :  { %v14084_v19 = vcombine.low %v3077_v44, %v3081_v52 }
 0x37e   :  { %8624 = vmatpush1.bf16.msra.mxu0 %v14044_v10  ;;  %v14076_v10 = vcombine.low %v3069_v16, %v3073_v41 }
 0x37f   :  { %8952 = vmatpush1.bf16.msra.mxu1 %v14046_v34  ;;  %8625 = vmatprep.subr.bf16.mxu0 %v14053_v14  ;;  %v14085_v34 = vcombine.high %v3077_v44, %v3081_v52  ;;  %v14087_v14 = vcombine.high %v3078_v5, %v3082_v7  ;;  %v3117_v5 = vld [vmem:[#allocation8 + $0x1dc0] sm:$0xff] }
 0x380   :  { %8953 = vmatprep.subr.bf16.mxu1 %v14055_v17  ;;  %v3085_v17 = vld [vmem:[#allocation8 + $0x1cc0] sm:$0xff] }
 0x381   :  { %v14092_v29 = vcombine.low %v3085_v17, %v3089_v51  ;;  %v3121_v7 = vld [vmem:[#allocation8 + $0x1de0] sm:$0xff] }
 0x382   :  { %8626 = vmatpush1.bf16.msra.mxu0 %v14052_v22  ;;  %v14093_v22 = vcombine.high %v3085_v17, %v3089_v51  ;;  %v14125_v17 = vcombine.high %v3117_v5, %v3121_v7 }
 0x383   :  { %8954 = vmatpush1.bf16.msra.mxu1 %v14054_v24  ;;  %8627 = vmatprep.subr.bf16.mxu0 %v14061_v61  ;;  %v3093_v24 = vld [vmem:[#allocation8 + $0x1d00] sm:$0xff] }
 0x384   :  { %8955 = vmatprep.subr.bf16.mxu1 %v14063_v27  ;;  %v3097_v61 = vld [vmem:[#allocation8 + $0x1d20] sm:$0xff]  ;;  %v3094_v27 = vld [vmem:[#allocation8 + $0x1d08] sm:$0xff] }
 0x385   :  { %v14101_v33 = vcombine.high %v3093_v24, %v3097_v61  ;;  %v14103_v35 = vcombine.high %v3094_v27, %v3098_v28  ;;  %v14102_v40 = vcombine.low %v3094_v27, %v3098_v28  ;;  %v3133_v27 = vld [vmem:[#allocation8 + $0x1e40] sm:$0xff] }
 0x386   :  { %8628 = vmatpush1.bf16.msra.mxu0 %v14060_v36  ;;  %v3101_v36 = vld [vmem:[#allocation8 + $0x1d40] sm:$0xff] }
 0x387   :  { %8956 = vmatpush1.bf16.msra.mxu1 %v14062_v45  ;;  %8638 = vmatprep.subr.bf16.mxu0 %v14069_v37  ;;  %v3102_v45 = vld [vmem:[#allocation8 + $0x1d48] sm:$0xff]  ;;  %v14109_v16 = vcombine.high %v3101_v36, %v3105_v48  ;;  %v3137_v28 = vld [vmem:[#allocation8 + $0x1e60] sm:$0xff] }
 0x388   :  { %8966 = vmatprep.subr.bf16.mxu1 %v14071_v55  ;;  %v3106_v37 = vld [vmem:[#allocation8 + $0x1d68] sm:$0xff]  ;;  %v14100_v55 = vcombine.low %v3093_v24, %v3097_v61  ;;  %v14133_v24 = vcombine.high %v3125_v57, %v3129_v18 }
 0x389   :  { %8630 = vmatmul.mubr.bf16.vlgmr.msra.gmra.mrb[16].mxu0 %v16128_v8  ;;  %v14111_v41 = vcombine.high %v3102_v45, %v3106_v37  ;;  %v14110_v44 = vcombine.low %v3102_v45, %v3106_v37  ;;  %v3141_v45 = vld [vmem:[#allocation8 + $0x1e80] sm:$0xff] }
 0x38a   :  { %8958 = vmatmul.mubr.bf16.vlgmr.msra.gmra.mrb[16].mxu1 %v16128_v8  ;;  %8639 = vmatpush1.bf16.msra.mxu0 %v14068_v43  ;;  %v3109_v43 = vld [vmem:[#allocation8 + $0x1d80] sm:$0xff] }
 0x38b   :  { %8670 = vmatprep.mubr.bf16.mxu0 %v16130_v62  ;;  %8967 = vmatpush1.bf16.msra.mxu1 %v14070_v6  ;;  %v3114_v6 = vld [vmem:[#allocation8 + $0x1da8] sm:$0xff]  ;;  %v14117_v52 = vcombine.high %v3109_v43, %v3113_v12  ;;  %v3145_v37 = vld [vmem:[#allocation8 + $0x1ea0] sm:$0xff] }
 0x38c   :  { %8998 = vmatprep.mubr.bf16.mxu1 %v16130_v62  ;;  %8640 = vmatprep.subr.bf16.mxu0 %v14077_v50  ;;  %v14108_v50 = vcombine.low %v3101_v36, %v3105_v48  ;;  %v14141_v36 = vcombine.high %v3133_v27, %v3137_v28 }
 0x38d   :  { %8968 = vmatprep.subr.bf16.mxu1 %v14079_v63  ;;  %v14119_v63 = vcombine.high %v3110_v47, %v3114_v6 }
 0x38e   :  { %8641 = vmatpush1.bf16.msra.mxu0 %v14076_v10  ;;  %v3118_v10 = vld [vmem:[#allocation8 + $0x1dc8] sm:$0xff] }
 0x38f   :  { %8969 = vmatpush1.bf16.msra.mxu1 %v14078_v13  ;;  %8642 = vmatprep.subr.bf16.mxu0 %v14085_v34  ;;  %v3122_v13 = vld [vmem:[#allocation8 + $0x1de8] sm:$0xff]  ;;  %v14116_v34 = vcombine.low %v3109_v43, %v3113_v12  ;;  %v14149_v43 = vcombine.high %v3141_v45, %v3145_v37 }
 0x390   :  { %8970 = vmatprep.subr.bf16.mxu1 %v14087_v14  ;;  %v14118_v14 = vcombine.low %v3110_v47, %v3114_v6  ;;  %v14127_v51 = vcombine.high %v3118_v10, %v3122_v13  ;;  %v3149_v47 = vld [vmem:[#allocation8 + $0x1ec0] sm:$0xff] }
 0x391   :  { %v3153_v6 = vld [vmem:[#allocation8 + $0x1ee0] sm:$0xff] }
 0x392   :  { %8643 = vmatpush1.bf16.msra.mxu0 %v14084_v19  ;;  %v3126_v19 = vld [vmem:[#allocation8 + $0x1e08] sm:$0xff] }
 0x393   :  { %8971 = vmatpush1.bf16.msra.mxu1 %v14086_v21  ;;  %8644 = vmatprep.subr.bf16.mxu0 %v14093_v22  ;;  %v3130_v21 = vld [vmem:[#allocation8 + $0x1e28] sm:$0xff]  ;;  %v14124_v22 = vcombine.low %v3117_v5, %v3121_v7  ;;  %v14157_v5 = vcombine.high %v3149_v47, %v3153_v6 }
 0x394   :  { %8972 = vmatprep.subr.bf16.mxu1 %v14095_v23  ;;  %v14126_v23 = vcombine.low %v3118_v10, %v3122_v13  ;;  %v14135_v61 = vcombine.high %v3126_v19, %v3130_v21  ;;  %v3157_v10 = vld [vmem:[#allocation8 + $0x1f00] sm:$0xff] }
 0x395   :  { %v3161_v13 = vld [vmem:[#allocation8 + $0x1f20] sm:$0xff] }
 0x396   :  { %8645 = vmatpush1.bf16.msra.mxu0 %v14092_v29  ;;  %v3134_v29 = vld [vmem:[#allocation8 + $0x1e48] sm:$0xff] }
 0x397   :  { %8973 = vmatpush1.bf16.msra.mxu1 %v14094_v32  ;;  %8646 = vmatprep.subr.bf16.mxu0 %v14101_v33  ;;  %v3138_v32 = vld [vmem:[#allocation8 + $0x1e68] sm:$0xff]  ;;  %v14132_v33 = vcombine.low %v3125_v57, %v3129_v18  ;;  %v14165_v57 = vcombine.high %v3157_v10, %v3161_v13 }
 0x398   :  { %8974 = vmatprep.subr.bf16.mxu1 %v14103_v35  ;;  %v14134_v35 = vcombine.low %v3126_v19, %v3130_v21  ;;  %v14143_v48 = vcombine.high %v3134_v29, %v3138_v32  ;;  %v3165_v19 = vld [vmem:[#allocation8 + $0x1f40] sm:$0xff] }
 0x399   :  { %v3169_v21 = vld [vmem:[#allocation8 + $0x1f60] sm:$0xff] }
 0x39a   :  { %8647 = vmatpush1.bf16.msra.mxu0 %v14100_v55  ;;  %v3142_v55 = vld [vmem:[#allocation8 + $0x1e88] sm:$0xff] }
 0x39b   :  { %8975 = vmatpush1.bf16.msra.mxu1 %v14102_v40  ;;  %8648 = vmatprep.subr.bf16.mxu0 %v14109_v16  ;;  %v3146_v40 = vld [vmem:[#allocation8 + $0x1ea8] sm:$0xff]  ;;  %v14140_v16 = vcombine.low %v3133_v27, %v3137_v28  ;;  %v14173_v27 = vcombine.high %v3165_v19, %v3169_v21 }
 0x39c   :  { %8976 = vmatprep.subr.bf16.mxu1 %v14111_v41  ;;  %v14142_v41 = vcombine.low %v3134_v29, %v3138_v32  ;;  %v14151_v12 = vcombine.high %v3142_v55, %v3146_v40  ;;  %v3173_v29 = vld [vmem:[#allocation8 + $0x1f80] sm:$0xff] }
 0x39d   :  { %v3177_v32 = vld [vmem:[#allocation8 + $0x1fa0] sm:$0xff] }
 0x39e   :  { %8649 = vmatpush1.bf16.msra.mxu0 %v14108_v50  ;;  %v3150_v50 = vld [vmem:[#allocation8 + $0x1ec8] sm:$0xff] }
 0x39f   :  { %8977 = vmatpush1.bf16.msra.mxu1 %v14110_v44  ;;  %8650 = vmatprep.subr.bf16.mxu0 %v14117_v52  ;;  %v3154_v44 = vld [vmem:[#allocation8 + $0x1ee8] sm:$0xff]  ;;  %v14148_v52 = vcombine.low %v3141_v45, %v3145_v37  ;;  %v14181_v37 = vcombine.high %v3173_v29, %v3177_v32 }
 0x3a0   :  { %8978 = vmatprep.subr.bf16.mxu1 %v14119_v63  ;;  %v14150_v63 = vcombine.low %v3142_v55, %v3146_v40  ;;  %v14159_v7 = vcombine.high %v3150_v50, %v3154_v44  ;;  %v3181_v40 = vld [vmem:[#allocation8 + $0x1fc0] sm:$0xff] }
 0x3a2   :  { %8651 = vmatpush1.bf16.msra.mxu0 %v14116_v34  ;;  %v3158_v34 = vld [vmem:[#allocation8 + $0x1f08] sm:$0xff] }
 0x3a3   :  { %8979 = vmatpush1.bf16.msra.mxu1 %v14118_v14  ;;  %8652 = vmatprep.subr.bf16.mxu0 %v14125_v17  ;;  %v3162_v14 = vld [vmem:[#allocation8 + $0x1f28] sm:$0xff]  ;;  %v14156_v17 = vcombine.low %v3149_v47, %v3153_v6 }
 0x3a4   :  { %8980 = vmatprep.subr.bf16.mxu1 %v14127_v51  ;;  %v14158_v51 = vcombine.low %v3150_v50, %v3154_v44  ;;  %v14167_v18 = vcombine.high %v3158_v34, %v3162_v14  ;;  %v2167_v44 = vld [vmem:[#allocation8 + $0x10] sm:$0xff] }
 0x3a6   :  { %8653 = vmatpush1.bf16.msra.mxu0 %v14124_v22  ;;  %v3166_v22 = vld [vmem:[#allocation8 + $0x1f48] sm:$0xff] }
 0x3a7   :  { %8981 = vmatpush1.bf16.msra.mxu1 %v14126_v23  ;;  %8654 = vmatprep.subr.bf16.mxu0 %v14133_v24  ;;  %v3170_v23 = vld [vmem:[#allocation8 + $0x1f68] sm:$0xff]  ;;  %v14164_v24 = vcombine.low %v3157_v10, %v3161_v13 }
 0x3a8   :  { %8982 = vmatprep.subr.bf16.mxu1 %v14135_v61  ;;  %v14166_v61 = vcombine.low %v3158_v34, %v3162_v14  ;;  %v14175_v28 = vcombine.high %v3166_v22, %v3170_v23  ;;  %v14174_v45 = vcombine.low %v3166_v22, %v3170_v23  ;;  %v2183_v23 = vld [vmem:[#allocation8 + $0x90] sm:$0xff] }
 0x3aa   :  { %8655 = vmatpush1.bf16.msra.mxu0 %v14132_v33  ;;  %v3174_v33 = vld [vmem:[#allocation8 + $0x1f88] sm:$0xff] }
 0x3ab   :  { %8983 = vmatpush1.bf16.msra.mxu1 %v14134_v35  ;;  %8656 = vmatprep.subr.bf16.mxu0 %v14141_v36  ;;  %v3178_v35 = vld [vmem:[#allocation8 + $0x1fa8] sm:$0xff]  ;;  %v14172_v36 = vcombine.low %v3165_v19, %v3169_v21 }
 0x3ac   :  { %8984 = vmatprep.subr.bf16.mxu1 %v14143_v48  ;;  %v497_v48 = vrot.slane %v16120_v11, %v16074_v26  ;;  %v14183_v55 = vcombine.high %v3174_v33, %v3178_v35  ;;  %v14182_v6 = vcombine.low %v3174_v33, %v3178_v35 }
 0x3ae   :  { %8657 = vmatpush1.bf16.msra.mxu0 %v14140_v16  ;;  %v3185_v16 = vld [vmem:[#allocation8 + $0x1fe0] sm:$0xff]  ;;  %v2127_v47 = vadd.f32 %v16069_v0, %v497_v48  ;;  %v2175_v0 = vld [vmem:[#allocation8 + $0x50] sm:$0xff] }
 0x3af   :  { %8985 = vmatpush1.bf16.msra.mxu1 %v14142_v41  ;;  %8658 = vmatprep.subr.bf16.mxu0 %v14149_v43  ;;  %v3182_v41 = vld [vmem:[#allocation8 + $0x1fc8] sm:$0xff]  ;;  %v14189_v50 = vcombine.high %v3181_v40, %v3185_v16  ;;  %v2195_v48 = vld [vmem:[#allocation8 + $0xf0] sm:$0xff] }
 0x3b0   :  { %8986 = vmatprep.subr.bf16.mxu1 %v14151_v12  ;;  %v3186_v43 = vld [vmem:[#allocation8 + $0x1fe8] sm:$0xff]  ;;  %v14180_v12 = vcombine.low %v3173_v29, %v3177_v32  ;;  %v2147_v10 = vmax.f32 %v2127_v47, 0.0  ;;  %v2200_v47 = vld [vmem:[#allocation8 + $0x118] sm:$0xff] }
 0x3b1   :  { %v14191_v11 = vcombine.high %v3182_v41, %v3186_v43  ;;  %v14190_v13 = vcombine.low %v3182_v41, %v3186_v43  ;;  %v2199_v43 = vld [vmem:[#allocation8 + $0x110] sm:$0xff] }
 0x3b2   :  { %8659 = vmatpush1.bf16.msra.mxu0 %v14148_v52  ;;  %v2171_v52 = vld [vmem:[#allocation8 + $0x30] sm:$0xff]  ;;  %v16139_v19 = vpack.c.bf16 %v2147_v10, %v2147_v10 }
 0x3b3   :  { %8987 = vmatpush1.bf16.msra.mxu1 %v14150_v63  ;;  %8660 = vmatprep.subr.bf16.mxu0 %v14157_v5  ;;  %v2168_v63 = vld [vmem:[#allocation8 + $0x18] sm:$0xff]  ;;  %v13177_v34 = vcombine.high %v2167_v44, %v2171_v52 }
 0x3b4   :  { %8988 = vmatprep.subr.bf16.mxu1 %v14159_v7  ;;  %v2172_v5 = vld [vmem:[#allocation8 + $0x38] sm:$0xff]  ;;  %v14188_v7 = vcombine.low %v3181_v40, %v3185_v16 }
 0x3b5   :  { %v13179_v14 = vcombine.high %v2168_v63, %v2172_v5  ;;  %v13178_v21 = vcombine.low %v2168_v63, %v2172_v5  ;;  %v2211_v63 = vld [vmem:[#allocation8 + $0x170] sm:$0xff]  ;;  %v2208_v5 = vld [vmem:[#allocation8 + $0x158] sm:$0xff] }
 0x3b6   :  { %8661 = vmatpush1.bf16.msra.mxu0 %v14156_v17  ;;  %v2179_v17 = vld [vmem:[#allocation8 + $0x70] sm:$0xff] }
 0x3b7   :  { %8989 = vmatpush1.bf16.msra.mxu1 %v14158_v51  ;;  %8662 = vmatprep.subr.bf16.mxu0 %v14165_v57  ;;  %v13176_v51 = vcombine.low %v2167_v44, %v2171_v52  ;;  %v2176_v57 = vld [vmem:[#allocation8 + $0x58] sm:$0xff]  ;;  %v13185_v22 = vcombine.high %v2175_v0, %v2179_v17  ;;  %v13184_v29 = vcombine.low %v2175_v0, %v2179_v17  ;;  %v2207_v52 = vld [vmem:[#allocation8 + $0x150] sm:$0xff] }
 0x3b8   :  { %8990 = vmatprep.subr.bf16.mxu1 %v14167_v18  ;;  %v2180_v18 = vld [vmem:[#allocation8 + $0x78] sm:$0xff]  ;;  %v2215_v0 = vld [vmem:[#allocation8 + $0x190] sm:$0xff] }
 0x3b9   :  { %v13186_v32 = vcombine.low %v2176_v57, %v2180_v18  ;;  %v2219_v17 = vld [vmem:[#allocation8 + $0x1b0] sm:$0xff] }
 0x3ba   :  { %8663 = vmatpush1.bf16.msra.mxu0 %v14164_v24  ;;  %v2187_v24 = vld [vmem:[#allocation8 + $0xb0] sm:$0xff] }
 0x3bb   :  { %8991 = vmatpush1.bf16.msra.mxu1 %v14166_v61  ;;  %8664 = vmatprep.subr.bf16.mxu0 %v14173_v27  ;;  %v13187_v61 = vcombine.high %v2176_v57, %v2180_v18  ;;  %v2184_v27 = vld [vmem:[#allocation8 + $0x98] sm:$0xff]  ;;  %v13193_v33 = vcombine.high %v2183_v23, %v2187_v24  ;;  %v13216_v18 = vcombine.low %v2207_v52, %v2211_v63 }
 0x3bc   :  { %8992 = vmatprep.subr.bf16.mxu1 %v14175_v28  ;;  %v2188_v28 = vld [vmem:[#allocation8 + $0xb8] sm:$0xff] }
 0x3bd   :  { %v13195_v35 = vcombine.high %v2184_v27, %v2188_v28  ;;  %v13194_v40 = vcombine.low %v2184_v27, %v2188_v28  ;;  %v2220_v57 = vld [vmem:[#allocation8 + $0x1b8] sm:$0xff] }
 0x3be   :  { %8665 = vmatpush1.bf16.msra.mxu0 %v14172_v36  ;;  %v2191_v36 = vld [vmem:[#allocation8 + $0xd0] sm:$0xff]  ;;  %v2224_v27 = vld [vmem:[#allocation8 + $0x1d8] sm:$0xff] }
 0x3bf   :  { %8993 = vmatpush1.bf16.msra.mxu1 %v14174_v45  ;;  %8666 = vmatprep.subr.bf16.mxu0 %v14181_v37  ;;  %v2192_v45 = vld [vmem:[#allocation8 + $0xd8] sm:$0xff]  ;;  %v13201_v16 = vcombine.high %v2191_v36, %v2195_v48 }
 0x3c0   :  { %8994 = vmatprep.subr.bf16.mxu1 %v14183_v55  ;;  %v2196_v37 = vld [vmem:[#allocation8 + $0xf8] sm:$0xff]  ;;  %v13192_v55 = vcombine.low %v2183_v23, %v2187_v24  ;;  %v2223_v24 = vld [vmem:[#allocation8 + $0x1d0] sm:$0xff] }
 0x3c1   :  { %v13203_v41 = vcombine.high %v2192_v45, %v2196_v37  ;;  %v2228_v28 = vld [vmem:[#allocation8 + $0x1f8] sm:$0xff] }
 0x3c2   :  { %8667 = vmatpush1.bf16.msra.mxu0 %v14180_v12  ;;  %v2203_v12 = vld [vmem:[#allocation8 + $0x130] sm:$0xff] }
 0x3c3   :  { %8995 = vmatpush1.bf16.msra.mxu1 %v14182_v6  ;;  %8668 = vmatprep.subr.bf16.mxu0 %v14189_v50  ;;  %v2204_v6 = vld [vmem:[#allocation8 + $0x138] sm:$0xff]  ;;  %v13202_v50 = vcombine.low %v2192_v45, %v2196_v37  ;;  %v13208_v10 = vcombine.low %v2199_v43, %v2203_v12 }
 0x3c4   :  { %8996 = vmatprep.subr.bf16.mxu1 %v14191_v11  ;;  %v13209_v11 = vcombine.high %v2199_v43, %v2203_v12  ;;  %v13211_v44 = vcombine.high %v2200_v47, %v2204_v6  ;;  %v2232_v45 = vld [vmem:[#allocation8 + $0x218] sm:$0xff]  ;;  %v2239_v43 = vld [vmem:[#allocation8 + $0x250] sm:$0xff] }
 0x3c5   :  { %v2236_v37 = vld [vmem:[#allocation8 + $0x238] sm:$0xff]  ;;  %v2243_v12 = vld [vmem:[#allocation8 + $0x270] sm:$0xff] }
 0x3c6   :  { %8669 = vmatpush1.bf16.msra.mxu0 %v14188_v7  ;;  %v2212_v7 = vld [vmem:[#allocation8 + $0x178] sm:$0xff] }
 0x3c7   :  { %8997 = vmatpush1.bf16.msra.mxu1 %v14190_v13  ;;  %9007 = vmatprep.subr.bf16.mxu0 %v13177_v34  ;;  %v13210_v13 = vcombine.low %v2200_v47, %v2204_v6  ;;  %v13217_v34 = vcombine.high %v2207_v52, %v2211_v63  ;;  %v2240_v47 = vld [vmem:[#allocation8 + $0x258] sm:$0xff]  ;;  %v2247_v52 = vld [vmem:[#allocation8 + $0x290] sm:$0xff] }
 0x3c8   :  { %9335 = vmatprep.subr.bf16.mxu1 %v13179_v14  ;;  %v13219_v14 = vcombine.high %v2208_v5, %v2212_v7  ;;  %v2244_v6 = vld [vmem:[#allocation8 + $0x278] sm:$0xff]  ;;  %v2251_v63 = vld [vmem:[#allocation8 + $0x2b0] sm:$0xff] }
 0x3c9   :  { %8671 = vmatmul.mubr.bf16.vlgmr.msra.gmra.mrb[16].mxu0 %v16139_v19 }
 0x3ca   :  { %8999 = vmatmul.mubr.bf16.vlgmr.msra.gmra.mrb[16].mxu1 %v16139_v19  ;;  %9008 = vmatpush1.bf16.msra.mxu0 %v13176_v51  ;;  %v2216_v51 = vld [vmem:[#allocation8 + $0x198] sm:$0xff] }
 0x3cb   :  { %9039 = vmatprep.mubr.bf16.mxu0 %v15983_v31  ;;  %9336 = vmatpush1.bf16.msra.mxu1 %v13178_v21  ;;  %v13218_v21 = vcombine.low %v2208_v5, %v2212_v7  ;;  %v13227_v23 = vcombine.high %v2216_v51, %v2220_v57  ;;  %v2248_v5 = vld [vmem:[#allocation8 + $0x298] sm:$0xff] }
 0x3cc   :  { %9367 = vmatprep.mubr.bf16.mxu1 %v15983_v31  ;;  %9009 = vmatprep.subr.bf16.mxu0 %v13185_v22  ;;  %v13200_v31 = vcombine.low %v2191_v36, %v2195_v48  ;;  %v13225_v22 = vcombine.high %v2215_v0, %v2219_v17  ;;  %v2231_v36 = vld [vmem:[#allocation8 + $0x210] sm:$0xff]  ;;  %v2252_v7 = vld [vmem:[#allocation8 + $0x2b8] sm:$0xff] }
 0x3cd   :  { %9337 = vmatprep.subr.bf16.mxu1 %v13187_v61  ;;  %v2227_v61 = vld [vmem:[#allocation8 + $0x1f0] sm:$0xff] }
 0x3ce   :  { %9010 = vmatpush1.bf16.msra.mxu0 %v13184_v29  ;;  %v13224_v29 = vcombine.low %v2215_v0, %v2219_v17  ;;  %v2235_v48 = vld [vmem:[#allocation8 + $0x230] sm:$0xff] }
 0x3cf   :  { %9338 = vmatpush1.bf16.msra.mxu1 %v13186_v32  ;;  %9011 = vmatprep.subr.bf16.mxu0 %v13193_v33  ;;  %v13226_v32 = vcombine.low %v2216_v51, %v2220_v57  ;;  %v13233_v33 = vcombine.high %v2223_v24, %v2227_v61  ;;  %v2255_v0 = vld [vmem:[#allocation8 + $0x2d0] sm:$0xff]  ;;  %v2256_v51 = vld [vmem:[#allocation8 + $0x2d8] sm:$0xff] }
 0x3d0   :  { %9339 = vmatprep.subr.bf16.mxu1 %v13195_v35  ;;  %v13235_v35 = vcombine.high %v2224_v27, %v2228_v28  ;;  %v2259_v17 = vld [vmem:[#allocation8 + $0x2f0] sm:$0xff]  ;;  %v2260_v57 = vld [vmem:[#allocation8 + $0x2f8] sm:$0xff] }
 0x3d2   :  { %9012 = vmatpush1.bf16.msra.mxu0 %v13192_v55  ;;  %v13232_v55 = vcombine.low %v2223_v24, %v2227_v61  ;;  %v2263_v24 = vld [vmem:[#allocation8 + $0x310] sm:$0xff] }
 0x3d3   :  { %9340 = vmatpush1.bf16.msra.mxu1 %v13194_v40  ;;  %9013 = vmatprep.subr.bf16.mxu0 %v13201_v16  ;;  %v13234_v40 = vcombine.low %v2224_v27, %v2228_v28  ;;  %v13241_v16 = vcombine.high %v2231_v36, %v2235_v48  ;;  %v2267_v61 = vld [vmem:[#allocation8 + $0x330] sm:$0xff]  ;;  %v2264_v27 = vld [vmem:[#allocation8 + $0x318] sm:$0xff] }
 0x3d4   :  { %9341 = vmatprep.subr.bf16.mxu1 %v13203_v41  ;;  %v13243_v41 = vcombine.high %v2232_v45, %v2236_v37  ;;  %v2268_v28 = vld [vmem:[#allocation8 + $0x338] sm:$0xff] }
 0x3d6   :  { %9014 = vmatpush1.bf16.msra.mxu0 %v13200_v31  ;;  %v13240_v31 = vcombine.low %v2231_v36, %v2235_v48  ;;  %v2271_v36 = vld [vmem:[#allocation8 + $0x350] sm:$0xff] }
 0x3d7   :  { %9342 = vmatpush1.bf16.msra.mxu1 %v13202_v50  ;;  %9015 = vmatprep.subr.bf16.mxu0 %v13209_v11  ;;  %v13242_v50 = vcombine.low %v2232_v45, %v2236_v37  ;;  %v13249_v11 = vcombine.high %v2239_v43, %v2243_v12  ;;  %v2275_v48 = vld [vmem:[#allocation8 + $0x370] sm:$0xff]  ;;  %v2272_v45 = vld [vmem:[#allocation8 + $0x358] sm:$0xff] }
 0x3d8   :  { %9343 = vmatprep.subr.bf16.mxu1 %v13211_v44  ;;  %v13251_v44 = vcombine.high %v2240_v47, %v2244_v6  ;;  %v2276_v37 = vld [vmem:[#allocation8 + $0x378] sm:$0xff] }
 0x3da   :  { %9016 = vmatpush1.bf16.msra.mxu0 %v13208_v10  ;;  %v13248_v10 = vcombine.low %v2239_v43, %v2243_v12  ;;  %v2279_v43 = vld [vmem:[#allocation8 + $0x390] sm:$0xff] }
 0x3db   :  { %9344 = vmatpush1.bf16.msra.mxu1 %v13210_v13  ;;  %9017 = vmatprep.subr.bf16.mxu0 %v13217_v34  ;;  %v13250_v13 = vcombine.low %v2240_v47, %v2244_v6  ;;  %v13257_v34 = vcombine.high %v2247_v52, %v2251_v63  ;;  %v2283_v12 = vld [vmem:[#allocation8 + $0x3b0] sm:$0xff]  ;;  %v2280_v47 = vld [vmem:[#allocation8 + $0x398] sm:$0xff] }
 0x3dc   :  { %9345 = vmatprep.subr.bf16.mxu1 %v13219_v14  ;;  %v13259_v14 = vcombine.high %v2248_v5, %v2252_v7  ;;  %v2284_v6 = vld [vmem:[#allocation8 + $0x3b8] sm:$0xff] }
 0x3de   :  { %9018 = vmatpush1.bf16.msra.mxu0 %v13216_v18  ;;  %v13256_v18 = vcombine.low %v2247_v52, %v2251_v63  ;;  %v2287_v52 = vld [vmem:[#allocation8 + $0x3d0] sm:$0xff] }
 0x3df   :  { %9346 = vmatpush1.bf16.msra.mxu1 %v13218_v21  ;;  %9019 = vmatprep.subr.bf16.mxu0 %v13225_v22  ;;  %v13258_v21 = vcombine.low %v2248_v5, %v2252_v7  ;;  %v13265_v22 = vcombine.high %v2255_v0, %v2259_v17  ;;  %v2291_v63 = vld [vmem:[#allocation8 + $0x3f0] sm:$0xff]  ;;  %v2288_v5 = vld [vmem:[#allocation8 + $0x3d8] sm:$0xff] }
 0x3e0   :  { %9347 = vmatprep.subr.bf16.mxu1 %v13227_v23  ;;  %v13267_v23 = vcombine.high %v2256_v51, %v2260_v57  ;;  %v2292_v7 = vld [vmem:[#allocation8 + $0x3f8] sm:$0xff] }
 0x3e2   :  { %9020 = vmatpush1.bf16.msra.mxu0 %v13224_v29  ;;  %v13264_v29 = vcombine.low %v2255_v0, %v2259_v17  ;;  %v2295_v0 = vld [vmem:[#allocation8 + $0x410] sm:$0xff] }
 0x3e3   :  { %9348 = vmatpush1.bf16.msra.mxu1 %v13226_v32  ;;  %9021 = vmatprep.subr.bf16.mxu0 %v13233_v33  ;;  %v13266_v32 = vcombine.low %v2256_v51, %v2260_v57  ;;  %v13273_v33 = vcombine.high %v2263_v24, %v2267_v61  ;;  %v2299_v17 = vld [vmem:[#allocation8 + $0x430] sm:$0xff]  ;;  %v2296_v51 = vld [vmem:[#allocation8 + $0x418] sm:$0xff] }
 0x3e4   :  { %9349 = vmatprep.subr.bf16.mxu1 %v13235_v35  ;;  %v13275_v35 = vcombine.high %v2264_v27, %v2268_v28  ;;  %v2300_v57 = vld [vmem:[#allocation8 + $0x438] sm:$0xff] }
 0x3e6   :  { %9022 = vmatpush1.bf16.msra.mxu0 %v13232_v55  ;;  %v13272_v55 = vcombine.low %v2263_v24, %v2267_v61  ;;  %v2303_v24 = vld [vmem:[#allocation8 + $0x450] sm:$0xff] }
 0x3e7   :  { %9350 = vmatpush1.bf16.msra.mxu1 %v13234_v40  ;;  %9023 = vmatprep.subr.bf16.mxu0 %v13241_v16  ;;  %v13274_v40 = vcombine.low %v2264_v27, %v2268_v28  ;;  %v13281_v16 = vcombine.high %v2271_v36, %v2275_v48  ;;  %v2307_v61 = vld [vmem:[#allocation8 + $0x470] sm:$0xff]  ;;  %v13304_v27 = vcombine.low %v2295_v0, %v2299_v17  ;;  %v2304_v28 = vld [vmem:[#allocation8 + $0x458] sm:$0xff] }
 0x3e8   :  { %9351 = vmatprep.subr.bf16.mxu1 %v13243_v41  ;;  %v13283_v41 = vcombine.high %v2272_v45, %v2276_v37 }
 0x3ea   :  { %9024 = vmatpush1.bf16.msra.mxu0 %v13240_v31  ;;  %v13280_v31 = vcombine.low %v2271_v36, %v2275_v48  ;;  %v2315_v36 = vld [vmem:[#allocation8 + $0x4b0] sm:$0xff] }
 0x3eb   :  { %9352 = vmatpush1.bf16.msra.mxu1 %v13242_v50  ;;  %9025 = vmatprep.subr.bf16.mxu0 %v13249_v11  ;;  %v13282_v50 = vcombine.low %v2272_v45, %v2276_v37  ;;  %v13289_v11 = vcombine.high %v2279_v43, %v2283_v12  ;;  %v2312_v45 = vld [vmem:[#allocation8 + $0x498] sm:$0xff] }
 0x3ec   :  { %9353 = vmatprep.subr.bf16.mxu1 %v13251_v44  ;;  %v13291_v44 = vcombine.high %v2280_v47, %v2284_v6  ;;  %v2316_v37 = vld [vmem:[#allocation8 + $0x4b8] sm:$0xff] }
 0x3ee   :  { %9026 = vmatpush1.bf16.msra.mxu0 %v13248_v10  ;;  %v13288_v10 = vcombine.low %v2279_v43, %v2283_v12  ;;  %v2319_v43 = vld [vmem:[#allocation8 + $0x4d0] sm:$0xff] }
 0x3ef   :  { %9354 = vmatpush1.bf16.msra.mxu1 %v13250_v13  ;;  %9027 = vmatprep.subr.bf16.mxu0 %v13257_v34  ;;  %v13290_v13 = vcombine.low %v2280_v47, %v2284_v6  ;;  %v13297_v34 = vcombine.high %v2287_v52, %v2291_v63  ;;  %v2323_v12 = vld [vmem:[#allocation8 + $0x4f0] sm:$0xff]  ;;  %v2320_v47 = vld [vmem:[#allocation8 + $0x4d8] sm:$0xff] }
 0x3f0   :  { %9355 = vmatprep.subr.bf16.mxu1 %v13259_v14  ;;  %v13299_v14 = vcombine.high %v2288_v5, %v2292_v7  ;;  %v2324_v6 = vld [vmem:[#allocation8 + $0x4f8] sm:$0xff] }
 0x3f2   :  { %9028 = vmatpush1.bf16.msra.mxu0 %v13256_v18  ;;  %v13296_v18 = vcombine.low %v2287_v52, %v2291_v63  ;;  %v2331_v52 = vld [vmem:[#allocation8 + $0x530] sm:$0xff]  ;;  %v2328_v63 = vld [vmem:[#allocation8 + $0x518] sm:$0xff] }
 0x3f3   :  { %9356 = vmatpush1.bf16.msra.mxu1 %v13258_v21  ;;  %9029 = vmatprep.subr.bf16.mxu0 %v13265_v22  ;;  %v13298_v21 = vcombine.low %v2288_v5, %v2292_v7  ;;  %v13305_v22 = vcombine.high %v2295_v0, %v2299_v17  ;;  %v2332_v5 = vld [vmem:[#allocation8 + $0x538] sm:$0xff]  ;;  %v13330_v7 = vcombine.low %v2320_v47, %v2324_v6 }
 0x3f4   :  { %9357 = vmatprep.subr.bf16.mxu1 %v13267_v23  ;;  %v13307_v23 = vcombine.high %v2296_v51, %v2300_v57  ;;  %v2336_v0 = vld [vmem:[#allocation8 + $0x558] sm:$0xff] }
 0x3f5   :  { %v2340_v17 = vld [vmem:[#allocation8 + $0x578] sm:$0xff] }
 0x3f6   :  { %9030 = vmatpush1.bf16.msra.mxu0 %v13264_v29  ;;  %v2308_v29 = vld [vmem:[#allocation8 + $0x478] sm:$0xff] }
 0x3f7   :  { %9358 = vmatpush1.bf16.msra.mxu1 %v13266_v32  ;;  %9031 = vmatprep.subr.bf16.mxu0 %v13273_v33  ;;  %v13306_v32 = vcombine.low %v2296_v51, %v2300_v57  ;;  %v13313_v33 = vcombine.high %v2303_v24, %v2307_v61  ;;  %v13315_v48 = vcombine.high %v2304_v28, %v2308_v29 }
 0x3f8   :  { %9359 = vmatprep.subr.bf16.mxu1 %v13275_v35  ;;  %v2311_v35 = vld [vmem:[#allocation8 + $0x490] sm:$0xff]  ;;  %v13338_v57 = vcombine.low %v2328_v63, %v2332_v5 }
 0x3fa   :  { %9032 = vmatpush1.bf16.msra.mxu0 %v13272_v55  ;;  %v13312_v55 = vcombine.low %v2303_v24, %v2307_v61  ;;  %v2344_v24 = vld [vmem:[#allocation8 + $0x598] sm:$0xff] }
 0x3fb   :  { %9360 = vmatpush1.bf16.msra.mxu1 %v13274_v40  ;;  %9033 = vmatprep.subr.bf16.mxu0 %v13281_v16  ;;  %v13314_v40 = vcombine.low %v2304_v28, %v2308_v29  ;;  %v13321_v16 = vcombine.high %v2311_v35, %v2315_v36  ;;  %v2348_v61 = vld [vmem:[#allocation8 + $0x5b8] sm:$0xff]  ;;  %v13346_v28 = vcombine.low %v2336_v0, %v2340_v17 }
 0x3fc   :  { %9361 = vmatprep.subr.bf16.mxu1 %v13283_v41  ;;  %v13323_v41 = vcombine.high %v2312_v45, %v2316_v37 }
 0x3fe   :  { %9034 = vmatpush1.bf16.msra.mxu0 %v13280_v31  ;;  %v13320_v31 = vcombine.low %v2311_v35, %v2315_v36  ;;  %v2355_v35 = vld [vmem:[#allocation8 + $0x5f0] sm:$0xff]  ;;  %v2352_v36 = vld [vmem:[#allocation8 + $0x5d8] sm:$0xff] }
 0x3ff   :  { %9362 = vmatpush1.bf16.msra.mxu1 %v13282_v50  ;;  %9035 = vmatprep.subr.bf16.mxu0 %v13289_v11  ;;  %v13329_v50 = vcombine.high %v2319_v43, %v2323_v12  ;;  %v13331_v11 = vcombine.high %v2320_v47, %v2324_v6 }
 0x400   :  { %9363 = vmatprep.subr.bf16.mxu1 %v13291_v44  ;;  %v2327_v44 = vld [vmem:[#allocation8 + $0x510] sm:$0xff] }
 0x401   :  { %v13336_v51 = vcombine.low %v2327_v44, %v2331_v52 }
 0x402   :  { %9036 = vmatpush1.bf16.msra.mxu0 %v13288_v10  ;;  %v13337_v10 = vcombine.high %v2327_v44, %v2331_v52  ;;  %v2368_v44 = vld [vmem:[#allocation8 + $0x658] sm:$0xff] }
 0x403   :  { %9364 = vmatpush1.bf16.msra.mxu1 %v13290_v13  ;;  %9037 = vmatprep.subr.bf16.mxu0 %v13297_v34  ;;  %v13339_v13 = vcombine.high %v2328_v63, %v2332_v5  ;;  %v2335_v34 = vld [vmem:[#allocation8 + $0x550] sm:$0xff]  ;;  %v2372_v52 = vld [vmem:[#allocation8 + $0x678] sm:$0xff] }
 0x404   :  { %9365 = vmatprep.subr.bf16.mxu1 %v13299_v14  ;;  %v2339_v14 = vld [vmem:[#allocation8 + $0x570] sm:$0xff] }
 0x406   :  { %9038 = vmatpush1.bf16.msra.mxu0 %v13296_v18  ;;  %v13345_v18 = vcombine.high %v2335_v34, %v2339_v14 }
 0x407   :  { %9366 = vmatpush1.bf16.msra.mxu1 %v13298_v21  ;;  %9048 = vmatprep.subr.bf16.mxu0 %v13305_v22  ;;  %v13347_v21 = vcombine.high %v2336_v0, %v2340_v17  ;;  %v2343_v22 = vld [vmem:[#allocation8 + $0x590] sm:$0xff]  ;;  %v13378_v17 = vcombine.low %v2368_v44, %v2372_v52 }
 0x408   :  { %9376 = vmatprep.subr.bf16.mxu1 %v13307_v23  ;;  %v2347_v23 = vld [vmem:[#allocation8 + $0x5b0] sm:$0xff] }
 0x409   :  { %9040 = vmatmul.mubr.bf16.vlgmr.msra.gmra.mrb[20].mxu0 %v15999_v60  ;;  %v13353_v29 = vcombine.high %v2343_v22, %v2347_v23 }
 0x40a   :  { %9368 = vmatmul.mubr.bf16.vlgmr.msra.gmra.mrb[20].mxu1 %v15999_v60  ;;  %9049 = vmatpush1.bf16.msra.mxu0 %v13304_v27  ;;  %v13322_v60 = vcombine.low %v2312_v45, %v2316_v37  ;;  %v13344_v27 = vcombine.low %v2335_v34, %v2339_v14  ;;  %v13352_v45 = vcombine.low %v2343_v22, %v2347_v23  ;;  %v2376_v34 = vld [vmem:[#allocation8 + $0x698] sm:$0xff] }
 0x40b   :  { %9080 = vmatprep.mubr.bf16.mxu0 %v16001_v1  ;;  %9377 = vmatpush1.bf16.msra.mxu1 %v13306_v32  ;;  %v13355_v32 = vcombine.high %v2344_v24, %v2348_v61  ;;  %v13354_v37 = vcombine.low %v2344_v24, %v2348_v61  ;;  %v2380_v14 = vld [vmem:[#allocation8 + $0x6b8] sm:$0xff] }
 0x40c   :  { %9408 = vmatprep.mubr.bf16.mxu1 %v16001_v1  ;;  %9050 = vmatprep.subr.bf16.mxu0 %v13313_v33  ;;  %v13328_v1 = vcombine.low %v2319_v43, %v2323_v12  ;;  %v2351_v33 = vld [vmem:[#allocation8 + $0x5d0] sm:$0xff]  ;;  %v2360_v43 = vld [vmem:[#allocation8 + $0x618] sm:$0xff]  ;;  %v13386_v61 = vcombine.low %v2376_v34, %v2380_v14 }
 0x40d   :  { %9378 = vmatprep.subr.bf16.mxu1 %v13315_v48  ;;  %v2356_v48 = vld [vmem:[#allocation8 + $0x5f8] sm:$0xff]  ;;  %v13360_v47 = vcombine.low %v2351_v33, %v2355_v35 }
 0x40e   :  { %9051 = vmatpush1.bf16.msra.mxu0 %v13312_v55  ;;  %v13361_v55 = vcombine.high %v2351_v33, %v2355_v35  ;;  %v2364_v12 = vld [vmem:[#allocation8 + $0x638] sm:$0xff]  ;;  %v13362_v6 = vcombine.low %v2352_v36, %v2356_v48 }
 0x40f   :  { %9379 = vmatpush1.bf16.msra.mxu1 %v13314_v40  ;;  %9052 = vmatprep.subr.bf16.mxu0 %v13321_v16  ;;  %v13363_v40 = vcombine.high %v2352_v36, %v2356_v48  ;;  %v2359_v16 = vld [vmem:[#allocation8 + $0x610] sm:$0xff]  ;;  %v13370_v5 = vcombine.low %v2360_v43, %v2364_v12  ;;  %v2384_v22 = vld [vmem:[#allocation8 + $0x6d8] sm:$0xff] }
 0x410   :  { %9380 = vmatprep.subr.bf16.mxu1 %v13323_v41  ;;  %v2363_v41 = vld [vmem:[#allocation8 + $0x630] sm:$0xff]  ;;  %v2388_v23 = vld [vmem:[#allocation8 + $0x6f8] sm:$0xff] }
 0x411   :  { %v13368_v63 = vcombine.low %v2359_v16, %v2363_v41  ;;  %v2392_v33 = vld [vmem:[#allocation8 + $0x718] sm:$0xff]  ;;  %v13394_v48 = vcombine.low %v2384_v22, %v2388_v23 }
 0x412   :  { %9053 = vmatpush1.bf16.msra.mxu0 %v13320_v31  ;;  %v13369_v31 = vcombine.high %v2359_v16, %v2363_v41  ;;  %v2396_v35 = vld [vmem:[#allocation8 + $0x738] sm:$0xff] }
 0x413   :  { %9381 = vmatpush1.bf16.msra.mxu1 %v13322_v60  ;;  %9054 = vmatprep.subr.bf16.mxu0 %v13329_v50  ;;  %v13371_v60 = vcombine.high %v2360_v43, %v2364_v12  ;;  %v2367_v50 = vld [vmem:[#allocation8 + $0x650] sm:$0xff]  ;;  %v2400_v16 = vld [vmem:[#allocation8 + $0x758] sm:$0xff]  ;;  %v13402_v12 = vcombine.low %v2392_v33, %v2396_v35 }
 0x414   :  { %9382 = vmatprep.subr.bf16.mxu1 %v13331_v11  ;;  %v2371_v11 = vld [vmem:[#allocation8 + $0x670] sm:$0xff]  ;;  %v2404_v41 = vld [vmem:[#allocation8 + $0x778] sm:$0xff] }
 0x415   :  { %v13376_v0 = vcombine.low %v2367_v50, %v2371_v11 }
 0x416   :  { %9055 = vmatpush1.bf16.msra.mxu0 %v13328_v1  ;;  %v13377_v1 = vcombine.high %v2367_v50, %v2371_v11  ;;  %v2408_v50 = vld [vmem:[#allocation8 + $0x798] sm:$0xff] }
 0x417   :  { %9383 = vmatpush1.bf16.msra.mxu1 %v13330_v7  ;;  %9056 = vmatprep.subr.bf16.mxu0 %v13337_v10  ;;  %v13379_v7 = vcombine.high %v2368_v44, %v2372_v52  ;;  %v2375_v10 = vld [vmem:[#allocation8 + $0x690] sm:$0xff]  ;;  %v2412_v11 = vld [vmem:[#allocation8 + $0x7b8] sm:$0xff]  ;;  %v13410_v52 = vcombine.low %v2400_v16, %v2404_v41 }
 0x418   :  { %9384 = vmatprep.subr.bf16.mxu1 %v13339_v13  ;;  %v2379_v13 = vld [vmem:[#allocation8 + $0x6b0] sm:$0xff] }
 0x419   :  { %v13384_v24 = vcombine.low %v2375_v10, %v2379_v13 }
 0x41a   :  { %9057 = vmatpush1.bf16.msra.mxu0 %v13336_v51  ;;  %v13385_v51 = vcombine.high %v2375_v10, %v2379_v13  ;;  %v2416_v10 = vld [vmem:[#allocation8 + $0x7d8] sm:$0xff] }
 0x41b   :  { %9385 = vmatpush1.bf16.msra.mxu1 %v13338_v57  ;;  %9058 = vmatprep.subr.bf16.mxu0 %v13345_v18  ;;  %v13387_v57 = vcombine.high %v2376_v34, %v2380_v14  ;;  %v2383_v18 = vld [vmem:[#allocation8 + $0x6d0] sm:$0xff]  ;;  %v2420_v13 = vld [vmem:[#allocation8 + $0x7f8] sm:$0xff]  ;;  %v13418_v14 = vcombine.low %v2408_v50, %v2412_v11 }
 0x41c   :  { %9386 = vmatprep.subr.bf16.mxu1 %v13347_v21  ;;  %v2387_v21 = vld [vmem:[#allocation8 + $0x6f0] sm:$0xff] }
 0x41d   :  { %v13392_v36 = vcombine.low %v2383_v18, %v2387_v21 }
 0x41e   :  { %9059 = vmatpush1.bf16.msra.mxu0 %v13344_v27  ;;  %v13393_v27 = vcombine.high %v2383_v18, %v2387_v21  ;;  %v2424_v18 = vld [vmem:[#allocation8 + $0x818] sm:$0xff] }
 0x41f   :  { %9387 = vmatpush1.bf16.msra.mxu1 %v13346_v28  ;;  %9060 = vmatprep.subr.bf16.mxu0 %v13353_v29  ;;  %v13395_v28 = vcombine.high %v2384_v22, %v2388_v23  ;;  %v2391_v29 = vld [vmem:[#allocation8 + $0x710] sm:$0xff]  ;;  %v2428_v21 = vld [vmem:[#allocation8 + $0x838] sm:$0xff]  ;;  %v13426_v23 = vcombine.low %v2416_v10, %v2420_v13 }
 0x420   :  { %9388 = vmatprep.subr.bf16.mxu1 %v13355_v32  ;;  %v2395_v32 = vld [vmem:[#allocation8 + $0x730] sm:$0xff] }
 0x421   :  { %v13400_v43 = vcombine.low %v2391_v29, %v2395_v32 }
 0x422   :  { %9061 = vmatpush1.bf16.msra.mxu0 %v13352_v45  ;;  %v13401_v45 = vcombine.high %v2391_v29, %v2395_v32  ;;  %v2432_v32 = vld [vmem:[#allocation8 + $0x858] sm:$0xff] }
 0x423   :  { %9389 = vmatpush1.bf16.msra.mxu1 %v13354_v37  ;;  %9062 = vmatprep.subr.bf16.mxu0 %v13361_v55  ;;  %v13403_v37 = vcombine.high %v2392_v33, %v2396_v35  ;;  %v2399_v55 = vld [vmem:[#allocation8 + $0x750] sm:$0xff]  ;;  %v2436_v33 = vld [vmem:[#allocation8 + $0x878] sm:$0xff]  ;;  %v13434_v35 = vcombine.low %v2424_v18, %v2428_v21 }
 0x424   :  { %9390 = vmatprep.subr.bf16.mxu1 %v13363_v40  ;;  %v2403_v40 = vld [vmem:[#allocation8 + $0x770] sm:$0xff] }
 0x425   :  { %v13408_v44 = vcombine.low %v2399_v55, %v2403_v40 }
 0x426   :  { %9063 = vmatpush1.bf16.msra.mxu0 %v13360_v47  ;;  %v13409_v47 = vcombine.high %v2399_v55, %v2403_v40  ;;  %v2440_v55 = vld [vmem:[#allocation8 + $0x898] sm:$0xff] }
 0x427   :  { %9391 = vmatpush1.bf16.msra.mxu1 %v13362_v6  ;;  %9064 = vmatprep.subr.bf16.mxu0 %v13369_v31  ;;  %v13411_v6 = vcombine.high %v2400_v16, %v2404_v41  ;;  %v2407_v31 = vld [vmem:[#allocation8 + $0x790] sm:$0xff]  ;;  %v2444_v40 = vld [vmem:[#allocation8 + $0x8b8] sm:$0xff]  ;;  %v13442_v41 = vcombine.low %v2432_v32, %v2436_v33 }
 0x428   :  { %9392 = vmatprep.subr.bf16.mxu1 %v13371_v60  ;;  %v2411_v60 = vld [vmem:[#allocation8 + $0x7b0] sm:$0xff] }
 0x429   :  { %v13416_v34 = vcombine.low %v2407_v31, %v2411_v60 }
 0x42a   :  { %9065 = vmatpush1.bf16.msra.mxu0 %v13368_v63  ;;  %v13417_v63 = vcombine.high %v2407_v31, %v2411_v60  ;;  %v2448_v31 = vld [vmem:[#allocation8 + $0x8d8] sm:$0xff] }
 0x42b   :  { %9393 = vmatpush1.bf16.msra.mxu1 %v13370_v5  ;;  %9066 = vmatprep.subr.bf16.mxu0 %v13377_v1  ;;  %v13419_v5 = vcombine.high %v2408_v50, %v2412_v11  ;;  %v2415_v1 = vld [vmem:[#allocation8 + $0x7d0] sm:$0xff]  ;;  %v2452_v60 = vld [vmem:[#allocation8 + $0x8f8] sm:$0xff] }
 0x42c   :  { %9394 = vmatprep.subr.bf16.mxu1 %v13379_v7  ;;  %v2419_v7 = vld [vmem:[#allocation8 + $0x7f0] sm:$0xff] }
 0x42d   :  { %v13424_v22 = vcombine.low %v2415_v1, %v2419_v7 }
 0x42e   :  { %9067 = vmatpush1.bf16.msra.mxu0 %v13376_v0  ;;  %v13425_v0 = vcombine.high %v2415_v1, %v2419_v7  ;;  %v2460_v1 = vld [vmem:[#allocation8 + $0x938] sm:$0xff]  ;;  %v13458_v7 = vcombine.low %v2448_v31, %v2452_v60 }
 0x42f   :  { %9395 = vmatpush1.bf16.msra.mxu1 %v13378_v17  ;;  %9068 = vmatprep.subr.bf16.mxu0 %v13385_v51  ;;  %v13427_v17 = vcombine.high %v2416_v10, %v2420_v13  ;;  %v2423_v51 = vld [vmem:[#allocation8 + $0x810] sm:$0xff] }
 0x430   :  { %9396 = vmatprep.subr.bf16.mxu1 %v13387_v57  ;;  %v2427_v57 = vld [vmem:[#allocation8 + $0x830] sm:$0xff] }
 0x431   :  { %v13432_v29 = vcombine.low %v2423_v51, %v2427_v57 }
 0x432   :  { %9069 = vmatpush1.bf16.msra.mxu0 %v13384_v24  ;;  %v13433_v24 = vcombine.high %v2423_v51, %v2427_v57 }
 0x433   :  { %9397 = vmatpush1.bf16.msra.mxu1 %v13386_v61  ;;  %9070 = vmatprep.subr.bf16.mxu0 %v13393_v27  ;;  %v13435_v61 = vcombine.high %v2424_v18, %v2428_v21  ;;  %v2431_v27 = vld [vmem:[#allocation8 + $0x850] sm:$0xff] }
 0x434   :  { %9398 = vmatprep.subr.bf16.mxu1 %v13395_v28  ;;  %v2435_v28 = vld [vmem:[#allocation8 + $0x870] sm:$0xff] }
 0x435   :  { %v13440_v16 = vcombine.low %v2431_v27, %v2435_v28 }
 0x436   :  { %9071 = vmatpush1.bf16.msra.mxu0 %v13392_v36  ;;  %v13441_v36 = vcombine.high %v2431_v27, %v2435_v28 }
 0x437   :  { %9399 = vmatpush1.bf16.msra.mxu1 %v13394_v48  ;;  %9072 = vmatprep.subr.bf16.mxu0 %v13401_v45  ;;  %v2439_v48 = vld [vmem:[#allocation8 + $0x890] sm:$0xff] }
 0x438   :  { %9400 = vmatprep.subr.bf16.mxu1 %v13403_v37  ;;  %v2443_v45 = vld [vmem:[#allocation8 + $0x8b0] sm:$0xff]  ;;  %v13443_v37 = vcombine.high %v2432_v32, %v2436_v33 }
 0x439   :  { %v13448_v50 = vcombine.low %v2439_v48, %v2443_v45  ;;  %v2479_v33 = vld [vmem:[#allocation8 + $0x9d0] sm:$0xff] }
 0x43a   :  { %9073 = vmatpush1.bf16.msra.mxu0 %v13400_v43  ;;  %v13449_v43 = vcombine.high %v2439_v48, %v2443_v45  ;;  %v2484_v48 = vld [vmem:[#allocation8 + $0x9f8] sm:$0xff] }
 0x43b   :  { %9401 = vmatpush1.bf16.msra.mxu1 %v13402_v12  ;;  %9074 = vmatprep.subr.bf16.mxu0 %v13409_v47  ;;  %v13451_v12 = vcombine.high %v2440_v55, %v2444_v40  ;;  %v2447_v47 = vld [vmem:[#allocation8 + $0x8d0] sm:$0xff] }
 0x43c   :  { %9402 = vmatprep.subr.bf16.mxu1 %v13411_v6  ;;  %v2451_v6 = vld [vmem:[#allocation8 + $0x8f0] sm:$0xff] }
 0x43d   :  { %v13457_v11 = vcombine.high %v2447_v47, %v2451_v6 }
 0x43e   :  { %9075 = vmatpush1.bf16.msra.mxu0 %v13408_v44  ;;  %v13459_v44 = vcombine.high %v2448_v31, %v2452_v60 }
 0x43f   :  { %9403 = vmatpush1.bf16.msra.mxu1 %v13410_v52  ;;  %9076 = vmatprep.subr.bf16.mxu0 %v13417_v63  ;;  %v2455_v52 = vld [vmem:[#allocation8 + $0x910] sm:$0xff] }
 0x440   :  { %9404 = vmatprep.subr.bf16.mxu1 %v13419_v5  ;;  %v2459_v63 = vld [vmem:[#allocation8 + $0x930] sm:$0xff]  ;;  %v2456_v5 = vld [vmem:[#allocation8 + $0x918] sm:$0xff] }
 0x441   :  { %v13465_v10 = vcombine.high %v2455_v52, %v2459_v63  ;;  %v13467_v13 = vcombine.high %v2456_v5, %v2460_v1  ;;  %v13464_v51 = vcombine.low %v2455_v52, %v2459_v63  ;;  %v13466_v57 = vcombine.low %v2456_v5, %v2460_v1 }
 0x442   :  { %9077 = vmatpush1.bf16.msra.mxu0 %v13416_v34  ;;  %v2463_v34 = vld [vmem:[#allocation8 + $0x950] sm:$0xff] }
 0x443   :  { %9405 = vmatpush1.bf16.msra.mxu1 %v13418_v14  ;;  %9078 = vmatprep.subr.bf16.mxu0 %v13425_v0  ;;  %v2467_v14 = vld [vmem:[#allocation8 + $0x970] sm:$0xff]  ;;  %v2464_v0 = vld [vmem:[#allocation8 + $0x958] sm:$0xff] }
 0x444   :  { %9406 = vmatprep.subr.bf16.mxu1 %v13427_v17  ;;  %v2468_v17 = vld [vmem:[#allocation8 + $0x978] sm:$0xff]  ;;  %v13473_v18 = vcombine.high %v2463_v34, %v2467_v14  ;;  %v13472_v27 = vcombine.low %v2463_v34, %v2467_v14 }
 0x445   :  { %v13475_v21 = vcombine.high %v2464_v0, %v2468_v17  ;;  %v13474_v28 = vcombine.low %v2464_v0, %v2468_v17 }
 0x446   :  { %9079 = vmatpush1.bf16.msra.mxu0 %v13424_v22  ;;  %v2471_v22 = vld [vmem:[#allocation8 + $0x990] sm:$0xff] }
 0x447   :  { %9407 = vmatpush1.bf16.msra.mxu1 %v13426_v23  ;;  %9089 = vmatprep.subr.bf16.mxu0 %v13433_v24  ;;  %v2475_v23 = vld [vmem:[#allocation8 + $0x9b0] sm:$0xff]  ;;  %v2472_v24 = vld [vmem:[#allocation8 + $0x998] sm:$0xff] }
 0x448   :  { %9417 = vmatprep.subr.bf16.mxu1 %v13435_v61  ;;  %v2476_v61 = vld [vmem:[#allocation8 + $0x9b8] sm:$0xff]  ;;  %v13480_v45 = vcombine.low %v2471_v22, %v2475_v23 }
 0x449   :  { %9081 = vmatmul.mubr.bf16.vlgmr.msra.gmra.mrb[20].mxu0 %v16027_v42  ;;  %v13483_v32 = vcombine.high %v2472_v24, %v2476_v61 }
 0x44a   :  { %9409 = vmatmul.mubr.bf16.vlgmr.msra.gmra.mrb[20].mxu1 %v16027_v42  ;;  %9090 = vmatpush1.bf16.msra.mxu0 %v13432_v29  ;;  %v13450_v42 = vcombine.low %v2440_v55, %v2444_v40  ;;  %v13481_v29 = vcombine.high %v2471_v22, %v2475_v23 }
 0x44b   :  { %9121 = vmatprep.mubr.bf16.mxu0 %v16029_v46  ;;  %9418 = vmatpush1.bf16.msra.mxu1 %v13434_v35  ;;  %v2483_v35 = vld [vmem:[#allocation8 + $0x9f0] sm:$0xff] }
 0x44c   :  { %9449 = vmatprep.mubr.bf16.mxu1 %v16029_v46  ;;  %9091 = vmatprep.subr.bf16.mxu0 %v13441_v36  ;;  %v13456_v46 = vcombine.low %v2447_v47, %v2451_v6  ;;  %v2480_v36 = vld [vmem:[#allocation8 + $0x9d8] sm:$0xff]  ;;  %v13489_v55 = vcombine.high %v2479_v33, %v2483_v35  ;;  %v13488_v47 = vcombine.low %v2479_v33, %v2483_v35 }
 0x44d   :  { %9419 = vmatprep.subr.bf16.mxu1 %v13443_v37  ;;  %v13482_v37 = vcombine.low %v2472_v24, %v2476_v61  ;;  %v13491_v40 = vcombine.high %v2480_v36, %v2484_v48  ;;  %v13490_v6 = vcombine.low %v2480_v36, %v2484_v48 }
 0x44e   :  { %9092 = vmatpush1.bf16.msra.mxu0 %v13440_v16  ;;  %v2487_v16 = vld [vmem:[#allocation8 + $0xa10] sm:$0xff] }
 0x44f   :  { %9420 = vmatpush1.bf16.msra.mxu1 %v13442_v41  ;;  %9093 = vmatprep.subr.bf16.mxu0 %v13449_v43  ;;  %v2491_v41 = vld [vmem:[#allocation8 + $0xa30] sm:$0xff]  ;;  %v2488_v43 = vld [vmem:[#allocation8 + $0xa18] sm:$0xff] }
 0x450   :  { %9421 = vmatprep.subr.bf16.mxu1 %v13451_v12  ;;  %v2492_v12 = vld [vmem:[#allocation8 + $0xa38] sm:$0xff]  ;;  %v13497_v31 = vcombine.high %v2487_v16, %v2491_v41  ;;  %v13496_v52 = vcombine.low %v2487_v16, %v2491_v41 }
 0x451   :  { %v13499_v60 = vcombine.high %v2488_v43, %v2492_v12  ;;  %v13498_v63 = vcombine.low %v2488_v43, %v2492_v12 }
 0x452   :  { %9094 = vmatpush1.bf16.msra.mxu0 %v13448_v50  ;;  %v2495_v50 = vld [vmem:[#allocation8 + $0xa50] sm:$0xff] }
 0x453   :  { %9422 = vmatpush1.bf16.msra.mxu1 %v13450_v42  ;;  %9095 = vmatprep.subr.bf16.mxu0 %v13457_v11  ;;  %v2499_v42 = vld [vmem:[#allocation8 + $0xa70] sm:$0xff]  ;;  %v2496_v11 = vld [vmem:[#allocation8 + $0xa58] sm:$0xff] }
 0x454   :  { %9423 = vmatprep.subr.bf16.mxu1 %v13459_v44  ;;  %v2500_v44 = vld [vmem:[#allocation8 + $0xa78] sm:$0xff]  ;;  %v13505_v5 = vcombine.high %v2495_v50, %v2499_v42  ;;  %v13504_v34 = vcombine.low %v2495_v50, %v2499_v42 }
 0x455   :  { %v13507_v1 = vcombine.high %v2496_v11, %v2500_v44  ;;  %v13506_v14 = vcombine.low %v2496_v11, %v2500_v44 }
 0x456   :  { %9096 = vmatpush1.bf16.msra.mxu0 %v13456_v46  ;;  %v2503_v46 = vld [vmem:[#allocation8 + $0xa90] sm:$0xff] }
 0x457   :  { %9424 = vmatpush1.bf16.msra.mxu1 %v13458_v7  ;;  %9097 = vmatprep.subr.bf16.mxu0 %v13465_v10  ;;  %v2507_v7 = vld [vmem:[#allocation8 + $0xab0] sm:$0xff]  ;;  %v2504_v10 = vld [vmem:[#allocation8 + $0xa98] sm:$0xff] }
 0x458   :  { %9425 = vmatprep.subr.bf16.mxu1 %v13467_v13  ;;  %v2508_v13 = vld [vmem:[#allocation8 + $0xab8] sm:$0xff]  ;;  %v13513_v0 = vcombine.high %v2503_v46, %v2507_v7  ;;  %v13512_v22 = vcombine.low %v2503_v46, %v2507_v7 }
 0x459   :  { %v13515_v17 = vcombine.high %v2504_v10, %v2508_v13  ;;  %v13514_v23 = vcombine.low %v2504_v10, %v2508_v13 }
 0x45a   :  { %9098 = vmatpush1.bf16.msra.mxu0 %v13464_v51  ;;  %v2511_v51 = vld [vmem:[#allocation8 + $0xad0] sm:$0xff] }
 0x45b   :  { %9426 = vmatpush1.bf16.msra.mxu1 %v13466_v57  ;;  %9099 = vmatprep.subr.bf16.mxu0 %v13473_v18  ;;  %v2515_v57 = vld [vmem:[#allocation8 + $0xaf0] sm:$0xff]  ;;  %v2512_v18 = vld [vmem:[#allocation8 + $0xad8] sm:$0xff] }
 0x45c   :  { %9427 = vmatprep.subr.bf16.mxu1 %v13475_v21  ;;  %v2516_v21 = vld [vmem:[#allocation8 + $0xaf8] sm:$0xff]  ;;  %v13521_v24 = vcombine.high %v2511_v51, %v2515_v57  ;;  %v13520_v33 = vcombine.low %v2511_v51, %v2515_v57 }
 0x45d   :  { %v13523_v61 = vcombine.high %v2512_v18, %v2516_v21  ;;  %v13522_v35 = vcombine.low %v2512_v18, %v2516_v21 }
 0x45e   :  { %9100 = vmatpush1.bf16.msra.mxu0 %v13472_v27  ;;  %v2519_v27 = vld [vmem:[#allocation8 + $0xb10] sm:$0xff] }
 0x45f   :  { %9428 = vmatpush1.bf16.msra.mxu1 %v13474_v28  ;;  %9101 = vmatprep.subr.bf16.mxu0 %v13481_v29  ;;  %v2523_v28 = vld [vmem:[#allocation8 + $0xb30] sm:$0xff]  ;;  %v2520_v29 = vld [vmem:[#allocation8 + $0xb18] sm:$0xff] }
 0x460   :  { %9429 = vmatprep.subr.bf16.mxu1 %v13483_v32  ;;  %v2524_v32 = vld [vmem:[#allocation8 + $0xb38] sm:$0xff]  ;;  %v13529_v36 = vcombine.high %v2519_v27, %v2523_v28  ;;  %v13528_v16 = vcombine.low %v2519_v27, %v2523_v28 }
 0x461   :  { %v13531_v48 = vcombine.high %v2520_v29, %v2524_v32  ;;  %v13530_v41 = vcombine.low %v2520_v29, %v2524_v32  ;;  %v2564_v27 = vld [vmem:[#allocation8 + $0xc78] sm:$0xff]  ;;  %v2567_v32 = vld [vmem:[#allocation8 + $0xc90] sm:$0xff] }
 0x462   :  { %9102 = vmatpush1.bf16.msra.mxu0 %v13480_v45  ;;  %v2527_v45 = vld [vmem:[#allocation8 + $0xb50] sm:$0xff] }
 0x463   :  { %9430 = vmatpush1.bf16.msra.mxu1 %v13482_v37  ;;  %9103 = vmatprep.subr.bf16.mxu0 %v13489_v55  ;;  %v2531_v37 = vld [vmem:[#allocation8 + $0xb70] sm:$0xff]  ;;  %v2528_v55 = vld [vmem:[#allocation8 + $0xb58] sm:$0xff] }
 0x464   :  { %9431 = vmatprep.subr.bf16.mxu1 %v13491_v40  ;;  %v2532_v40 = vld [vmem:[#allocation8 + $0xb78] sm:$0xff]  ;;  %v13537_v43 = vcombine.high %v2527_v45, %v2531_v37  ;;  %v13536_v50 = vcombine.low %v2527_v45, %v2531_v37 }
 0x465   :  { %v13539_v12 = vcombine.high %v2528_v55, %v2532_v40  ;;  %v13538_v42 = vcombine.low %v2528_v55, %v2532_v40 }
 0x466   :  { %9104 = vmatpush1.bf16.msra.mxu0 %v13488_v47  ;;  %v2535_v47 = vld [vmem:[#allocation8 + $0xb90] sm:$0xff] }
 0x467   :  { %9432 = vmatpush1.bf16.msra.mxu1 %v13490_v6  ;;  %9105 = vmatprep.subr.bf16.mxu0 %v13497_v31  ;;  %v2539_v6 = vld [vmem:[#allocation8 + $0xbb0] sm:$0xff]  ;;  %v2536_v31 = vld [vmem:[#allocation8 + $0xb98] sm:$0xff] }
 0x468   :  { %9433 = vmatprep.subr.bf16.mxu1 %v13499_v60  ;;  %v2540_v60 = vld [vmem:[#allocation8 + $0xbb8] sm:$0xff]  ;;  %v13545_v11 = vcombine.high %v2535_v47, %v2539_v6  ;;  %v13544_v46 = vcombine.low %v2535_v47, %v2539_v6 }
 0x469   :  { %v13547_v44 = vcombine.high %v2536_v31, %v2540_v60  ;;  %v13546_v7 = vcombine.low %v2536_v31, %v2540_v60  ;;  %v2583_v60 = vld [vmem:[#allocation8 + $0xd10] sm:$0xff] }
 0x46a   :  { %9106 = vmatpush1.bf16.msra.mxu0 %v13496_v52  ;;  %v2543_v52 = vld [vmem:[#allocation8 + $0xbd0] sm:$0xff] }
 0x46b   :  { %9434 = vmatpush1.bf16.msra.mxu1 %v13498_v63  ;;  %9107 = vmatprep.subr.bf16.mxu0 %v13505_v5  ;;  %v2547_v63 = vld [vmem:[#allocation8 + $0xbf0] sm:$0xff]  ;;  %v2544_v5 = vld [vmem:[#allocation8 + $0xbd8] sm:$0xff] }
 0x46c   :  { %9435 = vmatprep.subr.bf16.mxu1 %v13507_v1  ;;  %v2548_v1 = vld [vmem:[#allocation8 + $0xbf8] sm:$0xff]  ;;  %v13553_v10 = vcombine.high %v2543_v52, %v2547_v63  ;;  %v13552_v51 = vcombine.low %v2543_v52, %v2547_v63 }
 0x46d   :  { %v13555_v13 = vcombine.high %v2544_v5, %v2548_v1  ;;  %v13554_v57 = vcombine.low %v2544_v5, %v2548_v1  ;;  %v2591_v5 = vld [vmem:[#allocation8 + $0xd50] sm:$0xff] }
 0x46e   :  { %9108 = vmatpush1.bf16.msra.mxu0 %v13504_v34  ;;  %v2551_v34 = vld [vmem:[#allocation8 + $0xc10] sm:$0xff] }
 0x46f   :  { %9436 = vmatpush1.bf16.msra.mxu1 %v13506_v14  ;;  %9109 = vmatprep.subr.bf16.mxu0 %v13513_v0  ;;  %v2555_v14 = vld [vmem:[#allocation8 + $0xc30] sm:$0xff]  ;;  %v2552_v0 = vld [vmem:[#allocation8 + $0xc18] sm:$0xff] }
 0x470   :  { %9437 = vmatprep.subr.bf16.mxu1 %v13515_v17  ;;  %v2556_v17 = vld [vmem:[#allocation8 + $0xc38] sm:$0xff]  ;;  %v13561_v18 = vcombine.high %v2551_v34, %v2555_v14  ;;  %v2595_v1 = vld [vmem:[#allocation8 + $0xd70] sm:$0xff] }
 0x471   :  { %v13563_v21 = vcombine.high %v2552_v0, %v2556_v17  ;;  %v13562_v28 = vcombine.low %v2552_v0, %v2556_v17  ;;  %v2599_v0 = vld [vmem:[#allocation8 + $0xd90] sm:$0xff] }
 0x472   :  { %9110 = vmatpush1.bf16.msra.mxu0 %v13512_v22  ;;  %v2559_v22 = vld [vmem:[#allocation8 + $0xc50] sm:$0xff] }
 0x473   :  { %9438 = vmatpush1.bf16.msra.mxu1 %v13514_v23  ;;  %9111 = vmatprep.subr.bf16.mxu0 %v13521_v24  ;;  %v2563_v23 = vld [vmem:[#allocation8 + $0xc70] sm:$0xff]  ;;  %v13560_v24 = vcombine.low %v2551_v34, %v2555_v14  ;;  %v13601_v34 = vcombine.high %v2591_v5, %v2595_v1 }
 0x474   :  { %9439 = vmatprep.subr.bf16.mxu1 %v13523_v61  ;;  %v2560_v61 = vld [vmem:[#allocation8 + $0xc58] sm:$0xff]  ;;  %v13569_v29 = vcombine.high %v2559_v22, %v2563_v23  ;;  %v13568_v45 = vcombine.low %v2559_v22, %v2563_v23  ;;  %v2603_v17 = vld [vmem:[#allocation8 + $0xdb0] sm:$0xff] }
 0x475   :  { %v13570_v37 = vcombine.low %v2560_v61, %v2564_v27  ;;  %v13609_v22 = vcombine.high %v2599_v0, %v2603_v17 }
 0x476   :  { %9112 = vmatpush1.bf16.msra.mxu0 %v13520_v33  ;;  %v2571_v33 = vld [vmem:[#allocation8 + $0xcb0] sm:$0xff] }
 0x477   :  { %9440 = vmatpush1.bf16.msra.mxu1 %v13522_v35  ;;  %9113 = vmatprep.subr.bf16.mxu0 %v13529_v36  ;;  %v13571_v35 = vcombine.high %v2560_v61, %v2564_v27  ;;  %v2568_v36 = vld [vmem:[#allocation8 + $0xc98] sm:$0xff]  ;;  %v13577_v55 = vcombine.high %v2567_v32, %v2571_v33  ;;  %v13576_v47 = vcombine.low %v2567_v32, %v2571_v33  ;;  %v2607_v61 = vld [vmem:[#allocation8 + $0xdd0] sm:$0xff] }
 0x478   :  { %9441 = vmatprep.subr.bf16.mxu1 %v13531_v48  ;;  %v2572_v48 = vld [vmem:[#allocation8 + $0xcb8] sm:$0xff]  ;;  %v2611_v27 = vld [vmem:[#allocation8 + $0xdf0] sm:$0xff] }
 0x479   :  { %v13579_v40 = vcombine.high %v2568_v36, %v2572_v48  ;;  %v2608_v32 = vld [vmem:[#allocation8 + $0xdd8] sm:$0xff] }
 0x47a   :  { %9114 = vmatpush1.bf16.msra.mxu0 %v13528_v16  ;;  %v2575_v16 = vld [vmem:[#allocation8 + $0xcd0] sm:$0xff]  ;;  %v2612_v33 = vld [vmem:[#allocation8 + $0xdf8] sm:$0xff] }
 0x47b   :  { %9442 = vmatpush1.bf16.msra.mxu1 %v13530_v41  ;;  %9115 = vmatprep.subr.bf16.mxu0 %v13537_v43  ;;  %v2579_v41 = vld [vmem:[#allocation8 + $0xcf0] sm:$0xff]  ;;  %v2576_v43 = vld [vmem:[#allocation8 + $0xcd8] sm:$0xff] }
 0x47c   :  { %9443 = vmatprep.subr.bf16.mxu1 %v13539_v12  ;;  %v2580_v12 = vld [vmem:[#allocation8 + $0xcf8] sm:$0xff]  ;;  %v13585_v6 = vcombine.high %v2575_v16, %v2579_v41 }
 0x47d   :  { %v13587_v31 = vcombine.high %v2576_v43, %v2580_v12 }
 0x47e   :  { %9116 = vmatpush1.bf16.msra.mxu0 %v13536_v50  ;;  %v2587_v50 = vld [vmem:[#allocation8 + $0xd30] sm:$0xff] }
 0x47f   :  { %9444 = vmatpush1.bf16.msra.mxu1 %v13538_v42  ;;  %9117 = vmatprep.subr.bf16.mxu0 %v13545_v11  ;;  %v2584_v42 = vld [vmem:[#allocation8 + $0xd18] sm:$0xff]  ;;  %v13593_v52 = vcombine.high %v2583_v60, %v2587_v50 }
 0x480   :  { %9445 = vmatprep.subr.bf16.mxu1 %v13547_v44  ;;  %v2588_v11 = vld [vmem:[#allocation8 + $0xd38] sm:$0xff]  ;;  %v13586_v44 = vcombine.low %v2576_v43, %v2580_v12  ;;  %v2615_v43 = vld [vmem:[#allocation8 + $0xe10] sm:$0xff] }
 0x481   :  { %v13595_v63 = vcombine.high %v2584_v42, %v2588_v11  ;;  %v2619_v12 = vld [vmem:[#allocation8 + $0xe30] sm:$0xff] }
 0x482   :  { %9118 = vmatpush1.bf16.msra.mxu0 %v13544_v46  ;;  %v2592_v46 = vld [vmem:[#allocation8 + $0xd58] sm:$0xff] }
 0x483   :  { %9446 = vmatpush1.bf16.msra.mxu1 %v13546_v7  ;;  %9119 = vmatprep.subr.bf16.mxu0 %v13553_v10  ;;  %v2596_v7 = vld [vmem:[#allocation8 + $0xd78] sm:$0xff]  ;;  %v13592_v10 = vcombine.low %v2583_v60, %v2587_v50  ;;  %v13625_v60 = vcombine.high %v2615_v43, %v2619_v12 }
 0x484   :  { %9447 = vmatprep.subr.bf16.mxu1 %v13555_v13  ;;  %v13594_v13 = vcombine.low %v2584_v42, %v2588_v11  ;;  %v13603_v14 = vcombine.high %v2592_v46, %v2596_v7  ;;  %v2623_v42 = vld [vmem:[#allocation8 + $0xe50] sm:$0xff] }
 0x485   :  { %v2627_v11 = vld [vmem:[#allocation8 + $0xe70] sm:$0xff] }
 0x486   :  { %9120 = vmatpush1.bf16.msra.mxu0 %v13552_v51  ;;  %v2600_v51 = vld [vmem:[#allocation8 + $0xd98] sm:$0xff] }
 0x487   :  { %9448 = vmatpush1.bf16.msra.mxu1 %v13554_v57  ;;  %9130 = vmatprep.subr.bf16.mxu0 %v13561_v18  ;;  %v2604_v57 = vld [vmem:[#allocation8 + $0xdb8] sm:$0xff]  ;;  %v13600_v18 = vcombine.low %v2591_v5, %v2595_v1  ;;  %v13633_v5 = vcombine.high %v2623_v42, %v2627_v11 }
 0x488   :  { %9458 = vmatprep.subr.bf16.mxu1 %v13563_v21  ;;  %v13602_v21 = vcombine.low %v2592_v46, %v2596_v7  ;;  %v2631_v46 = vld [vmem:[#allocation8 + $0xe90] sm:$0xff] }
 0x489   :  { %9122 = vmatmul.mubr.bf16.vlgmr.msra.gmra.mrb[20].mxu0 %v16057_v49  ;;  %v2635_v7 = vld [vmem:[#allocation8 + $0xeb0] sm:$0xff] }
 0x48a   :  { %9450 = vmatmul.mubr.bf16.vlgmr.msra.gmra.mrb[20].mxu1 %v16057_v49  ;;  %9131 = vmatpush1.bf16.msra.mxu0 %v13560_v24  ;;  %v13578_v49 = vcombine.low %v2568_v36, %v2572_v48  ;;  %v13611_v24 = vcombine.high %v2600_v51, %v2604_v57  ;;  %v13608_v48 = vcombine.low %v2599_v0, %v2603_v17 }
 0x48b   :  { %9162 = vmatprep.mubr.bf16.mxu0 %v16059_v54  ;;  %9459 = vmatpush1.bf16.msra.mxu1 %v13562_v28  ;;  %v13641_v0 = vcombine.high %v2631_v46, %v2635_v7 }
 0x48c   :  { %9490 = vmatprep.mubr.bf16.mxu1 %v16059_v54  ;;  %9132 = vmatprep.subr.bf16.mxu0 %v13569_v29  ;;  %v13584_v54 = vcombine.low %v2575_v16, %v2579_v41  ;;  %v13619_v41 = vcombine.high %v2608_v32, %v2612_v33 }
 0x48d   :  { %9460 = vmatprep.subr.bf16.mxu1 %v13571_v35 }
 0x48e   :  { %9133 = vmatpush1.bf16.msra.mxu0 %v13568_v45 }
 0x48f   :  { %9461 = vmatpush1.bf16.msra.mxu1 %v13570_v37  ;;  %9134 = vmatprep.subr.bf16.mxu0 %v13577_v55  ;;  %v13610_v55 = vcombine.low %v2600_v51, %v2604_v57  ;;  %v2639_v51 = vld [vmem:[#allocation8 + $0xed0] sm:$0xff] }
 0x490   :  { %9462 = vmatprep.subr.bf16.mxu1 %v13579_v40  ;;  %v13617_v40 = vcombine.high %v2607_v61, %v2611_v27  ;;  %v2643_v57 = vld [vmem:[#allocation8 + $0xef0] sm:$0xff] }
 0x492   :  { %9135 = vmatpush1.bf16.msra.mxu0 %v13576_v47  ;;  %v2616_v47 = vld [vmem:[#allocation8 + $0xe18] sm:$0xff] }
 0x493   :  { %9463 = vmatpush1.bf16.msra.mxu1 %v13578_v49  ;;  %9136 = vmatprep.subr.bf16.mxu0 %v13585_v6  ;;  %v2620_v49 = vld [vmem:[#allocation8 + $0xe38] sm:$0xff]  ;;  %v13616_v6 = vcombine.low %v2607_v61, %v2611_v27  ;;  %v13649_v61 = vcombine.high %v2639_v51, %v2643_v57 }
 0x494   :  { %9464 = vmatprep.subr.bf16.mxu1 %v13587_v31  ;;  %v13618_v31 = vcombine.low %v2608_v32, %v2612_v33  ;;  %v13627_v50 = vcombine.high %v2616_v47, %v2620_v49  ;;  %v2647_v32 = vld [vmem:[#allocation8 + $0xf10] sm:$0xff] }
 0x495   :  { %v2651_v33 = vld [vmem:[#allocation8 + $0xf30] sm:$0xff] }
 0x496   :  { %9137 = vmatpush1.bf16.msra.mxu0 %v13584_v54  ;;  %v2624_v54 = vld [vmem:[#allocation8 + $0xe58] sm:$0xff] }
 0x497   :  { %9465 = vmatpush1.bf16.msra.mxu1 %v13586_v44  ;;  %9138 = vmatprep.subr.bf16.mxu0 %v13593_v52  ;;  %v2628_v44 = vld [vmem:[#allocation8 + $0xe78] sm:$0xff]  ;;  %v13624_v52 = vcombine.low %v2615_v43, %v2619_v12 }
 0x498   :  { %9466 = vmatprep.subr.bf16.mxu1 %v13595_v63  ;;  %v13626_v63 = vcombine.low %v2616_v47, %v2620_v49  ;;  %v13635_v1 = vcombine.high %v2624_v54, %v2628_v44  ;;  %v2656_v43 = vld [vmem:[#allocation8 + $0xf58] sm:$0xff]  ;;  %v13656_v47 = vcombine.low %v2647_v32, %v2651_v33 }
 0x499   :  { %v2660_v12 = vld [vmem:[#allocation8 + $0xf78] sm:$0xff] }
 0x49a   :  { %9139 = vmatpush1.bf16.msra.mxu0 %v13592_v10  ;;  %v2632_v10 = vld [vmem:[#allocation8 + $0xe98] sm:$0xff] }
 0x49b   :  { %9467 = vmatpush1.bf16.msra.mxu1 %v13594_v13  ;;  %9140 = vmatprep.subr.bf16.mxu0 %v13601_v34  ;;  %v2636_v13 = vld [vmem:[#allocation8 + $0xeb8] sm:$0xff]  ;;  %v13632_v34 = vcombine.low %v2623_v42, %v2627_v11 }
 0x49c   :  { %v16157_v23 = vpop.f32.mrb[16].mxu0  ;;  %9468 = vmatprep.subr.bf16.mxu1 %v13603_v14  ;;  %v13634_v14 = vcombine.low %v2624_v54, %v2628_v44  ;;  %v13643_v17 = vcombine.high %v2632_v10, %v2636_v13  ;;  %v2664_v42 = vld [vmem:[#allocation8 + $0xf98] sm:$0xff]  ;;  %v13666_v44 = vcombine.low %v2656_v43, %v2660_v12 }
 0x49d   :  { %v16159_v28 = vpop.f32.mrb[16].mxu1  ;;  %v16161_v29 = vpop.f32.mrb[17].mxu0  ;;  %v2668_v11 = vld [vmem:[#allocation8 + $0xfb8] sm:$0xff] }
 0x49e   :  { %v16163_v35 = vpop.f32.mrb[17].mxu1  ;;  %v8676_v36 = vpop.f32.mrb[18].mxu0  ;;  %9141 = vmatpush1.bf16.msra.mxu0 %v13600_v18  ;;  %v2640_v18 = vld [vmem:[#allocation8 + $0xed8] sm:$0xff] }
 0x49f   :  { %v9004_v45 = vpop.f32.mrb[18].mxu1  ;;  %9469 = vmatpush1.bf16.msra.mxu1 %v13602_v21  ;;  %v8677_v37 = vpop.f32.mrb[19].mxu0  ;;  %9142 = vmatprep.subr.bf16.mxu0 %v13609_v22  ;;  %v2644_v21 = vld [vmem:[#allocation8 + $0xef8] sm:$0xff]  ;;  %v13640_v22 = vcombine.low %v2631_v46, %v2635_v7 }
 0x4a0   :  { %v9005_v16 = vpop.f32.mrb[19].mxu1  ;;  %9470 = vmatprep.subr.bf16.mxu1 %v13611_v24  ;;  %v13642_v24 = vcombine.low %v2632_v10, %v2636_v13  ;;  %v13651_v27 = vcombine.high %v2640_v18, %v2644_v21  ;;  %v2648_v36 = vld [vmem:[#allocation8 + $0xf18] sm:$0xff]  ;;  %v13648_v45 = vcombine.low %v2639_v51, %v2643_v57  ;;  %v13650_v37 = vcombine.low %v2640_v18, %v2644_v21 }
 0x4a1   :  { %v2655_v16 = vld [vmem:[#allocation8 + $0xf50] sm:$0xff]  ;;  %v2672_v46 = vld [vmem:[#allocation8 + $0xfd8] sm:$0xff]  ;;  %v13674_v13 = vcombine.low %v2664_v42, %v2668_v11 }
 0x4a2   :  { %9143 = vmatpush1.bf16.msra.mxu0 %v13608_v48  ;;  %v2652_v48 = vld [vmem:[#allocation8 + $0xf38] sm:$0xff] }
 0x4a3   :  { %9471 = vmatpush1.bf16.msra.mxu1 %v13610_v55  ;;  %9144 = vmatprep.subr.bf16.mxu0 %v13617_v40  ;;  %v13657_v55 = vcombine.high %v2647_v32, %v2651_v33  ;;  %v13659_v40 = vcombine.high %v2648_v36, %v2652_v48  ;;  %v13658_v49 = vcombine.low %v2648_v36, %v2652_v48  ;;  %v2676_v7 = vld [vmem:[#allocation8 + $0xff8] sm:$0xff] }
 0x4a4   :  { %9472 = vmatprep.subr.bf16.mxu1 %v13619_v41  ;;  %v2659_v41 = vld [vmem:[#allocation8 + $0xf70] sm:$0xff]  ;;  %v2680_v51 = vld [vmem:[#allocation8 + $0x1018] sm:$0xff]  ;;  %v13682_v21 = vcombine.low %v2672_v46, %v2676_v7 }
 0x4a5   :  { %v13664_v54 = vcombine.low %v2655_v16, %v2659_v41  ;;  %v2684_v57 = vld [vmem:[#allocation8 + $0x1038] sm:$0xff] }
 0x4a6   :  { %9145 = vmatpush1.bf16.msra.mxu0 %v13616_v6  ;;  %v13665_v6 = vcombine.high %v2655_v16, %v2659_v41  ;;  %v2688_v33 = vld [vmem:[#allocation8 + $0x1058] sm:$0xff]  ;;  %v13690_v48 = vcombine.low %v2680_v51, %v2684_v57 }
 0x4a7   :  { %9473 = vmatpush1.bf16.msra.mxu1 %v13618_v31  ;;  %9146 = vmatprep.subr.bf16.mxu0 %v13625_v60  ;;  %v13667_v31 = vcombine.high %v2656_v43, %v2660_v12  ;;  %v2663_v60 = vld [vmem:[#allocation8 + $0xf90] sm:$0xff]  ;;  %v2692_v36 = vld [vmem:[#allocation8 + $0x1078] sm:$0xff] }
 0x4a8   :  { %9474 = vmatprep.subr.bf16.mxu1 %v13627_v50  ;;  %v2667_v50 = vld [vmem:[#allocation8 + $0xfb0] sm:$0xff]  ;;  %v2696_v16 = vld [vmem:[#allocation8 + $0x1098] sm:$0xff]  ;;  %v13698_v12 = vcombine.low %v2688_v33, %v2692_v36 }
 0x4a9   :  { %v13672_v10 = vcombine.low %v2663_v60, %v2667_v50  ;;  %v2700_v41 = vld [vmem:[#allocation8 + $0x10b8] sm:$0xff] }
 0x4aa   :  { %9147 = vmatpush1.bf16.msra.mxu0 %v13624_v52  ;;  %v13673_v52 = vcombine.high %v2663_v60, %v2667_v50  ;;  %v2704_v60 = vld [vmem:[#allocation8 + $0x10d8] sm:$0xff] }
 0x4ab   :  { %9475 = vmatpush1.bf16.msra.mxu1 %v13626_v63  ;;  %9148 = vmatprep.subr.bf16.mxu0 %v13633_v5  ;;  %v13675_v63 = vcombine.high %v2664_v42, %v2668_v11  ;;  %v2671_v5 = vld [vmem:[#allocation8 + $0xfd0] sm:$0xff]  ;;  %v2708_v50 = vld [vmem:[#allocation8 + $0x10f8] sm:$0xff] }
 0x4ac   :  { %9476 = vmatprep.subr.bf16.mxu1 %v13635_v1  ;;  %v2675_v1 = vld [vmem:[#allocation8 + $0xff0] sm:$0xff] }
 0x4ad   :  { %v13680_v18 = vcombine.low %v2671_v5, %v2675_v1 }
 0x4ae   :  { %9149 = vmatpush1.bf16.msra.mxu0 %v13632_v34  ;;  %v13681_v34 = vcombine.high %v2671_v5, %v2675_v1  ;;  %v2716_v5 = vld [vmem:[#allocation8 + $0x1138] sm:$0xff]  ;;  %v13714_v1 = vcombine.low %v2704_v60, %v2708_v50 }
 0x4af   :  { %9477 = vmatpush1.bf16.msra.mxu1 %v13634_v14  ;;  %9150 = vmatprep.subr.bf16.mxu0 %v13641_v0  ;;  %v13683_v14 = vcombine.high %v2672_v46, %v2676_v7  ;;  %v2679_v0 = vld [vmem:[#allocation8 + $0x1010] sm:$0xff] }
 0x4b0   :  { %9478 = vmatprep.subr.bf16.mxu1 %v13643_v17  ;;  %v2683_v17 = vld [vmem:[#allocation8 + $0x1030] sm:$0xff] }
 0x4b1   :  { %v13688_v32 = vcombine.low %v2679_v0, %v2683_v17 }
 0x4b2   :  { %9151 = vmatpush1.bf16.msra.mxu0 %v13640_v22  ;;  %v13689_v22 = vcombine.high %v2679_v0, %v2683_v17 }
 0x4b3   :  { %9479 = vmatpush1.bf16.msra.mxu1 %v13642_v24  ;;  %9152 = vmatprep.subr.bf16.mxu0 %v13649_v61  ;;  %v13691_v24 = vcombine.high %v2680_v51, %v2684_v57  ;;  %v2687_v61 = vld [vmem:[#allocation8 + $0x1050] sm:$0xff] }
 0x4b4   :  { %9480 = vmatprep.subr.bf16.mxu1 %v13651_v27  ;;  %v2691_v27 = vld [vmem:[#allocation8 + $0x1070] sm:$0xff] }
 0x4b5   :  { %v13696_v43 = vcombine.low %v2687_v61, %v2691_v27 }
 0x4b6   :  { %9153 = vmatpush1.bf16.msra.mxu0 %v13648_v45  ;;  %v13697_v45 = vcombine.high %v2687_v61, %v2691_v27 }
 0x4b7   :  { %9481 = vmatpush1.bf16.msra.mxu1 %v13650_v37  ;;  %9154 = vmatprep.subr.bf16.mxu0 %v13657_v55  ;;  %v2695_v37 = vld [vmem:[#allocation8 + $0x1090] sm:$0xff] }
 0x4b8   :  { %9482 = vmatprep.subr.bf16.mxu1 %v13659_v40  ;;  %v2699_v55 = vld [vmem:[#allocation8 + $0x10b0] sm:$0xff]  ;;  %v13699_v40 = vcombine.high %v2688_v33, %v2692_v36 }
 0x4b9   :  { %v13704_v42 = vcombine.low %v2695_v37, %v2699_v55  ;;  %v2735_v36 = vld [vmem:[#allocation8 + $0x11d0] sm:$0xff] }
 0x4ba   :  { %9155 = vmatpush1.bf16.msra.mxu0 %v13656_v47  ;;  %v13705_v47 = vcombine.high %v2695_v37, %v2699_v55  ;;  %v2740_v37 = vld [vmem:[#allocation8 + $0x11f8] sm:$0xff] }
 0x4bb   :  { %9483 = vmatpush1.bf16.msra.mxu1 %v13658_v49  ;;  %9156 = vmatprep.subr.bf16.mxu0 %v13665_v6  ;;  %v13707_v49 = vcombine.high %v2696_v16, %v2700_v41  ;;  %v2703_v6 = vld [vmem:[#allocation8 + $0x10d0] sm:$0xff] }
 0x4bc   :  { %9484 = vmatprep.subr.bf16.mxu1 %v13667_v31  ;;  %v2707_v31 = vld [vmem:[#allocation8 + $0x10f0] sm:$0xff] }
 0x4bd   :  { %v13713_v11 = vcombine.high %v2703_v6, %v2707_v31 }
 0x4be   :  { %9157 = vmatpush1.bf16.msra.mxu0 %v13664_v54  ;;  %v13715_v54 = vcombine.high %v2704_v60, %v2708_v50 }
 0x4bf   :  { %9485 = vmatpush1.bf16.msra.mxu1 %v13666_v44  ;;  %9158 = vmatprep.subr.bf16.mxu0 %v13673_v52  ;;  %v2711_v44 = vld [vmem:[#allocation8 + $0x1110] sm:$0xff] }
 0x4c0   :  { %9486 = vmatprep.subr.bf16.mxu1 %v13675_v63  ;;  %v2715_v52 = vld [vmem:[#allocation8 + $0x1130] sm:$0xff]  ;;  %v2712_v63 = vld [vmem:[#allocation8 + $0x1118] sm:$0xff] }
 0x4c1   :  { %v13721_v46 = vcombine.high %v2711_v44, %v2715_v52  ;;  %v13723_v7 = vcombine.high %v2712_v63, %v2716_v5  ;;  %v13720_v0 = vcombine.low %v2711_v44, %v2715_v52  ;;  %v13722_v17 = vcombine.low %v2712_v63, %v2716_v5 }
 0x4c2   :  { %9159 = vmatpush1.bf16.msra.mxu0 %v13672_v10  ;;  %v2719_v10 = vld [vmem:[#allocation8 + $0x1150] sm:$0xff] }
 0x4c3   :  { %9487 = vmatpush1.bf16.msra.mxu1 %v13674_v13  ;;  %9160 = vmatprep.subr.bf16.mxu0 %v13681_v34  ;;  %v2723_v13 = vld [vmem:[#allocation8 + $0x1170] sm:$0xff]  ;;  %v2720_v34 = vld [vmem:[#allocation8 + $0x1158] sm:$0xff] }
 0x4c4   :  { %9488 = vmatprep.subr.bf16.mxu1 %v13683_v14  ;;  %v2724_v14 = vld [vmem:[#allocation8 + $0x1178] sm:$0xff]  ;;  %v13729_v51 = vcombine.high %v2719_v10, %v2723_v13  ;;  %v13728_v61 = vcombine.low %v2719_v10, %v2723_v13 }
 0x4c5   :  { %v13731_v57 = vcombine.high %v2720_v34, %v2724_v14  ;;  %v13730_v27 = vcombine.low %v2720_v34, %v2724_v14 }
 0x4c6   :  { %9161 = vmatpush1.bf16.msra.mxu0 %v13680_v18  ;;  %v2727_v18 = vld [vmem:[#allocation8 + $0x1190] sm:$0xff] }
 0x4c7   :  { %9489 = vmatpush1.bf16.msra.mxu1 %v13682_v21  ;;  %9171 = vmatprep.subr.bf16.mxu0 %v13689_v22  ;;  %v2731_v21 = vld [vmem:[#allocation8 + $0x11b0] sm:$0xff]  ;;  %v2728_v22 = vld [vmem:[#allocation8 + $0x1198] sm:$0xff] }
 0x4c8   :  { %9499 = vmatprep.subr.bf16.mxu1 %v13691_v24  ;;  %v2732_v24 = vld [vmem:[#allocation8 + $0x11b8] sm:$0xff]  ;;  %v13736_v55 = vcombine.low %v2727_v18, %v2731_v21 }
 0x4c9   :  { %9163 = vmatmul.mubr.bf16.vlgmr.msra.gmra.mrb[20].mxu0 %v16084_v25  ;;  %v13739_v33 = vcombine.high %v2728_v22, %v2732_v24 }
 0x4ca   :  { %9491 = vmatmul.mubr.bf16.vlgmr.msra.gmra.mrb[20].mxu1 %v16084_v25  ;;  %9172 = vmatpush1.bf16.msra.mxu0 %v13688_v32  ;;  %v13706_v25 = vcombine.low %v2696_v16, %v2700_v41  ;;  %v13737_v32 = vcombine.high %v2727_v18, %v2731_v21 }
 0x4cb   :  { %9203 = vmatprep.mubr.bf16.mxu0 %v16086_v30  ;;  %9500 = vmatpush1.bf16.msra.mxu1 %v13690_v48  ;;  %v2739_v48 = vld [vmem:[#allocation8 + $0x11f0] sm:$0xff] }
 0x4cc   :  { %9531 = vmatprep.mubr.bf16.mxu1 %v16086_v30  ;;  %9173 = vmatprep.subr.bf16.mxu0 %v13697_v45  ;;  %v13712_v30 = vcombine.low %v2703_v6, %v2707_v31  ;;  %v2736_v45 = vld [vmem:[#allocation8 + $0x11d8] sm:$0xff]  ;;  %v13745_v16 = vcombine.high %v2735_v36, %v2739_v48  ;;  %v13744_v6 = vcombine.low %v2735_v36, %v2739_v48 }
 0x4cd   :  { %9501 = vmatprep.subr.bf16.mxu1 %v13699_v40  ;;  %v13738_v40 = vcombine.low %v2728_v22, %v2732_v24  ;;  %v13747_v41 = vcombine.high %v2736_v45, %v2740_v37  ;;  %v13746_v31 = vcombine.low %v2736_v45, %v2740_v37 }
 0x4ce   :  { %9174 = vmatpush1.bf16.msra.mxu0 %v13696_v43  ;;  %v2743_v43 = vld [vmem:[#allocation8 + $0x1210] sm:$0xff] }
 0x4cf   :  { %9502 = vmatpush1.bf16.msra.mxu1 %v13698_v12  ;;  %9175 = vmatprep.subr.bf16.mxu0 %v13705_v47  ;;  %v2747_v12 = vld [vmem:[#allocation8 + $0x1230] sm:$0xff]  ;;  %v2744_v47 = vld [vmem:[#allocation8 + $0x1218] sm:$0xff] }
 0x4d0   :  { %9503 = vmatprep.subr.bf16.mxu1 %v13707_v49  ;;  %v2748_v49 = vld [vmem:[#allocation8 + $0x1238] sm:$0xff]  ;;  %v13753_v60 = vcombine.high %v2743_v43, %v2747_v12  ;;  %v13752_v44 = vcombine.low %v2743_v43, %v2747_v12 }
 0x4d1   :  { %v13755_v50 = vcombine.high %v2744_v47, %v2748_v49  ;;  %v13754_v52 = vcombine.low %v2744_v47, %v2748_v49 }
 0x4d2   :  { %9176 = vmatpush1.bf16.msra.mxu0 %v13704_v42  ;;  %v2751_v42 = vld [vmem:[#allocation8 + $0x1250] sm:$0xff] }
 0x4d3   :  { %9504 = vmatpush1.bf16.msra.mxu1 %v13706_v25  ;;  %9177 = vmatprep.subr.bf16.mxu0 %v13713_v11  ;;  %v2755_v25 = vld [vmem:[#allocation8 + $0x1270] sm:$0xff]  ;;  %v2752_v11 = vld [vmem:[#allocation8 + $0x1258] sm:$0xff] }
 0x4d4   :  { %9505 = vmatprep.subr.bf16.mxu1 %v13715_v54  ;;  %v2756_v54 = vld [vmem:[#allocation8 + $0x1278] sm:$0xff]  ;;  %v13761_v63 = vcombine.high %v2751_v42, %v2755_v25  ;;  %v13760_v10 = vcombine.low %v2751_v42, %v2755_v25 }
 0x4d5   :  { %v13763_v5 = vcombine.high %v2752_v11, %v2756_v54  ;;  %v13762_v13 = vcombine.low %v2752_v11, %v2756_v54 }
 0x4d6   :  { %9178 = vmatpush1.bf16.msra.mxu0 %v13712_v30  ;;  %v2759_v30 = vld [vmem:[#allocation8 + $0x1290] sm:$0xff] }
 0x4d7   :  { %9506 = vmatpush1.bf16.msra.mxu1 %v13714_v1  ;;  %9179 = vmatprep.subr.bf16.mxu0 %v13721_v46  ;;  %v2763_v1 = vld [vmem:[#allocation8 + $0x12b0] sm:$0xff]  ;;  %v2760_v46 = vld [vmem:[#allocation8 + $0x1298] sm:$0xff] }
 0x4d8   :  { %9507 = vmatprep.subr.bf16.mxu1 %v13723_v7  ;;  %v2764_v7 = vld [vmem:[#allocation8 + $0x12b8] sm:$0xff]  ;;  %v13769_v34 = vcombine.high %v2759_v30, %v2763_v1  ;;  %v13768_v18 = vcombine.low %v2759_v30, %v2763_v1 }
 0x4d9   :  { %v13771_v14 = vcombine.high %v2760_v46, %v2764_v7  ;;  %v13770_v21 = vcombine.low %v2760_v46, %v2764_v7 }
 0x4da   :  { %9180 = vmatpush1.bf16.msra.mxu0 %v13720_v0  ;;  %v2767_v0 = vld [vmem:[#allocation8 + $0x12d0] sm:$0xff] }
 0x4db   :  { %9508 = vmatpush1.bf16.msra.mxu1 %v13722_v17  ;;  %9181 = vmatprep.subr.bf16.mxu0 %v13729_v51  ;;  %v2771_v17 = vld [vmem:[#allocation8 + $0x12f0] sm:$0xff]  ;;  %v2768_v51 = vld [vmem:[#allocation8 + $0x12d8] sm:$0xff] }
 0x4dc   :  { %9509 = vmatprep.subr.bf16.mxu1 %v13731_v57  ;;  %v2772_v57 = vld [vmem:[#allocation8 + $0x12f8] sm:$0xff]  ;;  %v13777_v22 = vcombine.high %v2767_v0, %v2771_v17  ;;  %v13776_v36 = vcombine.low %v2767_v0, %v2771_v17 }
 0x4dd   :  { %v13779_v24 = vcombine.high %v2768_v51, %v2772_v57  ;;  %v13778_v48 = vcombine.low %v2768_v51, %v2772_v57 }
 0x4de   :  { %9182 = vmatpush1.bf16.msra.mxu0 %v13728_v61  ;;  %v2775_v61 = vld [vmem:[#allocation8 + $0x1310] sm:$0xff] }
 0x4df   :  { %9510 = vmatpush1.bf16.msra.mxu1 %v13730_v27  ;;  %9183 = vmatprep.subr.bf16.mxu0 %v13737_v32  ;;  %v2779_v27 = vld [vmem:[#allocation8 + $0x1330] sm:$0xff]  ;;  %v2776_v32 = vld [vmem:[#allocation8 + $0x1318] sm:$0xff] }
 0x4e0   :  { %9511 = vmatprep.subr.bf16.mxu1 %v13739_v33  ;;  %v2780_v33 = vld [vmem:[#allocation8 + $0x1338] sm:$0xff]  ;;  %v13785_v45 = vcombine.high %v2775_v61, %v2779_v27  ;;  %v13784_v43 = vcombine.low %v2775_v61, %v2779_v27 }
 0x4e1   :  { %v13787_v37 = vcombine.high %v2776_v32, %v2780_v33  ;;  %v13786_v12 = vcombine.low %v2776_v32, %v2780_v33  ;;  %v2820_v61 = vld [vmem:[#allocation8 + $0x1478] sm:$0xff]  ;;  %v2823_v33 = vld [vmem:[#allocation8 + $0x1490] sm:$0xff] }
 0x4e2   :  { %9184 = vmatpush1.bf16.msra.mxu0 %v13736_v55  ;;  %v2783_v55 = vld [vmem:[#allocation8 + $0x1350] sm:$0xff] }
 0x4e3   :  { %9512 = vmatpush1.bf16.msra.mxu1 %v13738_v40  ;;  %9185 = vmatprep.subr.bf16.mxu0 %v13745_v16  ;;  %v2787_v40 = vld [vmem:[#allocation8 + $0x1370] sm:$0xff]  ;;  %v2784_v16 = vld [vmem:[#allocation8 + $0x1358] sm:$0xff] }
 0x4e4   :  { %9513 = vmatprep.subr.bf16.mxu1 %v13747_v41  ;;  %v2788_v41 = vld [vmem:[#allocation8 + $0x1378] sm:$0xff]  ;;  %v13793_v47 = vcombine.high %v2783_v55, %v2787_v40  ;;  %v13792_v42 = vcombine.low %v2783_v55, %v2787_v40 }
 0x4e5   :  { %v13795_v49 = vcombine.high %v2784_v16, %v2788_v41  ;;  %v13794_v25 = vcombine.low %v2784_v16, %v2788_v41 }
 0x4e6   :  { %9186 = vmatpush1.bf16.msra.mxu0 %v13744_v6  ;;  %v2791_v6 = vld [vmem:[#allocation8 + $0x1390] sm:$0xff] }
 0x4e7   :  { %9514 = vmatpush1.bf16.msra.mxu1 %v13746_v31  ;;  %9187 = vmatprep.subr.bf16.mxu0 %v13753_v60  ;;  %v2795_v31 = vld [vmem:[#allocation8 + $0x13b0] sm:$0xff]  ;;  %v2792_v60 = vld [vmem:[#allocation8 + $0x1398] sm:$0xff] }
 0x4e8   :  { %9515 = vmatprep.subr.bf16.mxu1 %v13755_v50  ;;  %v2796_v50 = vld [vmem:[#allocation8 + $0x13b8] sm:$0xff]  ;;  %v13801_v11 = vcombine.high %v2791_v6, %v2795_v31  ;;  %v13800_v30 = vcombine.low %v2791_v6, %v2795_v31 }
 0x4e9   :  { %v13803_v54 = vcombine.high %v2792_v60, %v2796_v50  ;;  %v13802_v1 = vcombine.low %v2792_v60, %v2796_v50  ;;  %v2839_v50 = vld [vmem:[#allocation8 + $0x1510] sm:$0xff] }
 0x4ea   :  { %9188 = vmatpush1.bf16.msra.mxu0 %v13752_v44  ;;  %v2799_v44 = vld [vmem:[#allocation8 + $0x13d0] sm:$0xff] }
 0x4eb   :  { %9516 = vmatpush1.bf16.msra.mxu1 %v13754_v52  ;;  %9189 = vmatprep.subr.bf16.mxu0 %v13761_v63  ;;  %v2803_v52 = vld [vmem:[#allocation8 + $0x13f0] sm:$0xff]  ;;  %v2800_v63 = vld [vmem:[#allocation8 + $0x13d8] sm:$0xff] }
 0x4ec   :  { %9517 = vmatprep.subr.bf16.mxu1 %v13763_v5  ;;  %v2804_v5 = vld [vmem:[#allocation8 + $0x13f8] sm:$0xff]  ;;  %v13809_v46 = vcombine.high %v2799_v44, %v2803_v52  ;;  %v13808_v0 = vcombine.low %v2799_v44, %v2803_v52 }
 0x4ed   :  { %v13811_v7 = vcombine.high %v2800_v63, %v2804_v5  ;;  %v13810_v17 = vcombine.low %v2800_v63, %v2804_v5  ;;  %v2847_v63 = vld [vmem:[#allocation8 + $0x1550] sm:$0xff] }
 0x4ee   :  { %9190 = vmatpush1.bf16.msra.mxu0 %v13760_v10  ;;  %v2807_v10 = vld [vmem:[#allocation8 + $0x1410] sm:$0xff] }
 0x4ef   :  { %9518 = vmatpush1.bf16.msra.mxu1 %v13762_v13  ;;  %9191 = vmatprep.subr.bf16.mxu0 %v13769_v34  ;;  %v2811_v13 = vld [vmem:[#allocation8 + $0x1430] sm:$0xff]  ;;  %v2808_v34 = vld [vmem:[#allocation8 + $0x1418] sm:$0xff] }
 0x4f0   :  { %9519 = vmatprep.subr.bf16.mxu1 %v13771_v14  ;;  %v2812_v14 = vld [vmem:[#allocation8 + $0x1438] sm:$0xff]  ;;  %v13817_v51 = vcombine.high %v2807_v10, %v2811_v13  ;;  %v2851_v5 = vld [vmem:[#allocation8 + $0x1570] sm:$0xff] }
 0x4f1   :  { %v13819_v57 = vcombine.high %v2808_v34, %v2812_v14  ;;  %v13818_v27 = vcombine.low %v2808_v34, %v2812_v14  ;;  %v2855_v34 = vld [vmem:[#allocation8 + $0x1590] sm:$0xff] }
 0x4f2   :  { %9192 = vmatpush1.bf16.msra.mxu0 %v13768_v18  ;;  %v2815_v18 = vld [vmem:[#allocation8 + $0x1450] sm:$0xff] }
 0x4f3   :  { %9520 = vmatpush1.bf16.msra.mxu1 %v13770_v21  ;;  %9193 = vmatprep.subr.bf16.mxu0 %v13777_v22  ;;  %v2819_v21 = vld [vmem:[#allocation8 + $0x1470] sm:$0xff]  ;;  %v13816_v22 = vcombine.low %v2807_v10, %v2811_v13  ;;  %v13857_v10 = vcombine.high %v2847_v63, %v2851_v5 }
 0x4f4   :  { %9521 = vmatprep.subr.bf16.mxu1 %v13779_v24  ;;  %v2816_v24 = vld [vmem:[#allocation8 + $0x1458] sm:$0xff]  ;;  %v13825_v32 = vcombine.high %v2815_v18, %v2819_v21  ;;  %v13824_v55 = vcombine.low %v2815_v18, %v2819_v21  ;;  %v2859_v14 = vld [vmem:[#allocation8 + $0x15b0] sm:$0xff] }
 0x4f5   :  { %v13826_v40 = vcombine.low %v2816_v24, %v2820_v61  ;;  %v13865_v18 = vcombine.high %v2855_v34, %v2859_v14 }
 0x4f6   :  { %9194 = vmatpush1.bf16.msra.mxu0 %v13776_v36  ;;  %v2827_v36 = vld [vmem:[#allocation8 + $0x14b0] sm:$0xff] }
 0x4f7   :  { %9522 = vmatpush1.bf16.msra.mxu1 %v13778_v48  ;;  %9195 = vmatprep.subr.bf16.mxu0 %v13785_v45  ;;  %v13827_v48 = vcombine.high %v2816_v24, %v2820_v61  ;;  %v2824_v45 = vld [vmem:[#allocation8 + $0x1498] sm:$0xff]  ;;  %v13833_v16 = vcombine.high %v2823_v33, %v2827_v36  ;;  %v13832_v6 = vcombine.low %v2823_v33, %v2827_v36  ;;  %v2867_v24 = vld [vmem:[#allocation8 + $0x15f0] sm:$0xff] }
 0x4f8   :  { %9523 = vmatprep.subr.bf16.mxu1 %v13787_v37  ;;  %v2828_v37 = vld [vmem:[#allocation8 + $0x14b8] sm:$0xff] }
 0x4f9   :  { %v13835_v41 = vcombine.high %v2824_v45, %v2828_v37  ;;  %v2864_v61 = vld [vmem:[#allocation8 + $0x15d8] sm:$0xff] }
 0x4fa   :  { %9196 = vmatpush1.bf16.msra.mxu0 %v13784_v43  ;;  %v2831_v43 = vld [vmem:[#allocation8 + $0x14d0] sm:$0xff] }
 0x4fb   :  { %9524 = vmatpush1.bf16.msra.mxu1 %v13786_v12  ;;  %9197 = vmatprep.subr.bf16.mxu0 %v13793_v47  ;;  %v2835_v12 = vld [vmem:[#allocation8 + $0x14f0] sm:$0xff]  ;;  %v2832_v47 = vld [vmem:[#allocation8 + $0x14d8] sm:$0xff] }
 0x4fc   :  { %9525 = vmatprep.subr.bf16.mxu1 %v13795_v49  ;;  %v2836_v49 = vld [vmem:[#allocation8 + $0x14f8] sm:$0xff]  ;;  %v13841_v31 = vcombine.high %v2831_v43, %v2835_v12 }
 0x4fd   :  { %v13843_v60 = vcombine.high %v2832_v47, %v2836_v49 }
 0x4fe   :  { %9198 = vmatpush1.bf16.msra.mxu0 %v13792_v42  ;;  %v2843_v42 = vld [vmem:[#allocation8 + $0x1530] sm:$0xff] }
 0x4ff   :  { %9526 = vmatpush1.bf16.msra.mxu1 %v13794_v25  ;;  %9199 = vmatprep.subr.bf16.mxu0 %v13801_v11  ;;  %v2840_v25 = vld [vmem:[#allocation8 + $0x1518] sm:$0xff]  ;;  %v13849_v44 = vcombine.high %v2839_v50, %v2843_v42 }
 0x500   :  { %9527 = vmatprep.subr.bf16.mxu1 %v13803_v54  ;;  %v2844_v11 = vld [vmem:[#allocation8 + $0x1538] sm:$0xff]  ;;  %v13842_v54 = vcombine.low %v2832_v47, %v2836_v49  ;;  %v2879_v47 = vld [vmem:[#allocation8 + $0x1650] sm:$0xff] }
 0x501   :  { %v13851_v52 = vcombine.high %v2840_v25, %v2844_v11  ;;  %v2883_v49 = vld [vmem:[#allocation8 + $0x1670] sm:$0xff] }
 0x502   :  { %9200 = vmatpush1.bf16.msra.mxu0 %v13800_v30  ;;  %v2848_v30 = vld [vmem:[#allocation8 + $0x1558] sm:$0xff] }
 0x503   :  { %9528 = vmatpush1.bf16.msra.mxu1 %v13802_v1  ;;  %9201 = vmatprep.subr.bf16.mxu0 %v13809_v46  ;;  %v2852_v1 = vld [vmem:[#allocation8 + $0x1578] sm:$0xff]  ;;  %v13848_v46 = vcombine.low %v2839_v50, %v2843_v42  ;;  %v13889_v50 = vcombine.high %v2879_v47, %v2883_v49 }
 0x504   :  { %9529 = vmatprep.subr.bf16.mxu1 %v13811_v7  ;;  %v13850_v7 = vcombine.low %v2840_v25, %v2844_v11  ;;  %v13859_v13 = vcombine.high %v2848_v30, %v2852_v1  ;;  %v2887_v25 = vld [vmem:[#allocation8 + $0x1690] sm:$0xff] }
 0x505   :  { %v2891_v11 = vld [vmem:[#allocation8 + $0x16b0] sm:$0xff] }
 0x506   :  { %9202 = vmatpush1.bf16.msra.mxu0 %v13808_v0  ;;  %v2856_v0 = vld [vmem:[#allocation8 + $0x1598] sm:$0xff] }
 0x507   :  { %9530 = vmatpush1.bf16.msra.mxu1 %v13810_v17  ;;  %9212 = vmatprep.subr.bf16.mxu0 %v13817_v51  ;;  %v2860_v17 = vld [vmem:[#allocation8 + $0x15b8] sm:$0xff]  ;;  %v13856_v51 = vcombine.low %v2847_v63, %v2851_v5  ;;  %v13897_v63 = vcombine.high %v2887_v25, %v2891_v11 }
 0x508   :  { %9540 = vmatprep.subr.bf16.mxu1 %v13819_v57  ;;  %v13858_v57 = vcombine.low %v2848_v30, %v2852_v1  ;;  %v13867_v21 = vcombine.high %v2856_v0, %v2860_v17  ;;  %v13866_v33 = vcombine.low %v2856_v0, %v2860_v17  ;;  %v2895_v30 = vld [vmem:[#allocation8 + $0x16d0] sm:$0xff] }
 0x509   :  { %9204 = vmatmul.mubr.bf16.vlgmr.msra.gmra.mrb[20].mxu0 %v16098_v9  ;;  %v2899_v1 = vld [vmem:[#allocation8 + $0x16f0] sm:$0xff] }
 0x50a   :  { %9532 = vmatmul.mubr.bf16.vlgmr.msra.gmra.mrb[20].mxu1 %v16098_v9  ;;  %9213 = vmatpush1.bf16.msra.mxu0 %v13816_v22  ;;  %v13834_v9 = vcombine.low %v2824_v45, %v2828_v37  ;;  %v2863_v22 = vld [vmem:[#allocation8 + $0x15d0] sm:$0xff] }
 0x50b   :  { %9244 = vmatprep.mubr.bf16.mxu0 %v16100_v2  ;;  %9541 = vmatpush1.bf16.msra.mxu1 %v13818_v27  ;;  %v2868_v27 = vld [vmem:[#allocation8 + $0x15f8] sm:$0xff]  ;;  %v13873_v36 = vcombine.high %v2863_v22, %v2867_v24  ;;  %v2871_v45 = vld [vmem:[#allocation8 + $0x1610] sm:$0xff] }
 0x50c   :  { %9572 = vmatprep.mubr.bf16.mxu1 %v16100_v2  ;;  %9214 = vmatprep.subr.bf16.mxu0 %v13825_v32  ;;  %v13840_v2 = vcombine.low %v2831_v43, %v2835_v12  ;;  %v13864_v32 = vcombine.low %v2855_v34, %v2859_v14  ;;  %v2875_v37 = vld [vmem:[#allocation8 + $0x1630] sm:$0xff]  ;;  %v13905_v34 = vcombine.high %v2895_v30, %v2899_v1 }
 0x50d   :  { %9542 = vmatprep.subr.bf16.mxu1 %v13827_v48  ;;  %v13875_v48 = vcombine.high %v2864_v61, %v2868_v27  ;;  %v13881_v43 = vcombine.high %v2871_v45, %v2875_v37  ;;  %v2903_v0 = vld [vmem:[#allocation8 + $0x1710] sm:$0xff] }
 0x50e   :  { %9215 = vmatpush1.bf16.msra.mxu0 %v13824_v55  ;;  %v2872_v55 = vld [vmem:[#allocation8 + $0x1618] sm:$0xff]  ;;  %v2907_v17 = vld [vmem:[#allocation8 + $0x1730] sm:$0xff] }
 0x50f   :  { %9543 = vmatpush1.bf16.msra.mxu1 %v13826_v40  ;;  %9216 = vmatprep.subr.bf16.mxu0 %v13833_v16  ;;  %v2876_v40 = vld [vmem:[#allocation8 + $0x1638] sm:$0xff]  ;;  %v13872_v16 = vcombine.low %v2863_v22, %v2867_v24  ;;  %v13913_v22 = vcombine.high %v2903_v0, %v2907_v17 }
 0x510   :  { %9544 = vmatprep.subr.bf16.mxu1 %v13835_v41  ;;  %v13874_v41 = vcombine.low %v2864_v61, %v2868_v27  ;;  %v13883_v12 = vcombine.high %v2872_v55, %v2876_v40  ;;  %v2911_v61 = vld [vmem:[#allocation8 + $0x1750] sm:$0xff] }
 0x511   :  { %v2915_v27 = vld [vmem:[#allocation8 + $0x1770] sm:$0xff] }
 0x512   :  { %9217 = vmatpush1.bf16.msra.mxu0 %v13832_v6  ;;  %v2880_v6 = vld [vmem:[#allocation8 + $0x1658] sm:$0xff] }
 0x513   :  { %9545 = vmatpush1.bf16.msra.mxu1 %v13834_v9  ;;  %9218 = vmatprep.subr.bf16.mxu0 %v13841_v31  ;;  %v2884_v9 = vld [vmem:[#allocation8 + $0x1678] sm:$0xff]  ;;  %v13880_v31 = vcombine.low %v2871_v45, %v2875_v37  ;;  %v13921_v45 = vcombine.high %v2911_v61, %v2915_v27 }
 0x514   :  { %9546 = vmatprep.subr.bf16.mxu1 %v13843_v60  ;;  %v13882_v60 = vcombine.low %v2872_v55, %v2876_v40  ;;  %v13891_v42 = vcombine.high %v2880_v6, %v2884_v9  ;;  %v2919_v55 = vld [vmem:[#allocation8 + $0x1790] sm:$0xff] }
 0x515   :  { %v2923_v40 = vld [vmem:[#allocation8 + $0x17b0] sm:$0xff] }
 0x516   :  { %9219 = vmatpush1.bf16.msra.mxu0 %v13840_v2  ;;  %v2888_v2 = vld [vmem:[#allocation8 + $0x1698] sm:$0xff] }
 0x517   :  { %9547 = vmatpush1.bf16.msra.mxu1 %v13842_v54  ;;  %9220 = vmatprep.subr.bf16.mxu0 %v13849_v44  ;;  %v2892_v54 = vld [vmem:[#allocation8 + $0x16b8] sm:$0xff]  ;;  %v13888_v44 = vcombine.low %v2879_v47, %v2883_v49  ;;  %v13929_v47 = vcombine.high %v2919_v55, %v2923_v40 }
 0x518   :  { %9548 = vmatprep.subr.bf16.mxu1 %v13851_v52  ;;  %v13890_v52 = vcombine.low %v2880_v6, %v2884_v9  ;;  %v13899_v5 = vcombine.high %v2888_v2, %v2892_v54  ;;  %v2927_v6 = vld [vmem:[#allocation8 + $0x17d0] sm:$0xff] }
 0x519   :  { %v2931_v9 = vld [vmem:[#allocation8 + $0x17f0] sm:$0xff] }
 0x51a   :  { %9221 = vmatpush1.bf16.msra.mxu0 %v13848_v46  ;;  %v2896_v46 = vld [vmem:[#allocation8 + $0x16d8] sm:$0xff] }
 0x51b   :  { %9549 = vmatpush1.bf16.msra.mxu1 %v13850_v7  ;;  %9222 = vmatprep.subr.bf16.mxu0 %v13857_v10  ;;  %v2900_v7 = vld [vmem:[#allocation8 + $0x16f8] sm:$0xff]  ;;  %v13896_v10 = vcombine.low %v2887_v25, %v2891_v11  ;;  %v13937_v25 = vcombine.high %v2927_v6, %v2931_v9 }
 0x51c   :  { %9550 = vmatprep.subr.bf16.mxu1 %v13859_v13  ;;  %v13898_v13 = vcombine.low %v2888_v2, %v2892_v54  ;;  %v13907_v14 = vcombine.high %v2896_v46, %v2900_v7  ;;  %v2935_v2 = vld [vmem:[#allocation8 + $0x1810] sm:$0xff] }
 0x51d   :  { %v2939_v54 = vld [vmem:[#allocation8 + $0x1830] sm:$0xff] }
 0x51e   :  { %9223 = vmatpush1.bf16.msra.mxu0 %v13856_v51  ;;  %v2904_v51 = vld [vmem:[#allocation8 + $0x1718] sm:$0xff] }
 0x51f   :  { %9551 = vmatpush1.bf16.msra.mxu1 %v13858_v57  ;;  %9224 = vmatprep.subr.bf16.mxu0 %v13865_v18  ;;  %v2908_v57 = vld [vmem:[#allocation8 + $0x1738] sm:$0xff]  ;;  %v13904_v18 = vcombine.low %v2895_v30, %v2899_v1  ;;  %v13945_v30 = vcombine.high %v2935_v2, %v2939_v54 }
 0x520   :  { %9552 = vmatprep.subr.bf16.mxu1 %v13867_v21  ;;  %v13906_v21 = vcombine.low %v2896_v46, %v2900_v7  ;;  %v13915_v24 = vcombine.high %v2904_v51, %v2908_v57  ;;  %v2943_v46 = vld [vmem:[#allocation8 + $0x1850] sm:$0xff] }
 0x521   :  { %v2947_v7 = vld [vmem:[#allocation8 + $0x1870] sm:$0xff] }
 0x522   :  { %9225 = vmatpush1.bf16.msra.mxu0 %v13864_v32  ;;  %v2912_v32 = vld [vmem:[#allocation8 + $0x1758] sm:$0xff] }
 0x523   :  { %9553 = vmatpush1.bf16.msra.mxu1 %v13866_v33  ;;  %9226 = vmatprep.subr.bf16.mxu0 %v13873_v36  ;;  %v2916_v33 = vld [vmem:[#allocation8 + $0x1778] sm:$0xff]  ;;  %v13912_v36 = vcombine.low %v2903_v0, %v2907_v17  ;;  %v13953_v0 = vcombine.high %v2943_v46, %v2947_v7  ;;  %v2951_v17 = vld [vmem:[#allocation8 + $0x1890] sm:$0xff] }
 0x524   :  { %9554 = vmatprep.subr.bf16.mxu1 %v13875_v48  ;;  %v13914_v48 = vcombine.low %v2904_v51, %v2908_v57  ;;  %v13923_v37 = vcombine.high %v2912_v32, %v2916_v33  ;;  %v2955_v51 = vld [vmem:[#allocation8 + $0x18b0] sm:$0xff] }
 0x526   :  { %9227 = vmatpush1.bf16.msra.mxu0 %v13872_v16  ;;  %v2920_v16 = vld [vmem:[#allocation8 + $0x1798] sm:$0xff] }
 0x527   :  { %9555 = vmatpush1.bf16.msra.mxu1 %v13874_v41  ;;  %9228 = vmatprep.subr.bf16.mxu0 %v13881_v43  ;;  %v2924_v41 = vld [vmem:[#allocation8 + $0x17b8] sm:$0xff]  ;;  %v13920_v43 = vcombine.low %v2911_v61, %v2915_v27  ;;  %v13961_v61 = vcombine.high %v2951_v17, %v2955_v51 }
 0x528   :  { %9556 = vmatprep.subr.bf16.mxu1 %v13883_v12  ;;  %v13922_v12 = vcombine.low %v2912_v32, %v2916_v33  ;;  %v13931_v49 = vcombine.high %v2920_v16, %v2924_v41  ;;  %v2959_v32 = vld [vmem:[#allocation8 + $0x18d0] sm:$0xff] }
 0x529   :  { %v2963_v33 = vld [vmem:[#allocation8 + $0x18f0] sm:$0xff] }
 0x52a   :  { %9229 = vmatpush1.bf16.msra.mxu0 %v13880_v31  ;;  %v2928_v31 = vld [vmem:[#allocation8 + $0x17d8] sm:$0xff] }
 0x52b   :  { %9557 = vmatpush1.bf16.msra.mxu1 %v13882_v60  ;;  %9230 = vmatprep.subr.bf16.mxu0 %v13889_v50  ;;  %v2932_v60 = vld [vmem:[#allocation8 + $0x17f8] sm:$0xff]  ;;  %v13928_v50 = vcombine.low %v2919_v55, %v2923_v40  ;;  %v2967_v40 = vld [vmem:[#allocation8 + $0x1910] sm:$0xff] }
 0x52c   :  { %9558 = vmatprep.subr.bf16.mxu1 %v13891_v42  ;;  %v13930_v42 = vcombine.low %v2920_v16, %v2924_v41  ;;  %v13939_v11 = vcombine.high %v2928_v31, %v2932_v60  ;;  %v2971_v16 = vld [vmem:[#allocation8 + $0x1930] sm:$0xff]  ;;  %v2968_v41 = vld [vmem:[#allocation8 + $0x1918] sm:$0xff] }
 0x52e   :  { %9231 = vmatpush1.bf16.msra.mxu0 %v13888_v44  ;;  %v2936_v44 = vld [vmem:[#allocation8 + $0x1818] sm:$0xff] }
 0x52f   :  { %9559 = vmatpush1.bf16.msra.mxu1 %v13890_v52  ;;  %9232 = vmatprep.subr.bf16.mxu0 %v13897_v63  ;;  %v2940_v52 = vld [vmem:[#allocation8 + $0x1838] sm:$0xff]  ;;  %v13936_v63 = vcombine.low %v2927_v6, %v2931_v9  ;;  %v2975_v6 = vld [vmem:[#allocation8 + $0x1950] sm:$0xff] }
 0x530   :  { %9560 = vmatprep.subr.bf16.mxu1 %v13899_v5  ;;  %v13938_v5 = vcombine.low %v2928_v31, %v2932_v60  ;;  %v13947_v1 = vcombine.high %v2936_v44, %v2940_v52  ;;  %v2979_v9 = vld [vmem:[#allocation8 + $0x1970] sm:$0xff]  ;;  %v2976_v31 = vld [vmem:[#allocation8 + $0x1958] sm:$0xff] }
 0x531   :  { %v2980_v60 = vld [vmem:[#allocation8 + $0x1978] sm:$0xff] }
 0x532   :  { %9233 = vmatpush1.bf16.msra.mxu0 %v13896_v10  ;;  %v13944_v10 = vcombine.low %v2935_v2, %v2939_v54  ;;  %v2983_v2 = vld [vmem:[#allocation8 + $0x1990] sm:$0xff] }
 0x533   :  { %9561 = vmatpush1.bf16.msra.mxu1 %v13898_v13  ;;  %9234 = vmatprep.subr.bf16.mxu0 %v13905_v34  ;;  %v2944_v13 = vld [vmem:[#allocation8 + $0x1858] sm:$0xff]  ;;  %v2987_v54 = vld [vmem:[#allocation8 + $0x19b0] sm:$0xff] }
 0x534   :  { %9562 = vmatprep.subr.bf16.mxu1 %v13907_v14  ;;  %v2948_v34 = vld [vmem:[#allocation8 + $0x1878] sm:$0xff]  ;;  %v13946_v14 = vcombine.low %v2936_v44, %v2940_v52 }
 0x535   :  { %v13955_v57 = vcombine.high %v2944_v13, %v2948_v34  ;;  %v2984_v44 = vld [vmem:[#allocation8 + $0x1998] sm:$0xff] }
 0x536   :  { %9235 = vmatpush1.bf16.msra.mxu0 %v13904_v18  ;;  %v2952_v18 = vld [vmem:[#allocation8 + $0x1898] sm:$0xff] }
 0x537   :  { %9563 = vmatpush1.bf16.msra.mxu1 %v13906_v21  ;;  %9236 = vmatprep.subr.bf16.mxu0 %v13913_v22  ;;  %v2956_v21 = vld [vmem:[#allocation8 + $0x18b8] sm:$0xff]  ;;  %v13952_v22 = vcombine.low %v2943_v46, %v2947_v7  ;;  %v2991_v46 = vld [vmem:[#allocation8 + $0x19d0] sm:$0xff] }
 0x538   :  { %9564 = vmatprep.subr.bf16.mxu1 %v13915_v24  ;;  %v13954_v24 = vcombine.low %v2944_v13, %v2948_v34  ;;  %v13963_v27 = vcombine.high %v2952_v18, %v2956_v21  ;;  %v2988_v52 = vld [vmem:[#allocation8 + $0x19b8] sm:$0xff]  ;;  %v2995_v7 = vld [vmem:[#allocation8 + $0x19f0] sm:$0xff]  ;;  %v13992_v34 = vcombine.low %v2983_v2, %v2987_v54 }
 0x539   :  { %v2996_v13 = vld [vmem:[#allocation8 + $0x19f8] sm:$0xff] }
 0x53a   :  { %9237 = vmatpush1.bf16.msra.mxu0 %v13912_v36  ;;  %v2960_v36 = vld [vmem:[#allocation8 + $0x18d8] sm:$0xff] }
 0x53b   :  { %9565 = vmatpush1.bf16.msra.mxu1 %v13914_v48  ;;  %9238 = vmatprep.subr.bf16.mxu0 %v13921_v45  ;;  %v2964_v48 = vld [vmem:[#allocation8 + $0x18f8] sm:$0xff]  ;;  %v13960_v45 = vcombine.low %v2951_v17, %v2955_v51  ;;  %v2999_v51 = vld [vmem:[#allocation8 + $0x1a10] sm:$0xff] }
 0x53c   :  { %9566 = vmatprep.subr.bf16.mxu1 %v13923_v37  ;;  %v13969_v37 = vcombine.high %v2959_v32, %v2963_v33  ;;  %v13971_v55 = vcombine.high %v2960_v36, %v2964_v48 }
 0x53e   :  { %9239 = vmatpush1.bf16.msra.mxu0 %v13920_v43  ;;  %v2972_v43 = vld [vmem:[#allocation8 + $0x1938] sm:$0xff] }
 0x53f   :  { %9567 = vmatpush1.bf16.msra.mxu1 %v13922_v12  ;;  %9240 = vmatprep.subr.bf16.mxu0 %v13929_v47  ;;  %v13970_v12 = vcombine.low %v2960_v36, %v2964_v48  ;;  %v13977_v47 = vcombine.high %v2967_v40, %v2971_v16  ;;  %v3008_v36 = vld [vmem:[#allocation8 + $0x1a58] sm:$0xff] }
 0x540   :  { %9568 = vmatprep.subr.bf16.mxu1 %v13931_v49  ;;  %v13979_v49 = vcombine.high %v2968_v41, %v2972_v43  ;;  %v3012_v48 = vld [vmem:[#allocation8 + $0x1a78] sm:$0xff] }
 0x542   :  { %9241 = vmatpush1.bf16.msra.mxu0 %v13928_v50  ;;  %v13976_v50 = vcombine.low %v2967_v40, %v2971_v16  ;;  %v3015_v40 = vld [vmem:[#allocation8 + $0x1a90] sm:$0xff] }
 0x543   :  { %9569 = vmatpush1.bf16.msra.mxu1 %v13930_v42  ;;  %9242 = vmatprep.subr.bf16.mxu0 %v13937_v25  ;;  %v13978_v42 = vcombine.low %v2968_v41, %v2972_v43  ;;  %v13985_v25 = vcombine.high %v2975_v6, %v2979_v9  ;;  %v3019_v16 = vld [vmem:[#allocation8 + $0x1ab0] sm:$0xff]  ;;  %v3016_v41 = vld [vmem:[#allocation8 + $0x1a98] sm:$0xff] }
 0x544   :  { %9570 = vmatprep.subr.bf16.mxu1 %v13939_v11  ;;  %v13987_v11 = vcombine.high %v2976_v31, %v2980_v60  ;;  %v3020_v43 = vld [vmem:[#allocation8 + $0x1ab8] sm:$0xff] }
 0x546   :  { %9243 = vmatpush1.bf16.msra.mxu0 %v13936_v63  ;;  %v13984_v63 = vcombine.low %v2975_v6, %v2979_v9  ;;  %v3023_v6 = vld [vmem:[#allocation8 + $0x1ad0] sm:$0xff] }
 0x547   :  { %9571 = vmatpush1.bf16.msra.mxu1 %v13938_v5  ;;  %9253 = vmatprep.subr.bf16.mxu0 %v13945_v30  ;;  %v13986_v5 = vcombine.low %v2976_v31, %v2980_v60  ;;  %v13993_v30 = vcombine.high %v2983_v2, %v2987_v54  ;;  %v3027_v9 = vld [vmem:[#allocation8 + $0x1af0] sm:$0xff]  ;;  %v3024_v31 = vld [vmem:[#allocation8 + $0x1ad8] sm:$0xff] }
 0x548   :  { %9581 = vmatprep.subr.bf16.mxu1 %v13947_v1  ;;  %v13995_v1 = vcombine.high %v2984_v44, %v2988_v52  ;;  %v3028_v60 = vld [vmem:[#allocation8 + $0x1af8] sm:$0xff]  ;;  %v3031_v2 = vld [vmem:[#allocation8 + $0x1b10] sm:$0xff] }
 0x549   :  { %9245 = vmatmul.mubr.bf16.vlgmr.msra.gmra.mrb[20].mxu0 %v16112_v38  ;;  %v3035_v54 = vld [vmem:[#allocation8 + $0x1b30] sm:$0xff] }
 0x54a   :  { %9573 = vmatmul.mubr.bf16.vlgmr.msra.gmra.mrb[20].mxu1 %v16112_v38  ;;  %9254 = vmatpush1.bf16.msra.mxu0 %v13944_v10  ;;  %v13962_v38 = vcombine.low %v2952_v18, %v2956_v21  ;;  %v2992_v10 = vld [vmem:[#allocation8 + $0x19d8] sm:$0xff] }
 0x54b   :  { %9285 = vmatprep.mubr.bf16.mxu0 %v16114_v59  ;;  %9582 = vmatpush1.bf16.msra.mxu1 %v13946_v14  ;;  %v13994_v14 = vcombine.low %v2984_v44, %v2988_v52  ;;  %v14003_v17 = vcombine.high %v2992_v10, %v2996_v13  ;;  %v3000_v18 = vld [vmem:[#allocation8 + $0x1a18] sm:$0xff] }
 0x54c   :  { %9613 = vmatprep.mubr.bf16.mxu1 %v16114_v59  ;;  %9255 = vmatprep.subr.bf16.mxu0 %v13953_v0  ;;  %v13968_v59 = vcombine.low %v2959_v32, %v2963_v33  ;;  %v14001_v0 = vcombine.high %v2991_v46, %v2995_v7  ;;  %v3004_v21 = vld [vmem:[#allocation8 + $0x1a38] sm:$0xff]  ;;  %v3007_v32 = vld [vmem:[#allocation8 + $0x1a50] sm:$0xff] }
 0x54d   :  { %9583 = vmatprep.subr.bf16.mxu1 %v13955_v57  ;;  %v3003_v57 = vld [vmem:[#allocation8 + $0x1a30] sm:$0xff]  ;;  %v3032_v44 = vld [vmem:[#allocation8 + $0x1b18] sm:$0xff] }
 0x54e   :  { %9256 = vmatpush1.bf16.msra.mxu0 %v13952_v22  ;;  %v14000_v22 = vcombine.low %v2991_v46, %v2995_v7  ;;  %v3011_v33 = vld [vmem:[#allocation8 + $0x1a70] sm:$0xff]  ;;  %v3036_v52 = vld [vmem:[#allocation8 + $0x1b38] sm:$0xff] }
 0x54f   :  { %9584 = vmatpush1.bf16.msra.mxu1 %v13954_v24  ;;  %9257 = vmatprep.subr.bf16.mxu0 %v13961_v61  ;;  %v14002_v24 = vcombine.low %v2992_v10, %v2996_v13  ;;  %v14009_v61 = vcombine.high %v2999_v51, %v3003_v57  ;;  %v3039_v46 = vld [vmem:[#allocation8 + $0x1b50] sm:$0xff]  ;;  %v3040_v10 = vld [vmem:[#allocation8 + $0x1b58] sm:$0xff] }
 0x550   :  { %9585 = vmatprep.subr.bf16.mxu1 %v13963_v27  ;;  %v14011_v27 = vcombine.high %v3000_v18, %v3004_v21  ;;  %v3043_v7 = vld [vmem:[#allocation8 + $0x1b70] sm:$0xff]  ;;  %v3044_v13 = vld [vmem:[#allocation8 + $0x1b78] sm:$0xff] }
 0x552   :  { %9258 = vmatpush1.bf16.msra.mxu0 %v13960_v45  ;;  %v14008_v45 = vcombine.low %v2999_v51, %v3003_v57  ;;  %v3047_v51 = vld [vmem:[#allocation8 + $0x1b90] sm:$0xff] }
 0x553   :  { %9586 = vmatpush1.bf16.msra.mxu1 %v13962_v38  ;;  %9259 = vmatprep.subr.bf16.mxu0 %v13969_v37  ;;  %v14010_v38 = vcombine.low %v3000_v18, %v3004_v21  ;;  %v14017_v37 = vcombine.high %v3007_v32, %v3011_v33  ;;  %v3051_v57 = vld [vmem:[#allocation8 + $0x1bb0] sm:$0xff]  ;;  %v3048_v18 = vld [vmem:[#allocation8 + $0x1b98] sm:$0xff] }
 0x554   :  { %9587 = vmatprep.subr.bf16.mxu1 %v13971_v55  ;;  %v14019_v55 = vcombine.high %v3008_v36, %v3012_v48  ;;  %v3052_v21 = vld [vmem:[#allocation8 + $0x1bb8] sm:$0xff] }
 0x556   :  { %9260 = vmatpush1.bf16.msra.mxu0 %v13968_v59  ;;  %v14016_v59 = vcombine.low %v3007_v32, %v3011_v33  ;;  %v3055_v32 = vld [vmem:[#allocation8 + $0x1bd0] sm:$0xff] }
 0x557   :  { %9588 = vmatpush1.bf16.msra.mxu1 %v13970_v12  ;;  %9261 = vmatprep.subr.bf16.mxu0 %v13977_v47  ;;  %v14018_v12 = vcombine.low %v3008_v36, %v3012_v48  ;;  %v14025_v47 = vcombine.high %v3015_v40, %v3019_v16  ;;  %v3059_v33 = vld [vmem:[#allocation8 + $0x1bf0] sm:$0xff]  ;;  %v3056_v36 = vld [vmem:[#allocation8 + $0x1bd8] sm:$0xff] }
 0x558   :  { %9589 = vmatprep.subr.bf16.mxu1 %v13979_v49  ;;  %v14027_v49 = vcombine.high %v3016_v41, %v3020_v43  ;;  %v3060_v48 = vld [vmem:[#allocation8 + $0x1bf8] sm:$0xff] }
 0x55a   :  { %9262 = vmatpush1.bf16.msra.mxu0 %v13976_v50  ;;  %v14024_v50 = vcombine.low %v3015_v40, %v3019_v16  ;;  %v3063_v40 = vld [vmem:[#allocation8 + $0x1c10] sm:$0xff] }
 0x55b   :  { %9590 = vmatpush1.bf16.msra.mxu1 %v13978_v42  ;;  %9263 = vmatprep.subr.bf16.mxu0 %v13985_v25  ;;  %v14026_v42 = vcombine.low %v3016_v41, %v3020_v43  ;;  %v14033_v25 = vcombine.high %v3023_v6, %v3027_v9  ;;  %v3067_v16 = vld [vmem:[#allocation8 + $0x1c30] sm:$0xff]  ;;  %v3064_v41 = vld [vmem:[#allocation8 + $0x1c18] sm:$0xff] }
 0x55c   :  { %9591 = vmatprep.subr.bf16.mxu1 %v13987_v11  ;;  %v14035_v11 = vcombine.high %v3024_v31, %v3028_v60  ;;  %v3068_v43 = vld [vmem:[#allocation8 + $0x1c38] sm:$0xff] }
 0x55e   :  { %9264 = vmatpush1.bf16.msra.mxu0 %v13984_v63  ;;  %v14032_v63 = vcombine.low %v3023_v6, %v3027_v9  ;;  %v3071_v6 = vld [vmem:[#allocation8 + $0x1c50] sm:$0xff] }
 0x55f   :  { %9592 = vmatpush1.bf16.msra.mxu1 %v13986_v5  ;;  %9265 = vmatprep.subr.bf16.mxu0 %v13993_v30  ;;  %v14034_v5 = vcombine.low %v3024_v31, %v3028_v60  ;;  %v14041_v30 = vcombine.high %v3031_v2, %v3035_v54  ;;  %v3075_v9 = vld [vmem:[#allocation8 + $0x1c70] sm:$0xff]  ;;  %v14072_v31 = vcombine.low %v3063_v40, %v3067_v16  ;;  %v3072_v60 = vld [vmem:[#allocation8 + $0x1c58] sm:$0xff] }
 0x560   :  { %9593 = vmatprep.subr.bf16.mxu1 %v13995_v1  ;;  %v14043_v1 = vcombine.high %v3032_v44, %v3036_v52 }
 0x562   :  { %9266 = vmatpush1.bf16.msra.mxu0 %v13992_v34  ;;  %v14040_v34 = vcombine.low %v3031_v2, %v3035_v54  ;;  %v3083_v2 = vld [vmem:[#allocation8 + $0x1cb0] sm:$0xff] }
 0x563   :  { %9594 = vmatpush1.bf16.msra.mxu1 %v13994_v14  ;;  %9267 = vmatprep.subr.bf16.mxu0 %v14001_v0  ;;  %v14042_v14 = vcombine.low %v3032_v44, %v3036_v52  ;;  %v14049_v0 = vcombine.high %v3039_v46, %v3043_v7  ;;  %v3080_v44 = vld [vmem:[#allocation8 + $0x1c98] sm:$0xff] }
 0x564   :  { %9595 = vmatprep.subr.bf16.mxu1 %v14003_v17  ;;  %v14051_v17 = vcombine.high %v3040_v10, %v3044_v13  ;;  %v3084_v52 = vld [vmem:[#allocation8 + $0x1cb8] sm:$0xff] }
 0x566   :  { %9268 = vmatpush1.bf16.msra.mxu0 %v14000_v22  ;;  %v14048_v22 = vcombine.low %v3039_v46, %v3043_v7  ;;  %v3087_v46 = vld [vmem:[#allocation8 + $0x1cd0] sm:$0xff] }
 0x567   :  { %9596 = vmatpush1.bf16.msra.mxu1 %v14002_v24  ;;  %9269 = vmatprep.subr.bf16.mxu0 %v14009_v61  ;;  %v14050_v24 = vcombine.low %v3040_v10, %v3044_v13  ;;  %v14057_v61 = vcombine.high %v3047_v51, %v3051_v57  ;;  %v3091_v7 = vld [vmem:[#allocation8 + $0x1cf0] sm:$0xff]  ;;  %v3088_v10 = vld [vmem:[#allocation8 + $0x1cd8] sm:$0xff] }
 0x568   :  { %9597 = vmatprep.subr.bf16.mxu1 %v14011_v27  ;;  %v14059_v27 = vcombine.high %v3048_v18, %v3052_v21  ;;  %v3092_v13 = vld [vmem:[#allocation8 + $0x1cf8] sm:$0xff] }
 0x56a   :  { %9270 = vmatpush1.bf16.msra.mxu0 %v14008_v45  ;;  %v14056_v45 = vcombine.low %v3047_v51, %v3051_v57  ;;  %v3099_v51 = vld [vmem:[#allocation8 + $0x1d30] sm:$0xff]  ;;  %v3096_v57 = vld [vmem:[#allocation8 + $0x1d18] sm:$0xff] }
 0x56b   :  { %9598 = vmatpush1.bf16.msra.mxu1 %v14010_v38  ;;  %9271 = vmatprep.subr.bf16.mxu0 %v14017_v37  ;;  %v14058_v38 = vcombine.low %v3048_v18, %v3052_v21  ;;  %v14065_v37 = vcombine.high %v3055_v32, %v3059_v33  ;;  %v3100_v18 = vld [vmem:[#allocation8 + $0x1d38] sm:$0xff]  ;;  %v14098_v21 = vcombine.low %v3088_v10, %v3092_v13 }
 0x56c   :  { %9599 = vmatprep.subr.bf16.mxu1 %v14019_v55  ;;  %v14067_v55 = vcombine.high %v3056_v36, %v3060_v48 }
 0x56e   :  { %9272 = vmatpush1.bf16.msra.mxu0 %v14016_v59  ;;  %v14064_v59 = vcombine.low %v3055_v32, %v3059_v33  ;;  %v3104_v32 = vld [vmem:[#allocation8 + $0x1d58] sm:$0xff] }
 0x56f   :  { %9600 = vmatpush1.bf16.msra.mxu1 %v14018_v12  ;;  %9273 = vmatprep.subr.bf16.mxu0 %v14025_v47  ;;  %v14066_v12 = vcombine.low %v3056_v36, %v3060_v48  ;;  %v14073_v47 = vcombine.high %v3063_v40, %v3067_v16  ;;  %v3108_v33 = vld [vmem:[#allocation8 + $0x1d78] sm:$0xff]  ;;  %v14106_v48 = vcombine.low %v3096_v57, %v3100_v18 }
 0x570   :  { %9601 = vmatprep.subr.bf16.mxu1 %v14027_v49  ;;  %v14075_v49 = vcombine.high %v3064_v41, %v3068_v43  ;;  %v3112_v40 = vld [vmem:[#allocation8 + $0x1d98] sm:$0xff] }
 0x571   :  { %v3116_v16 = vld [vmem:[#allocation8 + $0x1db8] sm:$0xff] }
 0x572   :  { %9274 = vmatpush1.bf16.msra.mxu0 %v14024_v50  ;;  %v3076_v50 = vld [vmem:[#allocation8 + $0x1c78] sm:$0xff] }
 0x573   :  { %9602 = vmatpush1.bf16.msra.mxu1 %v14026_v42  ;;  %9275 = vmatprep.subr.bf16.mxu0 %v14033_v25  ;;  %v14074_v42 = vcombine.low %v3064_v41, %v3068_v43  ;;  %v14081_v25 = vcombine.high %v3071_v6, %v3075_v9  ;;  %v14083_v54 = vcombine.high %v3072_v60, %v3076_v50 }
 0x574   :  { %9603 = vmatprep.subr.bf16.mxu1 %v14035_v11  ;;  %v3079_v11 = vld [vmem:[#allocation8 + $0x1c90] sm:$0xff]  ;;  %v14114_v43 = vcombine.low %v3104_v32, %v3108_v33 }
 0x576   :  { %9276 = vmatpush1.bf16.msra.mxu0 %v14032_v63  ;;  %v14080_v63 = vcombine.low %v3071_v6, %v3075_v9  ;;  %v3120_v6 = vld [vmem:[#allocation8 + $0x1dd8] sm:$0xff] }
 0x577   :  { %9604 = vmatpush1.bf16.msra.mxu1 %v14034_v5  ;;  %9277 = vmatprep.subr.bf16.mxu0 %v14041_v30  ;;  %v14082_v5 = vcombine.low %v3072_v60, %v3076_v50  ;;  %v14089_v30 = vcombine.high %v3079_v11, %v3083_v2  ;;  %v3124_v9 = vld [vmem:[#allocation8 + $0x1df8] sm:$0xff]  ;;  %v14122_v60 = vcombine.low %v3112_v40, %v3116_v16 }
 0x578   :  { %9605 = vmatprep.subr.bf16.mxu1 %v14043_v1  ;;  %v14091_v1 = vcombine.high %v3080_v44, %v3084_v52 }
 0x57a   :  { %9278 = vmatpush1.bf16.msra.mxu0 %v14040_v34  ;;  %v14088_v34 = vcombine.low %v3079_v11, %v3083_v2  ;;  %v3131_v11 = vld [vmem:[#allocation8 + $0x1e30] sm:$0xff]  ;;  %v3128_v2 = vld [vmem:[#allocation8 + $0x1e18] sm:$0xff] }
 0x57b   :  { %9606 = vmatpush1.bf16.msra.mxu1 %v14042_v14  ;;  %9279 = vmatprep.subr.bf16.mxu0 %v14049_v0  ;;  %v14097_v14 = vcombine.high %v3087_v46, %v3091_v7  ;;  %v14099_v0 = vcombine.high %v3088_v10, %v3092_v13 }
 0x57c   :  { %9607 = vmatprep.subr.bf16.mxu1 %v14051_v17  ;;  %v3095_v17 = vld [vmem:[#allocation8 + $0x1d10] sm:$0xff] }
 0x57d   :  { %v14104_v36 = vcombine.low %v3095_v17, %v3099_v51 }
 0x57e   :  { %9280 = vmatpush1.bf16.msra.mxu0 %v14048_v22  ;;  %v14105_v22 = vcombine.high %v3095_v17, %v3099_v51  ;;  %v3144_v17 = vld [vmem:[#allocation8 + $0x1e98] sm:$0xff] }
 0x57f   :  { %9608 = vmatpush1.bf16.msra.mxu1 %v14050_v24  ;;  %9281 = vmatprep.subr.bf16.mxu0 %v14057_v61  ;;  %v14107_v24 = vcombine.high %v3096_v57, %v3100_v18  ;;  %v3103_v61 = vld [vmem:[#allocation8 + $0x1d50] sm:$0xff]  ;;  %v3148_v51 = vld [vmem:[#allocation8 + $0x1eb8] sm:$0xff] }
 0x580   :  { %9609 = vmatprep.subr.bf16.mxu1 %v14059_v27  ;;  %v3107_v27 = vld [vmem:[#allocation8 + $0x1d70] sm:$0xff] }
 0x581   :  { %v14112_v41 = vcombine.low %v3103_v61, %v3107_v27 }
 0x582   :  { %9282 = vmatpush1.bf16.msra.mxu0 %v14056_v45  ;;  %v14113_v45 = vcombine.high %v3103_v61, %v3107_v27  ;;  %v3152_v61 = vld [vmem:[#allocation8 + $0x1ed8] sm:$0xff] }
 0x583   :  { %9610 = vmatpush1.bf16.msra.mxu1 %v14058_v38  ;;  %9283 = vmatprep.subr.bf16.mxu0 %v14065_v37  ;;  %v14115_v38 = vcombine.high %v3104_v32, %v3108_v33  ;;  %v3111_v37 = vld [vmem:[#allocation8 + $0x1d90] sm:$0xff]  ;;  %v3156_v27 = vld [vmem:[#allocation8 + $0x1ef8] sm:$0xff]  ;;  %v14154_v33 = vcombine.low %v3144_v17, %v3148_v51 }
 0x584   :  { %9611 = vmatprep.subr.bf16.mxu1 %v14067_v55  ;;  %v3115_v55 = vld [vmem:[#allocation8 + $0x1db0] sm:$0xff] }
 0x586   :  { %9284 = vmatpush1.bf16.msra.mxu0 %v14064_v59  ;;  %v14121_v59 = vcombine.high %v3111_v37, %v3115_v55 }
 0x587   :  { %9612 = vmatpush1.bf16.msra.mxu1 %v14066_v12  ;;  %9294 = vmatprep.subr.bf16.mxu0 %v14073_v47  ;;  %v14123_v12 = vcombine.high %v3112_v40, %v3116_v16  ;;  %v3119_v47 = vld [vmem:[#allocation8 + $0x1dd0] sm:$0xff]  ;;  %v14162_v16 = vcombine.low %v3152_v61, %v3156_v27 }
 0x588   :  { %9622 = vmatprep.subr.bf16.mxu1 %v14075_v49  ;;  %v3123_v49 = vld [vmem:[#allocation8 + $0x1df0] sm:$0xff] }
 0x589   :  { %9286 = vmatmul.mubr.bf16.vlgmr.msra.gmra.mrb[20].mxu0 %v16128_v8  ;;  %v14129_v50 = vcombine.high %v3119_v47, %v3123_v49 }
 0x58a   :  { %9614 = vmatmul.mubr.bf16.vlgmr.msra.gmra.mrb[20].mxu1 %v16128_v8  ;;  %9295 = vmatpush1.bf16.msra.mxu0 %v14072_v31  ;;  %v14090_v8 = vcombine.low %v3080_v44, %v3084_v52  ;;  %v14120_v31 = vcombine.low %v3111_v37, %v3115_v55  ;;  %v14128_v44 = vcombine.low %v3119_v47, %v3123_v49  ;;  %v3160_v37 = vld [vmem:[#allocation8 + $0x1f18] sm:$0xff] }
 0x58b   :  { %9326 = vmatprep.mubr.bf16.mxu0 %v16130_v62  ;;  %9623 = vmatpush1.bf16.msra.mxu1 %v14074_v42  ;;  %v14131_v42 = vcombine.high %v3120_v6, %v3124_v9  ;;  %v14130_v52 = vcombine.low %v3120_v6, %v3124_v9  ;;  %v3164_v55 = vld [vmem:[#allocation8 + $0x1f38] sm:$0xff] }
 0x58c   :  { %9654 = vmatprep.mubr.bf16.mxu1 %v16130_v62  ;;  %9296 = vmatprep.subr.bf16.mxu0 %v14081_v25  ;;  %v14096_v62 = vcombine.low %v3087_v46, %v3091_v7  ;;  %v3127_v25 = vld [vmem:[#allocation8 + $0x1e10] sm:$0xff]  ;;  %v3136_v46 = vld [vmem:[#allocation8 + $0x1e58] sm:$0xff]  ;;  %v14170_v9 = vcombine.low %v3160_v37, %v3164_v55 }
 0x58d   :  { %9624 = vmatprep.subr.bf16.mxu1 %v14083_v54  ;;  %v3132_v54 = vld [vmem:[#allocation8 + $0x1e38] sm:$0xff]  ;;  %v14136_v10 = vcombine.low %v3127_v25, %v3131_v11 }
 0x58e   :  { %9297 = vmatpush1.bf16.msra.mxu0 %v14080_v63  ;;  %v14137_v63 = vcombine.high %v3127_v25, %v3131_v11  ;;  %v3140_v7 = vld [vmem:[#allocation8 + $0x1e78] sm:$0xff]  ;;  %v14138_v13 = vcombine.low %v3128_v2, %v3132_v54 }
 0x58f   :  { %9625 = vmatpush1.bf16.msra.mxu1 %v14082_v5  ;;  %9298 = vmatprep.subr.bf16.mxu0 %v14089_v30  ;;  %v14139_v5 = vcombine.high %v3128_v2, %v3132_v54  ;;  %v3135_v30 = vld [vmem:[#allocation8 + $0x1e50] sm:$0xff]  ;;  %v14146_v18 = vcombine.low %v3136_v46, %v3140_v7  ;;  %v3168_v47 = vld [vmem:[#allocation8 + $0x1f58] sm:$0xff]  ;;  %v16181_v2 = vld [vmem:[#allocation10] sm:$0xff] }
 0x590   :  { %9626 = vmatprep.subr.bf16.mxu1 %v14091_v1  ;;  %v3139_v1 = vld [vmem:[#allocation8 + $0x1e70] sm:$0xff]  ;;  %v3172_v49 = vld [vmem:[#allocation8 + $0x1f78] sm:$0xff] }
 0x591   :  { %v14144_v57 = vcombine.low %v3135_v30, %v3139_v1  ;;  %v3176_v25 = vld [vmem:[#allocation8 + $0x1f98] sm:$0xff] }
 0x592   :  { %9299 = vmatpush1.bf16.msra.mxu0 %v14088_v34  ;;  %v14145_v34 = vcombine.high %v3135_v30, %v3139_v1  ;;  %v3180_v11 = vld [vmem:[#allocation8 + $0x1fb8] sm:$0xff]  ;;  %v3187_v30 = vld [vmem:[#allocation8 + $0x1ff0] sm:$0xff]  ;;  %v3198_v1 = vrot.slane %v16181_v2, %v15971_v56 }
 0x593   :  { %9627 = vmatpush1.bf16.msra.mxu1 %v14090_v8  ;;  %9300 = vmatprep.subr.bf16.mxu0 %v14097_v14  ;;  %v14147_v8 = vcombine.high %v3136_v46, %v3140_v7  ;;  %v3143_v14 = vld [vmem:[#allocation8 + $0x1e90] sm:$0xff]  ;;  %v3184_v46 = vld [vmem:[#allocation8 + $0x1fd8] sm:$0xff] }
 0x594   :  { %9628 = vmatprep.subr.bf16.mxu1 %v14099_v0  ;;  %v3147_v0 = vld [vmem:[#allocation8 + $0x1eb0] sm:$0xff]  ;;  %v3188_v7 = vld [vmem:[#allocation8 + $0x1ff8] sm:$0xff] }
 0x595   :  { %v14152_v32 = vcombine.low %v3143_v14, %v3147_v0 }
 0x596   :  { %9301 = vmatpush1.bf16.msra.mxu0 %v14096_v62  ;;  %v14153_v62 = vcombine.high %v3143_v14, %v3147_v0  ;;  %v14658_v14 = vadd.f32 %v16161_v29, %v3198_v1  ;;  %v14849_v29 = vld [vmem:[#allocation11 + $0x2c] ss:$16 sps:$4 sm:$0xff]   ;;  %v14895_v1 = vld [vmem:[#allocation11 + $0x128] ss:$16 sps:$4 sm:$0xff]  }
 0x597   :  { %9629 = vmatpush1.bf16.msra.mxu1 %v14098_v21  ;;  %9302 = vmatprep.subr.bf16.mxu0 %v14105_v22  ;;  %v14155_v21 = vcombine.high %v3144_v17, %v3148_v51  ;;  %v3151_v22 = vld [vmem:[#allocation8 + $0x1ed0] sm:$0xff]  ;;  %v14194_v17 = vcombine.low %v3184_v46, %v3188_v7  ;;  %v14840_v51 = vld [vmem:[#allocation11 + $0x4] ss:$16 sps:$4 sm:$0xff]  }
 0x598   :  { %9630 = vmatprep.subr.bf16.mxu1 %v14107_v24  ;;  %v3155_v24 = vld [vmem:[#allocation8 + $0x1ef0] sm:$0xff] }
 0x599   :  { %v14160_v40 = vcombine.low %v3151_v22, %v3155_v24 }
 0x59a   :  { %9303 = vmatpush1.bf16.msra.mxu0 %v14104_v36  ;;  %v14161_v36 = vcombine.high %v3151_v22, %v3155_v24  ;;  %v14846_v22 = vld [vmem:[#allocation11 + $0x24] ss:$16 sps:$4 sm:$0xff]  }
 0x59b   :  { %9631 = vmatpush1.bf16.msra.mxu1 %v14106_v48  ;;  %9304 = vmatprep.subr.bf16.mxu0 %v14113_v45  ;;  %v14163_v48 = vcombine.high %v3152_v61, %v3156_v27  ;;  %v3159_v45 = vld [vmem:[#allocation8 + $0x1f10] sm:$0xff]  ;;  %v14844_v61 = vld [vmem:[#allocation11 + $0x20] ss:$16 sps:$4 sm:$0xff]  }
 0x59c   :  { %9632 = vmatprep.subr.bf16.mxu1 %v14115_v38  ;;  %v3163_v38 = vld [vmem:[#allocation8 + $0x1f30] sm:$0xff] }
 0x59d   :  { %v14168_v6 = vcombine.low %v3159_v45, %v3163_v38  ;;  %v14847_v27 = vld [vmem:[#allocation11 + $0x28] ss:$16 sps:$4 sm:$0xff]  }
 0x59e   :  { %9305 = vmatpush1.bf16.msra.mxu0 %v14112_v41  ;;  %v14169_v41 = vcombine.high %v3159_v45, %v3163_v38  ;;  %v14858_v45 = vld [vmem:[#allocation11 + $0x64] ss:$16 sps:$4 sm:$0xff]   ;;  %v14861_v38 = vld [vmem:[#allocation11 + $0x6c] ss:$16 sps:$4 sm:$0xff]  }
 0x59f   :  { %9633 = vmatpush1.bf16.msra.mxu1 %v14114_v43  ;;  %9306 = vmatprep.subr.bf16.mxu0 %v14121_v59  ;;  %v14171_v43 = vcombine.high %v3160_v37, %v3164_v55  ;;  %v3167_v59 = vld [vmem:[#allocation8 + $0x1f50] sm:$0xff]  ;;  %v14864_v55 = vld [vmem:[#allocation11 + $0x84] ss:$16 sps:$4 sm:$0xff]  }
 0x5a0   :  { %9634 = vmatprep.subr.bf16.mxu1 %v14123_v12  ;;  %v3171_v12 = vld [vmem:[#allocation8 + $0x1f70] sm:$0xff] }
 0x5a1   :  { %v14176_v54 = vcombine.low %v3167_v59, %v3171_v12  ;;  %v14859_v37 = vld [vmem:[#allocation11 + $0x68] ss:$16 sps:$4 sm:$0xff]  }
 0x5a2   :  { %9307 = vmatpush1.bf16.msra.mxu0 %v14120_v31  ;;  %v14177_v31 = vcombine.high %v3167_v59, %v3171_v12  ;;  %v14873_v59 = vld [vmem:[#allocation11 + $0xac] ss:$16 sps:$4 sm:$0xff]   ;;  %v14868_v12 = vld [vmem:[#allocation11 + $0xa0] ss:$16 sps:$4 sm:$0xff]  }
 0x5a3   :  { %9635 = vmatpush1.bf16.msra.mxu1 %v14122_v60  ;;  %9308 = vmatprep.subr.bf16.mxu0 %v14129_v50  ;;  %v14179_v60 = vcombine.high %v3168_v47, %v3172_v49  ;;  %v3175_v50 = vld [vmem:[#allocation8 + $0x1f90] sm:$0xff] }
 0x5a4   :  { %9636 = vmatprep.subr.bf16.mxu1 %v14131_v42  ;;  %v3179_v42 = vld [vmem:[#allocation8 + $0x1fb0] sm:$0xff] }
 0x5a6   :  { %9309 = vmatpush1.bf16.msra.mxu0 %v14128_v44  ;;  %v14178_v44 = vcombine.low %v3168_v47, %v3172_v49  ;;  %v14871_v47 = vld [vmem:[#allocation11 + $0xa8] ss:$16 sps:$4 sm:$0xff]   ;;  %v14876_v49 = vld [vmem:[#allocation11 + $0xc4] ss:$16 sps:$4 sm:$0xff]  }
 0x5a7   :  { %9637 = vmatpush1.bf16.msra.mxu1 %v14130_v52  ;;  %9310 = vmatprep.subr.bf16.mxu0 %v14137_v63  ;;  %v14185_v52 = vcombine.high %v3175_v50, %v3179_v42  ;;  %v14187_v63 = vcombine.high %v3176_v25, %v3180_v11 }
 0x5a8   :  { %9638 = vmatprep.subr.bf16.mxu1 %v14139_v5  ;;  %v3183_v5 = vld [vmem:[#allocation8 + $0x1fd0] sm:$0xff] }
 0x5a9   :  { %v14192_v0 = vcombine.low %v3183_v5, %v3187_v30 }
 0x5aa   :  { %9311 = vmatpush1.bf16.msra.mxu0 %v14136_v10  ;;  %v14184_v10 = vcombine.low %v3175_v50, %v3179_v42  ;;  %v14885_v50 = vld [vmem:[#allocation11 + $0xec] ss:$16 sps:$4 sm:$0xff]   ;;  %v14880_v42 = vld [vmem:[#allocation11 + $0xe0] ss:$16 sps:$4 sm:$0xff]  }
 0x5ab   :  { %9639 = vmatpush1.bf16.msra.mxu1 %v14138_v13  ;;  %9312 = vmatprep.subr.bf16.mxu0 %v14145_v34  ;;  %v14186_v13 = vcombine.low %v3176_v25, %v3180_v11  ;;  %v14193_v34 = vcombine.high %v3183_v5, %v3187_v30  ;;  %v14883_v25 = vld [vmem:[#allocation11 + $0xe8] ss:$16 sps:$4 sm:$0xff]   ;;  %v14888_v11 = vld [vmem:[#allocation11 + $0x104] ss:$16 sps:$4 sm:$0xff]   ;;  %v14897_v5 = vld [vmem:[#allocation11 + $0x12c] ss:$16 sps:$4 sm:$0xff]  }
 0x5ac   :  { %9640 = vmatprep.subr.bf16.mxu1 %v14147_v8  ;;  %v14195_v8 = vcombine.high %v3184_v46, %v3188_v7  ;;  %v14892_v30 = vld [vmem:[#allocation11 + $0x120] ss:$16 sps:$4 sm:$0xff]   ;;  %v14900_v46 = vld [vmem:[#allocation11 + $0x144] ss:$16 sps:$4 sm:$0xff]   ;;  %v14903_v7 = vld [vmem:[#allocation11 + $0x14c] ss:$16 sps:$4 sm:$0xff]  }
 0x5ae   :  { %9313 = vmatpush1.bf16.msra.mxu0 %v14144_v57  ;;  %v14843_v57 = vld [vmem:[#allocation11 + $0xc] ss:$16 sps:$4 sm:$0xff]  }
 0x5af   :  { %9641 = vmatpush1.bf16.msra.mxu1 %v14146_v18  ;;  %9314 = vmatprep.subr.bf16.mxu0 %v14153_v62  ;;  %v9664_v18 = vmax.f32 %v14658_v14, 0.0  ;;  %v14838_v62 = vld [vmem:[#allocation11] ss:$16 sps:$4 sm:$0xff]  }
 0x5b0   :  { %9642 = vmatprep.subr.bf16.mxu1 %v14155_v21  ;;  %v14841_v21 = vld [vmem:[#allocation11 + $0x8] ss:$16 sps:$4 sm:$0xff]   ;;  %v14904_v14 = vld [vmem:[#allocation11 + $0x160] ss:$16 sps:$4 sm:$0xff]  }
 0x5b1   :  { %v9672_v24 = vpack.c.bf16 %v9664_v18, %v9664_v18  ;;  %v14913_v18 = vld [vmem:[#allocation11 + $0x188] ss:$16 sps:$4 sm:$0xff]  }
 0x5b2   :  { %9315 = vmatpush1.bf16.msra.mxu0 %v14152_v32  ;;  %v14852_v32 = vld [vmem:[#allocation11 + $0x44] ss:$16 sps:$4 sm:$0xff]  }
 0x5b3   :  { %9643 = vmatpush1.bf16.msra.mxu1 %v14154_v33  ;;  %9316 = vmatprep.subr.bf16.mxu0 %v14161_v36  ;;  %v14855_v33 = vld [vmem:[#allocation11 + $0x4c] ss:$16 sps:$4 sm:$0xff]   ;;  %v14850_v36 = vld [vmem:[#allocation11 + $0x40] ss:$16 sps:$4 sm:$0xff]  }
 0x5b4   :  { %9644 = vmatprep.subr.bf16.mxu1 %v14163_v48  ;;  %v14853_v48 = vld [vmem:[#allocation11 + $0x48] ss:$16 sps:$4 sm:$0xff]  }
 0x5b6   :  { %9317 = vmatpush1.bf16.msra.mxu0 %v14160_v40  ;;  %v14867_v40 = vld [vmem:[#allocation11 + $0x8c] ss:$16 sps:$4 sm:$0xff]  }
 0x5b7   :  { %9645 = vmatpush1.bf16.msra.mxu1 %v14162_v16  ;;  %9318 = vmatprep.subr.bf16.mxu0 %v14169_v41  ;;  %v14862_v16 = vld [vmem:[#allocation11 + $0x80] ss:$16 sps:$4 sm:$0xff]   ;;  %v14865_v41 = vld [vmem:[#allocation11 + $0x88] ss:$16 sps:$4 sm:$0xff]  }
 0x5b8   :  { %9646 = vmatprep.subr.bf16.mxu1 %v14171_v43  ;;  %v14870_v43 = vld [vmem:[#allocation11 + $0xa4] ss:$16 sps:$4 sm:$0xff]  }
 0x5ba   :  { %9319 = vmatpush1.bf16.msra.mxu0 %v14168_v6  ;;  %v14879_v6 = vld [vmem:[#allocation11 + $0xcc] ss:$16 sps:$4 sm:$0xff]  }
 0x5bb   :  { %9647 = vmatpush1.bf16.msra.mxu1 %v14170_v9  ;;  %9320 = vmatprep.subr.bf16.mxu0 %v14177_v31  ;;  %v14874_v9 = vld [vmem:[#allocation11 + $0xc0] ss:$16 sps:$4 sm:$0xff]   ;;  %v14877_v31 = vld [vmem:[#allocation11 + $0xc8] ss:$16 sps:$4 sm:$0xff]  }
 0x5bc   :  { %9648 = vmatprep.subr.bf16.mxu1 %v14179_v60  ;;  %v14882_v60 = vld [vmem:[#allocation11 + $0xe4] ss:$16 sps:$4 sm:$0xff]  }
 0x5be   :  { %9321 = vmatpush1.bf16.msra.mxu0 %v14176_v54  ;;  %v14891_v54 = vld [vmem:[#allocation11 + $0x10c] ss:$16 sps:$4 sm:$0xff]  }
 0x5bf   :  { %9649 = vmatpush1.bf16.msra.mxu1 %v14178_v44  ;;  %9322 = vmatprep.subr.bf16.mxu0 %v14185_v52  ;;  %v14886_v44 = vld [vmem:[#allocation11 + $0x100] ss:$16 sps:$4 sm:$0xff]   ;;  %v14889_v52 = vld [vmem:[#allocation11 + $0x108] ss:$16 sps:$4 sm:$0xff]  }
 0x5c0   :  { %9650 = vmatprep.subr.bf16.mxu1 %v14187_v63  ;;  %v14894_v63 = vld [vmem:[#allocation11 + $0x124] ss:$16 sps:$4 sm:$0xff]  }
 0x5c2   :  { %9323 = vmatpush1.bf16.msra.mxu0 %v14184_v10  ;;  %v14898_v10 = vld [vmem:[#allocation11 + $0x140] ss:$16 sps:$4 sm:$0xff]  }
 0x5c3   :  { %9651 = vmatpush1.bf16.msra.mxu1 %v14186_v13  ;;  %9324 = vmatprep.subr.bf16.mxu0 %v14193_v34  ;;  %v14901_v13 = vld [vmem:[#allocation11 + $0x148] ss:$16 sps:$4 sm:$0xff]   ;;  %v14906_v34 = vld [vmem:[#allocation11 + $0x164] ss:$16 sps:$4 sm:$0xff]  }
 0x5c4   :  { %9652 = vmatprep.subr.bf16.mxu1 %v14195_v8  ;;  %v14909_v8 = vld [vmem:[#allocation11 + $0x16c] ss:$16 sps:$4 sm:$0xff]  }
 0x5c6   :  { %9325 = vmatpush1.bf16.msra.mxu0 %v14192_v0  ;;  %v14907_v0 = vld [vmem:[#allocation11 + $0x168] ss:$16 sps:$4 sm:$0xff]  }
 0x5c7   :  { %9653 = vmatpush1.bf16.msra.mxu1 %v14194_v17  ;;  %11237 = vmatprep.subr.bf16.mxu0 %v14840_v51  ;;  %v14912_v17 = vld [vmem:[#allocation11 + $0x184] ss:$16 sps:$4 sm:$0xff]   ;;  %v14915_v51 = vld [vmem:[#allocation11 + $0x18c] ss:$16 sps:$4 sm:$0xff]  }
 0x5c8   :  { %11401 = vmatprep.subr.bf16.mxu1 %v14843_v57  ;;  %v14910_v57 = vld [vmem:[#allocation11 + $0x180] ss:$16 sps:$4 sm:$0xff]  }
 0x5c9   :  { %9327 = vmatmul.mubr.bf16.vlgmr.msra.gmra.mrb[20].mxu0 %v16139_v19 }
 0x5ca   :  { %9655 = vmatmul.mubr.bf16.vlgmr.msra.gmra.mrb[20].mxu1 %v16139_v19  ;;  %11238 = vmatpush1.bf16.msra.mxu0 %v14838_v62  ;;  %v14856_v19 = vld [vmem:[#allocation11 + $0x60] ss:$16 sps:$4 sm:$0xff]   ;;  %v14918_v62 = vld [vmem:[#allocation11 + $0x1a4] ss:$16 sps:$4 sm:$0xff]  }
 0x5cb   :  { %11269 = vmatprep.mubr.bf16.mxu0 %v9672_v24  ;;  %11402 = vmatpush1.bf16.msra.mxu1 %v14841_v21  ;;  %v14921_v21 = vld [vmem:[#allocation11 + $0x1ac] ss:$16 sps:$4 sm:$0xff]  }
 0x5cc   :  { %11433 = vmatprep.mubr.bf16.mxu1 %v9672_v24  ;;  %11239 = vmatprep.subr.bf16.mxu0 %v14846_v22  ;;  %v14916_v22 = vld [vmem:[#allocation11 + $0x1a0] ss:$16 sps:$4 sm:$0xff]   ;;  %v3194_v24 = vrot.slane %v16181_v2, %v15988_v15 }
 0x5cd   :  { %11403 = vmatprep.subr.bf16.mxu1 %v14849_v29  ;;  %v14919_v29 = vld [vmem:[#allocation11 + $0x1a8] ss:$16 sps:$4 sm:$0xff]  }
 0x5ce   :  { %11240 = vmatpush1.bf16.msra.mxu0 %v14844_v61  ;;  %v14924_v61 = vld [vmem:[#allocation11 + $0x1c4] ss:$16 sps:$4 sm:$0xff]  }
 0x5cf   :  { %11404 = vmatpush1.bf16.msra.mxu1 %v14847_v27  ;;  %11241 = vmatprep.subr.bf16.mxu0 %v14852_v32  ;;  %v14927_v27 = vld [vmem:[#allocation11 + $0x1cc] ss:$16 sps:$4 sm:$0xff]   ;;  %v3206_v32 = vrot.slane %v16181_v2, %v15991_v53 }
 0x5d0   :  { %11405 = vmatprep.subr.bf16.mxu1 %v14855_v33  ;;  %v14922_v33 = vld [vmem:[#allocation11 + $0x1c0] ss:$16 sps:$4 sm:$0xff]  }
 0x5d2   :  { %11242 = vmatpush1.bf16.msra.mxu0 %v14850_v36  ;;  %v14657_v36 = vadd.f32 %v16157_v23, %v3194_v24  ;;  %v14934_v23 = vld [vmem:[#allocation11 + $0x200] ss:$16 sps:$4 sm:$0xff]   ;;  %v14990_v24 = vld [vmem:[#allocation11 + $0x324] ss:$16 sps:$4 sm:$0xff]  }
 0x5d3   :  { %11406 = vmatpush1.bf16.msra.mxu1 %v14853_v48  ;;  %11243 = vmatprep.subr.bf16.mxu0 %v14858_v45  ;;  %v14925_v48 = vld [vmem:[#allocation11 + $0x1c8] ss:$16 sps:$4 sm:$0xff]   ;;  %v14930_v45 = vld [vmem:[#allocation11 + $0x1e4] ss:$16 sps:$4 sm:$0xff]  }
 0x5d4   :  { %11407 = vmatprep.subr.bf16.mxu1 %v14861_v38  ;;  %v14933_v38 = vld [vmem:[#allocation11 + $0x1ec] ss:$16 sps:$4 sm:$0xff]  }
 0x5d6   :  { %11244 = vmatpush1.bf16.msra.mxu0 %v14856_v19  ;;  %v14660_v19 = vadd.f32 %v16163_v35, %v3206_v32  ;;  %v14945_v35 = vld [vmem:[#allocation11 + $0x22c] ss:$16 sps:$4 sm:$0xff]   ;;  %v14996_v32 = vld [vmem:[#allocation11 + $0x344] ss:$16 sps:$4 sm:$0xff]  }
 0x5d7   :  { %11408 = vmatpush1.bf16.msra.mxu1 %v14859_v37  ;;  %11245 = vmatprep.subr.bf16.mxu0 %v14864_v55  ;;  %v14928_v37 = vld [vmem:[#allocation11 + $0x1e0] ss:$16 sps:$4 sm:$0xff]   ;;  %v9663_v55 = vmax.f32 %v14657_v36, 0.0 }
 0x5d8   :  { %11409 = vmatprep.subr.bf16.mxu1 %v14867_v40  ;;  %v14931_v40 = vld [vmem:[#allocation11 + $0x1e8] ss:$16 sps:$4 sm:$0xff]   ;;  %v14994_v36 = vld [vmem:[#allocation11 + $0x340] ss:$16 sps:$4 sm:$0xff]  }
 0x5da   :  { %11246 = vmatpush1.bf16.msra.mxu0 %v14862_v16  ;;  %v14936_v16 = vld [vmem:[#allocation11 + $0x204] ss:$16 sps:$4 sm:$0xff]  }
 0x5db   :  { %11410 = vmatpush1.bf16.msra.mxu1 %v14865_v41  ;;  %11247 = vmatprep.subr.bf16.mxu0 %v14870_v43  ;;  %v14939_v41 = vld [vmem:[#allocation11 + $0x20c] ss:$16 sps:$4 sm:$0xff]   ;;  %v9666_v43 = vmax.f32 %v14660_v19, 0.0  ;;  %v15000_v19 = vld [vmem:[#allocation11 + $0x360] ss:$16 sps:$4 sm:$0xff]  }
 0x5dc   :  { %11411 = vmatprep.subr.bf16.mxu1 %v14873_v59  ;;  %v9671_v59 = vpack.c.bf16 %v9663_v55, %v9663_v55  ;;  %v15008_v55 = vld [vmem:[#allocation11 + $0x384] ss:$16 sps:$4 sm:$0xff]  }
 0x5de   :  { %11248 = vmatpush1.bf16.msra.mxu0 %v14868_v12  ;;  %v14937_v12 = vld [vmem:[#allocation11 + $0x208] ss:$16 sps:$4 sm:$0xff]  }
 0x5df   :  { %11412 = vmatpush1.bf16.msra.mxu1 %v14871_v47  ;;  %11249 = vmatprep.subr.bf16.mxu0 %v14876_v49  ;;  %v14942_v47 = vld [vmem:[#allocation11 + $0x224] ss:$16 sps:$4 sm:$0xff]   ;;  %v9674_v49 = vpack.c.bf16 %v9666_v43, %v9666_v43 }
 0x5e0   :  { %11413 = vmatprep.subr.bf16.mxu1 %v14879_v6  ;;  %v14940_v6 = vld [vmem:[#allocation11 + $0x220] ss:$16 sps:$4 sm:$0xff]   ;;  %v15014_v43 = vld [vmem:[#allocation11 + $0x3a4] ss:$16 sps:$4 sm:$0xff]  }
 0x5e2   :  { %11250 = vmatpush1.bf16.msra.mxu0 %v14874_v9  ;;  %v14943_v9 = vld [vmem:[#allocation11 + $0x228] ss:$16 sps:$4 sm:$0xff]  }
 0x5e3   :  { %11414 = vmatpush1.bf16.msra.mxu1 %v14877_v31  ;;  %11251 = vmatprep.subr.bf16.mxu0 %v14882_v60  ;;  %v14948_v31 = vld [vmem:[#allocation11 + $0x244] ss:$16 sps:$4 sm:$0xff]   ;;  %v14951_v60 = vld [vmem:[#allocation11 + $0x24c] ss:$16 sps:$4 sm:$0xff]  }
 0x5e4   :  { %11415 = vmatprep.subr.bf16.mxu1 %v14885_v50  ;;  %v14946_v50 = vld [vmem:[#allocation11 + $0x240] ss:$16 sps:$4 sm:$0xff]  }
 0x5e6   :  { %11252 = vmatpush1.bf16.msra.mxu0 %v14880_v42  ;;  %v14949_v42 = vld [vmem:[#allocation11 + $0x248] ss:$16 sps:$4 sm:$0xff]  }
 0x5e7   :  { %11416 = vmatpush1.bf16.msra.mxu1 %v14883_v25  ;;  %11253 = vmatprep.subr.bf16.mxu0 %v14888_v11  ;;  %v14954_v25 = vld [vmem:[#allocation11 + $0x264] ss:$16 sps:$4 sm:$0xff]   ;;  %v14957_v11 = vld [vmem:[#allocation11 + $0x26c] ss:$16 sps:$4 sm:$0xff]  }
 0x5e8   :  { %11417 = vmatprep.subr.bf16.mxu1 %v14891_v54  ;;  %v14952_v54 = vld [vmem:[#allocation11 + $0x260] ss:$16 sps:$4 sm:$0xff]  }
 0x5ea   :  { %11254 = vmatpush1.bf16.msra.mxu0 %v14886_v44  ;;  %v14955_v44 = vld [vmem:[#allocation11 + $0x268] ss:$16 sps:$4 sm:$0xff]  }
 0x5eb   :  { %11418 = vmatpush1.bf16.msra.mxu1 %v14889_v52  ;;  %11255 = vmatprep.subr.bf16.mxu0 %v14894_v63  ;;  %v14960_v52 = vld [vmem:[#allocation11 + $0x284] ss:$16 sps:$4 sm:$0xff]   ;;  %v14963_v63 = vld [vmem:[#allocation11 + $0x28c] ss:$16 sps:$4 sm:$0xff]  }
 0x5ec   :  { %11419 = vmatprep.subr.bf16.mxu1 %v14897_v5  ;;  %v14958_v5 = vld [vmem:[#allocation11 + $0x280] ss:$16 sps:$4 sm:$0xff]  }
 0x5ee   :  { %11256 = vmatpush1.bf16.msra.mxu0 %v14892_v30  ;;  %v14961_v30 = vld [vmem:[#allocation11 + $0x288] ss:$16 sps:$4 sm:$0xff]  }
 0x5ef   :  { %11420 = vmatpush1.bf16.msra.mxu1 %v14895_v1  ;;  %11257 = vmatprep.subr.bf16.mxu0 %v14900_v46  ;;  %v14966_v1 = vld [vmem:[#allocation11 + $0x2a4] ss:$16 sps:$4 sm:$0xff]   ;;  %v14969_v46 = vld [vmem:[#allocation11 + $0x2ac] ss:$16 sps:$4 sm:$0xff]  }
 0x5f0   :  { %11421 = vmatprep.subr.bf16.mxu1 %v14903_v7  ;;  %v14964_v7 = vld [vmem:[#allocation11 + $0x2a0] ss:$16 sps:$4 sm:$0xff]  }
 0x5f2   :  { %11258 = vmatpush1.bf16.msra.mxu0 %v14898_v10  ;;  %v14967_v10 = vld [vmem:[#allocation11 + $0x2a8] ss:$16 sps:$4 sm:$0xff]  }
 0x5f3   :  { %11422 = vmatpush1.bf16.msra.mxu1 %v14901_v13  ;;  %11259 = vmatprep.subr.bf16.mxu0 %v14906_v34  ;;  %v14972_v13 = vld [vmem:[#allocation11 + $0x2c4] ss:$16 sps:$4 sm:$0xff]   ;;  %v14975_v34 = vld [vmem:[#allocation11 + $0x2cc] ss:$16 sps:$4 sm:$0xff]  }
 0x5f4   :  { %11423 = vmatprep.subr.bf16.mxu1 %v14909_v8  ;;  %v14970_v8 = vld [vmem:[#allocation11 + $0x2c0] ss:$16 sps:$4 sm:$0xff]  }
 0x5f6   :  { %11260 = vmatpush1.bf16.msra.mxu0 %v14904_v14  ;;  %v14973_v14 = vld [vmem:[#allocation11 + $0x2c8] ss:$16 sps:$4 sm:$0xff]  }
 0x5f7   :  { %11424 = vmatpush1.bf16.msra.mxu1 %v14907_v0  ;;  %11261 = vmatprep.subr.bf16.mxu0 %v14912_v17  ;;  %v14978_v0 = vld [vmem:[#allocation11 + $0x2e4] ss:$16 sps:$4 sm:$0xff]   ;;  %v14981_v17 = vld [vmem:[#allocation11 + $0x2ec] ss:$16 sps:$4 sm:$0xff]  }
 0x5f8   :  { %11425 = vmatprep.subr.bf16.mxu1 %v14915_v51  ;;  %v14976_v51 = vld [vmem:[#allocation11 + $0x2e0] ss:$16 sps:$4 sm:$0xff]  }
 0x5fa   :  { %11262 = vmatpush1.bf16.msra.mxu0 %v14910_v57  ;;  %v14979_v57 = vld [vmem:[#allocation11 + $0x2e8] ss:$16 sps:$4 sm:$0xff]  }
 0x5fb   :  { %11426 = vmatpush1.bf16.msra.mxu1 %v14913_v18  ;;  %11263 = vmatprep.subr.bf16.mxu0 %v14918_v62  ;;  %v14984_v18 = vld [vmem:[#allocation11 + $0x304] ss:$16 sps:$4 sm:$0xff]   ;;  %v14987_v62 = vld [vmem:[#allocation11 + $0x30c] ss:$16 sps:$4 sm:$0xff]  }
 0x5fc   :  { %11427 = vmatprep.subr.bf16.mxu1 %v14921_v21  ;;  %v14982_v21 = vld [vmem:[#allocation11 + $0x300] ss:$16 sps:$4 sm:$0xff]  }
 0x5fe   :  { %11264 = vmatpush1.bf16.msra.mxu0 %v14916_v22  ;;  %v14985_v22 = vld [vmem:[#allocation11 + $0x308] ss:$16 sps:$4 sm:$0xff]  }
 0x5ff   :  { %11428 = vmatpush1.bf16.msra.mxu1 %v14919_v29  ;;  %11265 = vmatprep.subr.bf16.mxu0 %v14924_v61  ;;  %v14993_v29 = vld [vmem:[#allocation11 + $0x32c] ss:$16 sps:$4 sm:$0xff]   ;;  %v14988_v61 = vld [vmem:[#allocation11 + $0x320] ss:$16 sps:$4 sm:$0xff]  }
 0x600   :  { %11429 = vmatprep.subr.bf16.mxu1 %v14927_v27  ;;  %v14991_v27 = vld [vmem:[#allocation11 + $0x328] ss:$16 sps:$4 sm:$0xff]  }
 0x602   :  { %11266 = vmatpush1.bf16.msra.mxu0 %v14922_v33  ;;  %v14999_v33 = vld [vmem:[#allocation11 + $0x34c] ss:$16 sps:$4 sm:$0xff]  }
 0x603   :  { %11430 = vmatpush1.bf16.msra.mxu1 %v14925_v48  ;;  %11267 = vmatprep.subr.bf16.mxu0 %v14930_v45  ;;  %v14997_v48 = vld [vmem:[#allocation11 + $0x348] ss:$16 sps:$4 sm:$0xff]   ;;  %v15002_v45 = vld [vmem:[#allocation11 + $0x364] ss:$16 sps:$4 sm:$0xff]  }
 0x604   :  { %11431 = vmatprep.subr.bf16.mxu1 %v14933_v38  ;;  %v15005_v38 = vld [vmem:[#allocation11 + $0x36c] ss:$16 sps:$4 sm:$0xff]  }
 0x606   :  { %11268 = vmatpush1.bf16.msra.mxu0 %v14928_v37  ;;  %v15003_v37 = vld [vmem:[#allocation11 + $0x368] ss:$16 sps:$4 sm:$0xff]  }
 0x607   :  { %11432 = vmatpush1.bf16.msra.mxu1 %v14931_v40  ;;  %11278 = vmatprep.subr.bf16.mxu0 %v14936_v16  ;;  %v15011_v40 = vld [vmem:[#allocation11 + $0x38c] ss:$16 sps:$4 sm:$0xff]   ;;  %v15006_v16 = vld [vmem:[#allocation11 + $0x380] ss:$16 sps:$4 sm:$0xff]  }
 0x608   :  { %11442 = vmatprep.subr.bf16.mxu1 %v14939_v41  ;;  %v15009_v41 = vld [vmem:[#allocation11 + $0x388] ss:$16 sps:$4 sm:$0xff]  }
 0x609   :  { %11270 = vmatmul.mubr.bf16.vlgmr.msra.gmra.mrb[24].mxu0 %v9671_v59 }
 0x60a   :  { %11434 = vmatmul.mubr.bf16.vlgmr.msra.gmra.mrb[24].mxu1 %v9671_v59  ;;  %11279 = vmatpush1.bf16.msra.mxu0 %v14934_v23  ;;  %v15017_v23 = vld [vmem:[#allocation11 + $0x3ac] ss:$16 sps:$4 sm:$0xff]   ;;  %v15012_v59 = vld [vmem:[#allocation11 + $0x3a0] ss:$16 sps:$4 sm:$0xff]  }
 0x60b   :  { %11310 = vmatprep.mubr.bf16.mxu0 %v9674_v49  ;;  %11443 = vmatpush1.bf16.msra.mxu1 %v14937_v12  ;;  %v3202_v12 = vrot.slane %v16181_v2, %v16016_v20 }
 0x60c   :  { %11474 = vmatprep.mubr.bf16.mxu1 %v9674_v49  ;;  %11280 = vmatprep.subr.bf16.mxu0 %v14942_v47  ;;  %v15015_v47 = vld [vmem:[#allocation11 + $0x3a8] ss:$16 sps:$4 sm:$0xff]   ;;  %v15020_v49 = vld [vmem:[#allocation11 + $0x3c4] ss:$16 sps:$4 sm:$0xff]  }
 0x60d   :  { %11444 = vmatprep.subr.bf16.mxu1 %v14945_v35  ;;  %v15023_v35 = vld [vmem:[#allocation11 + $0x3cc] ss:$16 sps:$4 sm:$0xff]  }
 0x60e   :  { %11281 = vmatpush1.bf16.msra.mxu0 %v14940_v6  ;;  %v15018_v6 = vld [vmem:[#allocation11 + $0x3c0] ss:$16 sps:$4 sm:$0xff]  }
 0x60f   :  { %11445 = vmatpush1.bf16.msra.mxu1 %v14943_v9  ;;  %11282 = vmatprep.subr.bf16.mxu0 %v14948_v31  ;;  %v14659_v9 = vadd.f32 %v16159_v28, %v3202_v12  ;;  %v15021_v31 = vld [vmem:[#allocation11 + $0x3c8] ss:$16 sps:$4 sm:$0xff]   ;;  %v15095_v12 = vld [vmem:[#allocation11 + $0x54c] ss:$16 sps:$4 sm:$0xff]  }
 0x610   :  { %11446 = vmatprep.subr.bf16.mxu1 %v14951_v60  ;;  %v15026_v60 = vld [vmem:[#allocation11 + $0x3e4] ss:$16 sps:$4 sm:$0xff]   ;;  %v15033_v28 = vld [vmem:[#allocation11 + $0x408] ss:$16 sps:$4 sm:$0xff]  }
 0x612   :  { %11283 = vmatpush1.bf16.msra.mxu0 %v14946_v50  ;;  %v15029_v50 = vld [vmem:[#allocation11 + $0x3ec] ss:$16 sps:$4 sm:$0xff]  }
 0x613   :  { %11447 = vmatpush1.bf16.msra.mxu1 %v14949_v42  ;;  %11284 = vmatprep.subr.bf16.mxu0 %v14954_v25  ;;  %v15024_v42 = vld [vmem:[#allocation11 + $0x3e0] ss:$16 sps:$4 sm:$0xff]   ;;  %v9665_v25 = vmax.f32 %v14659_v9, 0.0 }
 0x614   :  { %11448 = vmatprep.subr.bf16.mxu1 %v14957_v11  ;;  %v15027_v11 = vld [vmem:[#allocation11 + $0x3e8] ss:$16 sps:$4 sm:$0xff]   ;;  %v15096_v9 = vld [vmem:[#allocation11 + $0x560] ss:$16 sps:$4 sm:$0xff]  }
 0x616   :  { %11285 = vmatpush1.bf16.msra.mxu0 %v14952_v54  ;;  %v15032_v54 = vld [vmem:[#allocation11 + $0x404] ss:$16 sps:$4 sm:$0xff]  }
 0x617   :  { %11449 = vmatpush1.bf16.msra.mxu1 %v14955_v44  ;;  %11286 = vmatprep.subr.bf16.mxu0 %v14960_v52  ;;  %v15035_v44 = vld [vmem:[#allocation11 + $0x40c] ss:$16 sps:$4 sm:$0xff]   ;;  %v15030_v52 = vld [vmem:[#allocation11 + $0x400] ss:$16 sps:$4 sm:$0xff]  }
 0x618   :  { %11450 = vmatprep.subr.bf16.mxu1 %v14963_v63  ;;  %v9673_v63 = vpack.c.bf16 %v9665_v25, %v9665_v25  ;;  %v15105_v25 = vld [vmem:[#allocation11 + $0x588] ss:$16 sps:$4 sm:$0xff]  }
 0x61a   :  { %11287 = vmatpush1.bf16.msra.mxu0 %v14958_v5  ;;  %v15038_v5 = vld [vmem:[#allocation11 + $0x424] ss:$16 sps:$4 sm:$0xff]  }
 0x61b   :  { %11451 = vmatpush1.bf16.msra.mxu1 %v14961_v30  ;;  %11288 = vmatprep.subr.bf16.mxu0 %v14966_v1  ;;  %v15041_v30 = vld [vmem:[#allocation11 + $0x42c] ss:$16 sps:$4 sm:$0xff]   ;;  %v15036_v1 = vld [vmem:[#allocation11 + $0x420] ss:$16 sps:$4 sm:$0xff]  }
 0x61c   :  { %11452 = vmatprep.subr.bf16.mxu1 %v14969_v46  ;;  %v15039_v46 = vld [vmem:[#allocation11 + $0x428] ss:$16 sps:$4 sm:$0xff]  }
 0x61e   :  { %11289 = vmatpush1.bf16.msra.mxu0 %v14964_v7  ;;  %v15044_v7 = vld [vmem:[#allocation11 + $0x444] ss:$16 sps:$4 sm:$0xff]  }
 0x61f   :  { %11453 = vmatpush1.bf16.msra.mxu1 %v14967_v10  ;;  %11290 = vmatprep.subr.bf16.mxu0 %v14972_v13  ;;  %v15047_v10 = vld [vmem:[#allocation11 + $0x44c] ss:$16 sps:$4 sm:$0xff]   ;;  %v15042_v13 = vld [vmem:[#allocation11 + $0x440] ss:$16 sps:$4 sm:$0xff]  }
 0x620   :  { %11454 = vmatprep.subr.bf16.mxu1 %v14975_v34  ;;  %v15045_v34 = vld [vmem:[#allocation11 + $0x448] ss:$16 sps:$4 sm:$0xff]  }
 0x622   :  { %11291 = vmatpush1.bf16.msra.mxu0 %v14970_v8  ;;  %v15050_v8 = vld [vmem:[#allocation11 + $0x464] ss:$16 sps:$4 sm:$0xff]  }
 0x623   :  { %11455 = vmatpush1.bf16.msra.mxu1 %v14973_v14  ;;  %11292 = vmatprep.subr.bf16.mxu0 %v14978_v0  ;;  %v15053_v14 = vld [vmem:[#allocation11 + $0x46c] ss:$16 sps:$4 sm:$0xff]   ;;  %v15048_v0 = vld [vmem:[#allocation11 + $0x460] ss:$16 sps:$4 sm:$0xff]  }
 0x624   :  { %11456 = vmatprep.subr.bf16.mxu1 %v14981_v17  ;;  %v15051_v17 = vld [vmem:[#allocation11 + $0x468] ss:$16 sps:$4 sm:$0xff]  }
 0x626   :  { %11293 = vmatpush1.bf16.msra.mxu0 %v14976_v51  ;;  %v15056_v51 = vld [vmem:[#allocation11 + $0x484] ss:$16 sps:$4 sm:$0xff]  }
 0x627   :  { %11457 = vmatpush1.bf16.msra.mxu1 %v14979_v57  ;;  %11294 = vmatprep.subr.bf16.mxu0 %v14984_v18  ;;  %v15059_v57 = vld [vmem:[#allocation11 + $0x48c] ss:$16 sps:$4 sm:$0xff]   ;;  %v15054_v18 = vld [vmem:[#allocation11 + $0x480] ss:$16 sps:$4 sm:$0xff]  }
 0x628   :  { %11458 = vmatprep.subr.bf16.mxu1 %v14987_v62  ;;  %v15057_v62 = vld [vmem:[#allocation11 + $0x488] ss:$16 sps:$4 sm:$0xff]  }
 0x62a   :  { %11295 = vmatpush1.bf16.msra.mxu0 %v14982_v21  ;;  %v15062_v21 = vld [vmem:[#allocation11 + $0x4a4] ss:$16 sps:$4 sm:$0xff]  }
 0x62b   :  { %11459 = vmatpush1.bf16.msra.mxu1 %v14985_v22  ;;  %11296 = vmatprep.subr.bf16.mxu0 %v14990_v24  ;;  %v15065_v22 = vld [vmem:[#allocation11 + $0x4ac] ss:$16 sps:$4 sm:$0xff]   ;;  %v15060_v24 = vld [vmem:[#allocation11 + $0x4a0] ss:$16 sps:$4 sm:$0xff]  }
 0x62c   :  { %11460 = vmatprep.subr.bf16.mxu1 %v14993_v29  ;;  %v15063_v29 = vld [vmem:[#allocation11 + $0x4a8] ss:$16 sps:$4 sm:$0xff]  }
 0x62e   :  { %11297 = vmatpush1.bf16.msra.mxu0 %v14988_v61  ;;  %v15068_v61 = vld [vmem:[#allocation11 + $0x4c4] ss:$16 sps:$4 sm:$0xff]  }
 0x62f   :  { %11461 = vmatpush1.bf16.msra.mxu1 %v14991_v27  ;;  %11298 = vmatprep.subr.bf16.mxu0 %v14996_v32  ;;  %v15071_v27 = vld [vmem:[#allocation11 + $0x4cc] ss:$16 sps:$4 sm:$0xff]   ;;  %v15066_v32 = vld [vmem:[#allocation11 + $0x4c0] ss:$16 sps:$4 sm:$0xff]  }
 0x630   :  { %11462 = vmatprep.subr.bf16.mxu1 %v14999_v33  ;;  %v15069_v33 = vld [vmem:[#allocation11 + $0x4c8] ss:$16 sps:$4 sm:$0xff]  }
 0x632   :  { %11299 = vmatpush1.bf16.msra.mxu0 %v14994_v36  ;;  %v15074_v36 = vld [vmem:[#allocation11 + $0x4e4] ss:$16 sps:$4 sm:$0xff]  }
 0x633   :  { %11463 = vmatpush1.bf16.msra.mxu1 %v14997_v48  ;;  %11300 = vmatprep.subr.bf16.mxu0 %v15002_v45  ;;  %v15077_v48 = vld [vmem:[#allocation11 + $0x4ec] ss:$16 sps:$4 sm:$0xff]   ;;  %v15072_v45 = vld [vmem:[#allocation11 + $0x4e0] ss:$16 sps:$4 sm:$0xff]  }
 0x634   :  { %11464 = vmatprep.subr.bf16.mxu1 %v15005_v38  ;;  %v15075_v38 = vld [vmem:[#allocation11 + $0x4e8] ss:$16 sps:$4 sm:$0xff]  }
 0x636   :  { %11301 = vmatpush1.bf16.msra.mxu0 %v15000_v19  ;;  %v15080_v19 = vld [vmem:[#allocation11 + $0x504] ss:$16 sps:$4 sm:$0xff]  }
 0x637   :  { %11465 = vmatpush1.bf16.msra.mxu1 %v15003_v37  ;;  %11302 = vmatprep.subr.bf16.mxu0 %v15008_v55  ;;  %v15083_v37 = vld [vmem:[#allocation11 + $0x50c] ss:$16 sps:$4 sm:$0xff]   ;;  %v15078_v55 = vld [vmem:[#allocation11 + $0x500] ss:$16 sps:$4 sm:$0xff]  }
 0x638   :  { %11466 = vmatprep.subr.bf16.mxu1 %v15011_v40  ;;  %v15081_v40 = vld [vmem:[#allocation11 + $0x508] ss:$16 sps:$4 sm:$0xff]  }
 0x63a   :  { %11303 = vmatpush1.bf16.msra.mxu0 %v15006_v16  ;;  %v15086_v16 = vld [vmem:[#allocation11 + $0x524] ss:$16 sps:$4 sm:$0xff]  }
 0x63b   :  { %11467 = vmatpush1.bf16.msra.mxu1 %v15009_v41  ;;  %11304 = vmatprep.subr.bf16.mxu0 %v15014_v43  ;;  %v15089_v41 = vld [vmem:[#allocation11 + $0x52c] ss:$16 sps:$4 sm:$0xff]   ;;  %v15084_v43 = vld [vmem:[#allocation11 + $0x520] ss:$16 sps:$4 sm:$0xff]  }
 0x63c   :  { %11468 = vmatprep.subr.bf16.mxu1 %v15017_v23  ;;  %v15087_v23 = vld [vmem:[#allocation11 + $0x528] ss:$16 sps:$4 sm:$0xff]  }
 0x63e   :  { %11305 = vmatpush1.bf16.msra.mxu0 %v15012_v59  ;;  %v15092_v59 = vld [vmem:[#allocation11 + $0x544] ss:$16 sps:$4 sm:$0xff]  }
 0x63f   :  { %11469 = vmatpush1.bf16.msra.mxu1 %v15015_v47  ;;  %11306 = vmatprep.subr.bf16.mxu0 %v15020_v49  ;;  %v15090_v47 = vld [vmem:[#allocation11 + $0x540] ss:$16 sps:$4 sm:$0xff]   ;;  %v15093_v49 = vld [vmem:[#allocation11 + $0x548] ss:$16 sps:$4 sm:$0xff]  }
 0x640   :  { %11470 = vmatprep.subr.bf16.mxu1 %v15023_v35  ;;  %v15098_v35 = vld [vmem:[#allocation11 + $0x564] ss:$16 sps:$4 sm:$0xff]  }
 0x642   :  { %11307 = vmatpush1.bf16.msra.mxu0 %v15018_v6  ;;  %v15101_v6 = vld [vmem:[#allocation11 + $0x56c] ss:$16 sps:$4 sm:$0xff]  }
 0x643   :  { %11471 = vmatpush1.bf16.msra.mxu1 %v15021_v31  ;;  %11308 = vmatprep.subr.bf16.mxu0 %v15026_v60  ;;  %v15099_v31 = vld [vmem:[#allocation11 + $0x568] ss:$16 sps:$4 sm:$0xff]   ;;  %v15104_v60 = vld [vmem:[#allocation11 + $0x584] ss:$16 sps:$4 sm:$0xff]  }
 0x644   :  { %11472 = vmatprep.subr.bf16.mxu1 %v15029_v50  ;;  %v15107_v50 = vld [vmem:[#allocation11 + $0x58c] ss:$16 sps:$4 sm:$0xff]  }
 0x646   :  { %11309 = vmatpush1.bf16.msra.mxu0 %v15024_v42  ;;  %v15102_v42 = vld [vmem:[#allocation11 + $0x580] ss:$16 sps:$4 sm:$0xff]  }
 0x647   :  { %11473 = vmatpush1.bf16.msra.mxu1 %v15027_v11  ;;  %11319 = vmatprep.subr.bf16.mxu0 %v15032_v54  ;;  %v15110_v11 = vld [vmem:[#allocation11 + $0x5a4] ss:$16 sps:$4 sm:$0xff]   ;;  %v15113_v54 = vld [vmem:[#allocation11 + $0x5ac] ss:$16 sps:$4 sm:$0xff]  }
 0x648   :  { %11483 = vmatprep.subr.bf16.mxu1 %v15035_v44  ;;  %v15108_v44 = vld [vmem:[#allocation11 + $0x5a0] ss:$16 sps:$4 sm:$0xff]  }
 0x649   :  { %11311 = vmatmul.mubr.bf16.vlgmr.msra.gmra.mrb[24].mxu0 %v9673_v63 }
 0x64a   :  { %11475 = vmatmul.mubr.bf16.vlgmr.msra.gmra.mrb[24].mxu1 %v9673_v63  ;;  %11320 = vmatpush1.bf16.msra.mxu0 %v15030_v52  ;;  %v15111_v52 = vld [vmem:[#allocation11 + $0x5a8] ss:$16 sps:$4 sm:$0xff]   ;;  %v15116_v63 = vld [vmem:[#allocation11 + $0x5c4] ss:$16 sps:$4 sm:$0xff]  }
 0x64b   :  { %11484 = vmatpush1.bf16.msra.mxu1 %v15033_v28  ;;  %11321 = vmatprep.subr.bf16.mxu0 %v15038_v5  ;;  %v15119_v28 = vld [vmem:[#allocation11 + $0x5cc] ss:$16 sps:$4 sm:$0xff]   ;;  %v15114_v5 = vld [vmem:[#allocation11 + $0x5c0] ss:$16 sps:$4 sm:$0xff]  }
 0x64c   :  { %11485 = vmatprep.subr.bf16.mxu1 %v15041_v30  ;;  %v15117_v30 = vld [vmem:[#allocation11 + $0x5c8] ss:$16 sps:$4 sm:$0xff]  }
 0x64e   :  { %11322 = vmatpush1.bf16.msra.mxu0 %v15036_v1  ;;  %v15122_v1 = vld [vmem:[#allocation11 + $0x5e4] ss:$16 sps:$4 sm:$0xff]  }
 0x64f   :  { %11486 = vmatpush1.bf16.msra.mxu1 %v15039_v46  ;;  %11323 = vmatprep.subr.bf16.mxu0 %v15044_v7  ;;  %v15125_v46 = vld [vmem:[#allocation11 + $0x5ec] ss:$16 sps:$4 sm:$0xff]   ;;  %v15120_v7 = vld [vmem:[#allocation11 + $0x5e0] ss:$16 sps:$4 sm:$0xff]  }
 0x650   :  { %11487 = vmatprep.subr.bf16.mxu1 %v15047_v10  ;;  %v15123_v10 = vld [vmem:[#allocation11 + $0x5e8] ss:$16 sps:$4 sm:$0xff]  }
 0x652   :  { %11324 = vmatpush1.bf16.msra.mxu0 %v15042_v13  ;;  %v15128_v13 = vld [vmem:[#allocation11 + $0x604] ss:$16 sps:$4 sm:$0xff]  }
 0x653   :  { %11488 = vmatpush1.bf16.msra.mxu1 %v15045_v34  ;;  %11325 = vmatprep.subr.bf16.mxu0 %v15050_v8  ;;  %v15131_v34 = vld [vmem:[#allocation11 + $0x60c] ss:$16 sps:$4 sm:$0xff]   ;;  %v3210_v8 = vrot.slane %v16181_v2, %v16044_v58 }
 0x654   :  { %11489 = vmatprep.subr.bf16.mxu1 %v15053_v14  ;;  %v3214_v14 = vrot.slane %v16181_v2, %v16019_v3  ;;  %v15126_v3 = vld [vmem:[#allocation11 + $0x600] ss:$16 sps:$4 sm:$0xff]  }
 0x656   :  { %11326 = vmatpush1.bf16.msra.mxu0 %v15048_v0  ;;  %v3222_v0 = vrot.slane %v16181_v2, %v16047_v4  ;;  %v15134_v4 = vld [vmem:[#allocation11 + $0x624] ss:$16 sps:$4 sm:$0xff]   ;;  %v15137_v2 = vld [vmem:[#allocation11 + $0x62c] ss:$16 sps:$4 sm:$0xff]  }
 0x657   :  { %11490 = vmatpush1.bf16.msra.mxu1 %v15051_v17  ;;  %11327 = vmatprep.subr.bf16.mxu0 %v15056_v51 }
 0x658   :  { %11491 = vmatprep.subr.bf16.mxu1 %v15059_v57 }
 0x65a   :  { %11328 = vmatpush1.bf16.msra.mxu0 %v15054_v18 }
 0x65b   :  { %11492 = vmatpush1.bf16.msra.mxu1 %v15057_v62  ;;  %11329 = vmatprep.subr.bf16.mxu0 %v15062_v21 }
 0x65c   :  { %11493 = vmatprep.subr.bf16.mxu1 %v15065_v22 }
 0x65e   :  { %11330 = vmatpush1.bf16.msra.mxu0 %v15060_v24 }
 0x65f   :  { %11494 = vmatpush1.bf16.msra.mxu1 %v15063_v29  ;;  %11331 = vmatprep.subr.bf16.mxu0 %v15068_v61 }
 0x660   :  { %11495 = vmatprep.subr.bf16.mxu1 %v15071_v27 }
 0x662   :  { %11332 = vmatpush1.bf16.msra.mxu0 %v15066_v32 }
 0x663   :  { %11496 = vmatpush1.bf16.msra.mxu1 %v15069_v33  ;;  %11333 = vmatprep.subr.bf16.mxu0 %v15074_v36 }
 0x664   :  { %11497 = vmatprep.subr.bf16.mxu1 %v15077_v48  ;;  %v15129_v48 = vld [vmem:[#allocation11 + $0x608] ss:$16 sps:$4 sm:$0xff]  }
 0x666   :  { %11334 = vmatpush1.bf16.msra.mxu0 %v15072_v45 }
 0x667   :  { %11498 = vmatpush1.bf16.msra.mxu1 %v15075_v38  ;;  %11335 = vmatprep.subr.bf16.mxu0 %v15080_v19  ;;  %v15132_v19 = vld [vmem:[#allocation11 + $0x620] ss:$16 sps:$4 sm:$0xff]  }
 0x668   :  { %11499 = vmatprep.subr.bf16.mxu1 %v15083_v37  ;;  %v15135_v37 = vld [vmem:[#allocation11 + $0x628] ss:$16 sps:$4 sm:$0xff]  }
 0x66a   :  { %11336 = vmatpush1.bf16.msra.mxu0 %v15078_v55  ;;  %v15140_v55 = vld [vmem:[#allocation11 + $0x644] ss:$16 sps:$4 sm:$0xff]  }
 0x66b   :  { %11500 = vmatpush1.bf16.msra.mxu1 %v15081_v40  ;;  %11337 = vmatprep.subr.bf16.mxu0 %v15086_v16  ;;  %v15143_v40 = vld [vmem:[#allocation11 + $0x64c] ss:$16 sps:$4 sm:$0xff]   ;;  %v15138_v16 = vld [vmem:[#allocation11 + $0x640] ss:$16 sps:$4 sm:$0xff]  }
 0x66c   :  { %11501 = vmatprep.subr.bf16.mxu1 %v15089_v41  ;;  %v15141_v41 = vld [vmem:[#allocation11 + $0x648] ss:$16 sps:$4 sm:$0xff]  }
 0x66e   :  { %11338 = vmatpush1.bf16.msra.mxu0 %v15084_v43  ;;  %v15146_v43 = vld [vmem:[#allocation11 + $0x664] ss:$16 sps:$4 sm:$0xff]  }
 0x66f   :  { %11502 = vmatpush1.bf16.msra.mxu1 %v15087_v23  ;;  %11339 = vmatprep.subr.bf16.mxu0 %v15092_v59  ;;  %v15149_v23 = vld [vmem:[#allocation11 + $0x66c] ss:$16 sps:$4 sm:$0xff]   ;;  %v15144_v59 = vld [vmem:[#allocation11 + $0x660] ss:$16 sps:$4 sm:$0xff]  }
 0x670   :  { %11503 = vmatprep.subr.bf16.mxu1 %v15095_v12  ;;  %v15147_v12 = vld [vmem:[#allocation11 + $0x668] ss:$16 sps:$4 sm:$0xff]  }
 0x672   :  { %11340 = vmatpush1.bf16.msra.mxu0 %v15090_v47  ;;  %v15152_v47 = vld [vmem:[#allocation11 + $0x684] ss:$16 sps:$4 sm:$0xff]  }
 0x673   :  { %11504 = vmatpush1.bf16.msra.mxu1 %v15093_v49  ;;  %11341 = vmatprep.subr.bf16.mxu0 %v15098_v35  ;;  %v15155_v49 = vld [vmem:[#allocation11 + $0x68c] ss:$16 sps:$4 sm:$0xff]   ;;  %v15150_v35 = vld [vmem:[#allocation11 + $0x680] ss:$16 sps:$4 sm:$0xff]  }
 0x674   :  { %11505 = vmatprep.subr.bf16.mxu1 %v15101_v6  ;;  %v15153_v6 = vld [vmem:[#allocation11 + $0x688] ss:$16 sps:$4 sm:$0xff]  }
 0x676   :  { %11342 = vmatpush1.bf16.msra.mxu0 %v15096_v9  ;;  %v15158_v9 = vld [vmem:[#allocation11 + $0x6a4] ss:$16 sps:$4 sm:$0xff]  }
 0x677   :  { %11506 = vmatpush1.bf16.msra.mxu1 %v15099_v31  ;;  %11343 = vmatprep.subr.bf16.mxu0 %v15104_v60  ;;  %v15161_v31 = vld [vmem:[#allocation11 + $0x6ac] ss:$16 sps:$4 sm:$0xff]   ;;  %v15156_v60 = vld [vmem:[#allocation11 + $0x6a0] ss:$16 sps:$4 sm:$0xff]  }
 0x678   :  { %11507 = vmatprep.subr.bf16.mxu1 %v15107_v50  ;;  %v15159_v50 = vld [vmem:[#allocation11 + $0x6a8] ss:$16 sps:$4 sm:$0xff]  }
 0x67a   :  { %11344 = vmatpush1.bf16.msra.mxu0 %v15102_v42  ;;  %v15164_v42 = vld [vmem:[#allocation11 + $0x6c4] ss:$16 sps:$4 sm:$0xff]  }
 0x67b   :  { %11508 = vmatpush1.bf16.msra.mxu1 %v15105_v25  ;;  %11345 = vmatprep.subr.bf16.mxu0 %v15110_v11  ;;  %v15167_v25 = vld [vmem:[#allocation11 + $0x6cc] ss:$16 sps:$4 sm:$0xff]   ;;  %v15162_v11 = vld [vmem:[#allocation11 + $0x6c0] ss:$16 sps:$4 sm:$0xff]  }
 0x67c   :  { %11509 = vmatprep.subr.bf16.mxu1 %v15113_v54  ;;  %v15165_v54 = vld [vmem:[#allocation11 + $0x6c8] ss:$16 sps:$4 sm:$0xff]  }
 0x67e   :  { %11346 = vmatpush1.bf16.msra.mxu0 %v15108_v44  ;;  %v15170_v44 = vld [vmem:[#allocation11 + $0x6e4] ss:$16 sps:$4 sm:$0xff]  }
 0x67f   :  { %11510 = vmatpush1.bf16.msra.mxu1 %v15111_v52  ;;  %11347 = vmatprep.subr.bf16.mxu0 %v15116_v63  ;;  %v15173_v52 = vld [vmem:[#allocation11 + $0x6ec] ss:$16 sps:$4 sm:$0xff]   ;;  %v15168_v63 = vld [vmem:[#allocation11 + $0x6e0] ss:$16 sps:$4 sm:$0xff]  }
 0x680   :  { %11511 = vmatprep.subr.bf16.mxu1 %v15119_v28  ;;  %v15171_v28 = vld [vmem:[#allocation11 + $0x6e8] ss:$16 sps:$4 sm:$0xff]  }
 0x682   :  { %11348 = vmatpush1.bf16.msra.mxu0 %v15114_v5  ;;  %v15176_v5 = vld [vmem:[#allocation11 + $0x704] ss:$16 sps:$4 sm:$0xff]  }
 0x683   :  { %11512 = vmatpush1.bf16.msra.mxu1 %v15117_v30  ;;  %11349 = vmatprep.subr.bf16.mxu0 %v15122_v1  ;;  %v15179_v30 = vld [vmem:[#allocation11 + $0x70c] ss:$16 sps:$4 sm:$0xff]   ;;  %v15174_v1 = vld [vmem:[#allocation11 + $0x700] ss:$16 sps:$4 sm:$0xff]  }
 0x684   :  { %11513 = vmatprep.subr.bf16.mxu1 %v15125_v46  ;;  %v15177_v46 = vld [vmem:[#allocation11 + $0x708] ss:$16 sps:$4 sm:$0xff]  }
 0x686   :  { %11350 = vmatpush1.bf16.msra.mxu0 %v15120_v7  ;;  %v15182_v7 = vld [vmem:[#allocation11 + $0x724] ss:$16 sps:$4 sm:$0xff]  }
 0x687   :  { %11514 = vmatpush1.bf16.msra.mxu1 %v15123_v10  ;;  %11360 = vmatprep.subr.bf16.mxu0 %v15128_v13  ;;  %v15185_v10 = vld [vmem:[#allocation11 + $0x72c] ss:$16 sps:$4 sm:$0xff]   ;;  %v15180_v13 = vld [vmem:[#allocation11 + $0x720] ss:$16 sps:$4 sm:$0xff]  }
 0x688   :  { %11524 = vmatprep.subr.bf16.mxu1 %v15131_v34  ;;  %v15183_v34 = vld [vmem:[#allocation11 + $0x728] ss:$16 sps:$4 sm:$0xff]  }
 0x69c   :  { %v9328_v17 = vpop.f32.mrb[20].mxu0 }
 0x69d   :  { %v14661_v51 = vadd.f32 %v9328_v17, %v3210_v8  ;;  %v16203_v57 = vpop.f32.mrb[20].mxu1  ;;  %v9330_v18 = vpop.f32.mrb[21].mxu0  ;;  %v15188_v8 = vld [vmem:[#allocation11 + $0x744] ss:$16 sps:$4 sm:$0xff]   ;;  %v15189_v17 = vld [vmem:[#allocation11 + $0x748] ss:$16 sps:$4 sm:$0xff]  }
 0x69e   :  { %v14662_v62 = vadd.f32 %v9330_v18, %v3214_v14  ;;  %v9658_v21 = vpop.f32.mrb[21].mxu1  ;;  %v9332_v22 = vpop.f32.mrb[22].mxu0  ;;  %v15191_v14 = vld [vmem:[#allocation11 + $0x74c] ss:$16 sps:$4 sm:$0xff]  }
 0x69f   :  { %v9667_v24 = vmax.f32 %v14661_v51, 0.0  ;;  %v14664_v29 = vadd.f32 %v9658_v21, %v3222_v0  ;;  %v9660_v61 = vpop.f32.mrb[22].mxu1  ;;  %v9333_v27 = vpop.f32.mrb[23].mxu0  ;;  %v15186_v0 = vld [vmem:[#allocation11 + $0x740] ss:$16 sps:$4 sm:$0xff]  }
 0x6a0   :  { %v9668_v32 = vmax.f32 %v14662_v62, 0.0  ;;  %v9661_v58 = vpop.f32.mrb[23].mxu1  ;;  %v15194_v51 = vld [vmem:[#allocation11 + $0x764] ss:$16 sps:$4 sm:$0xff]   ;;  %v15197_v18 = vld [vmem:[#allocation11 + $0x76c] ss:$16 sps:$4 sm:$0xff]  }
 0x6a1   :  { %v9670_v33 = vmax.f32 %v14664_v29, 0.0  ;;  %v9675_v45 = vpack.c.bf16 %v9667_v24, %v9667_v24  ;;  %v15192_v62 = vld [vmem:[#allocation11 + $0x760] ss:$16 sps:$4 sm:$0xff]   ;;  %v15195_v21 = vld [vmem:[#allocation11 + $0x768] ss:$16 sps:$4 sm:$0xff]  }
 0x6a2   :  { %v9676_v36 = vpack.c.bf16 %v9668_v32, %v9668_v32  ;;  %v15200_v22 = vld [vmem:[#allocation11 + $0x784] ss:$16 sps:$4 sm:$0xff]   ;;  %v15203_v24 = vld [vmem:[#allocation11 + $0x78c] ss:$16 sps:$4 sm:$0xff]   ;;  %v15198_v29 = vld [vmem:[#allocation11 + $0x780] ss:$16 sps:$4 sm:$0xff]  }
 0x6a3   :  { %v9678_v38 = vpack.c.bf16 %v9670_v33, %v9670_v33  ;;  %v15201_v61 = vld [vmem:[#allocation11 + $0x788] ss:$16 sps:$4 sm:$0xff]   ;;  %v15206_v27 = vld [vmem:[#allocation11 + $0x7a4] ss:$16 sps:$4 sm:$0xff]   ;;  %v15209_v32 = vld [vmem:[#allocation11 + $0x7ac] ss:$16 sps:$4 sm:$0xff]  }
 0x6a4   :  { %11351 = vmatprep.mubr.bf16.mxu0 %v9676_v36  ;;  %11515 = vmatprep.mubr.bf16.mxu1 %v9676_v36  ;;  %v15204_v58 = vld [vmem:[#allocation11 + $0x7a0] ss:$16 sps:$4 sm:$0xff]   ;;  %v15207_v33 = vld [vmem:[#allocation11 + $0x7a8] ss:$16 sps:$4 sm:$0xff]  }
 0x6a5   :  { %11352 = vmatmul.mubr.bf16.vlgmr.msra.gmra.mrb[24].mxu0 %v9675_v45  ;;  %11516 = vmatmul.mubr.bf16.vlgmr.msra.gmra.mrb[24].mxu1 %v9675_v45  ;;  %v15448_v36 = vld [vmem:[#allocation10] sm:$0xff] }
 0x6a6   :  { %11361 = vmatpush1.bf16.msra.mxu0 %v15126_v3  ;;  %11525 = vmatpush1.bf16.msra.mxu1 %v15129_v48  ;;  %v3218_v3 = vrot.slane %v15448_v36, %v16074_v26  ;;  %v15212_v48 = vld [vmem:[#allocation11 + $0x7c4] ss:$16 sps:$4 sm:$0xff]   ;;  %v15215_v45 = vld [vmem:[#allocation11 + $0x7cc] ss:$16 sps:$4 sm:$0xff]   ;;  %v15224_v26 = vld [vmem:[#allocation14 + $0x4] ss:$16 sps:$4 sm:$0xff]  }
 0x6a7   :  { %11392 = vmatprep.mubr.bf16.mxu0 %v9678_v38  ;;  %11556 = vmatprep.mubr.bf16.mxu1 %v9678_v38  ;;  %v15288_v36 = vld [vmem:[#allocation14 + $0x160] ss:$16 sps:$4 sm:$0xff]  }
 0x6a8   :  { %11362 = vmatprep.subr.bf16.mxu0 %v15134_v4  ;;  %11526 = vmatprep.subr.bf16.mxu1 %v15137_v2  ;;  %v15210_v4 = vld [vmem:[#allocation11 + $0x7c0] ss:$16 sps:$4 sm:$0xff]   ;;  %v15213_v2 = vld [vmem:[#allocation11 + $0x7c8] ss:$16 sps:$4 sm:$0xff]   ;;  %v14663_v38 = vadd.f32 %v16203_v57, %v3218_v3  ;;  %v15291_v3 = vld [vmem:[#allocation14 + $0x168] ss:$16 sps:$4 sm:$0xff]  }
 0x6a9   :  { %v15230_v57 = vld [vmem:[#allocation14 + $0x24] ss:$16 sps:$4 sm:$0xff]  }
 0x6aa   :  { %11363 = vmatpush1.bf16.msra.mxu0 %v15132_v19  ;;  %11527 = vmatpush1.bf16.msra.mxu1 %v15135_v37  ;;  %v15218_v19 = vld [vmem:[#allocation11 + $0x7e4] ss:$16 sps:$4 sm:$0xff]   ;;  %v15221_v37 = vld [vmem:[#allocation11 + $0x7ec] ss:$16 sps:$4 sm:$0xff]  }
 0x6ab   :  { %11364 = vmatprep.subr.bf16.mxu0 %v15140_v55  ;;  %11528 = vmatprep.subr.bf16.mxu1 %v15143_v40  ;;  %v15216_v55 = vld [vmem:[#allocation11 + $0x7e0] ss:$16 sps:$4 sm:$0xff]   ;;  %v15219_v40 = vld [vmem:[#allocation11 + $0x7e8] ss:$16 sps:$4 sm:$0xff]  }
 0x6ae   :  { %11365 = vmatpush1.bf16.msra.mxu0 %v15138_v16  ;;  %11529 = vmatpush1.bf16.msra.mxu1 %v15141_v41  ;;  %v9669_v16 = vmax.f32 %v14663_v38, 0.0  ;;  %v15227_v41 = vld [vmem:[#allocation14 + $0xc] ss:$16 sps:$4 sm:$0xff]   ;;  %v15302_v38 = vld [vmem:[#allocation14 + $0x1a4] ss:$16 sps:$4 sm:$0xff]  }
 0x6af   :  { %11366 = vmatprep.subr.bf16.mxu0 %v15146_v43  ;;  %11530 = vmatprep.subr.bf16.mxu1 %v15149_v23  ;;  %v15222_v43 = vld [vmem:[#allocation14] ss:$16 sps:$4 sm:$0xff]   ;;  %v15225_v23 = vld [vmem:[#allocation14 + $0x8] ss:$16 sps:$4 sm:$0xff]  }
 0x6b2   :  { %11367 = vmatpush1.bf16.msra.mxu0 %v15144_v59  ;;  %11531 = vmatpush1.bf16.msra.mxu1 %v15147_v12  ;;  %v9677_v59 = vpack.c.bf16 %v9669_v16, %v9669_v16  ;;  %v15233_v12 = vld [vmem:[#allocation14 + $0x2c] ss:$16 sps:$4 sm:$0xff]  }
 0x6b3   :  { %11368 = vmatprep.subr.bf16.mxu0 %v15152_v47  ;;  %11532 = vmatprep.subr.bf16.mxu1 %v15155_v49  ;;  %v15228_v47 = vld [vmem:[#allocation14 + $0x20] ss:$16 sps:$4 sm:$0xff]   ;;  %v15231_v49 = vld [vmem:[#allocation14 + $0x28] ss:$16 sps:$4 sm:$0xff]   ;;  %v15311_v16 = vld [vmem:[#allocation14 + $0x1cc] ss:$16 sps:$4 sm:$0xff]  }
 0x6b6   :  { %11369 = vmatpush1.bf16.msra.mxu0 %v15150_v35  ;;  %11533 = vmatpush1.bf16.msra.mxu1 %v15153_v6  ;;  %v15236_v35 = vld [vmem:[#allocation14 + $0x44] ss:$16 sps:$4 sm:$0xff]   ;;  %v15239_v6 = vld [vmem:[#allocation14 + $0x4c] ss:$16 sps:$4 sm:$0xff]  }
 0x6b7   :  { %11370 = vmatprep.subr.bf16.mxu0 %v15158_v9  ;;  %11534 = vmatprep.subr.bf16.mxu1 %v15161_v31  ;;  %v15234_v9 = vld [vmem:[#allocation14 + $0x40] ss:$16 sps:$4 sm:$0xff]   ;;  %v15237_v31 = vld [vmem:[#allocation14 + $0x48] ss:$16 sps:$4 sm:$0xff]  }
 0x6ba   :  { %11371 = vmatpush1.bf16.msra.mxu0 %v15156_v60  ;;  %11535 = vmatpush1.bf16.msra.mxu1 %v15159_v50  ;;  %v15242_v60 = vld [vmem:[#allocation14 + $0x64] ss:$16 sps:$4 sm:$0xff]   ;;  %v15245_v50 = vld [vmem:[#allocation14 + $0x6c] ss:$16 sps:$4 sm:$0xff]  }
 0x6bb   :  { %11372 = vmatprep.subr.bf16.mxu0 %v15164_v42  ;;  %11536 = vmatprep.subr.bf16.mxu1 %v15167_v25  ;;  %v15240_v42 = vld [vmem:[#allocation14 + $0x60] ss:$16 sps:$4 sm:$0xff]   ;;  %v15243_v25 = vld [vmem:[#allocation14 + $0x68] ss:$16 sps:$4 sm:$0xff]  }
 0x6be   :  { %11373 = vmatpush1.bf16.msra.mxu0 %v15162_v11  ;;  %11537 = vmatpush1.bf16.msra.mxu1 %v15165_v54  ;;  %v15248_v11 = vld [vmem:[#allocation14 + $0x84] ss:$16 sps:$4 sm:$0xff]   ;;  %v15251_v54 = vld [vmem:[#allocation14 + $0x8c] ss:$16 sps:$4 sm:$0xff]  }
 0x6bf   :  { %11374 = vmatprep.subr.bf16.mxu0 %v15170_v44  ;;  %11538 = vmatprep.subr.bf16.mxu1 %v15173_v52  ;;  %v15246_v44 = vld [vmem:[#allocation14 + $0x80] ss:$16 sps:$4 sm:$0xff]   ;;  %v15249_v52 = vld [vmem:[#allocation14 + $0x88] ss:$16 sps:$4 sm:$0xff]  }
 0x6c2   :  { %11375 = vmatpush1.bf16.msra.mxu0 %v15168_v63  ;;  %11539 = vmatpush1.bf16.msra.mxu1 %v15171_v28  ;;  %v15254_v63 = vld [vmem:[#allocation14 + $0xa4] ss:$16 sps:$4 sm:$0xff]   ;;  %v15257_v28 = vld [vmem:[#allocation14 + $0xac] ss:$16 sps:$4 sm:$0xff]  }
 0x6c3   :  { %11376 = vmatprep.subr.bf16.mxu0 %v15176_v5  ;;  %11540 = vmatprep.subr.bf16.mxu1 %v15179_v30  ;;  %v15252_v5 = vld [vmem:[#allocation14 + $0xa0] ss:$16 sps:$4 sm:$0xff]   ;;  %v15255_v30 = vld [vmem:[#allocation14 + $0xa8] ss:$16 sps:$4 sm:$0xff]  }
 0x6c6   :  { %11377 = vmatpush1.bf16.msra.mxu0 %v15174_v1  ;;  %11541 = vmatpush1.bf16.msra.mxu1 %v15177_v46  ;;  %v15260_v1 = vld [vmem:[#allocation14 + $0xc4] ss:$16 sps:$4 sm:$0xff]   ;;  %v15263_v46 = vld [vmem:[#allocation14 + $0xcc] ss:$16 sps:$4 sm:$0xff]  }
 0x6c7   :  { %11378 = vmatprep.subr.bf16.mxu0 %v15182_v7  ;;  %11542 = vmatprep.subr.bf16.mxu1 %v15185_v10  ;;  %v15258_v7 = vld [vmem:[#allocation14 + $0xc0] ss:$16 sps:$4 sm:$0xff]   ;;  %v15261_v10 = vld [vmem:[#allocation14 + $0xc8] ss:$16 sps:$4 sm:$0xff]  }
 0x6ca   :  { %11379 = vmatpush1.bf16.msra.mxu0 %v15180_v13  ;;  %11543 = vmatpush1.bf16.msra.mxu1 %v15183_v34  ;;  %v15266_v13 = vld [vmem:[#allocation14 + $0xe4] ss:$16 sps:$4 sm:$0xff]   ;;  %v15269_v34 = vld [vmem:[#allocation14 + $0xec] ss:$16 sps:$4 sm:$0xff]  }
 0x6cb   :  { %11380 = vmatprep.subr.bf16.mxu0 %v15188_v8  ;;  %11544 = vmatprep.subr.bf16.mxu1 %v15191_v14  ;;  %v15264_v8 = vld [vmem:[#allocation14 + $0xe0] ss:$16 sps:$4 sm:$0xff]   ;;  %v15267_v14 = vld [vmem:[#allocation14 + $0xe8] ss:$16 sps:$4 sm:$0xff]  }
 0x6ce   :  { %11381 = vmatpush1.bf16.msra.mxu0 %v15186_v0  ;;  %11545 = vmatpush1.bf16.msra.mxu1 %v15189_v17  ;;  %v15272_v0 = vld [vmem:[#allocation14 + $0x104] ss:$16 sps:$4 sm:$0xff]   ;;  %v15275_v17 = vld [vmem:[#allocation14 + $0x10c] ss:$16 sps:$4 sm:$0xff]  }
 0x6cf   :  { %11382 = vmatprep.subr.bf16.mxu0 %v15194_v51  ;;  %11546 = vmatprep.subr.bf16.mxu1 %v15197_v18  ;;  %v15270_v51 = vld [vmem:[#allocation14 + $0x100] ss:$16 sps:$4 sm:$0xff]   ;;  %v15273_v18 = vld [vmem:[#allocation14 + $0x108] ss:$16 sps:$4 sm:$0xff]  }
 0x6d2   :  { %11383 = vmatpush1.bf16.msra.mxu0 %v15192_v62  ;;  %11547 = vmatpush1.bf16.msra.mxu1 %v15195_v21  ;;  %v15278_v62 = vld [vmem:[#allocation14 + $0x124] ss:$16 sps:$4 sm:$0xff]   ;;  %v15281_v21 = vld [vmem:[#allocation14 + $0x12c] ss:$16 sps:$4 sm:$0xff]  }
 0x6d3   :  { %11384 = vmatprep.subr.bf16.mxu0 %v15200_v22  ;;  %11548 = vmatprep.subr.bf16.mxu1 %v15203_v24  ;;  %v15276_v22 = vld [vmem:[#allocation14 + $0x120] ss:$16 sps:$4 sm:$0xff]   ;;  %v15279_v24 = vld [vmem:[#allocation14 + $0x128] ss:$16 sps:$4 sm:$0xff]  }
 0x6d6   :  { %11385 = vmatpush1.bf16.msra.mxu0 %v15198_v29  ;;  %11549 = vmatpush1.bf16.msra.mxu1 %v15201_v61  ;;  %v15284_v29 = vld [vmem:[#allocation14 + $0x144] ss:$16 sps:$4 sm:$0xff]   ;;  %v15287_v61 = vld [vmem:[#allocation14 + $0x14c] ss:$16 sps:$4 sm:$0xff]  }
 0x6d7   :  { %11386 = vmatprep.subr.bf16.mxu0 %v15206_v27  ;;  %11550 = vmatprep.subr.bf16.mxu1 %v15209_v32  ;;  %v15282_v27 = vld [vmem:[#allocation14 + $0x140] ss:$16 sps:$4 sm:$0xff]   ;;  %v15285_v32 = vld [vmem:[#allocation14 + $0x148] ss:$16 sps:$4 sm:$0xff]  }
 0x6da   :  { %11387 = vmatpush1.bf16.msra.mxu0 %v15204_v58  ;;  %11551 = vmatpush1.bf16.msra.mxu1 %v15207_v33  ;;  %v15290_v58 = vld [vmem:[#allocation14 + $0x164] ss:$16 sps:$4 sm:$0xff]   ;;  %v15293_v33 = vld [vmem:[#allocation14 + $0x16c] ss:$16 sps:$4 sm:$0xff]  }
 0x6db   :  { %11388 = vmatprep.subr.bf16.mxu0 %v15212_v48  ;;  %11552 = vmatprep.subr.bf16.mxu1 %v15215_v45  ;;  %v15296_v48 = vld [vmem:[#allocation14 + $0x184] ss:$16 sps:$4 sm:$0xff]   ;;  %v15299_v45 = vld [vmem:[#allocation14 + $0x18c] ss:$16 sps:$4 sm:$0xff]  }
 0x6de   :  { %11389 = vmatpush1.bf16.msra.mxu0 %v15210_v4  ;;  %11553 = vmatpush1.bf16.msra.mxu1 %v15213_v2  ;;  %v15294_v4 = vld [vmem:[#allocation14 + $0x180] ss:$16 sps:$4 sm:$0xff]   ;;  %v15297_v2 = vld [vmem:[#allocation14 + $0x188] ss:$16 sps:$4 sm:$0xff]  }
 0x6df   :  { %11390 = vmatprep.subr.bf16.mxu0 %v15218_v19  ;;  %11554 = vmatprep.subr.bf16.mxu1 %v15221_v37  ;;  %v15305_v19 = vld [vmem:[#allocation14 + $0x1ac] ss:$16 sps:$4 sm:$0xff]   ;;  %v15300_v37 = vld [vmem:[#allocation14 + $0x1a0] ss:$16 sps:$4 sm:$0xff]  }
 0x6e2   :  { %11391 = vmatpush1.bf16.msra.mxu0 %v15216_v55  ;;  %11555 = vmatpush1.bf16.msra.mxu1 %v15219_v40  ;;  %v15303_v55 = vld [vmem:[#allocation14 + $0x1a8] ss:$16 sps:$4 sm:$0xff]   ;;  %v15308_v40 = vld [vmem:[#allocation14 + $0x1c4] ss:$16 sps:$4 sm:$0xff]  }
 0x6e3   :  { %12363 = vmatprep.subr.bf16.mxu0 %v15224_v26  ;;  %12445 = vmatprep.subr.bf16.mxu1 %v15227_v41  ;;  %v15306_v26 = vld [vmem:[#allocation14 + $0x1c0] ss:$16 sps:$4 sm:$0xff]   ;;  %v15309_v41 = vld [vmem:[#allocation14 + $0x1c8] ss:$16 sps:$4 sm:$0xff]  }
 0x6e5   :  { %11393 = vmatmul.mubr.bf16.vlgmr.msra.gmra.mrb[24].mxu0 %v9677_v59  ;;  %11557 = vmatmul.mubr.bf16.vlgmr.msra.gmra.mrb[24].mxu1 %v9677_v59  ;;  %v15312_v59 = vld [vmem:[#allocation14 + $0x1e0] ss:$16 sps:$4 sm:$0xff]  }
 0x6e6   :  { %12364 = vmatpush1.bf16.msra.mxu0 %v15222_v43  ;;  %12446 = vmatpush1.bf16.msra.mxu1 %v15225_v23  ;;  %v15314_v43 = vld [vmem:[#allocation14 + $0x1e4] ss:$16 sps:$4 sm:$0xff]   ;;  %v15317_v23 = vld [vmem:[#allocation14 + $0x1ec] ss:$16 sps:$4 sm:$0xff]  }
 0x6e7   :  { %12365 = vmatprep.subr.bf16.mxu0 %v15230_v57  ;;  %12447 = vmatprep.subr.bf16.mxu1 %v15233_v12  ;;  %v15315_v57 = vld [vmem:[#allocation14 + $0x1e8] ss:$16 sps:$4 sm:$0xff]   ;;  %v15320_v12 = vld [vmem:[#allocation14 + $0x204] ss:$16 sps:$4 sm:$0xff]  }
 0x6ea   :  { %12366 = vmatpush1.bf16.msra.mxu0 %v15228_v47  ;;  %12448 = vmatpush1.bf16.msra.mxu1 %v15231_v49  ;;  %v15323_v47 = vld [vmem:[#allocation14 + $0x20c] ss:$16 sps:$4 sm:$0xff]  }
 0x6eb   :  { %12367 = vmatprep.subr.bf16.mxu0 %v15236_v35  ;;  %12449 = vmatprep.subr.bf16.mxu1 %v15239_v6  ;;  %v16207_v49 = vld [vmem:[#allocation13] sm:$0xf] }
 0x6ec   :  { %v9940_v35 = vrot.slane %v16207_v49, %v15988_v15  ;;  %v9944_v6 = vrot.slane %v16207_v49, %v15971_v56 }
 0x6ee   :  { %12368 = vmatpush1.bf16.msra.mxu0 %v15234_v9  ;;  %12450 = vmatpush1.bf16.msra.mxu1 %v15237_v31  ;;  %v9952_v9 = vrot.slane %v16207_v49, %v15991_v53 }
 0x6ef   :  { %12369 = vmatprep.subr.bf16.mxu0 %v15242_v60  ;;  %12451 = vmatprep.subr.bf16.mxu1 %v15245_v50 }
 0x6f2   :  { %12370 = vmatpush1.bf16.msra.mxu0 %v15240_v42  ;;  %12452 = vmatpush1.bf16.msra.mxu1 %v15243_v25 }
 0x6f3   :  { %12371 = vmatprep.subr.bf16.mxu0 %v15248_v11  ;;  %12453 = vmatprep.subr.bf16.mxu1 %v15251_v54 }
 0x6f6   :  { %12372 = vmatpush1.bf16.msra.mxu0 %v15246_v44  ;;  %12454 = vmatpush1.bf16.msra.mxu1 %v15249_v52 }
 0x6f7   :  { %12373 = vmatprep.subr.bf16.mxu0 %v15254_v63  ;;  %12455 = vmatprep.subr.bf16.mxu1 %v15257_v28 }
 0x6fa   :  { %12374 = vmatpush1.bf16.msra.mxu0 %v15252_v5  ;;  %12456 = vmatpush1.bf16.msra.mxu1 %v15255_v30 }
 0x6fb   :  { %12375 = vmatprep.subr.bf16.mxu0 %v15260_v1  ;;  %12457 = vmatprep.subr.bf16.mxu1 %v15263_v46 }
 0x6fe   :  { %12376 = vmatpush1.bf16.msra.mxu0 %v15258_v7  ;;  %12458 = vmatpush1.bf16.msra.mxu1 %v15261_v10  ;;  %v15318_v7 = vld [vmem:[#allocation14 + $0x200] ss:$16 sps:$4 sm:$0xff]   ;;  %v15321_v10 = vld [vmem:[#allocation14 + $0x208] ss:$16 sps:$4 sm:$0xff]  }
 0x6ff   :  { %12377 = vmatprep.subr.bf16.mxu0 %v15266_v13  ;;  %12459 = vmatprep.subr.bf16.mxu1 %v15269_v34  ;;  %v15326_v34 = vld [vmem:[#allocation14 + $0x224] ss:$16 sps:$4 sm:$0xff]  }
 0x702   :  { %12378 = vmatpush1.bf16.msra.mxu0 %v15264_v8  ;;  %12460 = vmatpush1.bf16.msra.mxu1 %v15267_v14  ;;  %v15329_v8 = vld [vmem:[#allocation14 + $0x22c] ss:$16 sps:$4 sm:$0xff]  }
 0x703   :  { %12379 = vmatprep.subr.bf16.mxu0 %v15272_v0  ;;  %12461 = vmatprep.subr.bf16.mxu1 %v15275_v17  ;;  %v15324_v0 = vld [vmem:[#allocation14 + $0x220] ss:$16 sps:$4 sm:$0xff]   ;;  %v15327_v17 = vld [vmem:[#allocation14 + $0x228] ss:$16 sps:$4 sm:$0xff]  }
 0x706   :  { %12380 = vmatpush1.bf16.msra.mxu0 %v15270_v51  ;;  %12462 = vmatpush1.bf16.msra.mxu1 %v15273_v18  ;;  %v15332_v51 = vld [vmem:[#allocation14 + $0x244] ss:$16 sps:$4 sm:$0xff]   ;;  %v15335_v18 = vld [vmem:[#allocation14 + $0x24c] ss:$16 sps:$4 sm:$0xff]  }
 0x707   :  { %12381 = vmatprep.subr.bf16.mxu0 %v15278_v62  ;;  %12463 = vmatprep.subr.bf16.mxu1 %v15281_v21  ;;  %v15330_v62 = vld [vmem:[#allocation14 + $0x240] ss:$16 sps:$4 sm:$0xff]   ;;  %v15333_v21 = vld [vmem:[#allocation14 + $0x248] ss:$16 sps:$4 sm:$0xff]  }
 0x70a   :  { %12382 = vmatpush1.bf16.msra.mxu0 %v15276_v22  ;;  %12464 = vmatpush1.bf16.msra.mxu1 %v15279_v24  ;;  %v15338_v22 = vld [vmem:[#allocation14 + $0x264] ss:$16 sps:$4 sm:$0xff]   ;;  %v15341_v24 = vld [vmem:[#allocation14 + $0x26c] ss:$16 sps:$4 sm:$0xff]  }
 0x70b   :  { %12383 = vmatprep.subr.bf16.mxu0 %v15284_v29  ;;  %12465 = vmatprep.subr.bf16.mxu1 %v15287_v61  ;;  %v15336_v29 = vld [vmem:[#allocation14 + $0x260] ss:$16 sps:$4 sm:$0xff]   ;;  %v15339_v61 = vld [vmem:[#allocation14 + $0x268] ss:$16 sps:$4 sm:$0xff]  }
 0x70e   :  { %12384 = vmatpush1.bf16.msra.mxu0 %v15282_v27  ;;  %12466 = vmatpush1.bf16.msra.mxu1 %v15285_v32  ;;  %v15344_v27 = vld [vmem:[#allocation14 + $0x284] ss:$16 sps:$4 sm:$0xff]   ;;  %v15347_v32 = vld [vmem:[#allocation14 + $0x28c] ss:$16 sps:$4 sm:$0xff]  }
 0x70f   :  { %12385 = vmatprep.subr.bf16.mxu0 %v15290_v58  ;;  %12467 = vmatprep.subr.bf16.mxu1 %v15293_v33  ;;  %v15342_v58 = vld [vmem:[#allocation14 + $0x280] ss:$16 sps:$4 sm:$0xff]   ;;  %v15345_v33 = vld [vmem:[#allocation14 + $0x288] ss:$16 sps:$4 sm:$0xff]  }
 0x712   :  { %12386 = vmatpush1.bf16.msra.mxu0 %v15288_v36  ;;  %12468 = vmatpush1.bf16.msra.mxu1 %v15291_v3  ;;  %v15350_v36 = vld [vmem:[#allocation14 + $0x2a4] ss:$16 sps:$4 sm:$0xff]   ;;  %v15353_v3 = vld [vmem:[#allocation14 + $0x2ac] ss:$16 sps:$4 sm:$0xff]  }
 0x713   :  { %12387 = vmatprep.subr.bf16.mxu0 %v15296_v48  ;;  %12469 = vmatprep.subr.bf16.mxu1 %v15299_v45  ;;  %v15348_v48 = vld [vmem:[#allocation14 + $0x2a0] ss:$16 sps:$4 sm:$0xff]   ;;  %v15351_v45 = vld [vmem:[#allocation14 + $0x2a8] ss:$16 sps:$4 sm:$0xff]  }
 0x716   :  { %12388 = vmatpush1.bf16.msra.mxu0 %v15294_v4  ;;  %12470 = vmatpush1.bf16.msra.mxu1 %v15297_v2  ;;  %v15356_v4 = vld [vmem:[#allocation14 + $0x2c4] ss:$16 sps:$4 sm:$0xff]   ;;  %v15359_v2 = vld [vmem:[#allocation14 + $0x2cc] ss:$16 sps:$4 sm:$0xff]  }
 0x717   :  { %12389 = vmatprep.subr.bf16.mxu0 %v15302_v38  ;;  %12471 = vmatprep.subr.bf16.mxu1 %v15305_v19  ;;  %v15354_v38 = vld [vmem:[#allocation14 + $0x2c0] ss:$16 sps:$4 sm:$0xff]   ;;  %v15357_v19 = vld [vmem:[#allocation14 + $0x2c8] ss:$16 sps:$4 sm:$0xff]  }
 0x71a   :  { %12390 = vmatpush1.bf16.msra.mxu0 %v15300_v37  ;;  %12472 = vmatpush1.bf16.msra.mxu1 %v15303_v55  ;;  %v15362_v37 = vld [vmem:[#allocation14 + $0x2e4] ss:$16 sps:$4 sm:$0xff]   ;;  %v15365_v55 = vld [vmem:[#allocation14 + $0x2ec] ss:$16 sps:$4 sm:$0xff]  }
 0x71b   :  { %12391 = vmatprep.subr.bf16.mxu0 %v15308_v40  ;;  %12473 = vmatprep.subr.bf16.mxu1 %v15311_v16  ;;  %v15360_v40 = vld [vmem:[#allocation14 + $0x2e0] ss:$16 sps:$4 sm:$0xff]   ;;  %v15363_v16 = vld [vmem:[#allocation14 + $0x2e8] ss:$16 sps:$4 sm:$0xff]  }
 0x71e   :  { %12392 = vmatpush1.bf16.msra.mxu0 %v15306_v26  ;;  %12474 = vmatpush1.bf16.msra.mxu1 %v15309_v41  ;;  %v15368_v26 = vld [vmem:[#allocation14 + $0x304] ss:$16 sps:$4 sm:$0xff]   ;;  %v15371_v41 = vld [vmem:[#allocation14 + $0x30c] ss:$16 sps:$4 sm:$0xff]  }
 0x71f   :  { %12393 = vmatprep.subr.bf16.mxu0 %v15314_v43  ;;  %12475 = vmatprep.subr.bf16.mxu1 %v15317_v23  ;;  %v15366_v43 = vld [vmem:[#allocation14 + $0x300] ss:$16 sps:$4 sm:$0xff]   ;;  %v15369_v23 = vld [vmem:[#allocation14 + $0x308] ss:$16 sps:$4 sm:$0xff]  }
 0x722   :  { %12394 = vmatpush1.bf16.msra.mxu0 %v15312_v59  ;;  %12476 = vmatpush1.bf16.msra.mxu1 %v15315_v57  ;;  %v15374_v59 = vld [vmem:[#allocation14 + $0x324] ss:$16 sps:$4 sm:$0xff]   ;;  %v15377_v57 = vld [vmem:[#allocation14 + $0x32c] ss:$16 sps:$4 sm:$0xff]  }
 0x723   :  { %12404 = vmatprep.subr.bf16.mxu0 %v15320_v12  ;;  %12486 = vmatprep.subr.bf16.mxu1 %v15323_v47  ;;  %v15372_v12 = vld [vmem:[#allocation14 + $0x320] ss:$16 sps:$4 sm:$0xff]   ;;  %v15375_v47 = vld [vmem:[#allocation14 + $0x328] ss:$16 sps:$4 sm:$0xff]  }
 0x7b8   :  { %v11394_v31 = vpop.f32.mrb[24].mxu0  ;;  %v16215_v60 = vpop.f32.mrb[24].mxu1 }
 0x7b9   :  { %v14665_v50 = vadd.f32 %v11394_v31, %v9940_v35  ;;  %v11396_v42 = vpop.f32.mrb[25].mxu0  ;;  %v11560_v25 = vpop.f32.mrb[25].mxu1  ;;  %v15380_v35 = vld [vmem:[#allocation14 + $0x344] ss:$16 sps:$4 sm:$0xff]   ;;  %v15381_v31 = vld [vmem:[#allocation14 + $0x348] ss:$16 sps:$4 sm:$0xff]  }
 0x7ba   :  { %v14666_v11 = vadd.f32 %v11396_v42, %v9944_v6  ;;  %v14668_v54 = vadd.f32 %v11560_v25, %v9952_v9  ;;  %v11398_v44 = vpop.f32.mrb[26].mxu0  ;;  %v11562_v52 = vpop.f32.mrb[26].mxu1  ;;  %v15383_v6 = vld [vmem:[#allocation14 + $0x34c] ss:$16 sps:$4 sm:$0xff]   ;;  %v15378_v9 = vld [vmem:[#allocation14 + $0x340] ss:$16 sps:$4 sm:$0xff]  }
 0x7bb   :  { %v11565_v63 = vmax.f32 %v14665_v50, 0.0  ;;  %v11399_v28 = vpop.f32.mrb[27].mxu0  ;;  %v11563_v5 = vpop.f32.mrb[27].mxu1  ;;  %v15386_v50 = vld [vmem:[#allocation14 + $0x364] ss:$16 sps:$4 sm:$0xff]  }
 0x7bc   :  { %v11566_v30 = vmax.f32 %v14666_v11, 0.0  ;;  %v11568_v1 = vmax.f32 %v14668_v54, 0.0  ;;  %v15389_v42 = vld [vmem:[#allocation14 + $0x36c] ss:$16 sps:$4 sm:$0xff]   ;;  %v15384_v25 = vld [vmem:[#allocation14 + $0x360] ss:$16 sps:$4 sm:$0xff]  }
 0x7bd   :  { %v11569_v13 = vpack.c.bf16 %v11565_v63, %v11565_v63  ;;  %v15387_v11 = vld [vmem:[#allocation14 + $0x368] ss:$16 sps:$4 sm:$0xff]   ;;  %v15392_v54 = vld [vmem:[#allocation14 + $0x384] ss:$16 sps:$4 sm:$0xff]   ;;  %v15395_v44 = vld [vmem:[#allocation14 + $0x38c] ss:$16 sps:$4 sm:$0xff]  }
 0x7be   :  { %v11570_v46 = vpack.c.bf16 %v11566_v30, %v11566_v30  ;;  %v11572_v14 = vpack.c.bf16 %v11568_v1, %v11568_v1  ;;  %v15390_v52 = vld [vmem:[#allocation14 + $0x380] ss:$16 sps:$4 sm:$0xff]   ;;  %v15393_v63 = vld [vmem:[#allocation14 + $0x388] ss:$16 sps:$4 sm:$0xff]   ;;  %v15398_v28 = vld [vmem:[#allocation14 + $0x3a4] ss:$16 sps:$4 sm:$0xff]  }
 0x7bf   :  { %v15401_v5 = vld [vmem:[#allocation14 + $0x3ac] ss:$16 sps:$4 sm:$0xff]   ;;  %v15396_v30 = vld [vmem:[#allocation14 + $0x3a0] ss:$16 sps:$4 sm:$0xff]   ;;  %v15399_v1 = vld [vmem:[#allocation14 + $0x3a8] ss:$16 sps:$4 sm:$0xff]  }
 0x7c0   :  { %12395 = vmatprep.mubr.bf16.mxu0 %v11570_v46  ;;  %12477 = vmatprep.mubr.bf16.mxu1 %v11570_v46  ;;  %v9948_v46 = vrot.slane %v16207_v49, %v16016_v20  ;;  %v15414_v49 = vld [vmem:[#allocation17 + $0x40] sm:$0xff]  }
 0x7c1   :  { %12396 = vmatmul.mubr.bf16.vlgmr.msra.gmra.mrb[28].mxu0 %v11569_v13  ;;  %12478 = vmatmul.mubr.bf16.vlgmr.msra.gmra.mrb[28].mxu1 %v11569_v13  ;;  %v15402_v13 = vld [vmem:[#allocation14 + $0x3c0] ss:$16 sps:$4 sm:$0xff]  }
 0x7c2   :  { %12405 = vmatpush1.bf16.msra.mxu0 %v15318_v7  ;;  %12487 = vmatpush1.bf16.msra.mxu1 %v15321_v10  ;;  %v15404_v7 = vld [vmem:[#allocation14 + $0x3c4] ss:$16 sps:$4 sm:$0xff]   ;;  %v15407_v10 = vld [vmem:[#allocation14 + $0x3cc] ss:$16 sps:$4 sm:$0xff]  }
 0x7c3   :  { %12436 = vmatprep.mubr.bf16.mxu0 %v11572_v14  ;;  %12518 = vmatprep.mubr.bf16.mxu1 %v11572_v14  ;;  %v15410_v14 = vld [vmem:[#allocation14 + $0x3e4] ss:$16 sps:$4 sm:$0xff]  }
 0x7c4   :  { %12406 = vmatprep.subr.bf16.mxu0 %v15326_v34  ;;  %12488 = vmatprep.subr.bf16.mxu1 %v15329_v8  ;;  %v15405_v34 = vld [vmem:[#allocation14 + $0x3c8] ss:$16 sps:$4 sm:$0xff]   ;;  %v14667_v8 = vadd.f32 %v16215_v60, %v9948_v46  ;;  %v15418_v60 = vld [vmem:[#allocation17 + $0x48] sm:$0xff]  }
 0x7c6   :  { %12407 = vmatpush1.bf16.msra.mxu0 %v15324_v0  ;;  %12489 = vmatpush1.bf16.msra.mxu1 %v15327_v17  ;;  %v15413_v0 = vld [vmem:[#allocation14 + $0x3ec] ss:$16 sps:$4 sm:$0xff]   ;;  %v15408_v17 = vld [vmem:[#allocation14 + $0x3e0] ss:$16 sps:$4 sm:$0xff]  }
 0x7c7   :  { %12408 = vmatprep.subr.bf16.mxu0 %v15332_v51  ;;  %12490 = vmatprep.subr.bf16.mxu1 %v15335_v18  ;;  %v15411_v51 = vld [vmem:[#allocation14 + $0x3e8] ss:$16 sps:$4 sm:$0xff]   ;;  %v11567_v18 = vmax.f32 %v14667_v8, 0.0 }
 0x7ca   :  { %12409 = vmatpush1.bf16.msra.mxu0 %v15330_v62  ;;  %12491 = vmatpush1.bf16.msra.mxu1 %v15333_v21  ;;  %v15415_v62 = vld [vmem:[#allocation17 + $0xc0] sm:$0xff]  }
 0x7cb   :  { %12410 = vmatprep.subr.bf16.mxu0 %v15338_v22  ;;  %12492 = vmatprep.subr.bf16.mxu1 %v15341_v24  ;;  %v15416_v21 = vld [vmem:[#allocation17] sm:$0xff]   ;;  %v11571_v24 = vpack.c.bf16 %v11567_v18, %v11567_v18 }
 0x7cc   :  { %v15417_v22 = vld [vmem:[#allocation17 + $0x80] sm:$0xff]  }
 0x7ce   :  { %12411 = vmatpush1.bf16.msra.mxu0 %v15336_v29  ;;  %12493 = vmatpush1.bf16.msra.mxu1 %v15339_v61  ;;  %v15419_v29 = vld [vmem:[#allocation17 + $0xc8] sm:$0xff]  }
 0x7cf   :  { %12412 = vmatprep.subr.bf16.mxu0 %v15344_v27  ;;  %12494 = vmatprep.subr.bf16.mxu1 %v15347_v32  ;;  %v15420_v61 = vld [vmem:[#allocation17 + $0x8] sm:$0xff]   ;;  %v15422_v32 = vld [vmem:[#allocation17 + $0x50] sm:$0xff]  }
 0x7d0   :  { %v15421_v27 = vld [vmem:[#allocation17 + $0x88] sm:$0xff]  }
 0x7d2   :  { %12413 = vmatpush1.bf16.msra.mxu0 %v15342_v58  ;;  %12495 = vmatpush1.bf16.msra.mxu1 %v15345_v33  ;;  %v15423_v58 = vld [vmem:[#allocation17 + $0xd0] sm:$0xff]  }
 0x7d3   :  { %12414 = vmatprep.subr.bf16.mxu0 %v15350_v36  ;;  %12496 = vmatprep.subr.bf16.mxu1 %v15353_v3  ;;  %v15424_v33 = vld [vmem:[#allocation17 + $0x10] sm:$0xff]   ;;  %v15426_v3 = vld [vmem:[#allocation17 + $0x58] sm:$0xff]  }
 0x7d4   :  { %v15425_v36 = vld [vmem:[#allocation17 + $0x90] sm:$0xff]  }
 0x7d6   :  { %12415 = vmatpush1.bf16.msra.mxu0 %v15348_v48  ;;  %12497 = vmatpush1.bf16.msra.mxu1 %v15351_v45  ;;  %v15427_v48 = vld [vmem:[#allocation17 + $0xd8] sm:$0xff]  }
 0x7d7   :  { %12416 = vmatprep.subr.bf16.mxu0 %v15356_v4  ;;  %12498 = vmatprep.subr.bf16.mxu1 %v15359_v2  ;;  %v15428_v45 = vld [vmem:[#allocation17 + $0x18] sm:$0xff]   ;;  %v15430_v2 = vld [vmem:[#allocation17 + $0x60] sm:$0xff]  }
 0x7d8   :  { %v15429_v4 = vld [vmem:[#allocation17 + $0x98] sm:$0xff]  }
 0x7da   :  { %12417 = vmatpush1.bf16.msra.mxu0 %v15354_v38  ;;  %12499 = vmatpush1.bf16.msra.mxu1 %v15357_v19  ;;  %v15431_v38 = vld [vmem:[#allocation17 + $0xe0] sm:$0xff]  }
 0x7db   :  { %12418 = vmatprep.subr.bf16.mxu0 %v15362_v37  ;;  %12500 = vmatprep.subr.bf16.mxu1 %v15365_v55  ;;  %v15432_v19 = vld [vmem:[#allocation17 + $0x20] sm:$0xff]   ;;  %v15434_v55 = vld [vmem:[#allocation17 + $0x68] sm:$0xff]  }
 0x7dc   :  { %v15433_v37 = vld [vmem:[#allocation17 + $0xa0] sm:$0xff]  }
 0x7de   :  { %12419 = vmatpush1.bf16.msra.mxu0 %v15360_v40  ;;  %12501 = vmatpush1.bf16.msra.mxu1 %v15363_v16  ;;  %v15435_v40 = vld [vmem:[#allocation17 + $0xe8] sm:$0xff]  }
 0x7df   :  { %12420 = vmatprep.subr.bf16.mxu0 %v15368_v26  ;;  %12502 = vmatprep.subr.bf16.mxu1 %v15371_v41  ;;  %v15436_v16 = vld [vmem:[#allocation17 + $0x28] sm:$0xff]   ;;  %v15438_v41 = vld [vmem:[#allocation17 + $0x70] sm:$0xff]  }
 0x7e0   :  { %v15437_v26 = vld [vmem:[#allocation17 + $0xa8] sm:$0xff]  }
 0x7e2   :  { %12421 = vmatpush1.bf16.msra.mxu0 %v15366_v43  ;;  %12503 = vmatpush1.bf16.msra.mxu1 %v15369_v23  ;;  %v15439_v43 = vld [vmem:[#allocation17 + $0xf0] sm:$0xff]  }
 0x7e3   :  { %12422 = vmatprep.subr.bf16.mxu0 %v15374_v59  ;;  %12504 = vmatprep.subr.bf16.mxu1 %v15377_v57  ;;  %v15440_v23 = vld [vmem:[#allocation17 + $0x30] sm:$0xff]   ;;  %v15442_v57 = vld [vmem:[#allocation17 + $0x78] sm:$0xff]  }
 0x7e4   :  { %v15441_v59 = vld [vmem:[#allocation17 + $0xb0] sm:$0xff]  }
 0x7e6   :  { %12423 = vmatpush1.bf16.msra.mxu0 %v15372_v12  ;;  %12505 = vmatpush1.bf16.msra.mxu1 %v15375_v47  ;;  %v15443_v12 = vld [vmem:[#allocation17 + $0xf8] sm:$0xff]  }
 0x7e7   :  { %12424 = vmatprep.subr.bf16.mxu0 %v15380_v35  ;;  %12506 = vmatprep.subr.bf16.mxu1 %v15383_v6  ;;  %v15444_v47 = vld [vmem:[#allocation17 + $0x38] sm:$0xff]  }
 0x7e8   :  { %v15445_v35 = vld [vmem:[#allocation17 + $0xb8] sm:$0xff]  }
 0x7e9   :  { %v11701_v6 = vld [vmem:[#allocation16] sm:$0xf] }
 0x7ea   :  { %12425 = vmatpush1.bf16.msra.mxu0 %v15378_v9  ;;  %12507 = vmatpush1.bf16.msra.mxu1 %v15381_v31  ;;  %v11706_v9 = vrot.slane %v11701_v6, %v15988_v15  ;;  %v11714_v31 = vrot.slane %v11701_v6, %v16016_v20 }
 0x7eb   :  { %12426 = vmatprep.subr.bf16.mxu0 %v15386_v50  ;;  %12508 = vmatprep.subr.bf16.mxu1 %v15389_v42  ;;  %v11710_v50 = vrot.slane %v11701_v6, %v15971_v56  ;;  %v11718_v42 = vrot.slane %v11701_v6, %v15991_v53 }
 0x7ee   :  { %12427 = vmatpush1.bf16.msra.mxu0 %v15384_v25  ;;  %12509 = vmatpush1.bf16.msra.mxu1 %v15387_v11 }
 0x7ef   :  { %12428 = vmatprep.subr.bf16.mxu0 %v15392_v54  ;;  %12510 = vmatprep.subr.bf16.mxu1 %v15395_v44 }
 0x7f2   :  { %12429 = vmatpush1.bf16.msra.mxu0 %v15390_v52  ;;  %12511 = vmatpush1.bf16.msra.mxu1 %v15393_v63 }
 0x7f3   :  { %12430 = vmatprep.subr.bf16.mxu0 %v15398_v28  ;;  %12512 = vmatprep.subr.bf16.mxu1 %v15401_v5 }
 0x7f6   :  { %12431 = vmatpush1.bf16.msra.mxu0 %v15396_v30  ;;  %12513 = vmatpush1.bf16.msra.mxu1 %v15399_v1 }
 0x7f7   :  { %12432 = vmatprep.subr.bf16.mxu0 %v15404_v7  ;;  %12514 = vmatprep.subr.bf16.mxu1 %v15407_v10 }
 0x7fa   :  { %12433 = vmatpush1.bf16.msra.mxu0 %v15402_v13  ;;  %12515 = vmatpush1.bf16.msra.mxu1 %v15405_v34 }
 0x7fb   :  { %12434 = vmatprep.subr.bf16.mxu0 %v15410_v14  ;;  %12516 = vmatprep.subr.bf16.mxu1 %v15413_v0  ;;  %v12879_v14 = vand.u32 127, %v438_v39 }
 0x7fd   :  { %vm12880_vm0 = vcmp.ge.s32.totalorder %v12879_v14, 1  ;;  %vm12881_vm1 = vcmp.le.s32.totalorder %v12879_v14, 4  ;;  %vm12884_vm3 = vcmp.eq.s32.totalorder %v12879_v14, 0 }
 0x7fe   :  { %12435 = vmatpush1.bf16.msra.mxu0 %v15408_v17  ;;  %12517 = vmatpush1.bf16.msra.mxu1 %v15411_v51  ;;  %v14580_v51 = vld [vmem:[#allocation19] ss:$0 sm:$0xff]  ;;  %vm12882_vm2 = vmand %vm12880_vm0, %vm12881_vm1 }
 0x7ff   :  { %14613 = vmatprep.subr.bf16.mxu0 %v15414_v49  ;;  %14635 = vmatprep.subr.bf16.mxu1 %v15415_v62 }
 0x801   :  { %12437 = vmatmul.mubr.bf16.vlgmr.msra.gmra.mrb[28].mxu0 %v11571_v24  ;;  %12519 = vmatmul.mubr.bf16.vlgmr.msra.gmra.mrb[28].mxu1 %v11571_v24 }
 0x802   :  { %14614 = vmatpush3.bf16.msra.mxu0 %v15416_v21  ;;  %14636 = vmatpush3.bf16.msra.mxu1 %v15417_v22 }
 0x803   :  { %14615 = vmatprep.subr.bf16.mxu0 %v15418_v60  ;;  %14637 = vmatprep.subr.bf16.mxu1 %v15419_v29 }
 0x806   :  { %14616 = vmatpush3.bf16.msra.mxu0 %v15420_v61  ;;  %14638 = vmatpush3.bf16.msra.mxu1 %v15421_v27 }
 0x807   :  { %14617 = vmatprep.subr.bf16.mxu0 %v15422_v32  ;;  %14639 = vmatprep.subr.bf16.mxu1 %v15423_v58 }
 0x80a   :  { %14618 = vmatpush3.bf16.msra.mxu0 %v15424_v33  ;;  %14640 = vmatpush3.bf16.msra.mxu1 %v15425_v36 }
 0x80b   :  { %14619 = vmatprep.subr.bf16.mxu0 %v15426_v3  ;;  %14641 = vmatprep.subr.bf16.mxu1 %v15427_v48 }
 0x80e   :  { %14620 = vmatpush3.bf16.msra.mxu0 %v15428_v45  ;;  %14642 = vmatpush3.bf16.msra.mxu1 %v15429_v4 }
 0x80f   :  { %14621 = vmatprep.subr.bf16.mxu0 %v15430_v2  ;;  %14643 = vmatprep.subr.bf16.mxu1 %v15431_v38 }
 0x812   :  { %14622 = vmatpush3.bf16.msra.mxu0 %v15432_v19  ;;  %14644 = vmatpush3.bf16.msra.mxu1 %v15433_v37 }
 0x813   :  { %14623 = vmatprep.subr.bf16.mxu0 %v15434_v55  ;;  %14645 = vmatprep.subr.bf16.mxu1 %v15435_v40 }
 0x816   :  { %14624 = vmatpush3.bf16.msra.mxu0 %v15436_v16  ;;  %14646 = vmatpush3.bf16.msra.mxu1 %v15437_v26 }
 0x817   :  { %14625 = vmatprep.subr.bf16.mxu0 %v15438_v41  ;;  %14647 = vmatprep.subr.bf16.mxu1 %v15439_v43 }
 0x81a   :  { %14626 = vmatpush3.bf16.msra.mxu0 %v15440_v23  ;;  %14648 = vmatpush3.bf16.msra.mxu1 %v15441_v59 }
 0x81b   :  { %14627 = vmatprep.subr.bf16.mxu0 %v15442_v57  ;;  %14649 = vmatprep.subr.bf16.mxu1 %v15443_v12 }
 0x81e   :  { %14628 = vmatpush3.bf16.msra.mxu0 %v15444_v47  ;;  %14650 = vmatpush3.bf16.msra.mxu1 %v15445_v35 }
 0x8d4   :  { %v12438_v25 = vpop.f32.mrb[28].mxu0  ;;  %v12520_v11 = vpop.f32.mrb[28].mxu1 }
 0x8d5   :  { %v14669_v54 = vadd.f32 %v12438_v25, %v11706_v9  ;;  %v14671_v44 = vadd.f32 %v12520_v11, %v11714_v31  ;;  %v12440_v52 = vpop.f32.mrb[29].mxu0  ;;  %v12522_v63 = vpop.f32.mrb[29].mxu1 }
 0x8d6   :  { %v14670_v28 = vadd.f32 %v12440_v52, %v11710_v50  ;;  %v14672_v5 = vadd.f32 %v12522_v63, %v11718_v42  ;;  %v12442_v30 = vpop.f32.mrb[30].mxu0  ;;  %v12524_v1 = vpop.f32.mrb[30].mxu1 }
 0x8d7   :  { %v12527_v46 = vmax.f32 %v14669_v54, 0.0  ;;  %v12529_v7 = vmax.f32 %v14671_v44, 0.0  ;;  %v12443_v10 = vpop.f32.mrb[31].mxu0  ;;  %v12525_v15 = vpop.f32.mrb[31].mxu1 }
 0x8d8   :  { %v12528_v13 = vmax.f32 %v14670_v28, 0.0  ;;  %v12530_v20 = vmax.f32 %v14672_v5, 0.0 }
 0x8d9   :  { %v12531_v8 = vpack.c.bf16 %v12527_v46, %v12527_v46  ;;  %v12533_v53 = vpack.c.bf16 %v12529_v7, %v12529_v7 }
 0x8da   :  { %v12532_v34 = vpack.c.bf16 %v12528_v13, %v12528_v13  ;;  %v12534_v56 = vpack.c.bf16 %v12530_v20, %v12530_v20 }
 0x8dc   :  { %12830 = vmatprep.mubr.bf16.mxu0 %v12532_v34  ;;  %12870 = vmatprep.mubr.bf16.mxu1 %v12534_v56 }
 0x8dd   :  { %12831 = vmatmul.mubr.bf16.vlgmr.msra.gmra.mrb[32].mxu0 %v12531_v8  ;;  %12871 = vmatmul.mubr.bf16.vlgmr.msra.gmra.mrb[32].mxu1 %v12533_v53 }
 0x9b0   :  { %v14629_v0 = vpop.f32.mrb[32].mxu0  ;;  %v14651_v17 = vpop.f32.mrb[32].mxu1 }
 0x9b1   :  { %v14630_v18 = vpop.f32.mrb[33].mxu0  ;;  %v14652_v49 = vpop.f32.mrb[33].mxu1 }
 0x9b2   :  { %v14631_v62 = vadd.f32 %v14630_v18, %v14629_v0  ;;  %v14653_v21 = vadd.f32 %v14652_v49, %v14651_v17  ;;  %v14632_v22 = vpop.f32.mrb[34].mxu0  ;;  %v14654_v24 = vpop.f32.mrb[34].mxu1 }
 0x9b3   :  { %v14633_v60 = vpop.f32.mrb[35].mxu0  ;;  %v14655_v29 = vpop.f32.mrb[35].mxu1 }
 0x9b4   :  { %v12833_v61 = vadd.f32 %v14631_v62, %v14580_v51 }
 0x9b6   :  { %v12873_v27 = vadd.f32 %v14653_v21, %v12833_v61 }
 0x9b8   :  { %v12883_v32 = vsel %vm12882_vm2, %v12873_v27, 0.0  ;;  %v12885_v39 = vsel %vm12884_vm3, %v12873_v27, 0.0 }
 0x9b9   :  { %12888 = vadd.xlane.f32.xlu0 %v12883_v32 }
 0x9bd   :  { %12886 = vadd.xlane.f32.xlu0 %v12885_v39 }
 0xa46   :  { %v12889_v58 = vpop.xlane.xlu0 %12888 }
 0xa47   :  { %v12890_v33 = vmul.f32 0.25, %v12889_v58 }
 0xa4a   :  { %v12887_v36 = vpop.xlane.xlu0 %12886 }
 0xa4b   :  { %v12891_v3 = vsub.f32 %v12887_v36, %v12890_v33 }
 0xa4d   :  { %v12892_v48 = vadd.f32 %v12891_v3, %v12883_v32 }
 0xa4f   :  { %12893 = vst [vmem:[#allocation20] sm:$0xff] %v12892_v48 }
 0xa50   :  { %15702 = shalt.err (!%p15699_p8)
}
 0xa51   :  { %s15703_s7 = scalar_lea.hbm %s16248_s11, 128 }
 0xa52   :  { %p15704_p9 = scmp.ne.s32.totalorder %s16248_s11, %s15703_s7  ;;  %p15707_p10 = scmp.lt.u32.totalorder %s15703_s7, %s16248_s11 }
 0xa54   :  { %p15709_p11 = pnand %p15707_p10, %p15704_p9 }
 0xa56   :  { %15712 = shalt.err (!%p15709_p11)
}
 0xa57   :  { %12903 = dma.vmem_to_hbm [thread:$0]  %s12901_s21, 128, %s16248_s11, [#allocation4]  }
 0xa58   :  { %15725 = dma.done.wait [#allocation4], 128  }
 0xa59   :  { %15726 = vsyncadd [#allocation4], 4294967168 }
 0xa5a   :  { %12907 = vsyncpa [#allocation3], 1 }
 0xa5b   :  { %12908 = vsyncpa [#allocation6], 1 }
 0xa5c   :  { %12909 = vsyncpa [#allocation9], 1 }
 0xa5d   :  { %12910 = vsyncpa [#allocation12], 1 }
 0xa5e   :  { %12911 = vsyncpa [#allocation15], 1 }
 0xa5f   :  { %12912 = vsyncpa [#allocation18], 1 }
 0xa60   :  { %12913 = vsyncpa [#allocation4], 1 }

</bundles_post_ra>
